<compile_context>
chip_gen: v6e
topology: v6e:2x2x1
jax: 0.10.0
libtpu: 0.0.40
codegen_flags: <defaults>
</compile_context>

<pallas_src>
import functools

import jax
import jax.numpy as jnp
from jax import lax
from jax.experimental import pallas as pl
from jax.experimental.pallas import tpu as pltpu


# ---------------------------------------------------------------------------
# Kernel
# ---------------------------------------------------------------------------
def _fused_attn_kernel(x_ref, kt_ref, v_ref, wq_ref, wo_ref, bo_ref, o_ref,
                       q_scr, m_scr, l_scr, acc_scr, *, n_heads, d_head):
    # x_ref:   (1, tq, d_model)   bf16 query-token tile for batch b
    # kt_ref:  (1, d_attn, tkv)   bf16 pre-projected, pre-transposed K tile
    # v_ref:   (1, tkv, d_attn)   bf16 pre-projected V tile
    # wq_ref:  (d_model, d_attn)  bf16 to_q^T with 1/sqrt(d_head) folded in
    # wo_ref:  (d_attn, d_model)  bf16 to_out^T
    # bo_ref:  (1, d_model)       f32 to_out bias
    # o_ref:   (1, tq, d_model)   output tile (lane-dense store)
    # scratch: q_scr (tq, d_attn) bf16, m_scr/l_scr (n_heads, tq, 1) f32,
    #          acc_scr (tq, d_attn) f32
    kv = pl.program_id(2)
    kv_last = kv == pl.num_programs(2) - 1

    @pl.when(kv == 0)
    def _init():
        # Query projection for this q-tile (scale already folded into wq on
        # the host); kept resident (bf16) across the kv loop.
        q = jnp.dot(x_ref[0], wq_ref[...], preferred_element_type=jnp.float32)
        q_scr[...] = q.astype(q_scr.dtype)
        m_scr[...] = jnp.full(m_scr.shape, -jnp.inf, m_scr.dtype)
        l_scr[...] = jnp.zeros(l_scr.shape, l_scr.dtype)
        acc_scr[...] = jnp.zeros(acc_scr.shape, acc_scr.dtype)

    # Online-softmax (flash) update, one head at a time (statically unrolled).
    # Softmax / alpha math stays in f32 (v5e has no bf16 VPU/EUP path).
    for h in range(n_heads):
        sl = slice(h * d_head, (h + 1) * d_head)
        q_h = q_scr[:, sl]                     # (tq, d_head)  bf16
        k_h = kt_ref[0, sl, :]                 # (d_head, tkv) bf16, no transpose
        v_h = v_ref[0, :, sl]                  # (tkv, d_head) bf16
        s = jnp.dot(q_h, k_h, preferred_element_type=jnp.float32)  # (tq, tkv) f32

        m_prev = m_scr[h]                                      # (tq, 1)
        m_new = jnp.maximum(m_prev, jnp.max(s, axis=-1, keepdims=True))
        alpha = jnp.exp(m_prev - m_new)
        p = jnp.exp(s - m_new)                                 # f32
        l_scr[h] = alpha * l_scr[h] + jnp.sum(p, axis=-1, keepdims=True)
        pv = jnp.dot(p.astype(jnp.bfloat16), v_h,              # bf16 MXU, f32 acc
                     preferred_element_type=jnp.float32)
        acc_scr[:, sl] = alpha * acc_scr[:, sl] + pv
        m_scr[h] = m_new

    @pl.when(kv_last)
    def _finalize():
        # Exact per-head normalization (no approx reciprocal), then a single
        # output projection with K = d_attn (fills the MXU), plus bias.
        for h in range(n_heads):
            sl = slice(h * d_head, (h + 1) * d_head)
            acc_scr[:, sl] = acc_scr[:, sl] / l_scr[h]
        out = jnp.dot(acc_scr[...].astype(jnp.bfloat16), wo_ref[...],
                      preferred_element_type=jnp.float32)
        o_ref[0] = (out + bo_ref[...]).astype(o_ref.dtype)


# ---------------------------------------------------------------------------
# Host-side helpers
# ---------------------------------------------------------------------------
def _pick_q_tile(dim, target):
    """Largest multiple-of-16 divisor of `dim` that is <= target (else full)."""
    if dim <= target:
        return dim
    for t in range(min(target, dim), 15, -1):
        if dim % t == 0 and t % 16 == 0:
            return t
    return dim


def _pick_kv_tile(dim, target):
    """Largest multiple-of-128 divisor of `dim` that is <= target (else full).

    The kv tile lands in the lane dim of the transposed K block, so it must
    be a multiple of 128 (or the full Skv)."""
    if dim <= target:
        return dim
    t = (min(target, dim) // 128) * 128
    while t >= 128:
        if dim % t == 0:
            return t
        t -= 128
    return dim


def _prepare_inputs(x, cond, params, n_heads, d_head):
    """Shared preprocessing: bf16 casts, weight transposes/scale folding and
    the one-time K/V projections (plain XLA GEMMs, f32 accumulate)."""
    if cond is None:
        cond = x
    d_attn = n_heads * d_head
    scale = d_head ** (-0.5)

    wq, wk, wv, wo = params["wq"], params["wk"], params["wv"], params["wo"]
    assert wq.shape == (d_attn, x.shape[-1])
    assert wk.shape == (d_attn, cond.shape[-1])
    assert wv.shape == (d_attn, cond.shape[-1])
    assert wo.shape == (x.shape[-1], d_attn)

    wq_t = (wq.T.astype(jnp.float32) * scale).astype(jnp.bfloat16)  # (d_model, d_attn)
    wk_t = wk.T.astype(jnp.bfloat16)                                # (d_cond, d_attn)
    wv_t = wv.T.astype(jnp.bfloat16)                                # (d_cond, d_attn)
    wo_t = wo.T.astype(jnp.bfloat16)                                # (d_attn, d_model)
    bo = params["bo"].astype(jnp.float32).reshape(1, -1)

    cond_b = cond.astype(jnp.bfloat16)
    k_proj = jnp.einsum("bsc,ca->bsa", cond_b, wk_t,
                        preferred_element_type=jnp.float32).astype(jnp.bfloat16)
    v_proj = jnp.einsum("bsc,ca->bsa", cond_b, wv_t,
                        preferred_element_type=jnp.float32).astype(jnp.bfloat16)
    k_t = jnp.swapaxes(k_proj, 1, 2)                                # (B, d_attn, Skv)
    x_b = x.astype(jnp.bfloat16)
    return x_b, k_t, v_proj, wq_t, wo_t, bo


def cross_attention_pallas(x, cond, params, *, n_heads, d_head,
                           q_tile_target=512, kv_tile_target=512):
    """Pallas implementation of CrossAttention.forward."""
    B, Sq, d_model = x.shape
    d_attn = n_heads * d_head

    x_b, k_t, v_proj, wq_t, wo_t, bo = _prepare_inputs(x, cond, params,
                                                       n_heads, d_head)
    Skv = v_proj.shape[1]

    tq = _pick_q_tile(Sq, q_tile_target)
    tkv = _pick_kv_tile(Skv, kv_tile_target)
    nq = Sq // tq
    nkv = Skv // tkv

    kernel = functools.partial(_fused_attn_kernel,
                               n_heads=n_heads, d_head=d_head)

    # Per-generation VMEM budget (v5e/v6e 128 MiB, v7x 64 MiB physical).
    try:
        vmem_cap = pltpu.get_tpu_info().vmem_capacity_bytes
    except Exception:
        vmem_cap = 64 * 1024 * 1024
    vmem_limit = int(min(vmem_cap * 3 // 4, 112 * 1024 * 1024))

    # Advisory cost estimate matching what the kernel actually executes.
    flops = int(2 * B * Sq * d_model * d_attn            # Q projection
                + 4 * B * n_heads * Sq * Skv * d_head    # QK^T and PV
                + 2 * B * Sq * d_attn * d_model)         # output projection
    transcendentals = int(B * n_heads * Sq * Skv)        # exp in softmax
    bytes_accessed = int(
        2 * B * Sq * d_model                      # x (bf16), once per q-tile
        + 2 * (2 * B * nq * Skv * d_attn)         # K^T and V (bf16), re-read per q-tile
        + 2 * (d_model * d_attn + d_attn * d_model)  # resident weights, once
        + 4 * d_model                             # bias
        + 4 * B * Sq * d_model)                   # output (f32)

    return pl.pallas_call(
        kernel,
        out_shape=jax.ShapeDtypeStruct((B, Sq, d_model), x.dtype),
        grid_spec=pltpu.PrefetchScalarGridSpec(
            num_scalar_prefetch=0,
            grid=(B, nq, nkv),
            in_specs=[
                pl.BlockSpec((1, tq, d_model), lambda b, qi, kv: (b, qi, 0)),
                pl.BlockSpec((1, d_attn, tkv), lambda b, qi, kv: (b, 0, kv)),
                pl.BlockSpec((1, tkv, d_attn), lambda b, qi, kv: (b, kv, 0)),
                # Weights resident: constant block index -> DMA'd exactly once.
                pl.BlockSpec((d_model, d_attn), lambda b, qi, kv: (0, 0)),
                pl.BlockSpec((d_attn, d_model), lambda b, qi, kv: (0, 0)),
                pl.BlockSpec((1, d_model), lambda b, qi, kv: (0, 0)),
            ],
            out_specs=pl.BlockSpec((1, tq, d_model),
                                   lambda b, qi, kv: (b, qi, 0)),
            scratch_shapes=[
                pltpu.VMEM((tq, d_attn), jnp.bfloat16),       # q_scr
                pltpu.VMEM((n_heads, tq, 1), jnp.float32),    # m_scr (running max)
                pltpu.VMEM((n_heads, tq, 1), jnp.float32),    # l_scr (running sum)
                pltpu.VMEM((tq, d_attn), jnp.float32),        # acc_scr (PV accum)
            ],
        ),
        compiler_params=pltpu.CompilerParams(
            dimension_semantics=("parallel", "parallel", "arbitrary"),
            vmem_limit_bytes=vmem_limit,
        ),
        cost_estimate=pl.CostEstimate(
            flops=flops,
            transcendentals=transcendentals,
            bytes_accessed=bytes_accessed,
        ),
    )(x_b, k_t, v_proj, wq_t, wo_t, bo)


# ---------------------------------------------------------------------------
# References
# ---------------------------------------------------------------------------
def cross_attention_ref(x, cond, params, *, n_heads, d_head):
    """Pure-f32 reference mirroring the PyTorch module exactly."""
    if cond is None:
        cond = x
    hp = lax.Precision.HIGHEST
    scale = d_head ** (-0.5)
    q = jnp.einsum("bsd,ad->bsa", x, params["wq"], precision=hp)
    k = jnp.einsum("bsc,ac->bsa", cond, params["wk"], precision=hp)
    v = jnp.einsum("bsc,ac->bsa", cond, params["wv"], precision=hp)
    B, Sq, _ = q.shape
    Skv = k.shape[1]
    q = q.reshape(B, Sq, n_heads, d_head)
    k = k.reshape(B, Skv, n_heads, d_head)
    v = v.reshape(B, Skv, n_heads, d_head)
    attn = jnp.einsum("bihd,bjhd->bhij", q, k, precision=hp) * scale
    attn = jax.nn.softmax(attn, axis=-1)
    out = jnp.einsum("bhij,bjhd->bihd", attn, v, precision=hp)
    out = out.reshape(B, Sq, n_heads * d_head)
    return jnp.einsum("bsa,da->bsd", out, params["wo"], precision=hp) + params["bo"]


def cross_attention_matched_ref(x, cond, params, *, n_heads, d_head):
    """Reference with the SAME bf16 matmul operands / f32 accumulation as the
    kernel (for a tight numerical check of the kernel structure)."""
    x_b, k_t, v_proj, wq_t, wo_t, bo = _prepare_inputs(x, cond, params,
                                                       n_heads, d_head)
    q = jnp.einsum("bsd,da->bsa", x_b, wq_t,
                   preferred_element_type=jnp.float32).astype(jnp.bfloat16)
    outs = []
    for h in range(n_heads):
        sl = slice(h * d_head, (h + 1) * d_head)
        s = jnp.einsum("bsd,bdk->bsk", q[..., sl], k_t[:, sl, :],
                       preferred_element_type=jnp.float32)
        m = jnp.max(s, axis=-1, keepdims=True)
        p = jnp.exp(s - m)
        l = jnp.sum(p, axis=-1, keepdims=True)
        oh = jnp.einsum("bsk,bkd->bsd", p.astype(jnp.bfloat16), v_proj[..., sl],
                        preferred_element_type=jnp.float32) / l
        outs.append(oh)
    o = jnp.concatenate(outs, axis=-1)
    return jnp.einsum("bsa,ad->bsd", o.astype(jnp.bfloat16), wo_t,
                      preferred_element_type=jnp.float32) + bo


# ---------------------------------------------------------------------------
# Demo / self-test
# ---------------------------------------------------------------------------
if __name__ == "__main__":
    # Small shapes consistent with the module's forward (cross-attention on a
    # flattened latent).  Tile targets picked so the demo exercises every
    # accumulation path: 2 q-tiles and 2 kv-tiles per batch element.
    B = 2
    Sq = 256        # height * width flattened
    Skv = 256       # conditional tokens
    d_model = 128
    d_cond = 96
    n_heads = 4
    d_head = 64
    d_attn = n_heads * d_head

    key = jax.random.PRNGKey(0)
    kx, kc, k1, k2, k3, k4, k5 = jax.random.split(key, 7)

    x = jax.random.normal(kx, (B, Sq, d_model), dtype=jnp.float32)
    cond = jax.random.normal(kc, (B, Skv, d_cond), dtype=jnp.float32)

    # Deterministic synthetic parameters (PyTorch Linear convention: (out, in)).
    params = {
        "wq": jax.random.normal(k1, (d_attn, d_model), dtype=jnp.float32) * 0.1,
        "wk": jax.random.normal(k2, (d_attn, d_cond), dtype=jnp.float32) * 0.1,
        "wv": jax.random.normal(k3, (d_attn, d_cond), dtype=jnp.float32) * 0.1,
        "wo": jax.random.normal(k4, (d_model, d_attn), dtype=jnp.float32) * 0.1,
        "bo": jax.random.normal(k5, (d_model,), dtype=jnp.float32) * 0.1,
    }

    out = cross_attention_pallas(x, cond, params, n_heads=n_heads, d_head=d_head,
                                 q_tile_target=128, kv_tile_target=128)
    out = jax.block_until_ready(out)
    assert out.shape == (B, Sq, d_model)

    # Tight check against a precision-matched (bf16-MXU, f32-accumulate) reference.
    ref_m = cross_attention_matched_ref(x, cond, params,
                                        n_heads=n_heads, d_head=d_head)
    err_m = float(jnp.max(jnp.abs(out - ref_m)))
    assert jnp.allclose(out, ref_m, atol=5e-3, rtol=1e-2), (
        f"mismatch vs matched-precision reference, max abs err {err_m}")

    # Loose sanity check against the pure-f32 module reference (bf16 MXU
    # operands are a deliberate performance choice).
    ref_f = cross_attention_ref(x, cond, params, n_heads=n_heads, d_head=d_head)
    err_f = float(jnp.max(jnp.abs(out - ref_f)))
    assert jnp.allclose(out, ref_f, atol=5e-2, rtol=5e-2), (
        f"mismatch vs f32 reference, max abs err {err_f}")

    print("KERNEL_OK")
</pallas_src>

<mosaic_0001>
module attributes {stable_mosaic.version = 11 : i64} {
  func.func @_fused_attn_kernel(%arg0: i32, %arg1: i32, %arg2: i32, %arg3: memref<1x128x128xbf16, #tpu.memory_space<vmem>>, %arg4: memref<1x256x128xbf16, #tpu.memory_space<vmem>>, %arg5: memref<1x128x256xbf16, #tpu.memory_space<vmem>>, %arg6: memref<128x256xbf16, #tpu.memory_space<vmem>>, %arg7: memref<256x128xbf16, #tpu.memory_space<vmem>>, %arg8: memref<1x128xf32, #tpu.memory_space<vmem>>, %arg9: memref<1x128x128xf32, #tpu.memory_space<vmem>>, %arg10: memref<128x256xbf16, #tpu.memory_space<vmem>>, %arg11: memref<4x128x1xf32, #tpu.memory_space<vmem>>, %arg12: memref<4x128x1xf32, #tpu.memory_space<vmem>>, %arg13: memref<128x256xf32, #tpu.memory_space<vmem>>) attributes {dimension_semantics = [#tpu.dimension_semantics<parallel>, #tpu.dimension_semantics<parallel>, #tpu.dimension_semantics<arbitrary>], iteration_bounds = array<i64: 2, 2, 2>, scalar_prefetch = 0 : i64, scratch_operands = 4 : i64, tpu.core_type = #tpu.core_type<tc>, window_params = [{transform_indices = @transform_0, window_bounds = array<i64: 1, 128, 128>}, {transform_indices = @transform_1, window_bounds = array<i64: 1, 256, 128>}, {transform_indices = @transform_2, window_bounds = array<i64: 1, 128, 256>}, {pipeline_mode = #tpu.pipeline_mode<synchronous>, transform_indices = @transform_3, window_bounds = array<i64: 128, 256>}, {pipeline_mode = #tpu.pipeline_mode<synchronous>, transform_indices = @transform_4, window_bounds = array<i64: 256, 128>}, {pipeline_mode = #tpu.pipeline_mode<synchronous>, transform_indices = @transform_5, window_bounds = array<i64: 1, 128>}, {transform_indices = @transform_6, window_bounds = array<i64: 1, 128, 128>}]} {
    %c1_i32 = arith.constant 1 : i32
    %0 = arith.cmpi eq, %arg2, %c1_i32 : i32
    %c0_i32 = arith.constant 0 : i32
    %1 = arith.cmpi eq, %arg2, %c0_i32 : i32
    %2 = arith.extui %1 : i1 to i32
    %c0_i32_0 = arith.constant 0 : i32
    %3 = arith.cmpi ne, %2, %c0_i32_0 : i32
    scf.if %3 {
      %c0_106 = arith.constant 0 : index
      %c0_107 = arith.constant 0 : index
      %c0_108 = arith.constant 0 : index
      %146 = vector.load %arg3[%c0_106, %c0_107, %c0_108] : memref<1x128x128xbf16, #tpu.memory_space<vmem>>, vector<1x128x128xbf16>
      %147 = vector.shape_cast %146 : vector<1x128x128xbf16> to vector<128x128xbf16>
      %c0_109 = arith.constant 0 : index
      %c0_110 = arith.constant 0 : index
      %148 = vector.load %arg6[%c0_109, %c0_110] : memref<128x256xbf16, #tpu.memory_space<vmem>>, vector<128x256xbf16>
      %cst_111 = arith.constant dense<0.000000e+00> : vector<128x256xf32>
      %149 = tpu.matmul %147, %148, %cst_111 {dimension_numbers = #tpu.dot_dimension_numbers<[1], [0], [0], [1], [0, 0, 1, 1], [], []>} : vector<128x128xbf16>, vector<128x256xbf16>, vector<128x256xf32> -> vector<128x256xf32>
      %150 = arith.truncf %149 : vector<128x256xf32> to vector<128x256xbf16>
      %c0_112 = arith.constant 0 : index
      %c0_113 = arith.constant 0 : index
      %151 = vector.load %arg10[%c0_112, %c0_113] : memref<128x256xbf16, #tpu.memory_space<vmem>>, vector<128x256xbf16>
      tpu.vector_store %arg10[%c0_112, %c0_113], %150 {strides = array<i32>} : memref<128x256xbf16, #tpu.memory_space<vmem>>, vector<128x256xbf16>,
      %cst_114 = arith.constant 0xFF800000 : f32
      %152 = vector.broadcast %cst_114 : f32 to vector<4x128x1xf32>
      %c0_115 = arith.constant 0 : index
      %c0_116 = arith.constant 0 : index
      %c0_117 = arith.constant 0 : index
      %153 = vector.load %arg11[%c0_115, %c0_116, %c0_117] : memref<4x128x1xf32, #tpu.memory_space<vmem>>, vector<4x128x1xf32>
      tpu.vector_store %arg11[%c0_115, %c0_116, %c0_117], %152 {strides = array<i32>} : memref<4x128x1xf32, #tpu.memory_space<vmem>>, vector<4x128x1xf32>,
      %cst_118 = arith.constant 0.000000e+00 : f32
      %154 = vector.broadcast %cst_118 : f32 to vector<4x128x1xf32>
      %c0_119 = arith.constant 0 : index
      %c0_120 = arith.constant 0 : index
      %c0_121 = arith.constant 0 : index
      %155 = vector.load %arg12[%c0_119, %c0_120, %c0_121] : memref<4x128x1xf32, #tpu.memory_space<vmem>>, vector<4x128x1xf32>
      tpu.vector_store %arg12[%c0_119, %c0_120, %c0_121], %154 {strides = array<i32>} : memref<4x128x1xf32, #tpu.memory_space<vmem>>, vector<4x128x1xf32>,
      %cst_122 = arith.constant 0.000000e+00 : f32
      %156 = vector.broadcast %cst_122 : f32 to vector<128x256xf32>
      %c0_123 = arith.constant 0 : index
      %c0_124 = arith.constant 0 : index
      %157 = vector.load %arg13[%c0_123, %c0_124] : memref<128x256xf32, #tpu.memory_space<vmem>>, vector<128x256xf32>
      tpu.vector_store %arg13[%c0_123, %c0_124], %156 {strides = array<i32>} : memref<128x256xf32, #tpu.memory_space<vmem>>, vector<128x256xf32>,
    } else {
    }
    %c0 = arith.constant 0 : index
    %c0_1 = arith.constant 0 : index
    %4 = vector.load %arg10[%c0, %c0_1] : memref<128x256xbf16, #tpu.memory_space<vmem>>, vector<128x64xbf16>
    %c0_2 = arith.constant 0 : index
    %c0_3 = arith.constant 0 : index
    %c0_4 = arith.constant 0 : index
    %5 = vector.load %arg4[%c0_2, %c0_3, %c0_4] : memref<1x256x128xbf16, #tpu.memory_space<vmem>>, vector<1x64x128xbf16>
    %6 = vector.shape_cast %5 : vector<1x64x128xbf16> to vector<64x128xbf16>
    %c0_5 = arith.constant 0 : index
    %c0_6 = arith.constant 0 : index
    %c0_7 = arith.constant 0 : index
    %7 = vector.load %arg5[%c0_5, %c0_6, %c0_7] : memref<1x128x256xbf16, #tpu.memory_space<vmem>>, vector<1x128x64xbf16>
    %8 = vector.shape_cast %7 : vector<1x128x64xbf16> to vector<128x64xbf16>
    %cst = arith.constant dense<0.000000e+00> : vector<128x128xf32>
    %9 = tpu.matmul %4, %6, %cst {dimension_numbers = #tpu.dot_dimension_numbers<[1], [0], [0], [1], [0, 0, 1, 1], [], []>} : vector<128x64xbf16>, vector<64x128xbf16>, vector<128x128xf32> -> vector<128x128xf32>
    %c0_8 = arith.constant 0 : index
    %c0_9 = arith.constant 0 : index
    %c0_10 = arith.constant 0 : index
    %10 = vector.load %arg11[%c0_8, %c0_9, %c0_10] : memref<4x128x1xf32, #tpu.memory_space<vmem>>, vector<1x128x1xf32>
    %11 = vector.shape_cast %10 : vector<1x128x1xf32> to vector<128x1xf32>
    %cst_11 = arith.constant dense<0xFF800000> : vector<128xf32>
    %12 = vector.multi_reduction <maximumf>, %9, %cst_11 [1] : vector<128x128xf32> to vector<128xf32>
    %13 = vector.shape_cast %12 : vector<128xf32> to vector<128x1xf32>
    %14 = arith.maximumf %11, %13 : vector<128x1xf32>
    %15 = arith.subf %11, %14 : vector<128x1xf32>
    %16 = math.exp %15 : vector<128x1xf32>
    %17 = vector.broadcast %14 : vector<128x1xf32> to vector<128x128xf32>
    %18 = arith.subf %9, %17 : vector<128x128xf32>
    %19 = math.exp %18 : vector<128x128xf32>
    %c0_12 = arith.constant 0 : index
    %c0_13 = arith.constant 0 : index
    %c0_14 = arith.constant 0 : index
    %20 = vector.load %arg12[%c0_12, %c0_13, %c0_14] : memref<4x128x1xf32, #tpu.memory_space<vmem>>, vector<1x128x1xf32>
    %21 = vector.shape_cast %20 : vector<1x128x1xf32> to vector<128x1xf32>
    %22 = arith.mulf %16, %21 : vector<128x1xf32>
    %cst_15 = arith.constant dense<0.000000e+00> : vector<128xf32>
    %23 = vector.multi_reduction <add>, %19, %cst_15 [1] : vector<128x128xf32> to vector<128xf32>
    %24 = vector.shape_cast %23 : vector<128xf32> to vector<128x1xf32>
    %25 = arith.addf %22, %24 : vector<128x1xf32>
    %c0_16 = arith.constant 0 : index
    %c0_17 = arith.constant 0 : index
    %c0_18 = arith.constant 0 : index
    %26 = vector.load %arg12[%c0_16, %c0_17, %c0_18] : memref<4x128x1xf32, #tpu.memory_space<vmem>>, vector<1x128x1xf32>
    %27 = vector.shape_cast %26 : vector<1x128x1xf32> to vector<128x1xf32>
    %28 = vector.shape_cast %25 : vector<128x1xf32> to vector<1x128x1xf32>
    tpu.vector_store %arg12[%c0_16, %c0_17, %c0_18], %28 {strides = array<i32>} : memref<4x128x1xf32, #tpu.memory_space<vmem>>, vector<1x128x1xf32>,
    %29 = arith.truncf %19 : vector<128x128xf32> to vector<128x128xbf16>
    %cst_19 = arith.constant dense<0.000000e+00> : vector<128x64xf32>
    %30 = tpu.matmul %29, %8, %cst_19 {dimension_numbers = #tpu.dot_dimension_numbers<[1], [0], [0], [1], [0, 0, 1, 1], [], []>} : vector<128x128xbf16>, vector<128x64xbf16>, vector<128x64xf32> -> vector<128x64xf32>
    %c0_20 = arith.constant 0 : index
    %c0_21 = arith.constant 0 : index
    %31 = vector.load %arg13[%c0_20, %c0_21] : memref<128x256xf32, #tpu.memory_space<vmem>>, vector<128x64xf32>
    %32 = vector.broadcast %16 : vector<128x1xf32> to vector<128x64xf32>
    %33 = arith.mulf %32, %31 : vector<128x64xf32>
    %34 = arith.addf %33, %30 : vector<128x64xf32>
    %c0_22 = arith.constant 0 : index
    %c0_23 = arith.constant 0 : index
    %35 = vector.load %arg13[%c0_22, %c0_23] : memref<128x256xf32, #tpu.memory_space<vmem>>, vector<128x64xf32>
    tpu.vector_store %arg13[%c0_22, %c0_23], %34 {strides = array<i32>} : memref<128x256xf32, #tpu.memory_space<vmem>>, vector<128x64xf32>,
    %c0_24 = arith.constant 0 : index
    %c0_25 = arith.constant 0 : index
    %c0_26 = arith.constant 0 : index
    %36 = vector.load %arg11[%c0_24, %c0_25, %c0_26] : memref<4x128x1xf32, #tpu.memory_space<vmem>>, vector<1x128x1xf32>
    %37 = vector.shape_cast %36 : vector<1x128x1xf32> to vector<128x1xf32>
    %38 = vector.shape_cast %14 : vector<128x1xf32> to vector<1x128x1xf32>
    tpu.vector_store %arg11[%c0_24, %c0_25, %c0_26], %38 {strides = array<i32>} : memref<4x128x1xf32, #tpu.memory_space<vmem>>, vector<1x128x1xf32>,
    %c0_27 = arith.constant 0 : index
    %c64 = arith.constant 64 : index
    %39 = vector.load %arg10[%c0_27, %c64] : memref<128x256xbf16, #tpu.memory_space<vmem>>, vector<128x64xbf16>
    %c0_28 = arith.constant 0 : index
    %c64_29 = arith.constant 64 : index
    %c0_30 = arith.constant 0 : index
    %40 = vector.load %arg4[%c0_28, %c64_29, %c0_30] : memref<1x256x128xbf16, #tpu.memory_space<vmem>>, vector<1x64x128xbf16>
    %41 = vector.shape_cast %40 : vector<1x64x128xbf16> to vector<64x128xbf16>
    %c0_31 = arith.constant 0 : index
    %c0_32 = arith.constant 0 : index
    %c64_33 = arith.constant 64 : index
    %42 = vector.load %arg5[%c0_31, %c0_32, %c64_33] : memref<1x128x256xbf16, #tpu.memory_space<vmem>>, vector<1x128x64xbf16>
    %43 = vector.shape_cast %42 : vector<1x128x64xbf16> to vector<128x64xbf16>
    %cst_34 = arith.constant dense<0.000000e+00> : vector<128x128xf32>
    %44 = tpu.matmul %39, %41, %cst_34 {dimension_numbers = #tpu.dot_dimension_numbers<[1], [0], [0], [1], [0, 0, 1, 1], [], []>} : vector<128x64xbf16>, vector<64x128xbf16>, vector<128x128xf32> -> vector<128x128xf32>
    %c1 = arith.constant 1 : index
    %c0_35 = arith.constant 0 : index
    %c0_36 = arith.constant 0 : index
    %45 = vector.load %arg11[%c1, %c0_35, %c0_36] : memref<4x128x1xf32, #tpu.memory_space<vmem>>, vector<1x128x1xf32>
    %46 = vector.shape_cast %45 : vector<1x128x1xf32> to vector<128x1xf32>
    %cst_37 = arith.constant dense<0xFF800000> : vector<128xf32>
    %47 = vector.multi_reduction <maximumf>, %44, %cst_37 [1] : vector<128x128xf32> to vector<128xf32>
    %48 = vector.shape_cast %47 : vector<128xf32> to vector<128x1xf32>
    %49 = arith.maximumf %46, %48 : vector<128x1xf32>
    %50 = arith.subf %46, %49 : vector<128x1xf32>
    %51 = math.exp %50 : vector<128x1xf32>
    %52 = vector.broadcast %49 : vector<128x1xf32> to vector<128x128xf32>
    %53 = arith.subf %44, %52 : vector<128x128xf32>
    %54 = math.exp %53 : vector<128x128xf32>
    %c1_38 = arith.constant 1 : index
    %c0_39 = arith.constant 0 : index
    %c0_40 = arith.constant 0 : index
    %55 = vector.load %arg12[%c1_38, %c0_39, %c0_40] : memref<4x128x1xf32, #tpu.memory_space<vmem>>, vector<1x128x1xf32>
    %56 = vector.shape_cast %55 : vector<1x128x1xf32> to vector<128x1xf32>
    %57 = arith.mulf %51, %56 : vector<128x1xf32>
    %cst_41 = arith.constant dense<0.000000e+00> : vector<128xf32>
    %58 = vector.multi_reduction <add>, %54, %cst_41 [1] : vector<128x128xf32> to vector<128xf32>
    %59 = vector.shape_cast %58 : vector<128xf32> to vector<128x1xf32>
    %60 = arith.addf %57, %59 : vector<128x1xf32>
    %c1_42 = arith.constant 1 : index
    %c0_43 = arith.constant 0 : index
    %c0_44 = arith.constant 0 : index
    %61 = vector.load %arg12[%c1_42, %c0_43, %c0_44] : memref<4x128x1xf32, #tpu.memory_space<vmem>>, vector<1x128x1xf32>
    %62 = vector.shape_cast %61 : vector<1x128x1xf32> to vector<128x1xf32>
    %63 = vector.shape_cast %60 : vector<128x1xf32> to vector<1x128x1xf32>
    tpu.vector_store %arg12[%c1_42, %c0_43, %c0_44], %63 {strides = array<i32>} : memref<4x128x1xf32, #tpu.memory_space<vmem>>, vector<1x128x1xf32>,
    %64 = arith.truncf %54 : vector<128x128xf32> to vector<128x128xbf16>
    %cst_45 = arith.constant dense<0.000000e+00> : vector<128x64xf32>
    %65 = tpu.matmul %64, %43, %cst_45 {dimension_numbers = #tpu.dot_dimension_numbers<[1], [0], [0], [1], [0, 0, 1, 1], [], []>} : vector<128x128xbf16>, vector<128x64xbf16>, vector<128x64xf32> -> vector<128x64xf32>
    %c0_46 = arith.constant 0 : index
    %c64_47 = arith.constant 64 : index
    %66 = vector.load %arg13[%c0_46, %c64_47] : memref<128x256xf32, #tpu.memory_space<vmem>>, vector<128x64xf32>
    %67 = vector.broadcast %51 : vector<128x1xf32> to vector<128x64xf32>
    %68 = arith.mulf %67, %66 : vector<128x64xf32>
    %69 = arith.addf %68, %65 : vector<128x64xf32>
    %c0_48 = arith.constant 0 : index
    %c64_49 = arith.constant 64 : index
    %70 = vector.load %arg13[%c0_48, %c64_49] : memref<128x256xf32, #tpu.memory_space<vmem>>, vector<128x64xf32>
    tpu.vector_store %arg13[%c0_48, %c64_49], %69 {strides = array<i32>} : memref<128x256xf32, #tpu.memory_space<vmem>>, vector<128x64xf32>,
    %c1_50 = arith.constant 1 : index
    %c0_51 = arith.constant 0 : index
    %c0_52 = arith.constant 0 : index
    %71 = vector.load %arg11[%c1_50, %c0_51, %c0_52] : memref<4x128x1xf32, #tpu.memory_space<vmem>>, vector<1x128x1xf32>
    %72 = vector.shape_cast %71 : vector<1x128x1xf32> to vector<128x1xf32>
    %73 = vector.shape_cast %49 : vector<128x1xf32> to vector<1x128x1xf32>
    tpu.vector_store %arg11[%c1_50, %c0_51, %c0_52], %73 {strides = array<i32>} : memref<4x128x1xf32, #tpu.memory_space<vmem>>, vector<1x128x1xf32>,
    %c0_53 = arith.constant 0 : index
    %c128 = arith.constant 128 : index
    %74 = vector.load %arg10[%c0_53, %c128] : memref<128x256xbf16, #tpu.memory_space<vmem>>, vector<128x64xbf16>
    %c0_54 = arith.constant 0 : index
    %c128_55 = arith.constant 128 : index
    %c0_56 = arith.constant 0 : index
    %75 = vector.load %arg4[%c0_54, %c128_55, %c0_56] : memref<1x256x128xbf16, #tpu.memory_space<vmem>>, vector<1x64x128xbf16>
    %76 = vector.shape_cast %75 : vector<1x64x128xbf16> to vector<64x128xbf16>
    %c0_57 = arith.constant 0 : index
    %c0_58 = arith.constant 0 : index
    %c128_59 = arith.constant 128 : index
    %77 = vector.load %arg5[%c0_57, %c0_58, %c128_59] : memref<1x128x256xbf16, #tpu.memory_space<vmem>>, vector<1x128x64xbf16>
    %78 = vector.shape_cast %77 : vector<1x128x64xbf16> to vector<128x64xbf16>
    %cst_60 = arith.constant dense<0.000000e+00> : vector<128x128xf32>
    %79 = tpu.matmul %74, %76, %cst_60 {dimension_numbers = #tpu.dot_dimension_numbers<[1], [0], [0], [1], [0, 0, 1, 1], [], []>} : vector<128x64xbf16>, vector<64x128xbf16>, vector<128x128xf32> -> vector<128x128xf32>
    %c2 = arith.constant 2 : index
    %c0_61 = arith.constant 0 : index
    %c0_62 = arith.constant 0 : index
    %80 = vector.load %arg11[%c2, %c0_61, %c0_62] : memref<4x128x1xf32, #tpu.memory_space<vmem>>, vector<1x128x1xf32>
    %81 = vector.shape_cast %80 : vector<1x128x1xf32> to vector<128x1xf32>
    %cst_63 = arith.constant dense<0xFF800000> : vector<128xf32>
    %82 = vector.multi_reduction <maximumf>, %79, %cst_63 [1] : vector<128x128xf32> to vector<128xf32>
    %83 = vector.shape_cast %82 : vector<128xf32> to vector<128x1xf32>
    %84 = arith.maximumf %81, %83 : vector<128x1xf32>
    %85 = arith.subf %81, %84 : vector<128x1xf32>
    %86 = math.exp %85 : vector<128x1xf32>
    %87 = vector.broadcast %84 : vector<128x1xf32> to vector<128x128xf32>
    %88 = arith.subf %79, %87 : vector<128x128xf32>
    %89 = math.exp %88 : vector<128x128xf32>
    %c2_64 = arith.constant 2 : index
    %c0_65 = arith.constant 0 : index
    %c0_66 = arith.constant 0 : index
    %90 = vector.load %arg12[%c2_64, %c0_65, %c0_66] : memref<4x128x1xf32, #tpu.memory_space<vmem>>, vector<1x128x1xf32>
    %91 = vector.shape_cast %90 : vector<1x128x1xf32> to vector<128x1xf32>
    %92 = arith.mulf %86, %91 : vector<128x1xf32>
    %cst_67 = arith.constant dense<0.000000e+00> : vector<128xf32>
    %93 = vector.multi_reduction <add>, %89, %cst_67 [1] : vector<128x128xf32> to vector<128xf32>
    %94 = vector.shape_cast %93 : vector<128xf32> to vector<128x1xf32>
    %95 = arith.addf %92, %94 : vector<128x1xf32>
    %c2_68 = arith.constant 2 : index
    %c0_69 = arith.constant 0 : index
    %c0_70 = arith.constant 0 : index
    %96 = vector.load %arg12[%c2_68, %c0_69, %c0_70] : memref<4x128x1xf32, #tpu.memory_space<vmem>>, vector<1x128x1xf32>
    %97 = vector.shape_cast %96 : vector<1x128x1xf32> to vector<128x1xf32>
    %98 = vector.shape_cast %95 : vector<128x1xf32> to vector<1x128x1xf32>
    tpu.vector_store %arg12[%c2_68, %c0_69, %c0_70], %98 {strides = array<i32>} : memref<4x128x1xf32, #tpu.memory_space<vmem>>, vector<1x128x1xf32>,
    %99 = arith.truncf %89 : vector<128x128xf32> to vector<128x128xbf16>
    %cst_71 = arith.constant dense<0.000000e+00> : vector<128x64xf32>
    %100 = tpu.matmul %99, %78, %cst_71 {dimension_numbers = #tpu.dot_dimension_numbers<[1], [0], [0], [1], [0, 0, 1, 1], [], []>} : vector<128x128xbf16>, vector<128x64xbf16>, vector<128x64xf32> -> vector<128x64xf32>
    %c0_72 = arith.constant 0 : index
    %c128_73 = arith.constant 128 : index
    %101 = vector.load %arg13[%c0_72, %c128_73] : memref<128x256xf32, #tpu.memory_space<vmem>>, vector<128x64xf32>
    %102 = vector.broadcast %86 : vector<128x1xf32> to vector<128x64xf32>
    %103 = arith.mulf %102, %101 : vector<128x64xf32>
    %104 = arith.addf %103, %100 : vector<128x64xf32>
    %c0_74 = arith.constant 0 : index
    %c128_75 = arith.constant 128 : index
    %105 = vector.load %arg13[%c0_74, %c128_75] : memref<128x256xf32, #tpu.memory_space<vmem>>, vector<128x64xf32>
    tpu.vector_store %arg13[%c0_74, %c128_75], %104 {strides = array<i32>} : memref<128x256xf32, #tpu.memory_space<vmem>>, vector<128x64xf32>,
    %c2_76 = arith.constant 2 : index
    %c0_77 = arith.constant 0 : index
    %c0_78 = arith.constant 0 : index
    %106 = vector.load %arg11[%c2_76, %c0_77, %c0_78] : memref<4x128x1xf32, #tpu.memory_space<vmem>>, vector<1x128x1xf32>
    %107 = vector.shape_cast %106 : vector<1x128x1xf32> to vector<128x1xf32>
    %108 = vector.shape_cast %84 : vector<128x1xf32> to vector<1x128x1xf32>
    tpu.vector_store %arg11[%c2_76, %c0_77, %c0_78], %108 {strides = array<i32>} : memref<4x128x1xf32, #tpu.memory_space<vmem>>, vector<1x128x1xf32>,
    %c0_79 = arith.constant 0 : index
    %c192 = arith.constant 192 : index
    %109 = vector.load %arg10[%c0_79, %c192] : memref<128x256xbf16, #tpu.memory_space<vmem>>, vector<128x64xbf16>
    %c0_80 = arith.constant 0 : index
    %c192_81 = arith.constant 192 : index
    %c0_82 = arith.constant 0 : index
    %110 = vector.load %arg4[%c0_80, %c192_81, %c0_82] : memref<1x256x128xbf16, #tpu.memory_space<vmem>>, vector<1x64x128xbf16>
    %111 = vector.shape_cast %110 : vector<1x64x128xbf16> to vector<64x128xbf16>
    %c0_83 = arith.constant 0 : index
    %c0_84 = arith.constant 0 : index
    %c192_85 = arith.constant 192 : index
    %112 = vector.load %arg5[%c0_83, %c0_84, %c192_85] : memref<1x128x256xbf16, #tpu.memory_space<vmem>>, vector<1x128x64xbf16>
    %113 = vector.shape_cast %112 : vector<1x128x64xbf16> to vector<128x64xbf16>
    %cst_86 = arith.constant dense<0.000000e+00> : vector<128x128xf32>
    %114 = tpu.matmul %109, %111, %cst_86 {dimension_numbers = #tpu.dot_dimension_numbers<[1], [0], [0], [1], [0, 0, 1, 1], [], []>} : vector<128x64xbf16>, vector<64x128xbf16>, vector<128x128xf32> -> vector<128x128xf32>
    %c3 = arith.constant 3 : index
    %c0_87 = arith.constant 0 : index
    %c0_88 = arith.constant 0 : index
    %115 = vector.load %arg11[%c3, %c0_87, %c0_88] : memref<4x128x1xf32, #tpu.memory_space<vmem>>, vector<1x128x1xf32>
    %116 = vector.shape_cast %115 : vector<1x128x1xf32> to vector<128x1xf32>
    %cst_89 = arith.constant dense<0xFF800000> : vector<128xf32>
    %117 = vector.multi_reduction <maximumf>, %114, %cst_89 [1] : vector<128x128xf32> to vector<128xf32>
    %118 = vector.shape_cast %117 : vector<128xf32> to vector<128x1xf32>
    %119 = arith.maximumf %116, %118 : vector<128x1xf32>
    %120 = arith.subf %116, %119 : vector<128x1xf32>
    %121 = math.exp %120 : vector<128x1xf32>
    %122 = vector.broadcast %119 : vector<128x1xf32> to vector<128x128xf32>
    %123 = arith.subf %114, %122 : vector<128x128xf32>
    %124 = math.exp %123 : vector<128x128xf32>
    %c3_90 = arith.constant 3 : index
    %c0_91 = arith.constant 0 : index
    %c0_92 = arith.constant 0 : index
    %125 = vector.load %arg12[%c3_90, %c0_91, %c0_92] : memref<4x128x1xf32, #tpu.memory_space<vmem>>, vector<1x128x1xf32>
    %126 = vector.shape_cast %125 : vector<1x128x1xf32> to vector<128x1xf32>
    %127 = arith.mulf %121, %126 : vector<128x1xf32>
    %cst_93 = arith.constant dense<0.000000e+00> : vector<128xf32>
    %128 = vector.multi_reduction <add>, %124, %cst_93 [1] : vector<128x128xf32> to vector<128xf32>
    %129 = vector.shape_cast %128 : vector<128xf32> to vector<128x1xf32>
    %130 = arith.addf %127, %129 : vector<128x1xf32>
    %c3_94 = arith.constant 3 : index
    %c0_95 = arith.constant 0 : index
    %c0_96 = arith.constant 0 : index
    %131 = vector.load %arg12[%c3_94, %c0_95, %c0_96] : memref<4x128x1xf32, #tpu.memory_space<vmem>>, vector<1x128x1xf32>
    %132 = vector.shape_cast %131 : vector<1x128x1xf32> to vector<128x1xf32>
    %133 = vector.shape_cast %130 : vector<128x1xf32> to vector<1x128x1xf32>
    tpu.vector_store %arg12[%c3_94, %c0_95, %c0_96], %133 {strides = array<i32>} : memref<4x128x1xf32, #tpu.memory_space<vmem>>, vector<1x128x1xf32>,
    %134 = arith.truncf %124 : vector<128x128xf32> to vector<128x128xbf16>
    %cst_97 = arith.constant dense<0.000000e+00> : vector<128x64xf32>
    %135 = tpu.matmul %134, %113, %cst_97 {dimension_numbers = #tpu.dot_dimension_numbers<[1], [0], [0], [1], [0, 0, 1, 1], [], []>} : vector<128x128xbf16>, vector<128x64xbf16>, vector<128x64xf32> -> vector<128x64xf32>
    %c0_98 = arith.constant 0 : index
    %c192_99 = arith.constant 192 : index
    %136 = vector.load %arg13[%c0_98, %c192_99] : memref<128x256xf32, #tpu.memory_space<vmem>>, vector<128x64xf32>
    %137 = vector.broadcast %121 : vector<128x1xf32> to vector<128x64xf32>
    %138 = arith.mulf %137, %136 : vector<128x64xf32>
    %139 = arith.addf %138, %135 : vector<128x64xf32>
    %c0_100 = arith.constant 0 : index
    %c192_101 = arith.constant 192 : index
    %140 = vector.load %arg13[%c0_100, %c192_101] : memref<128x256xf32, #tpu.memory_space<vmem>>, vector<128x64xf32>
    tpu.vector_store %arg13[%c0_100, %c192_101], %139 {strides = array<i32>} : memref<128x256xf32, #tpu.memory_space<vmem>>, vector<128x64xf32>,
    %c3_102 = arith.constant 3 : index
    %c0_103 = arith.constant 0 : index
    %c0_104 = arith.constant 0 : index
    %141 = vector.load %arg11[%c3_102, %c0_103, %c0_104] : memref<4x128x1xf32, #tpu.memory_space<vmem>>, vector<1x128x1xf32>
    %142 = vector.shape_cast %141 : vector<1x128x1xf32> to vector<128x1xf32>
    %143 = vector.shape_cast %119 : vector<128x1xf32> to vector<1x128x1xf32>
    tpu.vector_store %arg11[%c3_102, %c0_103, %c0_104], %143 {strides = array<i32>} : memref<4x128x1xf32, #tpu.memory_space<vmem>>, vector<1x128x1xf32>,
    %144 = arith.extui %0 : i1 to i32
    %c0_i32_105 = arith.constant 0 : i32
    %145 = arith.cmpi ne, %144, %c0_i32_105 : i32
    scf.if %145 {
      %c0_106 = arith.constant 0 : index
      %c0_107 = arith.constant 0 : index
      %146 = vector.load %arg13[%c0_106, %c0_107] : memref<128x256xf32, #tpu.memory_space<vmem>>, vector<128x64xf32>
      %c0_108 = arith.constant 0 : index
      %c0_109 = arith.constant 0 : index
      %c0_110 = arith.constant 0 : index
      %147 = vector.load %arg12[%c0_108, %c0_109, %c0_110] : memref<4x128x1xf32, #tpu.memory_space<vmem>>, vector<1x128x1xf32>
      %148 = vector.shape_cast %147 : vector<1x128x1xf32> to vector<128x1xf32>
      %149 = vector.broadcast %148 : vector<128x1xf32> to vector<128x64xf32>
      %150 = arith.divf %146, %149 : vector<128x64xf32>
      %c0_111 = arith.constant 0 : index
      %c0_112 = arith.constant 0 : index
      %151 = vector.load %arg13[%c0_111, %c0_112] : memref<128x256xf32, #tpu.memory_space<vmem>>, vector<128x64xf32>
      tpu.vector_store %arg13[%c0_111, %c0_112], %150 {strides = array<i32>} : memref<128x256xf32, #tpu.memory_space<vmem>>, vector<128x64xf32>,
      %c0_113 = arith.constant 0 : index
      %c64_114 = arith.constant 64 : index
      %152 = vector.load %arg13[%c0_113, %c64_114] : memref<128x256xf32, #tpu.memory_space<vmem>>, vector<128x64xf32>
      %c1_115 = arith.constant 1 : index
      %c0_116 = arith.constant 0 : index
      %c0_117 = arith.constant 0 : index
      %153 = vector.load %arg12[%c1_115, %c0_116, %c0_117] : memref<4x128x1xf32, #tpu.memory_space<vmem>>, vector<1x128x1xf32>
      %154 = vector.shape_cast %153 : vector<1x128x1xf32> to vector<128x1xf32>
      %155 = vector.broadcast %154 : vector<128x1xf32> to vector<128x64xf32>
      %156 = arith.divf %152, %155 : vector<128x64xf32>
      %c0_118 = arith.constant 0 : index
      %c64_119 = arith.constant 64 : index
      %157 = vector.load %arg13[%c0_118, %c64_119] : memref<128x256xf32, #tpu.memory_space<vmem>>, vector<128x64xf32>
      tpu.vector_store %arg13[%c0_118, %c64_119], %156 {strides = array<i32>} : memref<128x256xf32, #tpu.memory_space<vmem>>, vector<128x64xf32>,
      %c0_120 = arith.constant 0 : index
      %c128_121 = arith.constant 128 : index
      %158 = vector.load %arg13[%c0_120, %c128_121] : memref<128x256xf32, #tpu.memory_space<vmem>>, vector<128x64xf32>
      %c2_122 = arith.constant 2 : index
      %c0_123 = arith.constant 0 : index
      %c0_124 = arith.constant 0 : index
      %159 = vector.load %arg12[%c2_122, %c0_123, %c0_124] : memref<4x128x1xf32, #tpu.memory_space<vmem>>, vector<1x128x1xf32>
      %160 = vector.shape_cast %159 : vector<1x128x1xf32> to vector<128x1xf32>
      %161 = vector.broadcast %160 : vector<128x1xf32> to vector<128x64xf32>
      %162 = arith.divf %158, %161 : vector<128x64xf32>
      %c0_125 = arith.constant 0 : index
      %c128_126 = arith.constant 128 : index
      %163 = vector.load %arg13[%c0_125, %c128_126] : memref<128x256xf32, #tpu.memory_space<vmem>>, vector<128x64xf32>
      tpu.vector_store %arg13[%c0_125, %c128_126], %162 {strides = array<i32>} : memref<128x256xf32, #tpu.memory_space<vmem>>, vector<128x64xf32>,
      %c0_127 = arith.constant 0 : index
      %c192_128 = arith.constant 192 : index
      %164 = vector.load %arg13[%c0_127, %c192_128] : memref<128x256xf32, #tpu.memory_space<vmem>>, vector<128x64xf32>
      %c3_129 = arith.constant 3 : index
      %c0_130 = arith.constant 0 : index
      %c0_131 = arith.constant 0 : index
      %165 = vector.load %arg12[%c3_129, %c0_130, %c0_131] : memref<4x128x1xf32, #tpu.memory_space<vmem>>, vector<1x128x1xf32>
      %166 = vector.shape_cast %165 : vector<1x128x1xf32> to vector<128x1xf32>
      %167 = vector.broadcast %166 : vector<128x1xf32> to vector<128x64xf32>
      %168 = arith.divf %164, %167 : vector<128x64xf32>
      %c0_132 = arith.constant 0 : index
      %c192_133 = arith.constant 192 : index
      %169 = vector.load %arg13[%c0_132, %c192_133] : memref<128x256xf32, #tpu.memory_space<vmem>>, vector<128x64xf32>
      tpu.vector_store %arg13[%c0_132, %c192_133], %168 {strides = array<i32>} : memref<128x256xf32, #tpu.memory_space<vmem>>, vector<128x64xf32>,
      %c0_134 = arith.constant 0 : index
      %c0_135 = arith.constant 0 : index
      %170 = vector.load %arg13[%c0_134, %c0_135] : memref<128x256xf32, #tpu.memory_space<vmem>>, vector<128x256xf32>
      %171 = arith.truncf %170 : vector<128x256xf32> to vector<128x256xbf16>
      %c0_136 = arith.constant 0 : index
      %c0_137 = arith.constant 0 : index
      %172 = vector.load %arg7[%c0_136, %c0_137] : memref<256x128xbf16, #tpu.memory_space<vmem>>, vector<256x128xbf16>
      %cst_138 = arith.constant dense<0.000000e+00> : vector<128x128xf32>
      %173 = tpu.matmul %171, %172, %cst_138 {dimension_numbers = #tpu.dot_dimension_numbers<[1], [0], [0], [1], [0, 0, 1, 1], [], []>} : vector<128x256xbf16>, vector<256x128xbf16>, vector<128x128xf32> -> vector<128x128xf32>
      %c0_139 = arith.constant 0 : index
      %c0_140 = arith.constant 0 : index
      %174 = vector.load %arg8[%c0_139, %c0_140] : memref<1x128xf32, #tpu.memory_space<vmem>>, vector<1x128xf32>
      %175 = vector.broadcast %174 : vector<1x128xf32> to vector<128x128xf32>
      %176 = arith.addf %173, %175 : vector<128x128xf32>
      %c0_141 = arith.constant 0 : index
      %c0_142 = arith.constant 0 : index
      %c0_143 = arith.constant 0 : index
      %177 = vector.load %arg9[%c0_141, %c0_142, %c0_143] : memref<1x128x128xf32, #tpu.memory_space<vmem>>, vector<1x128x128xf32>
      %178 = vector.shape_cast %177 : vector<1x128x128xf32> to vector<128x128xf32>
      %179 = vector.shape_cast %176 : vector<128x128xf32> to vector<1x128x128xf32>
      tpu.vector_store %arg9[%c0_141, %c0_142, %c0_143], %179 {strides = array<i32>} : memref<1x128x128xf32, #tpu.memory_space<vmem>>, vector<1x128x128xf32>,
    } else {
    }
    return
  }
  func.func @transform_0(%arg0: i32, %arg1: i32, %arg2: i32) -> (i32, i32, i32) {
    %c0_i32 = arith.constant 0 : i32
    %c0_i32_0 = arith.constant 0 : i32
    return %arg0, %arg1, %c0_i32 : i32, i32, i32
  }
  func.func @transform_1(%arg0: i32, %arg1: i32, %arg2: i32) -> (i32, i32, i32) {
    %c0_i32 = arith.constant 0 : i32
    %c0_i32_0 = arith.constant 0 : i32
    return %arg0, %c0_i32, %arg2 : i32, i32, i32
  }
  func.func @transform_2(%arg0: i32, %arg1: i32, %arg2: i32) -> (i32, i32, i32) {
    %c0_i32 = arith.constant 0 : i32
    %c0_i32_0 = arith.constant 0 : i32
    return %arg0, %arg2, %c0_i32 : i32, i32, i32
  }
  func.func @transform_3(%arg0: i32, %arg1: i32, %arg2: i32) -> (i32, i32) {
    %c0_i32 = arith.constant 0 : i32
    %c0_i32_0 = arith.constant 0 : i32
    %c0_i32_1 = arith.constant 0 : i32
    return %c0_i32, %c0_i32_0 : i32, i32
  }
  func.func @transform_4(%arg0: i32, %arg1: i32, %arg2: i32) -> (i32, i32) {
    %c0_i32 = arith.constant 0 : i32
    %c0_i32_0 = arith.constant 0 : i32
    %c0_i32_1 = arith.constant 0 : i32
    return %c0_i32, %c0_i32_0 : i32, i32
  }
  func.func @transform_5(%arg0: i32, %arg1: i32, %arg2: i32) -> (i32, i32) {
    %c0_i32 = arith.constant 0 : i32
    %c0_i32_0 = arith.constant 0 : i32
    %c0_i32_1 = arith.constant 0 : i32
    return %c0_i32, %c0_i32_0 : i32, i32
  }
  func.func @transform_6(%arg0: i32, %arg1: i32, %arg2: i32) -> (i32, i32, i32) {
    %c0_i32 = arith.constant 0 : i32
    %c0_i32_0 = arith.constant 0 : i32
    return %arg0, %arg1, %c0_i32 : i32, i32, i32
  }
}

</mosaic_0001>

<bundles_post_ra>
// kernel: tpu_custom_call.1
= control target key start
LH: loop header
LB: loop body
LE: loop exit
PB: predicated region body
PF: predicated region fallthrough
CT: control target
= control target key end

     0   :  { %s9982_s0 = inlined_call_operand.hbm [shape: bf16[2,256,128], index: 0, kind: input, shape index: {}]   ;;  %s9983_s1 = inlined_call_operand.hbm [shape: bf16[2,256,256], index: 1, kind: input, shape index: {}]   ;;  %s9984_s2 = inlined_call_operand.hbm [shape: bf16[2,256,256], index: 2, kind: input, shape index: {}]   ;;  %s9985_s3 = inlined_call_operand.hbm [shape: bf16[128,256], index: 3, kind: input, shape index: {}]   ;;  %s9986_s4 = inlined_call_operand.hbm [shape: bf16[256,128], index: 4, kind: input, shape index: {}]   ;;  %s9987_s5 = inlined_call_operand.vmem [shape: f32[1,128], index: 5, kind: input, shape index: {}]   ;;  %s9988_s6 = inlined_call_operand.hbm [shape: f32[2,256,128], index: 6, kind: output, shape index: {}]  }
   0x1   :  { %10190 = sst [smem:[#allocation149_spill]] %s9983_s1 }
   0x2   :  { %10191 = sst [smem:[#allocation150_spill]] %s9985_s3 }
   0x3   :  { %10192 = sst [smem:[#allocation151_spill]] %s9986_s4 }
   0x4   :  { %10193 = sst [smem:[#allocation152_spill]] %s9987_s5 }
   0x5   :  { %10194 = sst [smem:[#allocation153_spill]] %s9988_s6 }
   0x6   :  { %11 = vsyncpa [#allocation7], 0 }
   0x7   :  { %13 = vsyncpa [#allocation7 + $0x1], 0 }
   0x8   :  { %14 = vsyncpa [#allocation10], 0 }
   0x9   :  { %16 = vsyncpa [#allocation10 + $0x1], 0 }
   0xa   :  { %17 = vsyncpa [#allocation13], 0 }
   0xb   :  { %18 = vsyncpa [#allocation8], 0 }
   0xc   :  { %20 = vsyncpa [#allocation8 + $0x1], 0  ;;  %s7458_s21 = smov 0   ;;  %s7460_s22 = smov 0  }
   0xd   :  { %s7462_s23 = smov 0   ;;  %s7464_s24 = smov 0  }
   0xe   :  { %s7466_s25 = smov 0   ;;  %s7468_s26 = smov 0  }
   0xf   :  { %s7470_s27 = smov 0   ;;  %s7472_s28 = smov 0  }
  0x10   :  { %s7474_s29 = smov 0   ;;  %s7476_s30 = smov 0  }
  0x11   :  { %s7478_s7 = smov 0   ;;  %s7480_s8 = smov 0  }
  0x12   :  { %s7482_s9 = smov 0  }
  0x13 LB: > { %10195 = sst [smem:[#allocation20_spill]] %s7359_s22  ;;  %s7522_s10 = sadd.s32 4294967295, %s7403_s9   ;;  %s7403_s9 = sphi %s7482_s9, %s26_s9   ;;  %s7399_s8 = sphi %s7480_s8, %s10598_s8   ;;  %s7395_s7 = sphi %s7478_s7, %s10590_s7   ;;  %s7391_s30 = sphi %s7476_s30, %s10597_s30   ;;  %s7387_s29 = sphi %s7474_s29, %s10596_s29   ;;  %s7383_s28 = sphi %s7472_s28, %s10589_s28   ;;  %s7379_s27 = sphi %s7470_s27, %s10595_s27   ;;  %s7375_s26 = sphi %s7468_s26, %s10594_s26   ;;  %s7371_s25 = sphi %s7466_s25, %s10593_s25   ;;  %s7367_s24 = sphi %s7464_s24, %s10588_s24   ;;  %s7363_s23 = sphi %s7462_s23, %s10592_s23   ;;  %s7359_s22 = sphi %s7460_s22, %s10591_s22   ;;  %s7355_s21 = sphi %s7458_s21, %s10587_s21  }
  0x14   : > { %10196 = sst [smem:[#allocation21_spill]] %s7367_s24  ;;  %s5780_s11 = sadd.s32 4294967294, %s7403_s9  }
  0x15   : > { %10197 = sst [smem:[#allocation22_spill]] %s7371_s25  ;;  %p67_p0 = scmp.ne.s32.totalorder %s7371_s25, %s7367_s24 }
  0x16   : > { %10198 = sst [smem:[#allocation23_spill]] %s7379_s27  ;;  %p9998_p1 = scmp.eq.s32.totalorder %s7522_s10, 0 }
  0x17   : > { %10199 = sst [smem:[#allocation24_spill]] %s7383_s28  ;;  %p95_p2 = scmp.ne.s32.totalorder %s7359_s22, %s7355_s21 }
  0x18   : > { %10200 = sst [smem:[#allocation25_spill]] %s7387_s29  ;;  %p7532_p4 = por %p9998_p1, %p67_p0 }
  0x19   : > { %10201 = sst [smem:[#allocation26_spill]] %s7395_s7  ;;  %p218_p5 = scmp.eq.s32.totalorder %s5780_s11, 7 }
  0x1a   : > { %10202 = sst [smem:[#allocation27_spill]] %s7522_s10  ;;  %p7538_p6 = por %p95_p2, %p9998_p1 }
  0x1b   : > { %s10203_s12 = scalar_select %p7532_p4, 1, 0 }
  0x1c   : > { %s10205_s13 = scalar_select %p7538_p6, 1, 0 }
  0x1d   : > { %10204 = sst [smem:[#allocation28_spill]] %s10203_s12  ;;  %p5781_p7 = scmp.ge.s32.totalorder %s7403_s9, 1 }
  0x1e   : > { %10206 = sst [smem:[#allocation29_spill]] %s10205_s13  ;;  %p7543_p8 = por %p218_p5, %p67_p0 }
  0x1f   : > { %p225_p9 = scmp.lt.s32.totalorder %s7403_s9, 9  ;;  %s7405_s16 = smov [#allocation12]  }
  0x20   : > { %s10207_s14 = scalar_select %p7543_p8, 1, 0 }
  0x21   : > { %p7548_p10 = pnand %p5781_p7, %p225_p9  ;;  %s237_s17 = sshll.u32 %s7405_s16, 4  ;;  %s238_s17 = int_to_ptr.vmem [resolvable:$true] %s237_s17 }
  0x22   : > { %10208 = sst [smem:[#allocation30_spill]] %s10207_s14  ;;  %s7134_s19 = scalar_lea.vmem %s238_s17, 2048 }
  0x23   : > { %s10209_s15 = scalar_select %p7548_p10, 1, 0 }
  0x24   : > { %p6462_p11 = pneg %p7548_p10  ;;  %p7135_p0 = scmp.ne.s32.totalorder %s238_s17, %s7134_s19 }
  0x25   : > { %10210 = sst [smem:[#allocation31_spill]] %s10209_s15  ;;  %p7142_p7 = scmp.lt.s32.totalorder %s238_s17, %s238_s17 }
  0x26   : > { %p7556_p12 = pnand %p6462_p11, %p9998_p1  ;;  %p7143_p9 = scmp.lt.s32.totalorder %s7134_s19, %s7134_s19 }
  0x28   : > { %p10001_p13 = pneg %p7556_p12  ;;  %p7144_p3 = por %p7143_p9, %p7142_p7 }
  0x2a   : > { %p7137_p2 = pnand %p7135_p0, %p10001_p13 }
  0x2c   : > { %p7138_p5 = pneg %p7137_p2 }
  0x2e   : > { %p7145_p8 = pnand %p7144_p3, %p7138_p5 }
  0x30   : > { %7148 = shalt.err (!%p7145_p8)
}
  0x31   : > { %s9993_s20 = smov 128   ;;  %s9992_s21 = smov 8  }
  0x32   : > { %s10212_s3 = sld [smem:[#allocation150_spill]]  ;;  %s38_s19 = sadd.s32 1, %s7391_s30 }
  0x33   : > { %p7574_p3 = scmp.ge.s32.totalorder %s38_s19, 2  ;;  %p10000_p8 = scmp.eq.s32.totalorder %s7403_s9, 0 }
  0x34   : > { %p89_p11 = scmp.ne.s32.totalorder %s7363_s23, %s7359_s22  ;;  %p9999_p2 = scmp.lt.s32.totalorder %s7403_s9, 8 }
  0x35   : > { %s10600_s19 = smov (%p7574_p3, %s38_s19), 0  ;;  %s292_s11 = sand.u32 1, %s7363_s23  }
  0x36   : > { %p91_p0 = por %p89_p11, %p10000_p8  ;;  %s7594_s16 = sshll.u32 %s292_s11, 7 }
  0x37   : > { %s10214_s1 = sld [smem:[#allocation149_spill]]  ;;  %s7408_s11 = smov [#allocation14]  }
  0x38   : > { %6465 = dma.hbm_to_vmem [thread:$0]  (!%p7556_p12), %s10212_s3, 2048, %s238_s17, [#allocation13], %s9993_s20, %s9993_s20, %s9992_s21  }
  0x39   : > { %s290_s17 = sand.u32 1, %s7403_s9   ;;  %s10002_s21 = sshll.u32 %s7399_s8, 6 }
  0x3a   : > { %s299_s24 = sadd.s32 %s7391_s30, %s10002_s21  ;;  %s294_s20 = scalar_lea.vmem [#allocation9], %s7594_s16 }
  0x3b   : > { %s302_s6 = sshll.u32 %s294_s20, 4  ;;  %s5791_s3 = sshll.u32 %s299_s24, 6  ;;  %s303_s6 = int_to_ptr.vmem [resolvable:$true] %s302_s6 }
  0x3c   : > { %p7606_p5 = pnand %p9999_p2, %p91_p0  ;;  %s250_s13 = sshll.u32 %s7408_s11, 4  ;;  %s251_s13 = int_to_ptr.vmem [resolvable:$true] %s250_s13 }
  0x3d   : > { %s301_s27 = scalar_lea.hbm %s10214_s1, %s5791_s3  ;;  %s7610_s22 = scalar_lea.sflag [#allocation10], %s290_s17 }
  0x3e   : > { %10216 = sst [smem:[#allocation32_spill]] %s7610_s22  ;;  %p10003_p7 = pneg %p7606_p5 }
  0x3f   : > { %s7162_s20 = scalar_lea.vmem %s303_s6, 2048  ;;  %s7409_s3 = smov [#allocation9]  }
  0x40   : > { %p7163_p9 = scmp.ne.s32.totalorder %s303_s6, %s7162_s20  ;;  %s7167_s5 = sshll.u32 %s7409_s3, 4  ;;  %s7168_s5 = int_to_ptr.vmem [resolvable:$false] %s7167_s5 }
  0x41   : > { %s7169_s24 = scalar_lea.vmem %s7168_s5, 4096  ;;  %p7170_p0 = scmp.lt.s32.totalorder %s303_s6, %s7168_s5 }
  0x42   : > { %p7165_p11 = pnand %p7163_p9, %p10003_p7  ;;  %p7171_p2 = scmp.lt.s32.totalorder %s7169_s24, %s7162_s20 }
  0x44   : > { %p7166_p1 = pneg %p7165_p11  ;;  %p7172_p8 = por %p7171_p2, %p7170_p0 }
  0x46   : > { %p7173_p13 = pnand %p7172_p8, %p7166_p1 }
  0x48   : > { %7176 = shalt.err (!%p7173_p13)
}
  0x49   : > { %s10005_s28 = smov 64   ;;  %s10006_s17 = smov 4  }
  0x4a   : > { %s10217_s11 = smov 128   ;;  %s7188_s21 = scalar_lea.vmem %s251_s13, 2048 }
  0x4b   : > { %6475 = dma.hbm_to_vmem [thread:$0]  (!%p7606_p5), %s301_s27, 2048, %s303_s6, %s7610_s22, %s10217_s11, %s10005_s28, %s10006_s17  }
  0x4c   : > { %p7189_p9 = scmp.ne.s32.totalorder %s251_s13, %s7188_s21  ;;  %p10218_p11 = pneg %p7556_p12 }
  0x4d   : > { %p7196_p2 = scmp.lt.s32.totalorder %s251_s13, %s251_s13  ;;  %p7197_p1 = scmp.lt.s32.totalorder %s7188_s21, %s7188_s21 }
  0x4e   : > { %p7191_p7 = pnand %p7189_p9, %p10218_p11 }
  0x4f   : > { %p7198_p13 = por %p7197_p1, %p7196_p2 }
  0x50   : > { %p7192_p6 = pneg %p7191_p7 }
  0x52   : > { %p7199_p8 = pnand %p7198_p13, %p7192_p6 }
  0x54   : > { %7202 = shalt.err (!%p7199_p8)
}
  0x55   : > { %s10219_s4 = sld [smem:[#allocation151_spill]]  ;;  %s41_s6 = sadd.s32 1, %s7395_s7 }
  0x56   : > { %s54_s27 = sadd.s32 1, %s7375_s26  ;;  %s10602_s6 = smov (!%p7574_p3, %s41_s6), %s7395_s7 }
  0x57   : > { %p61_p6 = scmp.ne.s32.totalorder %s7375_s26, %s7371_s25  ;;  %s10007_s18 = sand.u32 1, %s7375_s26  }
  0x58   : > { %p43_p7 = scmp.ge.s32.totalorder %s10602_s6, 2  ;;  %p10220_p0 = scmp.eq.s32.totalorder %s7403_s9, 0 }
  0x59   : > { %p10222_p11 = scmp.eq.s32.totalorder %s7522_s10, 7  ;;  %s5785_s24 = sshll.u32 %s10007_s18, 6 }
  0x5a   : > { %p7644_p9 = por %p10220_p0, %p61_p6  ;;  %s10604_s6 = smov (%p43_p7, %s10602_s6), 0 }
  0x5b   : > { %6468 = dma.hbm_to_vmem [thread:$0]  (!%p7556_p12), %s10219_s4, 2048, %s251_s13, [#allocation13], %s10005_s28, %s10005_s28, %s10006_s17  }
  0x5c   : > { %p7650_p2 = por %p10222_p11, %p61_p6  ;;  %10225 = sst [smem:[#allocation34_spill]] %s10604_s6 }
  0x5d   : > { %s10226_s13 = sadd.s32 1, %s7399_s8  ;;  %s50_s14 = ssub.s32 %s7395_s7, %s10604_s6 }
  0x5e   : > { %s10223_s5 = scalar_select %p7650_p2, 1, 0 }
  0x5f   : > { %s10606_s13 = smov (!%p43_p7, %s10226_s13), %s7399_s8  ;;  %s5786_s20 = sshll.u32 %s7395_s7, 4 }
  0x60   : > { %10224 = sst [smem:[#allocation33_spill]] %s10223_s5  ;;  %p47_p12 = scmp.ge.s32.totalorder %s10606_s13, 2 }
  0x61   : > { %s5787_s3 = sshll.u32 %s7399_s8, 5  ;;  %s271_s17 = scalar_lea.vmem [#allocation6], %s5785_s24 }
  0x62   : > { %s10608_s13 = smov (%p47_p12, %s10606_s13), 0  ;;  %s277_s28 = sadd.s32 %s5787_s3, %s5786_s20 }
  0x63   : > { %s280_s1 = sshll.u32 %s271_s17, 4  ;;  %s49_s4 = ssub.s32 %s7399_s8, %s10608_s13  ;;  %s281_s1 = int_to_ptr.vmem [resolvable:$true] %s280_s1 }
  0x64   : > { %s5788_s18 = sshll.u32 %s277_s28, 6  ;;  %s51_s6 = sor.u32 %s50_s14, %s49_s4 }
  0x65   : > { %s10227_s5 = ssub.s32 %s7391_s30, %s10600_s19  ;;  %p52_p3 = scmp.eq.s32.totalorder %s51_s6, 0 }
  0x66   : > { %s79_s10 = sor.u32 %s10227_s5, %s49_s4  ;;  %s279_s25 = scalar_lea.hbm %s9982_s0, %s5788_s18 }
  0x67   : > { %p80_p1 = scmp.eq.s32.totalorder %s79_s10, 0  ;;  %s10228_s22 = sadd.s32 1, %s7363_s23 }
  0x68   : > { %s7676_s15 = scalar_select %p52_p3, %s7375_s26, %s54_s27  }
  0x69   : > { %s7681_s20 = scalar_select %p80_p1, %s7363_s23, %s10228_s22  }
  0x6a   : > { %p10229_p13 = scmp.lt.s32.totalorder %s7403_s9, 8  ;;  %s5981_s4 = sshll.u32 %s7391_s30, 5 }
  0x6b   : > { %s316_s28 = scalar_lea.vmem [#allocation11], %s7594_s16  ;;  %s10231_s6 = sshll.u32 %s7399_s8, 6 }
  0x6c   : > { %p7687_p8 = pnand %p10229_p13, %p7644_p9  ;;  %s326_s10 = sshll.u32 %s316_s28, 4  ;;  %s327_s10 = int_to_ptr.vmem [resolvable:$true] %s326_s10 }
  0x6d   : > { %s323_s5 = sadd.s32 %s5981_s4, %s10231_s6  ;;  %s10232_s7 = sand.u32 1, %s7375_s26  }
  0x6e   : > { %s268_s12 = scalar_lea.sflag [#allocation7], %s10232_s7  ;;  %p7205_p6 = pneg %p7687_p8 }
  0x6f   : > { %s7216_s27 = scalar_lea.vmem %s281_s1, 1024  ;;  %s7412_s22 = smov [#allocation6]  }
  0x70   : > { %p7217_p7 = scmp.ne.s32.totalorder %s281_s1, %s7216_s27  ;;  %s7221_s18 = sshll.u32 %s7412_s22, 4  ;;  %s7222_s18 = int_to_ptr.vmem [resolvable:$false] %s7221_s18 }
  0x71   : > { %s7223_s21 = scalar_lea.vmem %s7222_s18, 2048  ;;  %p7224_p9 = scmp.lt.s32.totalorder %s281_s1, %s7222_s18 }
  0x72   : > { %p7219_p0 = pnand %p7217_p7, %p7205_p6  ;;  %p7225_p12 = scmp.lt.s32.totalorder %s7223_s21, %s7216_s27 }
  0x74   : > { %p7220_p11 = pneg %p7219_p0  ;;  %p7226_p3 = por %p7225_p12, %p7224_p9 }
  0x76   : > { %p7227_p1 = pnand %p7226_p3, %p7220_p11 }
  0x78   : > { %7230 = shalt.err (!%p7227_p1)
}
  0x79   : > { %s10233_s16 = smov 4   ;;  %s10234_s14 = smov 64  }
  0x7a   : > { %6472 = dma.hbm_to_vmem [thread:$0]  (!%p7687_p8), %s279_s25, 1024, %s281_s1, %s268_s12, %s10234_s14, %s10234_s14, %s10233_s16  }
  0x7b   : > { %s5796_s24 = sshll.u32 %s323_s5, 6  ;;  %s7244_s6 = scalar_lea.vmem %s327_s10, 2048 }
  0x7c   : > { %s325_s28 = scalar_lea.hbm %s9984_s2, %s5796_s24  ;;  %p7245_p13 = scmp.ne.s32.totalorder %s327_s10, %s7244_s6 }
  0x7d   : > { %p10235_p6 = pneg %p7606_p5  ;;  %s7413_s7 = smov [#allocation11]  }
  0x7e   : > { %s7249_s27 = sshll.u32 %s7413_s7, 4  ;;  %s7250_s27 = int_to_ptr.vmem [resolvable:$false] %s7249_s27 }
  0x7f   : > { %p7247_p7 = pnand %p7245_p13, %p10235_p6  ;;  %s7251_s17 = scalar_lea.vmem %s7250_s27, 4096 }
  0x80   : > { %p7252_p11 = scmp.lt.s32.totalorder %s327_s10, %s7250_s27  ;;  %p7253_p9 = scmp.lt.s32.totalorder %s7251_s17, %s7244_s6 }
  0x81   : > { %p7248_p0 = pneg %p7247_p7 }
  0x82   : > { %p7254_p12 = por %p7253_p9, %p7252_p11 }
  0x84   : > { %p7255_p8 = pnand %p7254_p12, %p7248_p0 }
  0x86   : > { %7258 = shalt.err (!%p7255_p8)
}
  0x87   : > { %s10236_s1 = smov 8   ;;  %s10237_s25 = sld [smem:[#allocation32_spill]] }
  0x89   : > { %338 = sbr.rel (%p7548_p10) target bundleno = 2526 (0x9de), region = 44 }
  0x8d   : > { %6478 = dma.hbm_to_vmem [thread:$0]  (!%p7606_p5), %s325_s28, 2048, %s327_s10, %s10237_s25, %s10217_s11, %s10217_s11, %s10236_s1  }
  0x8e   : > { %s10239_s12 = sld [smem:[#allocation22_spill]] }
  0x94   : > { %s7719_s18 = sand.u32 1, %s10239_s12  }
  0x95   : > { %s5798_s21 = sshll.u32 %s7719_s18, 6  ;;  %s341_s16 = scalar_lea.sflag [#allocation7], %s7719_s18 }
  0x96   : > { %s7723_s14 = scalar_lea.vmem [#allocation6], %s5798_s21 }
  0x97   : > { %7338 = dma.done.wait (%p7532_p4), %s341_s16, 1024  }
  0x98   : > { %7340 = vsyncadd (%p7532_p4), %s341_s16, 4294966272  ;;  %s10241_s29 = sld [smem:[#allocation27_spill]] }
  0x99   : > { %s10242_s11 = sld [smem:[#allocation20_spill]] }
  0x9a   : > { %s10243_s10 = sld [smem:[#allocation29_spill]] }
  0x9e   : > { %s349_s24 = sand.u32 1, %s10241_s29  }
  0x9f   : > { %s351_s3 = sand.u32 1, %s10242_s11   ;;  %s350_s28 = scalar_lea.sflag [#allocation10], %s349_s24 }
  0xa0   : > { %s5799_s4 = sshll.u32 %s351_s3, 7  ;;  %p10244_p10 = scmp.ne.s32.totalorder %s10243_s10, 0 }
  0xa1   : > { %s7731_s6 = scalar_lea.vmem [#allocation9], %s5799_s4 }
  0xa2   : > { %7342 = dma.done.wait (%p10244_p10), %s350_s28, 4096  }
  0xa3   : > { %7344 = vsyncadd (%p10244_p10), %s350_s28, 4294963200  ;;  %s7737_s7 = scalar_lea.vmem [#allocation11], %s5799_s4  ;;  %p10245_p5 = scmp.eq.s32.totalorder %s10241_s29, 0 }
  0xa5   : > { %7346 = dma.done.wait (%p10245_p5), [#allocation13], 4096   ;;  %p10246_p4 = pmov %p10245_p5 }
  0xa6   : > { %s5803_s27 = sshll.u32 %s7719_s18, 7  ;;  %s10247_s1 = sld [smem:[#allocation23_spill]] }
  0xa7   : > { %7348 = vsyncadd (%p10246_p4), [#allocation13], 4294963200  ;;  %s7744_s17 = scalar_lea.vmem [#allocation15], %s5803_s27 }
  0xac   : > { %p5804_p3 = scmp.ne.s32.totalorder %s10247_s1, 0 }
  0xae   : > { %417 = sbr.rel (%p5804_p3) target bundleno = 439 (0x1b7), region = 68 }
  0xb3   : > { %v6607_v0 = vld [vmem:[#allocation12 + $0x74] ss:$8 sps:$4 sm:$0xff]   ;;  %v6609_v1 = vld [vmem:[#allocation12 + $0x70] ss:$8 sps:$4 sm:$0xff]   ;;  %v7414_v2 = vmov 0   ;;  %v6631_v17 = vld [vmem:[%s7723_s14] sm:$0xff]  }
  0xb4   : > { %610 = vmatprep.mubr.bf16.mxu0 %v7414_v2  ;;  %650 = vmatprep.mubr.bf16.mxu1 %v7414_v2  ;;  %v6610_v3 = vld [vmem:[#allocation12 + $0x64] ss:$8 sps:$4 sm:$0xff]   ;;  %v6612_v4 = vld [vmem:[#allocation12 + $0x60] ss:$8 sps:$4 sm:$0xff]   ;;  %v6613_v5 = vld [vmem:[#allocation12 + $0x54] ss:$8 sps:$4 sm:$0xff]  }
  0xb5   : > { %578 = vmatprep.subr.bf16.mxu0 %v6607_v0  ;;  %6398 = vmatprep.subr.bf16.mxu1 %v6607_v0  ;;  %v6615_v6 = vld [vmem:[#allocation12 + $0x50] ss:$8 sps:$4 sm:$0xff]   ;;  %v6616_v7 = vld [vmem:[#allocation12 + $0x44] ss:$8 sps:$4 sm:$0xff]   ;;  %v6618_v8 = vld [vmem:[#allocation12 + $0x40] ss:$8 sps:$4 sm:$0xff]  }
  0xb6   : > { %579 = vmatpush1.bf16.msra.mxu0 %v6609_v1  ;;  %6406 = vmatpush1.bf16.msra.mxu1 %v6609_v1  ;;  %v6619_v9 = vld [vmem:[#allocation12 + $0x34] ss:$8 sps:$4 sm:$0xff]   ;;  %v6621_v10 = vld [vmem:[#allocation12 + $0x30] ss:$8 sps:$4 sm:$0xff]   ;;  %v6622_v11 = vld [vmem:[#allocation12 + $0x24] ss:$8 sps:$4 sm:$0xff]  }
  0xb7   : > { %580 = vmatprep.subr.bf16.mxu0 %v6610_v3  ;;  %6399 = vmatprep.subr.bf16.mxu1 %v6610_v3  ;;  %v6624_v12 = vld [vmem:[#allocation12 + $0x20] ss:$8 sps:$4 sm:$0xff]   ;;  %v6625_v13 = vld [vmem:[#allocation12 + $0x14] ss:$8 sps:$4 sm:$0xff]   ;;  %v6627_v14 = vld [vmem:[#allocation12 + $0x10] ss:$8 sps:$4 sm:$0xff]  }
  0xb8   : > { %v6628_v15 = vld [vmem:[#allocation12 + $0x4] ss:$8 sps:$4 sm:$0xff]   ;;  %v6630_v16 = vld [vmem:[#allocation12] ss:$8 sps:$4 sm:$0xff]   ;;  %v6635_v21 = vld [vmem:[%s7723_s14 + $0x10] sm:$0xff]   ;;  %vm803_vm0 = vcmask 7168  }
  0xb9   : > { %v6632_v18 = vld [vmem:[%s7723_s14 + $0x20] sm:$0xff]   ;;  %v6633_v19 = vld [vmem:[%s7723_s14 + $0x8] sm:$0xff]   ;;  %v6636_v22 = vld [vmem:[%s7723_s14 + $0x30] sm:$0xff]   ;;  %v7415_v25 = vmov -inf   ;;  %v7416_v26 = vmov 0.0  }
  0xba   : > { %581 = vmatpush1.bf16.msra.mxu0 %v6612_v4  ;;  %6407 = vmatpush1.bf16.msra.mxu1 %v6612_v4  ;;  %v6634_v20 = vld [vmem:[%s7723_s14 + $0x28] sm:$0xff]   ;;  %v6637_v23 = vld [vmem:[%s7723_s14 + $0x18] sm:$0xff]   ;;  %804 = vst.msk [vmem:[#allocation3] sm:$0xff] %vm803_vm0, %v7415_v25  ;;  %805 = vst.msk [vmem:[#allocation3 + $0x8] sm:$0xff] %vm803_vm0, %v7415_v25 }
  0xbb   : > { %582 = vmatprep.subr.bf16.mxu0 %v6613_v5  ;;  %6400 = vmatprep.subr.bf16.mxu1 %v6613_v5  ;;  %v6638_v24 = vld [vmem:[%s7723_s14 + $0x38] sm:$0xff]   ;;  %806 = vst.msk [vmem:[#allocation3 + $0x10] sm:$0xff] %vm803_vm0, %v7415_v25  ;;  %807 = vst.msk [vmem:[#allocation3 + $0x18] sm:$0xff] %vm803_vm0, %v7415_v25 }
  0xbc   : > { %808 = vst.msk [vmem:[#allocation3 + $0x20] sm:$0xff] %vm803_vm0, %v7415_v25  ;;  %809 = vst.msk [vmem:[#allocation3 + $0x28] sm:$0xff] %vm803_vm0, %v7415_v25 }
  0xbd   : > { %810 = vst.msk [vmem:[#allocation3 + $0x30] sm:$0xff] %vm803_vm0, %v7415_v25  ;;  %811 = vst.msk [vmem:[#allocation3 + $0x38] sm:$0xff] %vm803_vm0, %v7415_v25 }
  0xbe   : > { %583 = vmatpush1.bf16.msra.mxu0 %v6615_v6  ;;  %6408 = vmatpush1.bf16.msra.mxu1 %v6615_v6  ;;  %812 = vst.msk [vmem:[#allocation3 + $0x40] sm:$0xff] %vm803_vm0, %v7415_v25  ;;  %813 = vst.msk [vmem:[#allocation3 + $0x48] sm:$0xff] %vm803_vm0, %v7415_v25 }
  0xbf   : > { %584 = vmatprep.subr.bf16.mxu0 %v6616_v7  ;;  %6401 = vmatprep.subr.bf16.mxu1 %v6616_v7  ;;  %814 = vst.msk [vmem:[#allocation3 + $0x50] sm:$0xff] %vm803_vm0, %v7415_v25  ;;  %815 = vst.msk [vmem:[#allocation3 + $0x58] sm:$0xff] %vm803_vm0, %v7415_v25 }
  0xc0   : > { %816 = vst.msk [vmem:[#allocation3 + $0x60] sm:$0xff] %vm803_vm0, %v7415_v25  ;;  %817 = vst.msk [vmem:[#allocation3 + $0x68] sm:$0xff] %vm803_vm0, %v7415_v25 }
  0xc1   : > { %818 = vst.msk [vmem:[#allocation3 + $0x70] sm:$0xff] %vm803_vm0, %v7415_v25  ;;  %819 = vst.msk [vmem:[#allocation3 + $0x78] sm:$0xff] %vm803_vm0, %v7415_v25 }
  0xc2   : > { %585 = vmatpush1.bf16.msra.mxu0 %v6618_v8  ;;  %6409 = vmatpush1.bf16.msra.mxu1 %v6618_v8  ;;  %820 = vst.msk [vmem:[#allocation3 + $0x80] sm:$0xff] %vm803_vm0, %v7415_v25  ;;  %821 = vst.msk [vmem:[#allocation3 + $0x88] sm:$0xff] %vm803_vm0, %v7415_v25 }
  0xc3   : > { %586 = vmatprep.subr.bf16.mxu0 %v6619_v9  ;;  %6402 = vmatprep.subr.bf16.mxu1 %v6619_v9  ;;  %822 = vst.msk [vmem:[#allocation3 + $0x90] sm:$0xff] %vm803_vm0, %v7415_v25  ;;  %823 = vst.msk [vmem:[#allocation3 + $0x98] sm:$0xff] %vm803_vm0, %v7415_v25 }
  0xc4   : > { %824 = vst.msk [vmem:[#allocation3 + $0xa0] sm:$0xff] %vm803_vm0, %v7415_v25  ;;  %825 = vst.msk [vmem:[#allocation3 + $0xa8] sm:$0xff] %vm803_vm0, %v7415_v25 }
  0xc5   : > { %826 = vst.msk [vmem:[#allocation3 + $0xb0] sm:$0xff] %vm803_vm0, %v7415_v25  ;;  %827 = vst.msk [vmem:[#allocation3 + $0xb8] sm:$0xff] %vm803_vm0, %v7415_v25 }
  0xc6   : > { %587 = vmatpush1.bf16.msra.mxu0 %v6621_v10  ;;  %6410 = vmatpush1.bf16.msra.mxu1 %v6621_v10  ;;  %828 = vst.msk [vmem:[#allocation3 + $0xc0] sm:$0xff] %vm803_vm0, %v7415_v25  ;;  %829 = vst.msk [vmem:[#allocation3 + $0xc8] sm:$0xff] %vm803_vm0, %v7415_v25 }
  0xc7   : > { %588 = vmatprep.subr.bf16.mxu0 %v6622_v11  ;;  %6403 = vmatprep.subr.bf16.mxu1 %v6622_v11  ;;  %830 = vst.msk [vmem:[#allocation3 + $0xd0] sm:$0xff] %vm803_vm0, %v7415_v25  ;;  %831 = vst.msk [vmem:[#allocation3 + $0xd8] sm:$0xff] %vm803_vm0, %v7415_v25 }
  0xc8   : > { %832 = vst.msk [vmem:[#allocation3 + $0xe0] sm:$0xff] %vm803_vm0, %v7415_v25  ;;  %833 = vst.msk [vmem:[#allocation3 + $0xe8] sm:$0xff] %vm803_vm0, %v7415_v25 }
  0xc9   : > { %834 = vst.msk [vmem:[#allocation3 + $0xf0] sm:$0xff] %vm803_vm0, %v7415_v25  ;;  %835 = vst.msk [vmem:[#allocation3 + $0xf8] sm:$0xff] %vm803_vm0, %v7415_v25 }
  0xca   : > { %589 = vmatpush1.bf16.msra.mxu0 %v6624_v12  ;;  %6411 = vmatpush1.bf16.msra.mxu1 %v6624_v12  ;;  %836 = vst.msk [vmem:[#allocation3 + $0x100] sm:$0xff] %vm803_vm0, %v7415_v25  ;;  %837 = vst.msk [vmem:[#allocation3 + $0x108] sm:$0xff] %vm803_vm0, %v7415_v25 }
  0xcb   : > { %590 = vmatprep.subr.bf16.mxu0 %v6625_v13  ;;  %6404 = vmatprep.subr.bf16.mxu1 %v6625_v13  ;;  %838 = vst.msk [vmem:[#allocation3 + $0x110] sm:$0xff] %vm803_vm0, %v7415_v25  ;;  %839 = vst.msk [vmem:[#allocation3 + $0x118] sm:$0xff] %vm803_vm0, %v7415_v25 }
  0xcc   : > { %840 = vst.msk [vmem:[#allocation3 + $0x120] sm:$0xff] %vm803_vm0, %v7415_v25  ;;  %841 = vst.msk [vmem:[#allocation3 + $0x128] sm:$0xff] %vm803_vm0, %v7415_v25 }
  0xcd   : > { %842 = vst.msk [vmem:[#allocation3 + $0x130] sm:$0xff] %vm803_vm0, %v7415_v25  ;;  %843 = vst.msk [vmem:[#allocation3 + $0x138] sm:$0xff] %vm803_vm0, %v7415_v25 }
  0xce   : > { %591 = vmatpush1.bf16.msra.mxu0 %v6627_v14  ;;  %6412 = vmatpush1.bf16.msra.mxu1 %v6627_v14  ;;  %844 = vst.msk [vmem:[#allocation3 + $0x140] sm:$0xff] %vm803_vm0, %v7415_v25  ;;  %845 = vst.msk [vmem:[#allocation3 + $0x148] sm:$0xff] %vm803_vm0, %v7415_v25 }
  0xcf   : > { %592 = vmatprep.subr.bf16.mxu0 %v6628_v15  ;;  %6405 = vmatprep.subr.bf16.mxu1 %v6628_v15  ;;  %846 = vst.msk [vmem:[#allocation3 + $0x150] sm:$0xff] %vm803_vm0, %v7415_v25  ;;  %847 = vst.msk [vmem:[#allocation3 + $0x158] sm:$0xff] %vm803_vm0, %v7415_v25 }
  0xd0   : > { %848 = vst.msk [vmem:[#allocation3 + $0x160] sm:$0xff] %vm803_vm0, %v7415_v25  ;;  %849 = vst.msk [vmem:[#allocation3 + $0x168] sm:$0xff] %vm803_vm0, %v7415_v25 }
  0xd1   : > { %850 = vst.msk [vmem:[#allocation3 + $0x170] sm:$0xff] %vm803_vm0, %v7415_v25  ;;  %851 = vst.msk [vmem:[#allocation3 + $0x178] sm:$0xff] %vm803_vm0, %v7415_v25 }
  0xd2   : > { %593 = vmatpush1.bf16.msra.mxu0 %v6630_v16  ;;  %6413 = vmatpush1.bf16.msra.mxu1 %v6630_v16  ;;  %852 = vst.msk [vmem:[#allocation3 + $0x180] sm:$0xff] %vm803_vm0, %v7415_v25  ;;  %853 = vst.msk [vmem:[#allocation3 + $0x188] sm:$0xff] %vm803_vm0, %v7415_v25 }
  0xd3   : > { %854 = vst.msk [vmem:[#allocation3 + $0x190] sm:$0xff] %vm803_vm0, %v7415_v25  ;;  %855 = vst.msk [vmem:[#allocation3 + $0x198] sm:$0xff] %vm803_vm0, %v7415_v25 }
  0xd4   : > { %856 = vst.msk [vmem:[#allocation3 + $0x1a0] sm:$0xff] %vm803_vm0, %v7415_v25  ;;  %857 = vst.msk [vmem:[#allocation3 + $0x1a8] sm:$0xff] %vm803_vm0, %v7415_v25 }
  0xd5   : > { %611 = vmatmul.mubr.bf16.vlgmr.msra.gmra.mxu0 %v6631_v17  ;;  %651 = vmatmul.mubr.bf16.vlgmr.msra.gmra.mxu1 %v6632_v18  ;;  %858 = vst.msk [vmem:[#allocation3 + $0x1b0] sm:$0xff] %vm803_vm0, %v7415_v25  ;;  %859 = vst.msk [vmem:[#allocation3 + $0x1b8] sm:$0xff] %vm803_vm0, %v7415_v25 }
  0xd6   : > { %620 = vmatprep.mubr.bf16.mxu0 %v7414_v2  ;;  %660 = vmatprep.mubr.bf16.mxu1 %v7414_v2  ;;  %860 = vst.msk [vmem:[#allocation3 + $0x1c0] sm:$0xff] %vm803_vm0, %v7415_v25  ;;  %861 = vst.msk [vmem:[#allocation3 + $0x1c8] sm:$0xff] %vm803_vm0, %v7415_v25 }
  0xd7   : > { %862 = vst.msk [vmem:[#allocation3 + $0x1d0] sm:$0xff] %vm803_vm0, %v7415_v25  ;;  %863 = vst.msk [vmem:[#allocation3 + $0x1d8] sm:$0xff] %vm803_vm0, %v7415_v25 }
  0xd8   : > { %864 = vst.msk [vmem:[#allocation3 + $0x1e0] sm:$0xff] %vm803_vm0, %v7415_v25  ;;  %865 = vst.msk [vmem:[#allocation3 + $0x1e8] sm:$0xff] %vm803_vm0, %v7415_v25 }
  0xd9   : > { %866 = vst.msk [vmem:[#allocation3 + $0x1f0] sm:$0xff] %vm803_vm0, %v7415_v25  ;;  %867 = vst.msk [vmem:[#allocation3 + $0x1f8] sm:$0xff] %vm803_vm0, %v7415_v25 }
  0xda   : > { %868 = vst.msk [vmem:[#allocation4] sm:$0xff] %vm803_vm0, %v7416_v26  ;;  %869 = vst.msk [vmem:[#allocation4 + $0x8] sm:$0xff] %vm803_vm0, %v7416_v26 }
  0xdb   : > { %870 = vst.msk [vmem:[#allocation4 + $0x10] sm:$0xff] %vm803_vm0, %v7416_v26  ;;  %871 = vst.msk [vmem:[#allocation4 + $0x18] sm:$0xff] %vm803_vm0, %v7416_v26 }
  0xdc   : > { %872 = vst.msk [vmem:[#allocation4 + $0x20] sm:$0xff] %vm803_vm0, %v7416_v26  ;;  %873 = vst.msk [vmem:[#allocation4 + $0x28] sm:$0xff] %vm803_vm0, %v7416_v26 }
  0xdd   : > { %621 = vmatmul.mubr.bf16.gmra.mxu0 %v6633_v19  ;;  %661 = vmatmul.mubr.bf16.gmra.mxu1 %v6634_v20  ;;  %874 = vst.msk [vmem:[#allocation4 + $0x30] sm:$0xff] %vm803_vm0, %v7416_v26  ;;  %875 = vst.msk [vmem:[#allocation4 + $0x38] sm:$0xff] %vm803_vm0, %v7416_v26 }
  0xde   : > { %630 = vmatprep.mubr.bf16.mxu0 %v7414_v2  ;;  %670 = vmatprep.mubr.bf16.mxu1 %v7414_v2  ;;  %876 = vst.msk [vmem:[#allocation4 + $0x40] sm:$0xff] %vm803_vm0, %v7416_v26  ;;  %877 = vst.msk [vmem:[#allocation4 + $0x48] sm:$0xff] %vm803_vm0, %v7416_v26 }
  0xdf   : > { %878 = vst.msk [vmem:[#allocation4 + $0x50] sm:$0xff] %vm803_vm0, %v7416_v26  ;;  %879 = vst.msk [vmem:[#allocation4 + $0x58] sm:$0xff] %vm803_vm0, %v7416_v26 }
  0xe0   : > { %880 = vst.msk [vmem:[#allocation4 + $0x60] sm:$0xff] %vm803_vm0, %v7416_v26  ;;  %881 = vst.msk [vmem:[#allocation4 + $0x68] sm:$0xff] %vm803_vm0, %v7416_v26 }
  0xe1   : > { %882 = vst.msk [vmem:[#allocation4 + $0x70] sm:$0xff] %vm803_vm0, %v7416_v26  ;;  %883 = vst.msk [vmem:[#allocation4 + $0x78] sm:$0xff] %vm803_vm0, %v7416_v26 }
  0xe2   : > { %884 = vst.msk [vmem:[#allocation4 + $0x80] sm:$0xff] %vm803_vm0, %v7416_v26  ;;  %885 = vst.msk [vmem:[#allocation4 + $0x88] sm:$0xff] %vm803_vm0, %v7416_v26 }
  0xe3   : > { %886 = vst.msk [vmem:[#allocation4 + $0x90] sm:$0xff] %vm803_vm0, %v7416_v26  ;;  %887 = vst.msk [vmem:[#allocation4 + $0x98] sm:$0xff] %vm803_vm0, %v7416_v26 }
  0xe4   : > { %888 = vst.msk [vmem:[#allocation4 + $0xa0] sm:$0xff] %vm803_vm0, %v7416_v26  ;;  %889 = vst.msk [vmem:[#allocation4 + $0xa8] sm:$0xff] %vm803_vm0, %v7416_v26 }
  0xe5   : > { %631 = vmatmul.mubr.bf16.gmra.mxu0 %v6635_v21  ;;  %671 = vmatmul.mubr.bf16.gmra.mxu1 %v6636_v22  ;;  %890 = vst.msk [vmem:[#allocation4 + $0xb0] sm:$0xff] %vm803_vm0, %v7416_v26  ;;  %891 = vst.msk [vmem:[#allocation4 + $0xb8] sm:$0xff] %vm803_vm0, %v7416_v26 }
  0xe6   : > { %640 = vmatprep.mubr.bf16.mxu0 %v7414_v2  ;;  %680 = vmatprep.mubr.bf16.mxu1 %v7414_v2  ;;  %892 = vst.msk [vmem:[#allocation4 + $0xc0] sm:$0xff] %vm803_vm0, %v7416_v26  ;;  %893 = vst.msk [vmem:[#allocation4 + $0xc8] sm:$0xff] %vm803_vm0, %v7416_v26 }
  0xe7   : > { %894 = vst.msk [vmem:[#allocation4 + $0xd0] sm:$0xff] %vm803_vm0, %v7416_v26  ;;  %895 = vst.msk [vmem:[#allocation4 + $0xd8] sm:$0xff] %vm803_vm0, %v7416_v26 }
  0xe8   : > { %896 = vst.msk [vmem:[#allocation4 + $0xe0] sm:$0xff] %vm803_vm0, %v7416_v26  ;;  %897 = vst.msk [vmem:[#allocation4 + $0xe8] sm:$0xff] %vm803_vm0, %v7416_v26 }
  0xe9   : > { %898 = vst.msk [vmem:[#allocation4 + $0xf0] sm:$0xff] %vm803_vm0, %v7416_v26  ;;  %899 = vst.msk [vmem:[#allocation4 + $0xf8] sm:$0xff] %vm803_vm0, %v7416_v26 }
  0xea   : > { %900 = vst.msk [vmem:[#allocation4 + $0x100] sm:$0xff] %vm803_vm0, %v7416_v26  ;;  %901 = vst.msk [vmem:[#allocation4 + $0x108] sm:$0xff] %vm803_vm0, %v7416_v26 }
  0xeb   : > { %902 = vst.msk [vmem:[#allocation4 + $0x110] sm:$0xff] %vm803_vm0, %v7416_v26  ;;  %903 = vst.msk [vmem:[#allocation4 + $0x118] sm:$0xff] %vm803_vm0, %v7416_v26 }
  0xec   : > { %904 = vst.msk [vmem:[#allocation4 + $0x120] sm:$0xff] %vm803_vm0, %v7416_v26  ;;  %905 = vst.msk [vmem:[#allocation4 + $0x128] sm:$0xff] %vm803_vm0, %v7416_v26 }
  0xed   : > { %641 = vmatmul.mubr.bf16.gmra.mxu0 %v6637_v23  ;;  %681 = vmatmul.mubr.bf16.gmra.mxu1 %v6638_v24  ;;  %906 = vst.msk [vmem:[#allocation4 + $0x130] sm:$0xff] %vm803_vm0, %v7416_v26  ;;  %907 = vst.msk [vmem:[#allocation4 + $0x138] sm:$0xff] %vm803_vm0, %v7416_v26 }
  0xee   : > { %908 = vst.msk [vmem:[#allocation4 + $0x140] sm:$0xff] %vm803_vm0, %v7416_v26  ;;  %909 = vst.msk [vmem:[#allocation4 + $0x148] sm:$0xff] %vm803_vm0, %v7416_v26 }
  0xef   : > { %910 = vst.msk [vmem:[#allocation4 + $0x150] sm:$0xff] %vm803_vm0, %v7416_v26  ;;  %911 = vst.msk [vmem:[#allocation4 + $0x158] sm:$0xff] %vm803_vm0, %v7416_v26 }
  0xf0   : > { %912 = vst.msk [vmem:[#allocation4 + $0x160] sm:$0xff] %vm803_vm0, %v7416_v26  ;;  %913 = vst.msk [vmem:[#allocation4 + $0x168] sm:$0xff] %vm803_vm0, %v7416_v26 }
  0xf1   : > { %914 = vst.msk [vmem:[#allocation4 + $0x170] sm:$0xff] %vm803_vm0, %v7416_v26  ;;  %915 = vst.msk [vmem:[#allocation4 + $0x178] sm:$0xff] %vm803_vm0, %v7416_v26 }
  0xf2   : > { %916 = vst.msk [vmem:[#allocation4 + $0x180] sm:$0xff] %vm803_vm0, %v7416_v26  ;;  %917 = vst.msk [vmem:[#allocation4 + $0x188] sm:$0xff] %vm803_vm0, %v7416_v26 }
  0xf3   : > { %918 = vst.msk [vmem:[#allocation4 + $0x190] sm:$0xff] %vm803_vm0, %v7416_v26  ;;  %919 = vst.msk [vmem:[#allocation4 + $0x198] sm:$0xff] %vm803_vm0, %v7416_v26 }
  0xf4   : > { %920 = vst.msk [vmem:[#allocation4 + $0x1a0] sm:$0xff] %vm803_vm0, %v7416_v26  ;;  %921 = vst.msk [vmem:[#allocation4 + $0x1a8] sm:$0xff] %vm803_vm0, %v7416_v26 }
  0xf5   : > { %922 = vst.msk [vmem:[#allocation4 + $0x1b0] sm:$0xff] %vm803_vm0, %v7416_v26  ;;  %923 = vst.msk [vmem:[#allocation4 + $0x1b8] sm:$0xff] %vm803_vm0, %v7416_v26 }
  0xf6   : > { %924 = vst.msk [vmem:[#allocation4 + $0x1c0] sm:$0xff] %vm803_vm0, %v7416_v26  ;;  %925 = vst.msk [vmem:[#allocation4 + $0x1c8] sm:$0xff] %vm803_vm0, %v7416_v26 }
  0xf7   : > { %926 = vst.msk [vmem:[#allocation4 + $0x1d0] sm:$0xff] %vm803_vm0, %v7416_v26  ;;  %927 = vst.msk [vmem:[#allocation4 + $0x1d8] sm:$0xff] %vm803_vm0, %v7416_v26 }
  0xf8   : > { %928 = vst.msk [vmem:[#allocation4 + $0x1e0] sm:$0xff] %vm803_vm0, %v7416_v26  ;;  %929 = vst.msk [vmem:[#allocation4 + $0x1e8] sm:$0xff] %vm803_vm0, %v7416_v26 }
  0xf9   : > { %930 = vst.msk [vmem:[#allocation4 + $0x1f0] sm:$0xff] %vm803_vm0, %v7416_v26  ;;  %931 = vst.msk [vmem:[#allocation4 + $0x1f8] sm:$0xff] %vm803_vm0, %v7416_v26 }
  0xfa   : > { %932 = vst [vmem:[#allocation5] sm:$0xff] %v7416_v26  ;;  %933 = vst [vmem:[#allocation5 + $0x8] sm:$0xff] %v7416_v26 }
  0xfb   : > { %934 = vst [vmem:[#allocation5 + $0x10] sm:$0xff] %v7416_v26  ;;  %935 = vst [vmem:[#allocation5 + $0x18] sm:$0xff] %v7416_v26 }
  0xfc   : > { %936 = vst [vmem:[#allocation5 + $0x20] sm:$0xff] %v7416_v26  ;;  %937 = vst [vmem:[#allocation5 + $0x28] sm:$0xff] %v7416_v26 }
  0xfd   : > { %938 = vst [vmem:[#allocation5 + $0x30] sm:$0xff] %v7416_v26  ;;  %939 = vst [vmem:[#allocation5 + $0x38] sm:$0xff] %v7416_v26 }
  0xfe   : > { %940 = vst [vmem:[#allocation5 + $0x40] sm:$0xff] %v7416_v26  ;;  %941 = vst [vmem:[#allocation5 + $0x48] sm:$0xff] %v7416_v26 }
  0xff   : > { %942 = vst [vmem:[#allocation5 + $0x50] sm:$0xff] %v7416_v26  ;;  %943 = vst [vmem:[#allocation5 + $0x58] sm:$0xff] %v7416_v26 }
 0x100   : > { %944 = vst [vmem:[#allocation5 + $0x60] sm:$0xff] %v7416_v26  ;;  %945 = vst [vmem:[#allocation5 + $0x68] sm:$0xff] %v7416_v26 }
 0x101   : > { %946 = vst [vmem:[#allocation5 + $0x70] sm:$0xff] %v7416_v26  ;;  %947 = vst [vmem:[#allocation5 + $0x78] sm:$0xff] %v7416_v26 }
 0x102   : > { %948 = vst [vmem:[#allocation5 + $0x80] sm:$0xff] %v7416_v26  ;;  %949 = vst [vmem:[#allocation5 + $0x88] sm:$0xff] %v7416_v26 }
 0x103   : > { %950 = vst [vmem:[#allocation5 + $0x90] sm:$0xff] %v7416_v26  ;;  %951 = vst [vmem:[#allocation5 + $0x98] sm:$0xff] %v7416_v26 }
 0x104   : > { %952 = vst [vmem:[#allocation5 + $0xa0] sm:$0xff] %v7416_v26  ;;  %953 = vst [vmem:[#allocation5 + $0xa8] sm:$0xff] %v7416_v26 }
 0x105   : > { %954 = vst [vmem:[#allocation5 + $0xb0] sm:$0xff] %v7416_v26  ;;  %955 = vst [vmem:[#allocation5 + $0xb8] sm:$0xff] %v7416_v26 }
 0x106   : > { %956 = vst [vmem:[#allocation5 + $0xc0] sm:$0xff] %v7416_v26  ;;  %957 = vst [vmem:[#allocation5 + $0xc8] sm:$0xff] %v7416_v26 }
 0x107   : > { %958 = vst [vmem:[#allocation5 + $0xd0] sm:$0xff] %v7416_v26  ;;  %959 = vst [vmem:[#allocation5 + $0xd8] sm:$0xff] %v7416_v26 }
 0x108   : > { %960 = vst [vmem:[#allocation5 + $0xe0] sm:$0xff] %v7416_v26  ;;  %961 = vst [vmem:[#allocation5 + $0xe8] sm:$0xff] %v7416_v26 }
 0x109   : > { %962 = vst [vmem:[#allocation5 + $0xf0] sm:$0xff] %v7416_v26  ;;  %963 = vst [vmem:[#allocation5 + $0xf8] sm:$0xff] %v7416_v26 }
 0x195   : > { %v612_v27 = vpop.f32.mrf.mxu0  ;;  %v652_v28 = vpop.f32.mrf.mxu1 }
 0x197   : > { %v614_v29 = vpop.f32.mrf.mxu0  ;;  %v654_v30 = vpop.f32.mrf.mxu1 }
 0x198   : > { %v5982_v31 = vpack.c.bf16 %v614_v29, %v612_v27  ;;  %v5990_v32 = vpack.c.bf16 %v654_v30, %v652_v28 }
 0x199   : > { %v616_v33 = vpop.f32.mrf.mxu0  ;;  %v656_v34 = vpop.f32.mrf.mxu1 }
 0x19a   : > { %787 = vst [vmem:[#allocation2] sm:$0xff] %v5982_v31  ;;  %795 = vst [vmem:[#allocation2 + $0x40] sm:$0xff] %v5990_v32 }
 0x19b   : > { %v618_v35 = vpop.f32.mrf.mxu0  ;;  %v658_v36 = vpop.f32.mrf.mxu1 }
 0x19c   : > { %v5983_v37 = vpack.c.bf16 %v618_v35, %v616_v33  ;;  %v5991_v38 = vpack.c.bf16 %v658_v36, %v656_v34 }
 0x19d   : > { %v622_v39 = vpop.f32.mrf.mxu0  ;;  %v662_v40 = vpop.f32.mrf.mxu1 }
 0x19e   : > { %788 = vst [vmem:[#allocation2 + $0x8] sm:$0xff] %v5983_v37  ;;  %796 = vst [vmem:[#allocation2 + $0x48] sm:$0xff] %v5991_v38 }
 0x19f   : > { %v624_v41 = vpop.f32.mrf.mxu0  ;;  %v664_v42 = vpop.f32.mrf.mxu1 }
 0x1a0   : > { %v5984_v43 = vpack.c.bf16 %v624_v41, %v622_v39  ;;  %v5992_v44 = vpack.c.bf16 %v664_v42, %v662_v40 }
 0x1a1   : > { %v626_v45 = vpop.f32.mrf.mxu0  ;;  %v666_v46 = vpop.f32.mrf.mxu1 }
 0x1a2   : > { %789 = vst [vmem:[#allocation2 + $0x10] sm:$0xff] %v5984_v43  ;;  %797 = vst [vmem:[#allocation2 + $0x50] sm:$0xff] %v5992_v44 }
 0x1a3   : > { %v628_v47 = vpop.f32.mrf.mxu0  ;;  %v668_v48 = vpop.f32.mrf.mxu1 }
 0x1a4   : > { %v5985_v49 = vpack.c.bf16 %v628_v47, %v626_v45  ;;  %v5993_v50 = vpack.c.bf16 %v668_v48, %v666_v46 }
 0x1a5   : > { %v632_v51 = vpop.f32.mrf.mxu0  ;;  %v672_v52 = vpop.f32.mrf.mxu1 }
 0x1a6   : > { %790 = vst [vmem:[#allocation2 + $0x18] sm:$0xff] %v5985_v49  ;;  %798 = vst [vmem:[#allocation2 + $0x58] sm:$0xff] %v5993_v50 }
 0x1a7   : > { %v634_v53 = vpop.f32.mrf.mxu0  ;;  %v674_v54 = vpop.f32.mrf.mxu1 }
 0x1a8   : > { %v5986_v55 = vpack.c.bf16 %v634_v53, %v632_v51  ;;  %v5994_v56 = vpack.c.bf16 %v674_v54, %v672_v52 }
 0x1a9   : > { %v636_v57 = vpop.f32.mrf.mxu0  ;;  %v676_v58 = vpop.f32.mrf.mxu1 }
 0x1aa   : > { %791 = vst [vmem:[#allocation2 + $0x20] sm:$0xff] %v5986_v55  ;;  %799 = vst [vmem:[#allocation2 + $0x60] sm:$0xff] %v5994_v56 }
 0x1ab   : > { %v638_v59 = vpop.f32.mrf.mxu0  ;;  %v678_v60 = vpop.f32.mrf.mxu1 }
 0x1ac   : > { %v5987_v61 = vpack.c.bf16 %v638_v59, %v636_v57  ;;  %v5995_v62 = vpack.c.bf16 %v678_v60, %v676_v58 }
 0x1ad   : > { %v642_v63 = vpop.f32.mrf.mxu0  ;;  %v682_v0 = vpop.f32.mrf.mxu1 }
 0x1ae   : > { %792 = vst [vmem:[#allocation2 + $0x28] sm:$0xff] %v5987_v61  ;;  %800 = vst [vmem:[#allocation2 + $0x68] sm:$0xff] %v5995_v62 }
 0x1af   : > { %v644_v1 = vpop.f32.mrf.mxu0  ;;  %v684_v2 = vpop.f32.mrf.mxu1 }
 0x1b0   : > { %v5988_v3 = vpack.c.bf16 %v644_v1, %v642_v63  ;;  %v5996_v4 = vpack.c.bf16 %v684_v2, %v682_v0 }
 0x1b1   : > { %v646_v5 = vpop.f32.mrf.mxu0  ;;  %v686_v6 = vpop.f32.mrf.mxu1 }
 0x1b2   : > { %793 = vst [vmem:[#allocation2 + $0x30] sm:$0xff] %v5988_v3  ;;  %801 = vst [vmem:[#allocation2 + $0x70] sm:$0xff] %v5996_v4 }
 0x1b3   : > { %v648_v7 = vpop.f32.mrf.mxu0  ;;  %v688_v8 = vpop.f32.mrf.mxu1 }
 0x1b4   : > { %v5989_v9 = vpack.c.bf16 %v648_v7, %v646_v5  ;;  %v5997_v10 = vpack.c.bf16 %v688_v8, %v686_v6 }
 0x1b6   : > { %794 = vst [vmem:[#allocation2 + $0x38] sm:$0xff] %v5989_v9  ;;  %802 = vst [vmem:[#allocation2 + $0x78] sm:$0xff] %v5997_v10 }
 0x1b7 PF: > { %v6641_v11 = vld [vmem:[#allocation2] ss:$8 sps:$4 sm:$0xff]   ;;  %v6645_v12 = vld [vmem:[%s7731_s6 + $0x18] sm:$0xff]   ;;  %s7417_s25 = smov 64   ;;  %v6646_v16 = vld [vmem:[%s7731_s6 + $0x10] sm:$0xff]   ;;  %vm1068_vm1 = vcmask 523264  }
 0x1b8   : > { %1920 = vrot.lane.b32.xlu1 %v6641_v11, %s7417_s25  ;;  %v6642_v13 = vld [vmem:[#allocation2 + $0x10] ss:$8 sps:$4 sm:$0xff]   ;;  %v6643_v14 = vld [vmem:[#allocation2 + $0x20] ss:$8 sps:$4 sm:$0xff]   ;;  %6174 = vmatprep.subr.bf16.mxu0 %v6645_v12  ;;  %v6673_v35 = vld [vmem:[#allocation2 + $0x4] ss:$8 sps:$4 sm:$0xff]  }
 0x1b9   : > { %1922 = vrot.lane.b32.xlu0 %v6642_v13, %s7417_s25  ;;  %6175 = vmatpush3.bf16.msra.mxu0 %v6645_v12  ;;  %v6647_v17 = vld [vmem:[#allocation2 + $0x40] ss:$8 sps:$4 sm:$0xff]   ;;  %v6648_v18 = vld [vmem:[#allocation2 + $0x50] ss:$8 sps:$4 sm:$0xff]   ;;  %v6674_v36 = vld [vmem:[#allocation2 + $0x14] ss:$8 sps:$4 sm:$0xff]  }
 0x1ba   : > { %6176 = vmatprep.subr.bf16.mxu0 %v6646_v16  ;;  %v6649_v19 = vld [vmem:[%s7731_s6 + $0x8] sm:$0xff]   ;;  %v6650_v20 = vld [vmem:[%s7731_s6] sm:$0xff]   ;;  %v6654_v24 = vld [vmem:[#allocation2 + $0x10] ss:$8 sps:$4 sm:$0xff]   ;;  %vm1510_vm2 = vcmask 7168   ;;  %vm2780_vm3 = vcmask 1048064  }
 0x1bb   : > { %v6651_v21 = vld [vmem:[#allocation2 + $0x60] ss:$8 sps:$4 sm:$0xff]   ;;  %v6657_v26 = vld [vmem:[%s7731_s6 + $0x38] sm:$0xff]   ;;  %v6660_v27 = vld [vmem:[%s7731_s6 + $0x30] sm:$0xff]   ;;  %s10576_s5 = sld [smem:[#allocation23_spill]] }
 0x1bc   : > { %1924 = vrot.lane.b32.xlu1 %v6643_v14, %s7417_s25  ;;  %v6653_v23 = vld [vmem:[#allocation2] ss:$8 sps:$4 sm:$0xff]   ;;  %v6665_v32 = vld [vmem:[%s7731_s6 + $0x58] sm:$0xff]   ;;  %v6676_v38 = vld [vmem:[#allocation2 + $0x24] ss:$8 sps:$4 sm:$0xff]  }
 0x1bd   : > { %v6644_v15 = vld [vmem:[#allocation2 + $0x30] ss:$8 sps:$4 sm:$0xff]   ;;  %6177 = vmatpush3.bf16.msra.mxu0 %v6646_v16  ;;  %6182 = vmatprep.mubr.msk.bf16.mxu0 %vm1068_vm1, %v6653_v23  ;;  %v6655_v25 = vld [vmem:[#allocation2 + $0x20] ss:$8 sps:$4 sm:$0xff]   ;;  %v6675_v37 = vld [vmem:[#allocation2 + $0x34] ss:$8 sps:$4 sm:$0xff]  }
 0x1be   : > { %1926 = vrot.lane.b32.xlu0 %v6644_v15, %s7417_s25  ;;  %6178 = vmatprep.subr.bf16.mxu0 %v6649_v19  ;;  %v6652_v22 = vld [vmem:[#allocation2 + $0x70] ss:$8 sps:$4 sm:$0xff]   ;;  %v6663_v28 = vld [vmem:[%s7731_s6 + $0x28] sm:$0xff]   ;;  %v6664_v31 = vld [vmem:[%s7731_s6 + $0x20] sm:$0xff]  }
 0x1bf   : > { %v6656_v29 = vld [vmem:[#allocation2 + $0x30] ss:$8 sps:$4 sm:$0xff]   ;;  %v6658_v30 = vld [vmem:[#allocation2 + $0x40] ss:$8 sps:$4 sm:$0xff]   ;;  %v6677_v40 = vld [vmem:[#allocation2 + $0x54] ss:$8 sps:$4 sm:$0xff]  }
 0x1c0   : > { %1928 = vrot.lane.b32.xlu1 %v6647_v17, %s7417_s25  ;;  %v6659_v33 = vld [vmem:[#allocation2 + $0x50] ss:$8 sps:$4 sm:$0xff]   ;;  %v6661_v34 = vld [vmem:[#allocation2 + $0x60] ss:$8 sps:$4 sm:$0xff]   ;;  %v6678_v41 = vld [vmem:[#allocation2 + $0x44] ss:$8 sps:$4 sm:$0xff]  }
 0x1c1   : > { %6179 = vmatpush3.bf16.msra.mxu0 %v6649_v19  ;;  %v6662_v39 = vld [vmem:[#allocation2 + $0x70] ss:$8 sps:$4 sm:$0xff]   ;;  %v6679_v42 = vld [vmem:[#allocation2 + $0x64] ss:$8 sps:$4 sm:$0xff]   ;;  %v6681_v44 = vld [vmem:[#allocation2 + $0x74] ss:$8 sps:$4 sm:$0xff]  }
 0x1c2   : > { %1930 = vrot.lane.b32.xlu0 %v6648_v18, %s7417_s25  ;;  %6180 = vmatprep.subr.bf16.mxu0 %v6650_v20  ;;  %v6680_v43 = vld [vmem:[%s7737_s7 + $0x10] ss:$8 sps:$4 sm:$0xff]   ;;  %v6682_v45 = vld [vmem:[%s7737_s7 + $0x20] ss:$8 sps:$4 sm:$0xff]   ;;  %v6669_v0 = vld [vmem:[#allocation2 + $0x4] ss:$8 sps:$4 sm:$0xff]  }
 0x1c3   : > { %v6683_v46 = vld [vmem:[%s7737_s7] ss:$8 sps:$4 sm:$0xff]   ;;  %v6685_v48 = vld [vmem:[%s7737_s7 + $0x30] ss:$8 sps:$4 sm:$0xff]   ;;  %v6670_v1 = vld [vmem:[#allocation2 + $0x14] ss:$8 sps:$4 sm:$0xff]  }
 0x1c4   : > { %1932 = vrot.lane.b32.xlu1 %v6651_v21, %s7417_s25  ;;  %v6684_v47 = vld [vmem:[%s7737_s7 + $0x40] ss:$8 sps:$4 sm:$0xff]   ;;  %v6687_v50 = vld [vmem:[%s7737_s7 + $0x50] ss:$8 sps:$4 sm:$0xff]   ;;  %v6671_v2 = vld [vmem:[#allocation2 + $0x24] ss:$8 sps:$4 sm:$0xff]  }
 0x1c5   : > { %6181 = vmatpush3.bf16.msra.mxu0 %v6650_v20  ;;  %v6686_v49 = vld [vmem:[%s7737_s7 + $0x60] ss:$8 sps:$4 sm:$0xff]   ;;  %v6688_v51 = vld [vmem:[%s7737_s7 + $0x70] ss:$8 sps:$4 sm:$0xff]   ;;  %v6672_v5 = vld [vmem:[#allocation2 + $0x34] ss:$8 sps:$4 sm:$0xff]  }
 0x1c6   : > { %1934 = vrot.lane.b32.xlu0 %v6652_v22, %s7417_s25  ;;  %6230 = vmatprep.subr.bf16.mxu0 %v6657_v26  ;;  %v6666_v53 = vld [vmem:[%s7731_s6 + $0x50] sm:$0xff]   ;;  %v6667_v56 = vld [vmem:[%s7731_s6 + $0x48] sm:$0xff]   ;;  %v6668_v59 = vld [vmem:[%s7731_s6 + $0x40] sm:$0xff]   ;;  %p5957_p1 = scmp.ne.s32.totalorder %s10576_s5, 1 }
 0x1c7   : > { %v6693_v60 = vld [vmem:[%s7731_s6 + $0x78] sm:$0xff]   ;;  %v6694_v3 = vld [vmem:[%s7731_s6 + $0x70] sm:$0xff]   ;;  %v6695_v4 = vld [vmem:[%s7731_s6 + $0x68] sm:$0xff]   ;;  %s10577_s21 = sld [smem:[#allocation152_spill]] (!%p5957_p1) }
 0x1c8   : > { %6183 = vmatmul.mubr.msk.bf16.vlgmr.msra.gmra.mxu0 %vm1068_vm1, %v6654_v24  ;;  %3771 = vrot.lane.b32.xlu1 %v6674_v36, %s7417_s25  ;;  %v6689_v6 = vld [vmem:[#allocation2 + $0x44] ss:$8 sps:$4 sm:$0xff]   ;;  %v6690_v8 = vld [vmem:[#allocation2 + $0x54] ss:$8 sps:$4 sm:$0xff]   ;;  %v6697_v17 = vld [vmem:[%s7737_s7 + $0x70] ss:$8 sps:$4 sm:$0xff]  }
 0x1c9   : > { %6186 = vmatprep.mubr.msk.bf16.mxu0 %vm1068_vm1, %v6655_v25  ;;  %6231 = vmatpush3.bf16.msra.mxu0 %v6657_v26  ;;  %v6696_v7 = vld [vmem:[%s7731_s6 + $0x60] sm:$0xff]   ;;  %v6692_v10 = vld [vmem:[#allocation2 + $0x74] ss:$8 sps:$4 sm:$0xff]   ;;  %v6699_v23 = vld [vmem:[%s7737_s7 + $0x50] ss:$8 sps:$4 sm:$0xff]  }
 0x1ca   : > { %6232 = vmatprep.subr.bf16.mxu0 %v6660_v27  ;;  %3769 = vrot.lane.b32.xlu0 %v6673_v35, %s7417_s25  ;;  %v6691_v9 = vld [vmem:[#allocation2 + $0x64] ss:$8 sps:$4 sm:$0xff]   ;;  %v6698_v19 = vld [vmem:[%s7737_s7 + $0x60] ss:$8 sps:$4 sm:$0xff]   ;;  %v6703_v35 = vld [vmem:[%s7737_s7 + $0x10] ss:$8 sps:$4 sm:$0xff]  }
 0x1cb   : > { %6198 = vmatprep.subr.bf16.mxu1 %v6697_v17  ;;  %v6700_v26 = vld [vmem:[%s7737_s7 + $0x40] ss:$8 sps:$4 sm:$0xff]  }
 0x1cc   : > { %3773 = vrot.lane.b32.xlu1 %v6676_v38, %s7417_s25  ;;  %6199 = vmatpush3.bf16.msra.mxu1 %v6697_v17  ;;  %v6704_v38 = vld [vmem:[%s7737_s7] ss:$8 sps:$4 sm:$0xff]  }
 0x1cd   : > { %6233 = vmatpush3.bf16.msra.mxu0 %v6660_v27  ;;  %6200 = vmatprep.subr.bf16.mxu1 %v6698_v19 }
 0x1ce   : > { %6234 = vmatprep.subr.bf16.mxu0 %v6663_v28  ;;  %3775 = vrot.lane.b32.xlu0 %v6675_v37, %s7417_s25 }
 0x1d0   : > { %6187 = vmatmul.mubr.msk.bf16.gmra.mxu0 %vm1068_vm1, %v6656_v29  ;;  %3777 = vrot.lane.b32.xlu1 %v6678_v41, %s7417_s25 }
 0x1d1   : > { %6190 = vmatprep.mubr.msk.bf16.mxu0 %vm1068_vm1, %v6658_v30  ;;  %6235 = vmatpush3.bf16.msra.mxu0 %v6663_v28  ;;  %v6701_v30 = vld [vmem:[%s7737_s7 + $0x30] ss:$8 sps:$4 sm:$0xff]  }
 0x1d2   : > { %6236 = vmatprep.subr.bf16.mxu0 %v6664_v31  ;;  %3779 = vrot.lane.b32.xlu0 %v6677_v40, %s7417_s25 }
 0x1d3   : > { %6201 = vmatpush3.bf16.msra.mxu1 %v6698_v19  ;;  %v8322_v19 = vld [vmem:[#allocation3 + $0x50] sm:$0xff] }
 0x1d4   : > { %2469 = vrot.lane.b32.xlu1 %v6680_v43, %s7417_s25  ;;  %6202 = vmatprep.subr.bf16.mxu1 %v6699_v23  ;;  %v7418_v43 = vmov 0  }
 0x1d5   : > { %6237 = vmatpush3.bf16.msra.mxu0 %v6664_v31  ;;  %6639 = vset.pattern.permute.xlu1 %v7418_v43 }
 0x1d6   : > { %6286 = vmatprep.subr.bf16.mxu0 %v6665_v32  ;;  %3781 = vrot.lane.b32.xlu0 %v6679_v42, %s7417_s25 }
 0x1d7   : > { %6203 = vmatpush3.bf16.msra.mxu1 %v6699_v23  ;;  %6640 = vset.pattern.permute.xlu0 %v7418_v43 }
 0x1d8   : > { %6191 = vmatmul.mubr.msk.bf16.gmra.mxu0 %vm1068_vm1, %v6659_v33  ;;  %2471 = vrot.lane.b32.xlu1 %v6682_v45, %s7417_s25 }
 0x1d9   : > { %6194 = vmatprep.mubr.msk.bf16.mxu0 %vm1068_vm1, %v6661_v34  ;;  %6204 = vmatprep.subr.bf16.mxu1 %v6700_v26  ;;  %v6702_v34 = vld [vmem:[%s7737_s7 + $0x20] ss:$8 sps:$4 sm:$0xff]  }
 0x1da   : > { %3783 = vrot.lane.b32.xlu0 %v6681_v44, %s7417_s25 }
 0x1db   : > { %6205 = vmatpush3.bf16.msra.mxu1 %v6700_v26 }
 0x1dc   : > { %2475 = vrot.lane.b32.xlu1 %v6684_v47, %s7417_s25  ;;  %6206 = vmatprep.subr.bf16.mxu1 %v6701_v30 }
 0x1de   : > { %2467 = vrot.lane.b32.xlu0 %v6683_v46, %s7417_s25 }
 0x1df   : > { %6207 = vmatpush3.bf16.msra.mxu1 %v6701_v30 }
 0x1e0   : > { %6195 = vmatmul.mubr.msk.bf16.gmra.mxu0 %vm1068_vm1, %v6662_v39  ;;  %2479 = vrot.lane.b32.xlu1 %v6686_v49, %s7417_s25 }
 0x1e1   : > { %6208 = vmatprep.subr.bf16.mxu1 %v6702_v34 }
 0x1e2   : > { %2473 = vrot.lane.b32.xlu0 %v6685_v48, %s7417_s25 }
 0x1e3   : > { %6209 = vmatpush3.bf16.msra.mxu1 %v6702_v34  ;;  %v8299_v34 = vld [vmem:[#allocation3 + $0x30] sm:$0xff] }
 0x1e4   : > { %6210 = vmatprep.subr.bf16.mxu1 %v6703_v35 }
 0x1e6   : > { %2477 = vrot.lane.b32.xlu0 %v6687_v50, %s7417_s25 }
 0x1e7   : > { %6211 = vmatpush3.bf16.msra.mxu1 %v6703_v35 }
 0x1e8   : > { %6212 = vmatprep.subr.bf16.mxu1 %v6704_v38 }
 0x1ea   : > { %2481 = vrot.lane.b32.xlu0 %v6688_v51, %s7417_s25 }
 0x1eb   : > { %6213 = vmatpush3.bf16.msra.mxu1 %v6704_v38  ;;  %v8303_v38 = vld [vmem:[#allocation3 + $0x38] sm:$0xff] }
 0x22a   : > { %v1921_v52 = vpop.permute.xlu1 %1920 }
 0x22b   : > { %6238 = vmatprep.mubr.msk.bf16.mxu0 %vm1068_vm1, %v1921_v52  ;;  %v1923_v54 = vpop.permute.xlu0 %1922 }
 0x22c   : > { %6239 = vmatmul.mubr.msk.bf16.vlgmr.msra.gmra.mxu0 %vm1068_vm1, %v1923_v54 }
 0x22d   : > { %6287 = vmatpush3.bf16.msra.mxu0 %v6665_v32 }
 0x22e   : > { %v1925_v55 = vpop.permute.xlu1 %1924  ;;  %6288 = vmatprep.subr.bf16.mxu0 %v6666_v53 }
 0x22f   : > { %6242 = vmatprep.mubr.msk.bf16.mxu0 %vm1068_vm1, %v1925_v55 }
 0x230   : > { %v1927_v57 = vpop.permute.xlu0 %1926 }
 0x231   : > { %6289 = vmatpush3.bf16.msra.mxu0 %v6666_v53 }
 0x232   : > { %v1929_v58 = vpop.permute.xlu1 %1928  ;;  %6290 = vmatprep.subr.bf16.mxu0 %v6667_v56 }
 0x234   : > { %6243 = vmatmul.mubr.msk.bf16.gmra.mxu0 %vm1068_vm1, %v1927_v57  ;;  %v1931_v61 = vpop.permute.xlu0 %1930 }
 0x235   : > { %6246 = vmatprep.mubr.msk.bf16.mxu0 %vm1068_vm1, %v1929_v58  ;;  %6291 = vmatpush3.bf16.msra.mxu0 %v6667_v56 }
 0x236   : > { %6292 = vmatprep.subr.bf16.mxu0 %v6668_v59  ;;  %v1933_v62 = vpop.permute.xlu1 %1932 }
 0x238   : > { %v1935_v63 = vpop.permute.xlu0 %1934 }
 0x239   : > { %6293 = vmatpush3.bf16.msra.mxu0 %v6668_v59 }
 0x23a   : > { %6342 = vmatprep.subr.bf16.mxu0 %v6693_v60  ;;  %v3772_v12 = vpop.permute.xlu1 %3771 }
 0x23c   : > { %6247 = vmatmul.mubr.msk.bf16.gmra.mxu0 %vm1068_vm1, %v1931_v61  ;;  %v3770_v11 = vpop.permute.xlu0 %3769 }
 0x23d   : > { %6250 = vmatprep.mubr.msk.bf16.mxu0 %vm1068_vm1, %v1933_v62 }
 0x23e   : > { %v3774_v13 = vpop.permute.xlu1 %3773 }
 0x240   : > { %v3776_v14 = vpop.permute.xlu0 %3775 }
 0x242   : > { %v3778_v15 = vpop.permute.xlu1 %3777 }
 0x244   : > { %6251 = vmatmul.mubr.msk.bf16.gmra.mxu0 %vm1068_vm1, %v1935_v63  ;;  %v3780_v16 = vpop.permute.xlu0 %3779 }
 0x245   : > { %6294 = vmatprep.mubr.msk.bf16.mxu0 %vm1068_vm1, %v6669_v0 }
 0x246   : > { %v8219_v56 = vpop.permute.xlu1 %2469 }
 0x248   : > { %v3782_v18 = vpop.permute.xlu0 %3781 }
 0x24c   : > { %6295 = vmatmul.mubr.msk.bf16.vlgmr.msra.gmra.mxu0 %vm1068_vm1, %v6670_v1  ;;  %v3784_v22 = vpop.permute.xlu0 %3783 }
 0x24d   : > { %6298 = vmatprep.mubr.msk.bf16.mxu0 %vm1068_vm1, %v6671_v2  ;;  %6343 = vmatpush3.bf16.msra.mxu0 %v6693_v60  ;;  %v8230_v60 = vpop.permute.xlu1 %2471 }
 0x24e   : > { %6344 = vmatprep.subr.bf16.mxu0 %v6694_v3 }
 0x250   : > { %v8149_v28 = vpop.permute.xlu0 %2467 }
 0x251   : > { %6345 = vmatpush3.bf16.msra.mxu0 %v6694_v3  ;;  %v8241_v0 = vpop.permute.xlu1 %2475 }
 0x252   : > { %6346 = vmatprep.subr.bf16.mxu0 %v6695_v4 }
 0x254   : > { %6299 = vmatmul.mubr.msk.bf16.gmra.mxu0 %vm1068_vm1, %v6672_v5  ;;  %v8160_v33 = vpop.permute.xlu0 %2473 }
 0x255   : > { %6302 = vmatprep.mubr.msk.bf16.mxu0 %vm1068_vm1, %v6689_v6  ;;  %6347 = vmatpush3.bf16.msra.mxu0 %v6695_v4  ;;  %v8252_v4 = vpop.permute.xlu1 %2479 }
 0x256   : > { %6348 = vmatprep.subr.bf16.mxu0 %v6696_v7 }
 0x258   : > { %v8174_v40 = vpop.permute.xlu0 %2477 }
 0x259   : > { %6349 = vmatpush3.bf16.msra.mxu0 %v6696_v7  ;;  %v8259_v7 = vld [vmem:[#allocation3 + $0x10] sm:$0xff] }
 0x25c   : > { %6303 = vmatmul.mubr.msk.bf16.gmra.mxu0 %vm1068_vm1, %v6690_v8  ;;  %v8185_v45 = vpop.permute.xlu0 %2481 }
 0x25d   : > { %6306 = vmatprep.mubr.msk.bf16.mxu0 %vm1068_vm1, %v6691_v9  ;;  %6254 = vmatprep.subr.bf16.mxu1 %v8185_v45 }
 0x264   : > { %6307 = vmatmul.mubr.msk.bf16.gmra.mxu0 %vm1068_vm1, %v6692_v10  ;;  %v8264_v10 = vld [vmem:[#allocation3] sm:$0xff] }
 0x265   : > { %6350 = vmatprep.mubr.msk.bf16.mxu0 %vm1068_vm1, %v3770_v11 }
 0x26c   : > { %6351 = vmatmul.mubr.msk.bf16.vlgmr.msra.gmra.mxu0 %vm1068_vm1, %v3772_v12 }
 0x26d   : > { %6354 = vmatprep.mubr.msk.bf16.mxu0 %vm1068_vm1, %v3774_v13 }
 0x274   : > { %6355 = vmatmul.mubr.msk.bf16.gmra.mxu0 %vm1068_vm1, %v3776_v14  ;;  %v8272_v14 = vld [vmem:[#allocation3 + $0x18] sm:$0xff] }
 0x275   : > { %6358 = vmatprep.mubr.msk.bf16.mxu0 %vm1068_vm1, %v3778_v15  ;;  %v8315_v15 = vld [vmem:[#allocation3 + $0x28] sm:$0xff] }
 0x27c   : > { %6359 = vmatmul.mubr.msk.bf16.gmra.mxu0 %vm1068_vm1, %v3780_v16 }
 0x27d   : > { %6362 = vmatprep.mubr.msk.bf16.mxu0 %vm1068_vm1, %v3782_v18  ;;  %v8282_v18 = vld [vmem:[#allocation3 + $0x8] sm:$0xff] }
 0x284   : > { %6363 = vmatmul.mubr.msk.bf16.gmra.mxu0 %vm1068_vm1, %v3784_v22 }
 0x288   : > { %v8132_v20 = vpop.f32.mrf.mxu0 }
 0x289   : > { %1210 = vmax.xlane.f32.xlu1 %v8132_v20 }
 0x28a   : > { %v8135_v21 = vpop.f32.mrf.mxu0 }
 0x28b   : > { %1206 = vmax.xlane.f32.xlu0 %v8135_v21 }
 0x28c   : > { %v8140_v24 = vpop.f32.mrf.mxu0 }
 0x28d   : > { %1212 = vmax.xlane.f32.xlu1 %v8140_v24 }
 0x28e   : > { %v8143_v25 = vpop.f32.mrf.mxu0 }
 0x28f   : > { %1208 = vmax.xlane.f32.xlu0 %v8143_v25 }
 0x290   : > { %v8147_v27 = vpop.f32.mrf.mxu0 }
 0x291   : > { %10248 = vst [vmem:[#allocation35_spill] sm:$0xff] %v8147_v27 }
 0x292   : > { %v8151_v29 = vpop.f32.mrf.mxu0 }
 0x293   : > { %10249 = vst [vmem:[#allocation36_spill] sm:$0xff] %v8151_v29  ;;  %1218 = vmax.xlane.f32.xlu0 %v8147_v27  ;;  %v8558_v27 = vld [vmem:[#allocation3 + $0x100] sm:$0xff] }
 0x294   : > { %v8155_v31 = vpop.f32.mrf.mxu0  ;;  %10320 = vst [vmem:[#allocation105_spill] sm:$0xff] %v8558_v27 }
 0x295   : > { %10250 = vst [vmem:[#allocation37_spill] sm:$0xff] %v8155_v31  ;;  %1220 = vmax.xlane.f32.xlu1 %v8155_v31  ;;  %v8565_v31 = vld [vmem:[#allocation3 + $0x108] sm:$0xff] }
 0x296   : > { %v8158_v32 = vpop.f32.mrf.mxu0  ;;  %10322 = vst [vmem:[#allocation107_spill] sm:$0xff] %v8565_v31 }
 0x297   : > { %10251 = vst [vmem:[#allocation38_spill] sm:$0xff] %v8158_v32  ;;  %1214 = vmax.xlane.f32.xlu0 %v8151_v29  ;;  %v8575_v29 = vld [vmem:[#allocation3 + $0x118] sm:$0xff] }
 0x298   : > { %v8165_v36 = vpop.f32.mrf.mxu0  ;;  %10324 = vst [vmem:[#allocation109_spill] sm:$0xff] %v8575_v29 }
 0x299   : > { %10252 = vst [vmem:[#allocation39_spill] sm:$0xff] %v8165_v36  ;;  %1216 = vmax.xlane.f32.xlu1 %v8158_v32  ;;  %v8548_v32 = vld [vmem:[#allocation3 + $0x110] sm:$0xff] }
 0x29a   : > { %v8168_v37 = vpop.f32.mrf.mxu0  ;;  %10318 = vst [vmem:[#allocation103_spill] sm:$0xff] %v8548_v32 }
 0x29b   : > { %10253 = vst [vmem:[#allocation40_spill] sm:$0xff] %v8168_v37  ;;  %1226 = vmax.xlane.f32.xlu0 %v8165_v36 }
 0x29c   : > { %v8172_v39 = vpop.f32.mrf.mxu0 }
 0x29d   : > { %10254 = vst [vmem:[#allocation41_spill] sm:$0xff] %v8172_v39  ;;  %1228 = vmax.xlane.f32.xlu1 %v8172_v39  ;;  %v8507_v39 = vld [vmem:[#allocation3 + $0xc8] sm:$0xff] }
 0x29e   : > { %v8177_v41 = vpop.f32.mrf.mxu0 }
 0x29f   : > { %10255 = vst [vmem:[#allocation42_spill] sm:$0xff] %v8177_v41  ;;  %1222 = vmax.xlane.f32.xlu0 %v8168_v37  ;;  %v8500_v37 = vld [vmem:[#allocation3 + $0xc0] sm:$0xff] }
 0x2a0   : > { %v8180_v42 = vpop.f32.mrf.mxu0  ;;  %10308 = vst [vmem:[#allocation93_spill] sm:$0xff] %v8500_v37 }
 0x2a1   : > { %10256 = vst [vmem:[#allocation43_spill] sm:$0xff] %v8180_v42  ;;  %1224 = vmax.xlane.f32.xlu1 %v8177_v41  ;;  %v8524_v41 = vld [vmem:[#allocation3 + $0xf8] sm:$0xff] }
 0x2a2   : > { %v8183_v44 = vpop.f32.mrf.mxu0  ;;  %10312 = vst [vmem:[#allocation97_spill] sm:$0xff] %v8524_v41 }
 0x2a3   : > { %10257 = vst [vmem:[#allocation44_spill] sm:$0xff] %v8183_v44  ;;  %1234 = vmax.xlane.f32.xlu0 %v8180_v42  ;;  %v8483_v42 = vld [vmem:[#allocation3 + $0xd0] sm:$0xff] }
 0x2a4   : > { %v8189_v46 = vpop.f32.mrf.mxu0  ;;  %10305 = vst [vmem:[#allocation90_spill] sm:$0xff] %v8483_v42 }
 0x2a5   : > { %10258 = vst [vmem:[#allocation45_spill] sm:$0xff] %v8189_v46  ;;  %1236 = vmax.xlane.f32.xlu1 %v8189_v46 }
 0x2a6   : > { %v8192_v47 = vpop.f32.mrf.mxu0 }
 0x2a7   : > { %10259 = vst [vmem:[#allocation46_spill] sm:$0xff] %v8192_v47  ;;  %1230 = vmax.xlane.f32.xlu0 %v8183_v44 }
 0x2a9   : > { %1232 = vmax.xlane.f32.xlu1 %v8192_v47 }
 0x2ec   : > { %v8196_v48 = vpop.f32.mrf.mxu0 }
 0x2ed   : > { %10260 = vst [vmem:[#allocation47_spill] sm:$0xff] %v8196_v48  ;;  %2102 = vmax.xlane.f32.xlu0 %v8196_v48 }
 0x2ee   : > { %v8199_v49 = vpop.f32.mrf.mxu0 }
 0x2ef   : > { %10261 = vst [vmem:[#allocation48_spill] sm:$0xff] %v8199_v49  ;;  %2098 = vmax.xlane.f32.xlu1 %v8199_v49 }
 0x2f0   : > { %v8202_v50 = vpop.f32.mrf.mxu0 }
 0x2f1   : > { %10262 = vst [vmem:[#allocation49_spill] sm:$0xff] %v8202_v50 }
 0x2f2   : > { %v8204_v51 = vpop.f32.mrf.mxu0 }
 0x2f3   : > { %10263 = vst [vmem:[#allocation50_spill] sm:$0xff] %v8204_v51  ;;  %2104 = vmax.xlane.f32.xlu1 %v8202_v50  ;;  %2100 = vmax.xlane.f32.xlu0 %v8204_v51 }
 0x2f4   : > { %v8208_v52 = vpop.f32.mrf.mxu0 }
 0x2f5   : > { %10264 = vst [vmem:[#allocation51_spill] sm:$0xff] %v8208_v52 }
 0x2f6   : > { %v8210_v53 = vpop.f32.mrf.mxu0 }
 0x2f7   : > { %10265 = vst [vmem:[#allocation52_spill] sm:$0xff] %v8210_v53  ;;  %2110 = vmax.xlane.f32.xlu0 %v8208_v52  ;;  %v8374_v52 = vld [vmem:[#allocation3 + $0x68] sm:$0xff] }
 0x2f8   : > { %v8213_v54 = vpop.f32.mrf.mxu0 }
 0x2f9   : > { %10266 = vst [vmem:[#allocation53_spill] sm:$0xff] %v8213_v54  ;;  %2112 = vmax.xlane.f32.xlu1 %v8213_v54 }
 0x2fa   : > { %v8216_v55 = vpop.f32.mrf.mxu0 }
 0x2fb   : > { %10267 = vst [vmem:[#allocation54_spill] sm:$0xff] %v8216_v55  ;;  %2106 = vmax.xlane.f32.xlu0 %v8210_v53  ;;  %v8367_v53 = vld [vmem:[#allocation3 + $0x60] sm:$0xff] }
 0x2fc   : > { %v8221_v57 = vpop.f32.mrf.mxu0  ;;  %10283 = vst [vmem:[#allocation70_spill] sm:$0xff] %v8367_v53 }
 0x2fd   : > { %10268 = vst [vmem:[#allocation55_spill] sm:$0xff] %v8221_v57  ;;  %2108 = vmax.xlane.f32.xlu1 %v8216_v55 }
 0x2fe   : > { %v8224_v58 = vpop.f32.mrf.mxu0 }
 0x2ff   : > { %10269 = vst [vmem:[#allocation56_spill] sm:$0xff] %v8224_v58  ;;  %2118 = vmax.xlane.f32.xlu0 %v8221_v57 }
 0x300   : > { %v8227_v59 = vpop.f32.mrf.mxu0 }
 0x301   : > { %10270 = vst [vmem:[#allocation57_spill] sm:$0xff] %v8227_v59  ;;  %2120 = vmax.xlane.f32.xlu1 %v8227_v59 }
 0x302   : > { %v8232_v61 = vpop.f32.mrf.mxu0 }
 0x303   : > { %10271 = vst [vmem:[#allocation58_spill] sm:$0xff] %v8232_v61  ;;  %2114 = vmax.xlane.f32.xlu0 %v8224_v58  ;;  %v8359_v58 = vld [vmem:[#allocation3 + $0x78] sm:$0xff] }
 0x304   : > { %v8235_v62 = vpop.f32.mrf.mxu0 }
 0x305   : > { %10272 = vst [vmem:[#allocation59_spill] sm:$0xff] %v8235_v62  ;;  %2116 = vmax.xlane.f32.xlu1 %v8232_v61 }
 0x306   : > { %v8238_v63 = vpop.f32.mrf.mxu0 }
 0x307   : > { %10273 = vst [vmem:[#allocation60_spill] sm:$0xff] %v8238_v63  ;;  %2126 = vmax.xlane.f32.xlu0 %v8235_v62  ;;  %v8352_v62 = vld [vmem:[#allocation3 + $0x70] sm:$0xff] }
 0x308   : > { %v8243_v1 = vpop.f32.mrf.mxu0  ;;  %10281 = vst [vmem:[#allocation68_spill] sm:$0xff] %v8352_v62 }
 0x309   : > { %10274 = vst [vmem:[#allocation61_spill] sm:$0xff] %v8243_v1  ;;  %2128 = vmax.xlane.f32.xlu1 %v8243_v1 }
 0x30a   : > { %v8246_v2 = vpop.f32.mrf.mxu0 }
 0x30b   : > { %10275 = vst [vmem:[#allocation62_spill] sm:$0xff] %v8246_v2  ;;  %2122 = vmax.xlane.f32.xlu0 %v8238_v63  ;;  %v8344_v63 = vld [vmem:[#allocation3 + $0x48] sm:$0xff] }
 0x30c   : > { %v8249_v3 = vpop.f32.mrf.mxu0 }
 0x30d   : > { %10276 = vst [vmem:[#allocation63_spill] sm:$0xff] %v8249_v3  ;;  %2124 = vmax.xlane.f32.xlu1 %v8246_v2 }
 0x30e   : > { %v8254_v5 = vpop.f32.mrf.mxu0 }
 0x30f   : > { %10277 = vst [vmem:[#allocation64_spill] sm:$0xff] %v8254_v5  ;;  %3059 = vmax.xlane.f32.xlu0 %v8249_v3 }
 0x310   : > { %v8257_v6 = vpop.f32.mrf.mxu0 }
 0x311   : > { %10278 = vst [vmem:[#allocation65_spill] sm:$0xff] %v8257_v6  ;;  %3055 = vmax.xlane.f32.xlu1 %v8254_v5 }
 0x312   : > { %v8262_v8 = vpop.f32.mrf.mxu0  ;;  %v1211_v9 = vpop.xlane.xlu1 %1210 }
 0x313   : > { %10279 = vst [vmem:[#allocation66_spill] sm:$0xff] %v8262_v8  ;;  %3057 = vmax.xlane.f32.xlu0 %v8262_v8  ;;  %v8268_v11 = vmax.f32 %v8259_v7, %v1211_v9  ;;  %v8337_v8 = vld [vmem:[#allocation3 + $0x40] sm:$0xff] }
 0x314   : > { %v8270_v12 = vpop.f32.mrf.mxu0  ;;  %v1207_v13 = vpop.xlane.xlu0 %1206 }
 0x315   : > { %10280 = vst [vmem:[#allocation67_spill] sm:$0xff] %v8270_v12  ;;  %3061 = vmax.xlane.f32.xlu1 %v8257_v6  ;;  %1826 = vst.msk [vmem:[#allocation3 + $0x10] sm:$0xff] %vm1510_vm2, %v8268_v11  ;;  %v8280_v16 = vmax.f32 %v8264_v10, %v1207_v13  ;;  %v8308_v13 = vld [vmem:[#allocation3 + $0x20] sm:$0xff]  ;;  %v8329_v6 = vld [vmem:[#allocation3 + $0x58] sm:$0xff] }
 0x316   : > { %v1213_v17 = vpop.xlane.xlu1 %1212 }
 0x317   : > { %3067 = vmax.xlane.f32.xlu0 %v8270_v12  ;;  %1824 = vst.msk [vmem:[#allocation3] sm:$0xff] %vm1510_vm2, %v8280_v16  ;;  %v8290_v22 = vmax.f32 %v8272_v14, %v1213_v17 }
 0x318   : > { %v1209_v23 = vpop.xlane.xlu0 %1208 }
 0x319   : > { %1827 = vst.msk [vmem:[#allocation3 + $0x18] sm:$0xff] %vm1510_vm2, %v8290_v22  ;;  %v8297_v30 = vmax.f32 %v8282_v18, %v1209_v23 }
 0x31b   : > { %1825 = vst.msk [vmem:[#allocation3 + $0x8] sm:$0xff] %vm1510_vm2, %v8297_v30 }
 0x31c   : > { %v1219_v35 = vpop.xlane.xlu0 %1218 }
 0x31d   : > { %v8306_v43 = vmax.f32 %v8299_v34, %v1219_v35 }
 0x31e   : > { %v1221_v9 = vpop.xlane.xlu1 %1220 }
 0x31f   : > { %1830 = vst.msk [vmem:[#allocation3 + $0x30] sm:$0xff] %vm1510_vm2, %v8306_v43  ;;  %v8313_v17 = vmax.f32 %v8303_v38, %v1221_v9 }
 0x320   : > { %v1215_v23 = vpop.xlane.xlu0 %1214 }
 0x321   : > { %1831 = vst.msk [vmem:[#allocation3 + $0x38] sm:$0xff] %vm1510_vm2, %v8313_v17  ;;  %v8320_v26 = vmax.f32 %v8308_v13, %v1215_v23 }
 0x322   : > { %v1217_v35 = vpop.xlane.xlu1 %1216 }
 0x323   : > { %1828 = vst.msk [vmem:[#allocation3 + $0x20] sm:$0xff] %vm1510_vm2, %v8320_v26  ;;  %v8327_v12 = vmax.f32 %v8315_v15, %v1217_v35 }
 0x324   : > { %v1227_v9 = vpop.xlane.xlu0 %1226 }
 0x325   : > { %1829 = vst.msk [vmem:[#allocation3 + $0x28] sm:$0xff] %vm1510_vm2, %v8327_v12  ;;  %v8334_v3 = vmax.f32 %v8322_v19, %v1227_v9 }
 0x326   : > { %1314 = vperm.xlu1 %6639, %v8268_v11   ;;  %v1229_v23 = vpop.xlane.xlu1 %1228 }
 0x327   : > { %1834 = vst.msk [vmem:[#allocation3 + $0x50] sm:$0xff] %vm1510_vm2, %v8334_v3  ;;  %v8342_v35 = vmax.f32 %v8329_v6, %v1229_v23 }
 0x328   : > { %v1223_v5 = vpop.xlane.xlu0 %1222 }
 0x329   : > { %1835 = vst.msk [vmem:[#allocation3 + $0x58] sm:$0xff] %vm1510_vm2, %v8342_v35  ;;  %v8349_v9 = vmax.f32 %v8337_v8, %v1223_v5 }
 0x32a   : > { %1319 = vperm.xlu1 %6639, %v8290_v22   ;;  %v1225_v1 = vpop.xlane.xlu1 %1224 }
 0x32b   : > { %1832 = vst.msk [vmem:[#allocation3 + $0x40] sm:$0xff] %vm1510_vm2, %v8349_v9  ;;  %v8357_v23 = vmax.f32 %v8344_v63, %v1225_v1 }
 0x32c   : > { %v1235_v2 = vpop.xlane.xlu0 %1234 }
 0x32d   : > { %1304 = vperm.xlu0 %6640, %v8280_v16   ;;  %1833 = vst.msk [vmem:[#allocation3 + $0x48] sm:$0xff] %vm1510_vm2, %v8357_v23  ;;  %v8365_v5 = vmax.f32 %v8352_v62, %v1235_v2  ;;  %v8531_v62 = vld [vmem:[#allocation3 + $0xe0] sm:$0xff] }
 0x32e   : > { %v1237_v57 = vpop.xlane.xlu1 %1236  ;;  %10314 = vst [vmem:[#allocation99_spill] sm:$0xff] %v8531_v62 }
 0x32f   : > { %10282 = vst [vmem:[#allocation69_spill] sm:$0xff] %v8365_v5  ;;  %1838 = vst.msk [vmem:[#allocation3 + $0x70] sm:$0xff] %vm1510_vm2, %v8365_v5  ;;  %v8372_v1 = vmax.f32 %v8359_v58, %v1237_v57  ;;  %v8388_v57 = vpop.f32.mrf.mxu0  ;;  %v8582_v5 = vld [vmem:[#allocation3 + $0x130] sm:$0xff] }
 0x330   : > { %v1231_v61 = vpop.xlane.xlu0 %1230  ;;  %10285 = vst [vmem:[#allocation72_spill] sm:$0xff] %v8388_v57  ;;  %10326 = vst [vmem:[#allocation111_spill] sm:$0xff] %v8582_v5 }
 0x331   : > { %1839 = vst.msk [vmem:[#allocation3 + $0x78] sm:$0xff] %vm1510_vm2, %v8372_v1  ;;  %v8379_v59 = vmax.f32 %v8367_v53, %v1231_v61  ;;  %v8390_v55 = vpop.f32.mrf.mxu0 }
 0x332   : > { %v1233_v2 = vpop.xlane.xlu1 %1232  ;;  %10286 = vst [vmem:[#allocation73_spill] sm:$0xff] %v8390_v55 }
 0x333   : > { %10284 = vst [vmem:[#allocation71_spill] sm:$0xff] %v8379_v59  ;;  %1836 = vst.msk [vmem:[#allocation3 + $0x60] sm:$0xff] %vm1510_vm2, %v8379_v59  ;;  %v8384_v51 = vmax.f32 %v8374_v52, %v1233_v2  ;;  %v8392_v48 = vpop.f32.mrf.mxu0  ;;  %v8541_v59 = vld [vmem:[#allocation3 + $0xe8] sm:$0xff] }
 0x334   : > { %10287 = vst [vmem:[#allocation74_spill] sm:$0xff] %v8392_v48  ;;  %10316 = vst [vmem:[#allocation101_spill] sm:$0xff] %v8541_v59 }
 0x335   : > { %1837 = vst.msk [vmem:[#allocation3 + $0x68] sm:$0xff] %vm1510_vm2, %v8384_v51  ;;  %v8394_v54 = vpop.f32.mrf.mxu0 }
 0x336   : > { %10288 = vst [vmem:[#allocation75_spill] sm:$0xff] %v8394_v54 }
 0x337   : > { %v8396_v61 = vpop.f32.mrf.mxu0 }
 0x338   : > { %10289 = vst [vmem:[#allocation76_spill] sm:$0xff] %v8396_v61 }
 0x339   : > { %v8399_v50 = vpop.f32.mrf.mxu0 }
 0x33a   : > { %10290 = vst [vmem:[#allocation77_spill] sm:$0xff] %v8399_v50 }
 0x33b   : > { %v8403_v2 = vpop.f32.mrf.mxu0 }
 0x33c   : > { %10291 = vst [vmem:[#allocation78_spill] sm:$0xff] %v8403_v2 }
 0x33d   : > { %v8406_v49 = vpop.f32.mrf.mxu0 }
 0x33e   : > { %10292 = vst [vmem:[#allocation79_spill] sm:$0xff] %v8406_v49 }
 0x33f   : > { %v8409_v44 = vpop.f32.mrf.mxu0 }
 0x340   : > { %10293 = vst [vmem:[#allocation80_spill] sm:$0xff] %v8409_v44 }
 0x34c   : > { %3063 = vmax.xlane.f32.xlu0 %v8388_v57  ;;  %v10294_v57 = vsub.f32 %v8264_v10, %v8280_v16  ;;  %v8427_v10 = vld [vmem:[#allocation3 + $0x80] sm:$0xff] }
 0x34d   : > { %10298 = vst [vmem:[#allocation83_spill] sm:$0xff] %v8427_v10 }
 0x34e   : > { %3069 = vmax.xlane.f32.xlu1 %v8390_v55  ;;  %v1270_v55 = vmul.f32 1.442695, %v10294_v57 }
 0x350   : > { %3075 = vmax.xlane.f32.xlu0 %v8394_v54  ;;  %6721 = vpow2.f32 %v1270_v55  ;;  %v10295_v54 = vsub.f32 %v8272_v14, %v8290_v22  ;;  %v8440_v22 = vld [vmem:[#allocation3 + $0x98] sm:$0xff] }
 0x352   : > { %v1276_v46 = vmul.f32 1.442695, %v10295_v54 }
 0x354   : > { %3071 = vmax.xlane.f32.xlu0 %v8396_v61  ;;  %6723 = vpow2.f32 %v1276_v46  ;;  %v8422_v61 = vld [vmem:[#allocation3 + $0x90] sm:$0xff]  ;;  %v1259_v46 = vsub.f32 %v8315_v15, %v8327_v12 }
 0x355   : > { %10296 = vst [vmem:[#allocation81_spill] sm:$0xff] %v8422_v61 }
 0x358   : > { %3083 = vmax.xlane.f32.xlu0 %v8406_v49  ;;  %v1261_v49 = vsub.f32 %v8303_v38, %v8313_v17  ;;  %v8442_v38 = vld [vmem:[#allocation3 + $0x88] sm:$0xff] }
 0x35a   : > { %v1284_v14 = vmul.f32 1.442695, %v1261_v49 }
 0x35c   : > { %3079 = vmax.xlane.f32.xlu0 %v8409_v44  ;;  %6725 = vpow2.f32 %v1284_v14 }
 0x35d   : > { %v8424_v44 = vpop.eup %6721 }
 0x35e   : > { %10297 = vst [vmem:[#allocation82_spill] sm:$0xff] %v8424_v44 }
 0x35f   : > { %1309 = vperm.xlu1 %6639, %v8297_v30  }
 0x361   : > { %v8446_v57 = vpop.eup %6723 }
 0x362   : > { %10300 = vst [vmem:[#allocation85_spill] sm:$0xff] %v8446_v57 }
 0x369   : > { %v8492_v53 = vpop.eup %6725 }
 0x36a   : > { %10306 = vst [vmem:[#allocation91_spill] sm:$0xff] %v8492_v53 }
 0x372   : > { %1359 = vperm.xlu0 %6640, %v8342_v35  }
 0x376   : > { %v2103_v47 = vpop.xlane.xlu0 %2102  ;;  %1698 = vperm.xlu0 %6640, %v8424_v44  }
 0x377   : > { %v8430_v55 = vmax.f32 %v8422_v61, %v2103_v47  ;;  %v1280_v47 = vmul.f32 1.442695, %v1259_v46  ;;  %v8461_v46 = vld [vmem:[#allocation3 + $0xb8] sm:$0xff] }
 0x378   : > { %v2099_v54 = vpop.xlane.xlu1 %2098 }
 0x379   : > { %10299 = vst [vmem:[#allocation84_spill] sm:$0xff] %v8430_v55  ;;  %2799 = vst.msk [vmem:[#allocation3 + $0x90] sm:$0xff] %vm1510_vm2, %v8430_v55  ;;  %v8437_v16 = vmax.f32 %v8427_v10, %v2099_v54  ;;  %v8455_v10 = vld [vmem:[#allocation3 + $0xb0] sm:$0xff]  ;;  %6727 = vpow2.f32 %v1280_v47  ;;  %v8475_v55 = vld [vmem:[#allocation3 + $0xa8] sm:$0xff] }
 0x37a   : > { %1349 = vperm.xlu0 %6640, %v8357_v23   ;;  %10301 = vst [vmem:[#allocation86_spill] sm:$0xff] %v8455_v10 }
 0x37b   : > { %2797 = vst.msk [vmem:[#allocation3 + $0x80] sm:$0xff] %vm1510_vm2, %v8437_v16 }
 0x37c   : > { %v2105_v49 = vpop.xlane.xlu1 %2104  ;;  %v2101_v15 = vpop.xlane.xlu0 %2100 }
 0x37d   : > { %v8449_v44 = vmax.f32 %v8440_v22, %v2105_v49  ;;  %v8452_v54 = vmax.f32 %v8442_v38, %v2101_v15  ;;  %v8467_v15 = vld [vmem:[#allocation3 + $0xa0] sm:$0xff] }
 0x37e   : > { %1713 = vperm.xlu0 %6640, %v8446_v57   ;;  %10303 = vst [vmem:[#allocation88_spill] sm:$0xff] %v8467_v15 }
 0x37f   : > { %2800 = vst.msk [vmem:[#allocation3 + $0x98] sm:$0xff] %vm1510_vm2, %v8449_v44  ;;  %2798 = vst.msk [vmem:[#allocation3 + $0x88] sm:$0xff] %vm1510_vm2, %v8452_v54 }
 0x380   : > { %v2111_v14 = vpop.xlane.xlu0 %2110 }
 0x381   : > { %v8464_v49 = vmax.f32 %v8455_v10, %v2111_v14 }
 0x382   : > { %v2113_v61 = vpop.xlane.xlu1 %2112  ;;  %1379 = vperm.xlu0 %6640, %v8372_v1  }
 0x383   : > { %10302 = vst [vmem:[#allocation87_spill] sm:$0xff] %v8464_v49  ;;  %2803 = vst.msk [vmem:[#allocation3 + $0xb0] sm:$0xff] %vm1510_vm2, %v8464_v49  ;;  %v8472_v57 = vmax.f32 %v8461_v46, %v2113_v61  ;;  %3065 = vmax.xlane.f32.xlu1 %v8392_v48  ;;  %v8490_v49 = vld [vmem:[#allocation3 + $0xd8] sm:$0xff] }
 0x384   : > { %v2107_v47 = vpop.xlane.xlu0 %2106 }
 0x385   : > { %2804 = vst.msk [vmem:[#allocation3 + $0xb8] sm:$0xff] %vm1510_vm2, %v8472_v57  ;;  %v8480_v14 = vmax.f32 %v8467_v15, %v2107_v47 }
 0x386   : > { %v2109_v10 = vpop.xlane.xlu1 %2108  ;;  %1369 = vperm.xlu0 %6640, %v8384_v51   ;;  %v8509_v36 = vpop.eup %6727 }
 0x387   : > { %10304 = vst [vmem:[#allocation89_spill] sm:$0xff] %v8480_v14  ;;  %2801 = vst.msk [vmem:[#allocation3 + $0xa0] sm:$0xff] %vm1510_vm2, %v8480_v14  ;;  %v8488_v61 = vmax.f32 %v8475_v55, %v2109_v10 }
 0x388   : > { %v2119_v48 = vpop.xlane.xlu0 %2118  ;;  %10309 = vst [vmem:[#allocation94_spill] sm:$0xff] %v8509_v36 }
 0x389   : > { %2802 = vst.msk [vmem:[#allocation3 + $0xa8] sm:$0xff] %vm1510_vm2, %v8488_v61  ;;  %v8497_v47 = vmax.f32 %v8483_v42, %v2119_v48  ;;  %v8517_v42 = vld [vmem:[#allocation3 + $0xf0] sm:$0xff] }
 0x38a   : > { %v2121_v15 = vpop.xlane.xlu1 %2120  ;;  %1733 = vperm.xlu0 %6640, %v8492_v53   ;;  %10311 = vst [vmem:[#allocation96_spill] sm:$0xff] %v8517_v42 }
 0x38b   : > { %10307 = vst [vmem:[#allocation92_spill] sm:$0xff] %v8497_v47  ;;  %2807 = vst.msk [vmem:[#allocation3 + $0xd0] sm:$0xff] %vm1510_vm2, %v8497_v47  ;;  %v8505_v10 = vmax.f32 %v8490_v49, %v2121_v15 }
 0x38c   : > { %v2115_v14 = vpop.xlane.xlu0 %2114 }
 0x38d   : > { %2808 = vst.msk [vmem:[#allocation3 + $0xd8] sm:$0xff] %vm1510_vm2, %v8505_v10  ;;  %v8514_v48 = vmax.f32 %v8500_v37, %v2115_v14 }
 0x38e   : > { %v2117_v53 = vpop.xlane.xlu1 %2116  ;;  %1723 = vperm.xlu0 %6640, %v8509_v36  }
 0x38f   : > { %10310 = vst [vmem:[#allocation95_spill] sm:$0xff] %v8514_v48  ;;  %2805 = vst.msk [vmem:[#allocation3 + $0xc0] sm:$0xff] %vm1510_vm2, %v8514_v48  ;;  %v8522_v15 = vmax.f32 %v8507_v39, %v2117_v53  ;;  %v8538_v53 = vpop.f32.mrf.mxu0 }
 0x390   : > { %v2127_v47 = vpop.xlane.xlu0 %2126  ;;  %10315 = vst [vmem:[#allocation100_spill] sm:$0xff] %v8538_v53 }
 0x391   : > { %2806 = vst.msk [vmem:[#allocation3 + $0xc8] sm:$0xff] %vm1510_vm2, %v8522_v15  ;;  %v8529_v14 = vmax.f32 %v8517_v42, %v2127_v47 }
 0x392   : > { %v2129_v37 = vpop.xlane.xlu1 %2128 }
 0x393   : > { %10313 = vst [vmem:[#allocation98_spill] sm:$0xff] %v8529_v14  ;;  %2811 = vst.msk [vmem:[#allocation3 + $0xf0] sm:$0xff] %vm1510_vm2, %v8529_v14  ;;  %v8536_v36 = vmax.f32 %v8524_v41, %v2129_v37  ;;  %v8555_v41 = vpop.f32.mrf.mxu0 }
 0x394   : > { %v2123_v48 = vpop.xlane.xlu0 %2122  ;;  %1334 = vperm.xlu1 %6639, %v8306_v43   ;;  %10319 = vst [vmem:[#allocation104_spill] sm:$0xff] %v8555_v41 }
 0x395   : > { %2812 = vst.msk [vmem:[#allocation3 + $0xf8] sm:$0xff] %vm1510_vm2, %v8536_v36  ;;  %v8546_v47 = vmax.f32 %v8531_v62, %v2123_v48 }
 0x396   : > { %v2125_v42 = vpop.xlane.xlu1 %2124 }
 0x397   : > { %10317 = vst [vmem:[#allocation102_spill] sm:$0xff] %v8546_v47  ;;  %2809 = vst.msk [vmem:[#allocation3 + $0xe0] sm:$0xff] %vm1510_vm2, %v8546_v47  ;;  %v8553_v37 = vmax.f32 %v8541_v59, %v2125_v42  ;;  %v8572_v59 = vpop.f32.mrf.mxu0 }
 0x398   : > { %v3060_v14 = vpop.xlane.xlu0 %3059  ;;  %1324 = vperm.xlu1 %6639, %v8320_v26  }
 0x399   : > { %2810 = vst.msk [vmem:[#allocation3 + $0xe8] sm:$0xff] %vm1510_vm2, %v8553_v37  ;;  %v8563_v48 = vmax.f32 %v8548_v32, %v3060_v14 }
 0x39a   : > { %v3056_v62 = vpop.xlane.xlu1 %3055 }
 0x39b   : > { %10321 = vst [vmem:[#allocation106_spill] sm:$0xff] %v8563_v48  ;;  %3675 = vst.msk [vmem:[#allocation3 + $0x110] sm:$0xff] %vm1510_vm2, %v8563_v48  ;;  %v8570_v42 = vmax.f32 %v8558_v27, %v3056_v62  ;;  %v8589_v27 = vpop.f32.mrf.mxu0 }
 0x39c   : > { %v3058_v47 = vpop.xlane.xlu0 %3057  ;;  %1339 = vperm.xlu1 %6639, %v8313_v17  }
 0x39d   : > { %10323 = vst [vmem:[#allocation108_spill] sm:$0xff] %v8570_v42  ;;  %3673 = vst.msk [vmem:[#allocation3 + $0x100] sm:$0xff] %vm1510_vm2, %v8570_v42  ;;  %v8580_v14 = vmax.f32 %v8565_v31, %v3058_v47  ;;  %v8598_v47 = vpop.f32.mrf.mxu0 }
 0x39e   : > { %v3062_v32 = vpop.xlane.xlu1 %3061  ;;  %10329 = vst [vmem:[#allocation114_spill] sm:$0xff] %v8598_v47 }
 0x39f   : > { %10325 = vst [vmem:[#allocation110_spill] sm:$0xff] %v8580_v14  ;;  %3674 = vst.msk [vmem:[#allocation3 + $0x108] sm:$0xff] %vm1510_vm2, %v8580_v14  ;;  %v8587_v62 = vmax.f32 %v8575_v29, %v3062_v32  ;;  %v8600_v31 = vpop.f32.mrf.mxu0 }
 0x3a0   : > { %v3068_v17 = vpop.xlane.xlu0 %3067  ;;  %10330 = vst [vmem:[#allocation115_spill] sm:$0xff] %v8600_v31 }
 0x3a1   : > { %10327 = vst [vmem:[#allocation112_spill] sm:$0xff] %v8587_v62  ;;  %3676 = vst.msk [vmem:[#allocation3 + $0x118] sm:$0xff] %vm1510_vm2, %v8587_v62  ;;  %v8594_v48 = vmax.f32 %v8582_v5, %v3068_v17  ;;  %v8602_v14 = vpop.f32.mrf.mxu0  ;;  %v1265_v17 = vsub.f32 %v8329_v6, %v8342_v35 }
 0x3a2   : > { %10331 = vst [vmem:[#allocation116_spill] sm:$0xff] %v8602_v14  ;;  %v1315_v6 = vpop.permute.xlu1 %1314 }
 0x3a3   : > { %10328 = vst [vmem:[#allocation113_spill] sm:$0xff] %v8594_v48  ;;  %3679 = vst.msk [vmem:[#allocation3 + $0x130] sm:$0xff] %vm1510_vm2, %v8594_v48  ;;  %v8605_v32 = vpop.f32.mrf.mxu0  ;;  %v1292_v5 = vmul.f32 1.442695, %v1265_v17  ;;  %v1263_v48 = vsub.f32 %v8344_v63, %v8357_v23 }
 0x3a4   : > { %10332 = vst [vmem:[#allocation117_spill] sm:$0xff] %v8605_v32 }
 0x3a5   : > { %v8608_v29 = vpop.f32.mrf.mxu0  ;;  %6729 = vpow2.f32 %v1292_v5  ;;  %v1288_v62 = vmul.f32 1.442695, %v1263_v48  ;;  %v8628_v5 = vld [vmem:[#allocation3 + $0x120] sm:$0xff]  ;;  %v8630_v48 = vld [vmem:[#allocation3 + $0x138] sm:$0xff] }
 0x3a6   : > { %10333 = vst [vmem:[#allocation118_spill] sm:$0xff] %v8608_v29  ;;  %10337 = vst [vmem:[#allocation122_spill] sm:$0xff] %v8628_v5 }
 0x3a7   : > { %6731 = vpow2.f32 %v1288_v62  ;;  %10338 = vst [vmem:[#allocation123_spill] sm:$0xff] %v8630_v48 }
 0x3a8   : > { %v1305_v63 = vpop.permute.xlu0 %1304 }
 0x3ad   : > { %3959 = vmax.xlane.f32.xlu0 %v8602_v14  ;;  %v1269_v14 = vsub.f32 %v8359_v58, %v8372_v1  ;;  %v1320_v58 = vpop.permute.xlu1 %1319 }
 0x3b1   : > { %3955 = vmax.xlane.f32.xlu0 %v8605_v32  ;;  %v1300_v32 = vmul.f32 1.442695, %v1269_v14  ;;  %v1385_v14 = vsub.f32 %v8140_v24, %v1320_v58  ;;  %v8650_v58 = vld [vmem:[#allocation3 + $0x140] sm:$0xff] }
 0x3b2   : > { %v8618_v42 = vpop.eup %6729  ;;  %10340 = vst [vmem:[#allocation125_spill] sm:$0xff] %v8650_v58 }
 0x3b3   : > { %6733 = vpow2.f32 %v1300_v32  ;;  %10334 = vst [vmem:[#allocation119_spill] sm:$0xff] %v8618_v42  ;;  %v1382_v32 = vsub.f32 %v8135_v21, %v1305_v63 }
 0x3b4   : > { %v8621_v35 = vpop.eup %6731 }
 0x3b5   : > { %3961 = vmax.xlane.f32.xlu0 %v8608_v29  ;;  %10335 = vst [vmem:[#allocation120_spill] sm:$0xff] %v8621_v35  ;;  %v8637_v29 = vld [vmem:[#allocation3 + $0x150] sm:$0xff]  ;;  %v1398_v21 = vmul.f32 1.442695, %v1382_v32 }
 0x3b6   : > { %10339 = vst [vmem:[#allocation124_spill] sm:$0xff] %v8637_v29 }
 0x3c0   : > { %3077 = vmax.xlane.f32.xlu1 %v8399_v50  ;;  %v8625_v23 = vpop.eup %6733  ;;  %v1384_v50 = vsub.f32 %v8132_v20, %v1315_v6 }
 0x3c1   : > { %10336 = vst [vmem:[#allocation121_spill] sm:$0xff] %v8625_v23 }
 0x3cb   : > { %1753 = vperm.xlu0 %6640, %v8618_v42  }
 0x3cf   : > { %1743 = vperm.xlu0 %6640, %v8621_v35   ;;  %v1404_v35 = vmul.f32 1.442695, %v1385_v14  ;;  %v8658_v14 = vld [vmem:[#allocation3 + $0x170] sm:$0xff] }
 0x3d0   : > { %10341 = vst [vmem:[#allocation126_spill] sm:$0xff] %v8658_v14 }
 0x3d1   : > { %1329 = vperm.xlu1 %6639, %v8327_v12   ;;  %6735 = vpow2.f32 %v1404_v35 }
 0x3d2   : > { %6737 = vpow2.f32 %v1398_v21 }
 0x3d3   : > { %1773 = vperm.xlu0 %6640, %v8625_v23  }
 0x3d5   : > { %v3064_v1 = vpop.xlane.xlu0 %3063 }
 0x3d6   : > { %v8634_v62 = vmax.f32 %v8628_v5, %v3064_v1 }
 0x3d7   : > { %v3070_v17 = vpop.xlane.xlu1 %3069 }
 0x3d8   : > { %3677 = vst.msk [vmem:[#allocation3 + $0x120] sm:$0xff] %vm1510_vm2, %v8634_v62  ;;  %v8642_v12 = vmax.f32 %v8630_v48, %v3070_v17  ;;  %v1402_v17 = vmul.f32 1.442695, %v1384_v50  ;;  %v8667_v50 = vld [vmem:[#allocation3 + $0x160] sm:$0xff] }
 0x3d9   : > { %v3076_v23 = vpop.xlane.xlu0 %3075  ;;  %10344 = vst [vmem:[#allocation129_spill] sm:$0xff] %v8667_v50 }
 0x3da   : > { %3680 = vst.msk [vmem:[#allocation3 + $0x138] sm:$0xff] %vm1510_vm2, %v8642_v12  ;;  %v8648_v24 = vmax.f32 %v8637_v29, %v3076_v23  ;;  %v8662_v23 = vpop.f32.mrf.mxu0 }
 0x3db   : > { %v1310_v63 = vpop.permute.xlu1 %1309  ;;  %10342 = vst [vmem:[#allocation127_spill] sm:$0xff] %v8662_v23 }
 0x3dc   : > { %v1383_v1 = vsub.f32 %v8143_v25, %v1310_v63  ;;  %3683 = vst.msk [vmem:[#allocation3 + $0x150] sm:$0xff] %vm1510_vm2, %v8648_v24  ;;  %v8671_v35 = vpop.f32.mrf.mxu0 }
 0x3dd   : > { %v3072_v48 = vpop.xlane.xlu0 %3071  ;;  %10345 = vst [vmem:[#allocation130_spill] sm:$0xff] %v8671_v35 }
 0x3de   : > { %v1400_v20 = vmul.f32 1.442695, %v1383_v1  ;;  %v8656_v6 = vmax.f32 %v8650_v58, %v3072_v48  ;;  %v8678_v63 = vpop.f32.mrf.mxu0  ;;  %v8680_v1 = vpop.eup %6735  ;;  %v1267_v58 = vsub.f32 %v8374_v52, %v8384_v51  ;;  %v8723_v52 = vld [vmem:[#allocation3 + $0x128] sm:$0xff] }
 0x3df   : > { %10347 = vst [vmem:[#allocation132_spill] sm:$0xff] %v8678_v63  ;;  %10352 = vst [vmem:[#allocation136_spill] sm:$0xff] %v8723_v52 }
 0x3e0   : > { %6739 = vpow2.f32 %v1400_v20  ;;  %3681 = vst.msk [vmem:[#allocation3 + $0x140] sm:$0xff] %vm1510_vm2, %v8656_v6  ;;  %v1296_v5 = vmul.f32 1.442695, %v1267_v58 }
 0x3e1   : > { %6741 = vpow2.f32 %v1402_v17  ;;  %v3084_v25 = vpop.xlane.xlu0 %3083  ;;  %v8682_v17 = vpop.eup %6737 }
 0x3e2   : > { %v8665_v32 = vmax.f32 %v8658_v14, %v3084_v25  ;;  %v8686_v25 = vpop.f32.mrf.mxu0  ;;  %6743 = vpow2.f32 %v1296_v5 }
 0x3e3   : > { %10348 = vst [vmem:[#allocation133_spill] sm:$0xff] %v8686_v25 }
 0x3e4   : > { %10343 = vst [vmem:[#allocation128_spill] sm:$0xff] %v8665_v32  ;;  %3687 = vst.msk [vmem:[#allocation3 + $0x170] sm:$0xff] %vm1510_vm2, %v8665_v32  ;;  %v10382_v32 = vld [vmem:[#allocation70_spill] sm:$0xff] }
 0x3e5   : > { %v3080_v48 = vpop.xlane.xlu0 %3079 }
 0x3e6   : > { %v8674_v21 = vmax.f32 %v8667_v50, %v3080_v48  ;;  %v8694_v50 = vpop.f32.mrf.mxu0 }
 0x3e7   : > { %10349 = vst [vmem:[#allocation134_spill] sm:$0xff] %v8694_v50 }
 0x3e8   : > { %10346 = vst [vmem:[#allocation131_spill] sm:$0xff] %v8674_v21  ;;  %3685 = vst.msk [vmem:[#allocation3 + $0x160] sm:$0xff] %vm1510_vm2, %v8674_v21 }
 0x3ed   : > { %v8684_v20 = vpop.eup %6739  ;;  %v8718_v51 = vpop.permute.xlu0 %1359 }
 0x3ee   : > { %v8688_v14 = vpop.eup %6741  ;;  %v1527_v29 = vpack.c.bf16 %v8684_v20, %v8682_v17 }
 0x3ef   : > { %v1528_v48 = vpack.c.bf16 %v8680_v1, %v8688_v14 }
 0x3f0   : > { %6214 = vmatprep.mubr.bf16.mxu1 %v1527_v29  ;;  %v10350_v29 = vsub.f32 %v8259_v7, %v8268_v11  ;;  %v2147_v11 = vsub.f32 %v8442_v38, %v8452_v54 }
 0x3f1   : > { %6215 = vmatmul.mubr.bf16.vlgmr.msra.gmra.mxu1 %v1528_v48  ;;  %v8734_v7 = vpop.permute.xlu0 %1698  ;;  %v2151_v48 = vsub.f32 %v8475_v55, %v8488_v61  ;;  %v2155_v55 = vsub.f32 %v8507_v39, %v8522_v15  ;;  %v1255_v39 = vsub.f32 %v8282_v18, %v8297_v30  ;;  %v8800_v30 = vld [vmem:[#allocation3 + $0x1b8] sm:$0xff] }
 0x3f2   : > { %6255 = vmatpush3.bf16.msra.mxu1 %v8185_v45  ;;  %3965 = vmax.xlane.f32.xlu0 %v8694_v50  ;;  %v1274_v45 = vmul.f32 1.442695, %v10350_v29  ;;  %10362 = vst [vmem:[#allocation146_spill] sm:$0xff] %v8800_v30 }
 0x3f3   : > { %6256 = vmatprep.subr.bf16.mxu1 %v8252_v4 }
 0x3f4   : > { %6745 = vpow2.f32 %v1274_v45  ;;  %v2172_v45 = vmul.f32 1.442695, %v2151_v48  ;;  %v1272_v48 = vmul.f32 1.442695, %v1255_v39 }
 0x3f5   : > { %3073 = vmax.xlane.f32.xlu1 %v8403_v2  ;;  %v8743_v5 = vpop.permute.xlu0 %1349 }
 0x3f6   : > { %6257 = vmatpush3.bf16.msra.mxu1 %v8252_v4  ;;  %v2149_v4 = vsub.f32 %v8440_v22, %v8449_v44  ;;  %v2164_v22 = vmul.f32 1.442695, %v2147_v11  ;;  %v8779_v11 = vld [vmem:[#allocation3 + $0x1b0] sm:$0xff] }
 0x3f7   : > { %6258 = vmatprep.subr.bf16.mxu1 %v8174_v40  ;;  %10356 = vst [vmem:[#allocation140_spill] sm:$0xff] %v8779_v11 }
 0x3fa   : > { %6259 = vmatpush3.bf16.msra.mxu1 %v8174_v40  ;;  %v8715_v40 = vpop.eup %6743 }
 0x3fb   : > { %6260 = vmatprep.subr.bf16.mxu1 %v8241_v0  ;;  %10351 = vst [vmem:[#allocation135_spill] sm:$0xff] %v8715_v40 }
 0x3fe   : > { %6261 = vmatpush3.bf16.msra.mxu1 %v8241_v0 }
 0x3ff   : > { %6262 = vmatprep.subr.bf16.mxu1 %v8160_v33 }
 0x402   : > { %6263 = vmatpush3.bf16.msra.mxu1 %v8160_v33 }
 0x403   : > { %6264 = vmatprep.subr.bf16.mxu1 %v8230_v60 }
 0x406   : > { %6265 = vmatpush3.bf16.msra.mxu1 %v8230_v60  ;;  %1354 = vperm.xlu1 %6639, %v8334_v3   ;;  %v8727_v60 = vpop.eup %6745 }
 0x407   : > { %6266 = vmatprep.subr.bf16.mxu1 %v8219_v56 }
 0x408   : > { %1763 = vperm.xlu0 %6640, %v8715_v40  }
 0x40a   : > { %6267 = vmatpush3.bf16.msra.mxu1 %v8219_v56  ;;  %1344 = vperm.xlu1 %6639, %v8349_v9   ;;  %v2168_v56 = vmul.f32 1.442695, %v2149_v4 }
 0x40b   : > { %6268 = vmatprep.subr.bf16.mxu1 %v8149_v28 }
 0x40c   : > { %v3066_v33 = vpop.xlane.xlu1 %3065  ;;  %2196 = vperm.xlu0 %6640, %v8437_v16   ;;  %6747 = vpow2.f32 %v2168_v56  ;;  %v2180_v56 = vmul.f32 1.442695, %v2155_v55  ;;  %v1260_v55 = vsub.f32 %v8299_v34, %v8306_v43  ;;  %v1264_v43 = vsub.f32 %v8322_v19, %v8334_v3  ;;  %v10370_v19 = vld [vmem:[#allocation35_spill] sm:$0xff] }
 0x40d   : > { %v8730_v0 = vmax.f32 %v8723_v52, %v3066_v33  ;;  %6749 = vpow2.f32 %v2164_v22  ;;  %v2157_v33 = vsub.f32 %v8490_v49, %v8505_v10  ;;  %v1262_v52 = vsub.f32 %v8337_v8, %v8349_v9 }
 0x40e   : > { %6269 = vmatpush3.bf16.msra.mxu1 %v8149_v28  ;;  %1708 = vperm.xlu1 %6639, %v8727_v60   ;;  %v8747_v28 = vpop.permute.xlu0 %1713 }
 0x40f   : > { %3678 = vst.msk [vmem:[#allocation3 + $0x128] sm:$0xff] %vm1510_vm2, %v8730_v0  ;;  %v1286_v3 = vmul.f32 1.442695, %v1262_v52 }
 0x410   : > { %2211 = vperm.xlu0 %6640, %v8449_v44   ;;  %v2153_v44 = vsub.f32 %v8461_v46, %v8472_v57  ;;  %v2184_v46 = vmul.f32 1.442695, %v2157_v33 }
 0x412   : > { %v8752_v58 = vpop.permute.xlu0 %1379  ;;  %v2176_v38 = vmul.f32 1.442695, %v2153_v44 }
 0x414   : > { %2231 = vperm.xlu0 %6640, %v8472_v57   ;;  %6751 = vpow2.f32 %v2176_v38  ;;  %v8790_v38 = vld [vmem:[#allocation3 + $0x1a0] sm:$0xff] }
 0x415   : > { %6753 = vpow2.f32 %v2172_v45  ;;  %10359 = vst [vmem:[#allocation143_spill] sm:$0xff] %v8790_v38  ;;  %v1335_v45 = vpop.permute.xlu1 %1334 }
 0x416   : > { %v8762_v4 = vpop.permute.xlu0 %1369  ;;  %6755 = vpow2.f32 %v2184_v46  ;;  %v1388_v2 = vsub.f32 %v10370_v19, %v1335_v45 }
 0x417   : > { %6757 = vpow2.f32 %v2180_v56 }
 0x418   : > { %2221 = vperm.xlu0 %6640, %v8488_v61   ;;  %6759 = vpow2.f32 %v1272_v48 }
 0x419   : > { %v8757_v29 = vpop.eup %6747 }
 0x41a   : > { %10353 = vst [vmem:[#allocation137_spill] sm:$0xff] %v8757_v29  ;;  %v8764_v57 = vpop.eup %6749  ;;  %v8769_v61 = vpop.permute.xlu0 %1733 }
 0x41b   : > { %10354 = vst [vmem:[#allocation138_spill] sm:$0xff] %v8764_v57 }
 0x41c   : > { %2251 = vperm.xlu0 %6640, %v8505_v10  }
 0x41e   : > { %v8773_v49 = vpop.permute.xlu0 %1723 }
 0x420   : > { %2241 = vperm.xlu0 %6640, %v8522_v15  }
 0x421   : > { %v8776_v10 = vpop.eup %6751 }
 0x422   : > { %10355 = vst [vmem:[#allocation139_spill] sm:$0xff] %v8776_v10  ;;  %v8784_v22 = vpop.eup %6753 }
 0x423   : > { %10357 = vst [vmem:[#allocation141_spill] sm:$0xff] %v8784_v22  ;;  %v8794_v46 = vpop.eup %6755 }
 0x424   : > { %2621 = vperm.xlu0 %6640, %v8757_v29   ;;  %10360 = vst [vmem:[#allocation144_spill] sm:$0xff] %v8794_v46  ;;  %v8806_v39 = vpop.eup %6757 }
 0x425   : > { %10363 = vst [vmem:[#allocation147_spill] sm:$0xff] %v8806_v39 }
 0x428   : > { %2611 = vperm.xlu0 %6640, %v8764_v57  }
 0x42c   : > { %2271 = vperm.xlu0 %6640, %v8536_v36  }
 0x430   : > { %2261 = vperm.xlu0 %6640, %v8553_v37  }
 0x432   : > { %3085 = vmax.xlane.f32.xlu1 %v8538_v53 }
 0x434   : > { %2641 = vperm.xlu0 %6640, %v8776_v10  }
 0x436   : > { %3081 = vmax.xlane.f32.xlu1 %v8555_v41  ;;  %v3960_v15 = vpop.xlane.xlu0 %3959 }
 0x437   : > { %v8787_v44 = vmax.f32 %v8779_v11, %v3960_v15  ;;  %v1325_v15 = vpop.permute.xlu1 %1324 }
 0x438   : > { %2631 = vperm.xlu0 %6640, %v8784_v22  }
 0x439   : > { %10358 = vst [vmem:[#allocation142_spill] sm:$0xff] %v8787_v44  ;;  %4651 = vst.msk [vmem:[#allocation3 + $0x1b0] sm:$0xff] %vm1510_vm2, %v8787_v44 }
 0x43a   : > { %v3956_v33 = vpop.xlane.xlu0 %3955 }
 0x43b   : > { %v8797_v18 = vmax.f32 %v8790_v38, %v3956_v33  ;;  %v1282_v33 = vmul.f32 1.442695, %v1260_v55  ;;  %v1258_v38 = vsub.f32 %v8308_v13, %v8320_v26  ;;  %v1340_v48 = vpop.permute.xlu1 %1339  ;;  %v10367_v55 = vld [vmem:[#allocation36_spill] sm:$0xff]  ;;  %v1290_v26 = vmul.f32 1.442695, %v1264_v43  ;;  %v10368_v13 = vld [vmem:[#allocation37_spill] sm:$0xff] }
 0x43c   : > { %2661 = vperm.xlu0 %6640, %v8794_v46   ;;  %v1386_v50 = vsub.f32 %v10367_v55, %v1325_v15  ;;  %v1389_v53 = vsub.f32 %v10368_v13, %v1340_v48  ;;  %v1410_v48 = vmul.f32 1.442695, %v1388_v2  ;;  %v10372_v55 = vld [vmem:[#allocation71_spill] sm:$0xff]  ;;  %v10380_v46 = vld [vmem:[#allocation41_spill] sm:$0xff] }
 0x43d   : > { %10361 = vst [vmem:[#allocation145_spill] sm:$0xff] %v8797_v18  ;;  %4649 = vst.msk [vmem:[#allocation3 + $0x1a0] sm:$0xff] %vm1510_vm2, %v8797_v18  ;;  %6761 = vpow2.f32 %v1282_v33  ;;  %v1278_v34 = vmul.f32 1.442695, %v1258_v38  ;;  %v8825_v33 = vpop.eup %6759  ;;  %v1393_v22 = vsub.f32 %v10380_v46, %v8718_v51 }
 0x43e   : > { %v3962_v56 = vpop.xlane.xlu0 %3961  ;;  %v1406_v8 = vmul.f32 1.442695, %v1386_v50  ;;  %v1412_v9 = vmul.f32 1.442695, %v1389_v53 }
 0x43f   : > { %v8809_v11 = vmax.f32 %v8800_v30, %v3962_v56  ;;  %v10365_v56 = vld [vmem:[#allocation69_spill] sm:$0xff]  ;;  %v8821_v30 = vld [vmem:[#allocation3 + $0x158] sm:$0xff]  ;;  %6763 = vpow2.f32 %v1278_v34  ;;  %v1420_v29 = vmul.f32 1.442695, %v1393_v22 }
 0x440   : > { %2651 = vperm.xlu0 %6640, %v8806_v39   ;;  %10366 = vst [vmem:[#allocation69_spill] sm:$0xff] %v8821_v30  ;;  %6765 = vpow2.f32 %v1290_v26  ;;  %v10371_v34 = vld [vmem:[#allocation38_spill] sm:$0xff] }
 0x441   : > { %10364 = vst [vmem:[#allocation148_spill] sm:$0xff] %v8809_v11  ;;  %4652 = vst.msk [vmem:[#allocation3 + $0x1b8] sm:$0xff] %vm1510_vm2, %v8809_v11  ;;  %6767 = vpow2.f32 %v1286_v3 }
 0x442   : > { %6769 = vpow2.f32 %v1406_v8 }
 0x443   : > { %6771 = vpow2.f32 %v1412_v9 }
 0x446   : > { %v8856_v9 = vpop.permute.xlu0 %1753 }
 0x447   : > { %1374 = vperm.xlu1 %6639, %v10365_v56  }
 0x449   : > { %v3078_v41 = vpop.xlane.xlu1 %3077 }
 0x44a   : > { %v8828_v38 = vmax.f32 %v8821_v30, %v3078_v41  ;;  %v8836_v52 = vpop.eup %6761 }
 0x44b   : > { %1703 = vperm.xlu1 %6639, %v8825_v33  }
 0x44c   : > { %10369 = vst [vmem:[#allocation36_spill] sm:$0xff] %v8828_v38  ;;  %3684 = vst.msk [vmem:[#allocation3 + $0x158] sm:$0xff] %vm1510_vm2, %v8828_v38  ;;  %v8839_v50 = vpop.eup %6763 }
 0x44d   : > { %v1330_v15 = vpop.permute.xlu1 %1329  ;;  %v8842_v53 = vpop.eup %6765 }
 0x44e   : > { %v1387_v43 = vsub.f32 %v10371_v34, %v1330_v15  ;;  %v8845_v2 = vpop.eup %6767  ;;  %v8858_v15 = vpop.permute.xlu0 %1743 }
 0x44f   : > { %1364 = vperm.xlu1 %6639, %v10372_v55   ;;  %v6770_v45 = vpop.eup %6769 }
 0x450   : > { %v1408_v41 = vmul.f32 1.442695, %v1387_v43  ;;  %v8847_v26 = vpop.eup %6771  ;;  %v8862_v43 = vld [vmem:[#allocation3 + $0x1c8] sm:$0xff] }
 0x451   : > { %10373 = vst [vmem:[#allocation37_spill] sm:$0xff] %v8862_v43 }
 0x452   : > { %6773 = vpow2.f32 %v1408_v41  ;;  %v8860_v34 = vpop.permute.xlu0 %1773  ;;  %v8867_v41 = vld [vmem:[#allocation3 + $0x148] sm:$0xff] }
 0x453   : > { %6775 = vpow2.f32 %v1410_v48  ;;  %1728 = vperm.xlu1 %6639, %v8836_v52   ;;  %10375 = vst [vmem:[#allocation38_spill] sm:$0xff] %v8867_v41 }
 0x457   : > { %1718 = vperm.xlu1 %6639, %v8839_v50  }
 0x45b   : > { %1748 = vperm.xlu1 %6639, %v8842_v53  }
 0x45f   : > { %v8849_v13 = vpop.eup %6773  ;;  %1738 = vperm.xlu1 %6639, %v8845_v2   ;;  %1466 = vadd.xlane.f32.xlu0 %v8688_v14 }
 0x460   : > { %v6776_v3 = vpop.eup %6775  ;;  %v1529_v19 = vpack.c.bf16 %v8849_v13, %v6770_v45 }
 0x461   : > { %v1530_v8 = vpack.c.bf16 %v8847_v26, %v6776_v3 }
 0x462   : > { %6218 = vmatprep.mubr.bf16.mxu1 %v1529_v19 }
 0x463   : > { %6219 = vmatmul.mubr.bf16.gmra.mxu1 %v1530_v8  ;;  %1464 = vadd.xlane.f32.xlu0 %v8684_v20  ;;  %v10378_v8 = vld [vmem:[#allocation42_spill] sm:$0xff] }
 0x464   : > { %v1391_v30 = vsub.f32 %v10378_v8, %v8743_v5 }
 0x467   : > { %1474 = vadd.xlane.f32.xlu0 %v6776_v3 }
 0x46b   : > { %1470 = vadd.xlane.f32.xlu0 %v6770_v45  ;;  %v10377_v45 = vld [vmem:[#allocation68_spill] sm:$0xff] }
 0x46c   : > { %v1268_v19 = vsub.f32 %v10377_v45, %v10365_v56  ;;  %v10381_v56 = vld [vmem:[#allocation40_spill] sm:$0xff] }
 0x46e   : > { %v1298_v57 = vmul.f32 1.442695, %v1268_v19 }
 0x47b   : > { %v3966_v14 = vpop.xlane.xlu0 %3965 }
 0x47c   : > { %v8865_v48 = vmax.f32 %v8862_v43, %v3966_v14  ;;  %v10379_v43 = vld [vmem:[#allocation39_spill] sm:$0xff] }
 0x47e   : > { %10374 = vst [vmem:[#allocation35_spill] sm:$0xff] %v8865_v48  ;;  %4654 = vst.msk [vmem:[#allocation3 + $0x1c8] sm:$0xff] %vm1510_vm2, %v8865_v48  ;;  %v3074_v20 = vpop.xlane.xlu1 %3073 }
 0x47f   : > { %v8872_v3 = vmax.f32 %v8867_v41, %v3074_v20  ;;  %v1416_v41 = vmul.f32 1.442695, %v1391_v30 }
 0x481   : > { %10376 = vst [vmem:[#allocation71_spill] sm:$0xff] %v8872_v3  ;;  %3682 = vst.msk [vmem:[#allocation3 + $0x148] sm:$0xff] %vm1510_vm2, %v8872_v3 }
 0x482   : > { %v1355_v14 = vpop.permute.xlu1 %1354 }
 0x483   : > { %v1392_v39 = vsub.f32 %v10379_v43, %v1355_v14  ;;  %3957 = vmax.xlane.f32.xlu1 %v8662_v23  ;;  %v8886_v43 = vpop.permute.xlu0 %1763  ;;  %v1682_v14 = vld [vmem:[#allocation5 + $0x20] sm:$0xff] }
 0x485   : > { %v1418_v20 = vmul.f32 1.442695, %v1392_v39 }
 0x486   : > { %v1345_v10 = vpop.permute.xlu1 %1344 }
 0x487   : > { %6777 = vpow2.f32 %v1418_v20  ;;  %v1390_v45 = vsub.f32 %v10381_v56, %v1345_v10  ;;  %3967 = vmax.xlane.f32.xlu1 %v8671_v35  ;;  %v8890_v46 = vpop.permute.xlu0 %2196  ;;  %v1683_v35 = vld [vmem:[#allocation5 + $0x30] sm:$0xff] }
 0x488   : > { %6779 = vpow2.f32 %v1298_v57 }
 0x489   : > { %v1414_v5 = vmul.f32 1.442695, %v1390_v45  ;;  %6781 = vpow2.f32 %v1416_v41  ;;  %v1680_v45 = vld [vmem:[#allocation5] sm:$0xff] }
 0x48a   : > { %v1709_v20 = vpop.permute.xlu1 %1708 }
 0x48b   : > { %6783 = vpow2.f32 %v1414_v5  ;;  %v8899_v22 = vpop.permute.xlu0 %2211  ;;  %v1778_v5 = vmul.f32 %v1709_v20, %v1682_v14  ;;  %v1266_v14 = vsub.f32 %v10382_v32, %v10372_v55  ;;  %v8916_v20 = vld [vmem:[#allocation3 + $0x178] sm:$0xff] }
 0x48c   : > { %6785 = vpow2.f32 %v1420_v29  ;;  %10383 = vst [vmem:[#allocation68_spill] sm:$0xff] %v8916_v20 }
 0x48f   : > { %v8901_v41 = vpop.permute.xlu0 %2231 }
 0x493   : > { %v8903_v19 = vpop.permute.xlu0 %2221 }
 0x494   : > { %v6778_v8 = vpop.eup %6777 }
 0x495   : > { %1482 = vadd.xlane.f32.xlu0 %v6778_v8  ;;  %v8888_v51 = vpop.eup %6779 }
 0x496   : > { %v8892_v30 = vpop.eup %6781 }
 0x497   : > { %v8905_v56 = vpop.permute.xlu0 %2251 }
 0x498   : > { %v6784_v39 = vpop.eup %6783  ;;  %1768 = vperm.xlu1 %6639, %v8888_v51  }
 0x499   : > { %v8895_v10 = vpop.eup %6785  ;;  %1478 = vadd.xlane.f32.xlu0 %v6784_v39  ;;  %v1531_v57 = vpack.c.bf16 %v8892_v30, %v6784_v39  ;;  %v1776_v39 = vmul.f32 %v8734_v7, %v1680_v45  ;;  %v1294_v7 = vmul.f32 1.442695, %v1266_v14  ;;  %v10389_v45 = vld [vmem:[#allocation43_spill] sm:$0xff] }
 0x49a   : > { %v1532_v29 = vpack.c.bf16 %v8895_v10, %v6778_v8 }
 0x49b   : > { %6222 = vmatprep.mubr.bf16.mxu1 %v1531_v57  ;;  %v1779_v57 = vmul.f32 %v8747_v28, %v1683_v35  ;;  %v8909_v44 = vpop.permute.xlu0 %2241  ;;  %6787 = vpow2.f32 %v1294_v7 }
 0x49c   : > { %6223 = vmatmul.mubr.bf16.gmra.mxu1 %v1532_v29 }
 0x4a8   : > { %v8942_v42 = vpop.eup %6787 }
 0x4b1   : > { %v6216_v23 = vpop.f32.mrf.mxu1 }
 0x4b2   : > { %v1794_v40 = vadd.f32 %v6216_v23, %v1778_v5  ;;  %v8918_v23 = vpop.permute.xlu0 %2621 }
 0x4b3   : > { %v1617_v8 = vpop.f32.mrf.mxu1  ;;  %10384 = vst [vmem:[#allocation42_spill] sm:$0xff] %v8918_v23 }
 0x4b4   : > { %1810 = vst.msk [vmem:[#allocation5 + $0x20] sm:$0xff] %vm1068_vm1, %v1794_v40  ;;  %v1792_v29 = vadd.f32 %v1776_v39, %v1617_v8  ;;  %v8924_v40 = vld [vmem:[#allocation3 + $0x168] sm:$0xff]  ;;  %v1681_v39 = vld [vmem:[#allocation5 + $0x10] sm:$0xff] }
 0x4b5   : > { %v6217_v18 = vpop.f32.mrf.mxu1  ;;  %10386 = vst [vmem:[#allocation41_spill] sm:$0xff] %v8924_v40 }
 0x4b6   : > { %1808 = vst.msk [vmem:[#allocation5] sm:$0xff] %vm1068_vm1, %v1792_v29  ;;  %v1795_v48 = vadd.f32 %v6217_v18, %v1779_v57  ;;  %v8928_v18 = vpop.permute.xlu0 %2611  ;;  %v10390_v29 = vld [vmem:[#allocation46_spill] sm:$0xff] }
 0x4b7   : > { %10387 = vst [vmem:[#allocation40_spill] sm:$0xff] %v8928_v18  ;;  %v1395_v14 = vsub.f32 %v10390_v29, %v8762_v4 }
 0x4b8   : > { %1811 = vst.msk [vmem:[#allocation5 + $0x30] sm:$0xff] %vm1068_vm1, %v1795_v48 }
 0x4b9   : > { %v1424_v23 = vmul.f32 1.442695, %v1395_v14 }
 0x4ba   : > { %v8936_v8 = vpop.permute.xlu0 %2271 }
 0x4bb   : > { %v3086_v35 = vpop.xlane.xlu1 %3085 }
 0x4bc   : > { %v8921_v28 = vmax.f32 %v8916_v20, %v3086_v35  ;;  %3963 = vmax.xlane.f32.xlu1 %v8678_v63  ;;  %v10391_v20 = vld [vmem:[#allocation45_spill] sm:$0xff] }
 0x4be   : > { %10385 = vst [vmem:[#allocation39_spill] sm:$0xff] %v8921_v28  ;;  %3688 = vst.msk [vmem:[#allocation3 + $0x178] sm:$0xff] %vm1510_vm2, %v8921_v28 }
 0x4bf   : > { %v3082_v32 = vpop.xlane.xlu1 %3081 }
 0x4c0   : > { %v8931_v55 = vmax.f32 %v8924_v40, %v3082_v32  ;;  %v1397_v32 = vsub.f32 %v10391_v20, %v8752_v58  ;;  %v1620_v40 = vpop.f32.mrf.mxu1  ;;  %v10393_v58 = vld [vmem:[#allocation84_spill] sm:$0xff] }
 0x4c2   : > { %10388 = vst [vmem:[#allocation70_spill] sm:$0xff] %v8931_v55  ;;  %3686 = vst.msk [vmem:[#allocation3 + $0x168] sm:$0xff] %vm1510_vm2, %v8931_v55  ;;  %v1428_v11 = vmul.f32 1.442695, %v1397_v32  ;;  %v8962_v32 = vpop.f32.mrf.mxu0 }
 0x4c3   : > { %v1375_v48 = vpop.permute.xlu1 %1374 }
 0x4c4   : > { %v1396_v5 = vsub.f32 %v10389_v45, %v1375_v48  ;;  %v8944_v48 = vpop.permute.xlu0 %2261  ;;  %v10392_v45 = vld [vmem:[#allocation44_spill] sm:$0xff] }
 0x4c6   : > { %v1426_v57 = vmul.f32 1.442695, %v1396_v5 }
 0x4c7   : > { %v1704_v7 = vpop.permute.xlu1 %1703 }
 0x4c8   : > { %6789 = vpow2.f32 %v1426_v57  ;;  %v1777_v35 = vmul.f32 %v1704_v7, %v1681_v39  ;;  %v8950_v20 = vpop.permute.xlu0 %2641 }
 0x4c9   : > { %6791 = vpow2.f32 %v1424_v23  ;;  %10394 = vst [vmem:[#allocation43_spill] sm:$0xff] %v8950_v20  ;;  %v10398_v23 = vld [vmem:[#allocation87_spill] sm:$0xff] }
 0x4ca   : > { %v1793_v18 = vadd.f32 %v1777_v35, %v1620_v40  ;;  %v10395_v40 = vld [vmem:[#allocation81_spill] sm:$0xff] }
 0x4cb   : > { %v1365_v63 = vpop.permute.xlu1 %1364  ;;  %v2148_v39 = vsub.f32 %v10395_v40, %v10393_v58  ;;  %v10401_v40 = vld [vmem:[#allocation92_spill] sm:$0xff] }
 0x4cc   : > { %1809 = vst.msk [vmem:[#allocation5 + $0x10] sm:$0xff] %vm1068_vm1, %v1793_v18  ;;  %v1394_v5 = vsub.f32 %v10392_v45, %v1365_v63  ;;  %v10396_v63 = vld [vmem:[#allocation83_spill] sm:$0xff]  ;;  %v8957_v14 = vpop.permute.xlu0 %2631  ;;  %v10399_v45 = vld [vmem:[#allocation89_spill] sm:$0xff] }
 0x4cd   : > { %1758 = vperm.xlu1 %6639, %v8942_v42   ;;  %v2166_v18 = vmul.f32 1.442695, %v2148_v39  ;;  %v2146_v29 = vsub.f32 %v10396_v63, %v8437_v16  ;;  %10397 = vst [vmem:[#allocation46_spill] sm:$0xff] %v8957_v14  ;;  %v10402_v39 = vld [vmem:[#allocation86_spill] sm:$0xff] }
 0x4ce   : > { %v1422_v4 = vmul.f32 1.442695, %v1394_v5 }
 0x4d0   : > { %6793 = vpow2.f32 %v1422_v4 }
 0x4d1   : > { %6795 = vpow2.f32 %v1428_v11  ;;  %2206 = vperm.xlu1 %6639, %v10393_v58   ;;  %v2162_v11 = vmul.f32 1.442695, %v2146_v29  ;;  %v8971_v58 = vpop.f32.mrf.mxu0  ;;  %v1432_v29 = vld [vmem:[#allocation4 + $0x10] sm:$0xff] }
 0x4d2   : > { %6797 = vpow2.f32 %v2166_v18  ;;  %v2152_v18 = vsub.f32 %v10402_v39, %v10398_v23 }
 0x4d3   : > { %6799 = vpow2.f32 %v2162_v11  ;;  %v10405_v11 = vld [vmem:[#allocation88_spill] sm:$0xff] }
 0x4d5   : > { %v6790_v57 = vpop.eup %6789  ;;  %2201 = vperm.xlu1 %6639, %v8452_v54   ;;  %v8967_v54 = vpop.permute.xlu0 %2661 }
 0x4d6   : > { %1490 = vadd.xlane.f32.xlu0 %v6790_v57  ;;  %v8960_v7 = vpop.eup %6791  ;;  %10400 = vst [vmem:[#allocation45_spill] sm:$0xff] %v8967_v54  ;;  %v8979_v54 = vpop.f32.mrf.mxu0 }
 0x4d9   : > { %2226 = vperm.xlu1 %6639, %v10398_v23   ;;  %v8977_v63 = vpop.permute.xlu0 %2651  ;;  %v8988_v23 = vpop.f32.mrf.mxu0 }
 0x4da   : > { %10403 = vst [vmem:[#allocation44_spill] sm:$0xff] %v8977_v63  ;;  %10407 = vst [vmem:[#allocation81_spill] sm:$0xff] %v8988_v23 }
 0x4dd   : > { %v6794_v35 = vpop.eup %6793  ;;  %2216 = vperm.xlu1 %6639, %v10399_v45  }
 0x4de   : > { %v8965_v5 = vpop.eup %6795  ;;  %1486 = vadd.xlane.f32.xlu0 %v6794_v35  ;;  %v1533_v16 = vpack.c.bf16 %v8960_v7, %v6794_v35  ;;  %v10404_v35 = vld [vmem:[#allocation95_spill] sm:$0xff] }
 0x4df   : > { %v1534_v4 = vpack.c.bf16 %v8965_v5, %v6790_v57  ;;  %v2174_v57 = vmul.f32 1.442695, %v2152_v18  ;;  %v8986_v14 = vpop.eup %6797  ;;  %v10408_v18 = vld [vmem:[#allocation90_spill] sm:$0xff] }
 0x4e0   : > { %6226 = vmatprep.mubr.bf16.mxu1 %v1533_v16  ;;  %v2150_v16 = vsub.f32 %v10405_v11, %v10399_v45  ;;  %10406 = vst [vmem:[#allocation84_spill] sm:$0xff] %v8986_v14  ;;  %v8996_v45 = vpop.eup %6799  ;;  %v1436_v11 = vld [vmem:[#allocation4 + $0x30] sm:$0xff] }
 0x4e1   : > { %6227 = vmatmul.mubr.bf16.gmra.mxu1 %v1534_v4  ;;  %2246 = vperm.xlu1 %6639, %v10401_v40   ;;  %v1448_v4 = vmul.f32 %v8727_v60, %v1432_v29  ;;  %6801 = vpow2.f32 %v2174_v57  ;;  %10409 = vst [vmem:[#allocation83_spill] sm:$0xff] %v8996_v45  ;;  %v10410_v57 = vld [vmem:[#allocation93_spill] sm:$0xff] }
 0x4e2   : > { %3969 = vmax.xlane.f32.xlu0 %v8686_v25  ;;  %v1431_v25 = vld [vmem:[#allocation4 + $0x8] sm:$0xff]  ;;  %v2170_v63 = vmul.f32 1.442695, %v2150_v16  ;;  %v2154_v16 = vsub.f32 %v10410_v57, %v10404_v35 }
 0x4e3   : > { %v1447_v60 = vmul.f32 %v8825_v33, %v1431_v25  ;;  %v1434_v25 = vld [vmem:[#allocation4 + $0x20] sm:$0xff] }
 0x4e4   : > { %6803 = vpow2.f32 %v2170_v63 }
 0x4e5   : > { %2236 = vperm.xlu1 %6639, %v10404_v35   ;;  %v1729_v35 = vpop.permute.xlu1 %1728 }
 0x4e6   : > { %3949 = vmax.xlane.f32.xlu0 %v8600_v31  ;;  %v2156_v31 = vsub.f32 %v10408_v18, %v10401_v40  ;;  %v1452_v40 = vmul.f32 %v8836_v52, %v1436_v11  ;;  %v2178_v18 = vmul.f32 1.442695, %v2154_v16 }
 0x4e8   : > { %v1467_v20 = vpop.xlane.xlu0 %1466 }
 0x4e9   : > { %v1496_v39 = vadd.f32 %v1467_v20, %v1448_v4  ;;  %2616 = vperm.xlu1 %6639, %v8986_v14   ;;  %v2182_v20 = vmul.f32 1.442695, %v2156_v31  ;;  %v1719_v11 = vpop.permute.xlu1 %1718  ;;  %v1687_v14 = vld [vmem:[#allocation5 + $0x70] sm:$0xff] }
 0x4ea   : > { %3973 = vmax.xlane.f32.xlu0 %v8988_v23 }
 0x4eb   : > { %1513 = vst.msk [vmem:[#allocation4 + $0x10] sm:$0xff] %vm1510_vm2, %v1496_v39  ;;  %v10411_v39 = vld [vmem:[#allocation98_spill] sm:$0xff]  ;;  %6805 = vpow2.f32 %v2182_v20 }
 0x4ec   : > { %v1465_v29 = vpop.xlane.xlu0 %1464  ;;  %6807 = vpow2.f32 %v2178_v18 }
 0x4ed   : > { %v1495_v21 = vadd.f32 %v1465_v29, %v1447_v60  ;;  %2606 = vperm.xlu1 %6639, %v8996_v45   ;;  %v1450_v60 = vmul.f32 %v8839_v50, %v1434_v25  ;;  %v10412_v29 = vld [vmem:[#allocation102_spill] sm:$0xff]  ;;  %v9018_v50 = vpop.permute.xlu1 %1748 }
 0x4ee   : > { %3953 = vmax.xlane.f32.xlu0 %v8598_v47  ;;  %v1438_v47 = vld [vmem:[#allocation4 + $0x40] sm:$0xff] }
 0x4ef   : > { %1512 = vst.msk [vmem:[#allocation4 + $0x8] sm:$0xff] %vm1510_vm2, %v1495_v21  ;;  %v9009_v21 = vpop.eup %6801 }
 0x4f0   : > { %v1475_v4 = vpop.xlane.xlu0 %1474  ;;  %10413 = vst [vmem:[#allocation87_spill] sm:$0xff] %v9009_v21 }
 0x4f1   : > { %v1500_v33 = vadd.f32 %v1475_v4, %v1452_v40  ;;  %2266 = vperm.xlu1 %6639, %v10411_v39   ;;  %v9012_v52 = vpop.eup %6803  ;;  %v9023_v16 = vpop.permute.xlu1 %1738  ;;  %v9025_v40 = vld [vmem:[#allocation3 + $0x1a8] sm:$0xff] }
 0x4f2   : > { %10414 = vst [vmem:[#allocation89_spill] sm:$0xff] %v9012_v52  ;;  %10417 = vst [vmem:[#allocation95_spill] sm:$0xff] %v9025_v40 }
 0x4f3   : > { %1517 = vst.msk [vmem:[#allocation4 + $0x30] sm:$0xff] %vm1510_vm2, %v1500_v33  ;;  %v9030_v33 = vld [vmem:[#allocation3 + $0x1d0] sm:$0xff] }
 0x4f4   : > { %v1471_v63 = vpop.xlane.xlu0 %1470  ;;  %10419 = vst [vmem:[#allocation90_spill] sm:$0xff] %v9030_v33 }
 0x4f5   : > { %v1498_v31 = vadd.f32 %v1471_v63, %v1450_v60  ;;  %2256 = vperm.xlu1 %6639, %v10412_v29   ;;  %v1440_v63 = vld [vmem:[#allocation4 + $0x50] sm:$0xff] }
 0x4f7   : > { %1515 = vst.msk [vmem:[#allocation4 + $0x20] sm:$0xff] %vm1510_vm2, %v1498_v31  ;;  %v1456_v31 = vmul.f32 %v8842_v53, %v1440_v63  ;;  %v1783_v63 = vmul.f32 %v8769_v61, %v1687_v14  ;;  %v9060_v14 = vld [vmem:[#allocation3 + $0x1c0] sm:$0xff] }
 0x4f8   : > { %v9015_v20 = vpop.eup %6805 }
 0x4f9   : > { %2636 = vperm.xlu1 %6639, %v9009_v21   ;;  %10415 = vst [vmem:[#allocation92_spill] sm:$0xff] %v9015_v20  ;;  %v9020_v57 = vpop.eup %6807 }
 0x4fa   : > { %10416 = vst [vmem:[#allocation86_spill] sm:$0xff] %v9020_v57 }
 0x4fd   : > { %2626 = vperm.xlu1 %6639, %v9012_v52  }
 0x501   : > { %2656 = vperm.xlu1 %6639, %v9015_v20   ;;  %v1454_v20 = vmul.f32 %v8845_v2, %v1438_v47 }
 0x505   : > { %2646 = vperm.xlu1 %6639, %v9020_v57   ;;  %v1686_v57 = vld [vmem:[#allocation5 + $0x60] sm:$0xff] }
 0x506   : > { %v1782_v52 = vmul.f32 %v1729_v35, %v1686_v57 }
 0x50c   : > { %v3958_v4 = vpop.xlane.xlu1 %3957 }
 0x50d   : > { %v9028_v25 = vmax.f32 %v9025_v40, %v3958_v4  ;;  %v1684_v40 = vld [vmem:[#allocation5 + $0x40] sm:$0xff] }
 0x50e   : > { %v1780_v45 = vmul.f32 %v1719_v11, %v1684_v40 }
 0x50f   : > { %10418 = vst [vmem:[#allocation88_spill] sm:$0xff] %v9028_v25  ;;  %4650 = vst.msk [vmem:[#allocation3 + $0x1a8] sm:$0xff] %vm1510_vm2, %v9028_v25 }
 0x510   : > { %v3968_v18 = vpop.xlane.xlu1 %3967 }
 0x511   : > { %v9035_v60 = vmax.f32 %v9030_v33, %v3968_v18 }
 0x513   : > { %10420 = vst [vmem:[#allocation93_spill] sm:$0xff] %v9035_v60  ;;  %4655 = vst.msk [vmem:[#allocation3 + $0x1d0] sm:$0xff] %vm1510_vm2, %v9035_v60  ;;  %v1685_v60 = vld [vmem:[#allocation5 + $0x50] sm:$0xff] }
 0x514   : > { %v9055_v61 = vpop.permute.xlu1 %1768 }
 0x51e   : > { %v1483_v23 = vpop.xlane.xlu0 %1482 }
 0x51f   : > { %v1504_v4 = vadd.f32 %v1483_v23, %v1456_v31 }
 0x521   : > { %1521 = vst.msk [vmem:[#allocation4 + $0x50] sm:$0xff] %vm1510_vm2, %v1504_v4  ;;  %v1781_v4 = vmul.f32 %v8773_v49, %v1685_v60 }
 0x522   : > { %v1479_v21 = vpop.xlane.xlu0 %1478 }
 0x523   : > { %v1502_v18 = vadd.f32 %v1479_v21, %v1454_v20  ;;  %v6220_v33 = vpop.f32.mrf.mxu1  ;;  %v10423_v21 = vld [vmem:[#allocation53_spill] sm:$0xff]  ;;  %v10424_v20 = vld [vmem:[#allocation47_spill] sm:$0xff] }
 0x524   : > { %v1798_v25 = vadd.f32 %v6220_v33, %v1782_v52  ;;  %v2281_v52 = vsub.f32 %v10423_v21, %v8901_v41  ;;  %v10427_v41 = vld [vmem:[#allocation57_spill] sm:$0xff] }
 0x525   : > { %1519 = vst.msk [vmem:[#allocation4 + $0x40] sm:$0xff] %vm1510_vm2, %v1502_v18  ;;  %v1633_v53 = vpop.f32.mrf.mxu1  ;;  %v10426_v18 = vld [vmem:[#allocation50_spill] sm:$0xff]  ;;  %v1444_v21 = vld [vmem:[#allocation4 + $0x70] sm:$0xff] }
 0x526   : > { %1814 = vst.msk [vmem:[#allocation5 + $0x60] sm:$0xff] %vm1068_vm1, %v1798_v25  ;;  %v1796_v23 = vadd.f32 %v1780_v45, %v1633_v53  ;;  %v2304_v40 = vmul.f32 1.442695, %v2281_v52 }
 0x527   : > { %v6221_v31 = vpop.f32.mrf.mxu1 }
 0x528   : > { %1812 = vst.msk [vmem:[#allocation5 + $0x40] sm:$0xff] %vm1068_vm1, %v1796_v23  ;;  %v1799_v47 = vadd.f32 %v6221_v31, %v1783_v63  ;;  %v2285_v23 = vsub.f32 %v10427_v41, %v8905_v56  ;;  %v10430_v56 = vld [vmem:[#allocation52_spill] sm:$0xff] }
 0x529   : > { %v1636_v2 = vpop.f32.mrf.mxu1  ;;  %1462 = vadd.xlane.f32.xlu1 %v8682_v17  ;;  %v10421_v17 = vld [vmem:[#allocation48_spill] sm:$0xff] }
 0x52a   : > { %1815 = vst.msk [vmem:[#allocation5 + $0x70] sm:$0xff] %vm1068_vm1, %v1799_v47  ;;  %v1797_v35 = vadd.f32 %v1781_v4, %v1636_v2  ;;  %v2274_v49 = vsub.f32 %v10421_v17, %v8890_v46  ;;  %v10428_v47 = vld [vmem:[#allocation51_spill] sm:$0xff] }
 0x52c   : > { %1813 = vst.msk [vmem:[#allocation5 + $0x50] sm:$0xff] %vm1068_vm1, %v1797_v35  ;;  %v10429_v35 = vld [vmem:[#allocation58_spill] sm:$0xff] }
 0x52d   : > { %1468 = vadd.xlane.f32.xlu1 %v8680_v1 }
 0x531   : > { %1476 = vadd.xlane.f32.xlu1 %v8847_v26  ;;  %v2290_v26 = vmul.f32 1.442695, %v2274_v49  ;;  %v1690_v49 = vld [vmem:[#allocation5 + $0xa0] sm:$0xff] }
 0x533   : > { %6809 = vpow2.f32 %v2290_v26 }
 0x535   : > { %1472 = vadd.xlane.f32.xlu1 %v8849_v13  ;;  %v10422_v13 = vld [vmem:[#allocation49_spill] sm:$0xff] }
 0x539   : > { %1484 = vadd.xlane.f32.xlu1 %v8895_v10  ;;  %v2277_v10 = vsub.f32 %v10422_v13, %v8899_v22  ;;  %v10425_v22 = vld [vmem:[#allocation54_spill] sm:$0xff]  ;;  %v1688_v13 = vld [vmem:[#allocation5 + $0x80] sm:$0xff] }
 0x53a   : > { %v2279_v25 = vsub.f32 %v10425_v22, %v8903_v19  ;;  %v2312_v19 = vmul.f32 1.442695, %v2285_v23 }
 0x53b   : > { %v2296_v46 = vmul.f32 1.442695, %v2277_v10 }
 0x53c   : > { %v2300_v63 = vmul.f32 1.442695, %v2279_v25  ;;  %v1689_v25 = vld [vmem:[#allocation5 + $0x90] sm:$0xff] }
 0x53d   : > { %1480 = vadd.xlane.f32.xlu1 %v8892_v30  ;;  %6811 = vpow2.f32 %v2296_v46 }
 0x540   : > { %v6810_v17 = vpop.eup %6809 }
 0x541   : > { %3947 = vmax.xlane.f32.xlu1 %v8589_v27 }
 0x545   : > { %v3964_v45 = vpop.xlane.xlu1 %3963  ;;  %3971 = vmax.xlane.f32.xlu1 %v8971_v58 }
 0x546   : > { %v9064_v1 = vmax.f32 %v9060_v14, %v3964_v45 }
 0x548   : > { %4653 = vst.msk [vmem:[#allocation3 + $0x1c0] sm:$0xff] %vm1510_vm2, %v9064_v1 }
 0x549   : > { %v9070_v30 = vpop.permute.xlu1 %1758  ;;  %3951 = vmax.xlane.f32.xlu1 %v8572_v59 }
 0x54a   : > { %v6812_v52 = vpop.eup %6811 }
 0x54d   : > { %v2207_v11 = vpop.permute.xlu1 %2206  ;;  %3975 = vmax.xlane.f32.xlu1 %v8962_v32 }
 0x54e   : > { %v2276_v57 = vsub.f32 %v10424_v20, %v2207_v11  ;;  %v1691_v11 = vld [vmem:[#allocation5 + $0xb0] sm:$0xff] }
 0x550   : > { %v2294_v33 = vmul.f32 1.442695, %v2276_v57 }
 0x551   : > { %v2202_v60 = vpop.permute.xlu1 %2201  ;;  %1492 = vadd.xlane.f32.xlu1 %v8965_v5  ;;  %v2283_v5 = vsub.f32 %v10429_v35, %v8909_v44  ;;  %v1784_v44 = vmul.f32 %v9023_v16, %v1688_v13 }
 0x552   : > { %6813 = vpow2.f32 %v2294_v33  ;;  %v2275_v53 = vsub.f32 %v10426_v18, %v2202_v60  ;;  %v10431_v33 = vld [vmem:[#allocation55_spill] sm:$0xff] }
 0x553   : > { %6815 = vpow2.f32 %v2304_v40  ;;  %v2308_v46 = vmul.f32 1.442695, %v2283_v5 }
 0x554   : > { %v2292_v31 = vmul.f32 1.442695, %v2275_v53  ;;  %v1460_v53 = vmul.f32 %v8888_v51, %v1444_v21 }
 0x555   : > { %v2227_v4 = vpop.permute.xlu1 %2226  ;;  %1488 = vadd.xlane.f32.xlu1 %v8960_v7  ;;  %v1786_v7 = vmul.f32 %v9018_v50, %v1690_v49  ;;  %v1787_v50 = vmul.f32 %v8856_v9, %v1691_v11  ;;  %v10432_v9 = vld [vmem:[#allocation56_spill] sm:$0xff] }
 0x556   : > { %6817 = vpow2.f32 %v2292_v31  ;;  %v2280_v2 = vsub.f32 %v10428_v47, %v2227_v4 }
 0x557   : > { %6819 = vpow2.f32 %v2300_v63 }
 0x558   : > { %v2302_v45 = vmul.f32 1.442695, %v2280_v2  ;;  %v1785_v2 = vmul.f32 %v8858_v15, %v1689_v25 }
 0x559   : > { %v2217_v26 = vpop.permute.xlu1 %2216  ;;  %2355 = vadd.xlane.f32.xlu1 %v6810_v17 }
 0x55a   : > { %6821 = vpow2.f32 %v2302_v45  ;;  %v2278_v10 = vsub.f32 %v10430_v56, %v2217_v26  ;;  %v1442_v26 = vld [vmem:[#allocation4 + $0x60] sm:$0xff] }
 0x55b   : > { %6823 = vpow2.f32 %v2312_v19  ;;  %v1458_v11 = vmul.f32 %v8942_v42, %v1442_v26 }
 0x55c   : > { %v2298_v20 = vmul.f32 1.442695, %v2278_v10  ;;  %v6224_v57 = vpop.f32.mrf.mxu1 }
 0x55d   : > { %v1802_v40 = vadd.f32 %v6224_v57, %v1786_v7  ;;  %v2247_v22 = vpop.permute.xlu1 %2246  ;;  %2361 = vadd.xlane.f32.xlu1 %v6812_v52  ;;  %v10433_v7 = vld [vmem:[#allocation62_spill] sm:$0xff] }
 0x55e   : > { %6825 = vpow2.f32 %v2298_v20  ;;  %v2284_v60 = vsub.f32 %v10431_v33, %v2247_v22  ;;  %v1649_v18 = vpop.f32.mrf.mxu1  ;;  %v2287_v21 = vsub.f32 %v10433_v7, %v8944_v48  ;;  %v9107_v22 = vld [vmem:[#allocation3 + $0x1d8] sm:$0xff] }
 0x55f   : > { %v6814_v63 = vpop.eup %6813  ;;  %6827 = vpow2.f32 %v2308_v46  ;;  %1818 = vst.msk [vmem:[#allocation5 + $0xa0] sm:$0xff] %vm1068_vm1, %v1802_v40  ;;  %v1800_v41 = vadd.f32 %v1784_v44, %v1649_v18  ;;  %v1491_v23 = vpop.xlane.xlu0 %1490  ;;  %10434 = vst [vmem:[#allocation98_spill] sm:$0xff] %v9107_v22 }
 0x560   : > { %v6816_v31 = vpop.eup %6815  ;;  %v2310_v16 = vmul.f32 1.442695, %v2284_v60  ;;  %v1508_v4 = vadd.f32 %v1491_v23, %v1460_v53  ;;  %v6225_v47 = vpop.f32.mrf.mxu1  ;;  %2359 = vadd.xlane.f32.xlu0 %v6814_v63  ;;  %v2420_v46 = vpack.c.bf16 %v6812_v52, %v6814_v63  ;;  %v2316_v25 = vmul.f32 1.442695, %v2287_v21  ;;  %v9113_v63 = vld [vmem:[#allocation3 + $0x188] sm:$0xff] }
 0x561   : > { %1816 = vst.msk [vmem:[#allocation5 + $0x80] sm:$0xff] %vm1068_vm1, %v1800_v41  ;;  %v1803_v19 = vadd.f32 %v6225_v47, %v1787_v50  ;;  %v2237_v35 = vpop.permute.xlu1 %2236  ;;  %2369 = vadd.xlane.f32.xlu1 %v6816_v31  ;;  %v10436_v50 = vld [vmem:[#allocation59_spill] sm:$0xff] }
 0x562   : > { %6829 = vpow2.f32 %v2310_v16  ;;  %1525 = vst.msk [vmem:[#allocation4 + $0x70] sm:$0xff] %vm1510_vm2, %v1508_v4  ;;  %v2282_v51 = vsub.f32 %v10432_v9, %v2237_v35  ;;  %v1652_v5 = vpop.f32.mrf.mxu1  ;;  %v10437_v4 = vld [vmem:[#allocation61_spill] sm:$0xff]  ;;  %v9123_v35 = vld [vmem:[#allocation3 + $0x1e8] sm:$0xff] }
 0x563   : > { %v6818_v49 = vpop.eup %6817  ;;  %1819 = vst.msk [vmem:[#allocation5 + $0xb0] sm:$0xff] %vm1068_vm1, %v1803_v19  ;;  %v1801_v45 = vadd.f32 %v1785_v2, %v1652_v5  ;;  %v2289_v47 = vsub.f32 %v10437_v4, %v8936_v8  ;;  %10438 = vst [vmem:[#allocation48_spill] sm:$0xff] %v9123_v35  ;;  %v10439_v9 = vld [vmem:[#allocation60_spill] sm:$0xff] }
 0x564   : > { %v6820_v13 = vpop.eup %6819  ;;  %v2306_v56 = vmul.f32 1.442695, %v2282_v51  ;;  %2357 = vadd.xlane.f32.xlu0 %v6818_v49  ;;  %v2419_v15 = vpack.c.bf16 %v6818_v49, %v6810_v17 }
 0x565   : > { %1817 = vst.msk [vmem:[#allocation5 + $0x90] sm:$0xff] %vm1068_vm1, %v1801_v45  ;;  %v9100_v10 = vpop.permute.xlu1 %2616  ;;  %2365 = vadd.xlane.f32.xlu1 %v6820_v13  ;;  %v2320_v45 = vmul.f32 1.442695, %v2289_v47  ;;  %v6713_v47 = vld [vmem:[%s7737_s7 + $0x74] ss:$8 sps:$4 sm:$0xff]  }
 0x566   : > { %6831 = vpow2.f32 %v2306_v56  ;;  %6270 = vmatprep.mubr.bf16.mxu1 %v2419_v15  ;;  %v9131_v15 = vld [vmem:[#allocation3 + $0x198] sm:$0xff]  ;;  %6310 = vmatprep.subr.bf16.mxu1 %v6713_v47 }
 0x567   : > { %v6822_v20 = vpop.eup %6821  ;;  %6271 = vmatmul.mubr.bf16.vlgmr.msra.gmra.mxu1 %v2420_v46  ;;  %v1487_v57 = vpop.xlane.xlu0 %1486  ;;  %6833 = vpow2.f32 %v2316_v25  ;;  %10441 = vst [vmem:[#allocation53_spill] sm:$0xff] %v9131_v15 }
 0x568   : > { %v6824_v44 = vpop.eup %6823  ;;  %v1506_v40 = vadd.f32 %v1487_v57, %v1458_v11  ;;  %2367 = vadd.xlane.f32.xlu0 %v6822_v20  ;;  %v2422_v53 = vpack.c.bf16 %v6816_v31, %v6822_v20  ;;  %v10443_v11 = vld [vmem:[#allocation101_spill] sm:$0xff]  ;;  %6311 = vmatpush3.bf16.msra.mxu1 %v6713_v47 }
 0x569   : > { %v9105_v17 = vpop.permute.xlu1 %2606  ;;  %2377 = vadd.xlane.f32.xlu1 %v6824_v44  ;;  %v2159_v20 = vsub.f32 %v10443_v11, %v8553_v37  ;;  %v10446_v37 = vld [vmem:[#allocation96_spill] sm:$0xff]  ;;  %v10448_v11 = vld [vmem:[#allocation110_spill] sm:$0xff]  ;;  %v10452_v47 = vld [vmem:[#allocation113_spill] sm:$0xff] }
 0x56a   : > { %1523 = vst.msk [vmem:[#allocation4 + $0x60] sm:$0xff] %vm1510_vm2, %v1506_v40 }
 0x56b   : > { %v6826_v52 = vpop.eup %6825  ;;  %v3970_v48 = vpop.xlane.xlu0 %3969  ;;  %v2188_v25 = vmul.f32 1.442695, %v2159_v20  ;;  %v1693_v20 = vld [vmem:[#allocation5 + $0xd0] sm:$0xff] }
 0x56c   : > { %v6828_v33 = vpop.eup %6827  ;;  %v9111_v60 = vmax.f32 %v9107_v22, %v3970_v48  ;;  %2363 = vadd.xlane.f32.xlu0 %v6826_v52  ;;  %v2421_v42 = vpack.c.bf16 %v6820_v13, %v6826_v52 }
 0x56d   : > { %v2267_v18 = vpop.permute.xlu1 %2266  ;;  %2373 = vadd.xlane.f32.xlu1 %v6828_v33 }
 0x56e   : > { %10435 = vst [vmem:[#allocation102_spill] sm:$0xff] %v9111_v60  ;;  %4656 = vst.msk [vmem:[#allocation3 + $0x1d8] sm:$0xff] %vm1510_vm2, %v9111_v60  ;;  %v2288_v41 = vsub.f32 %v10436_v50, %v2267_v18  ;;  %6274 = vmatprep.mubr.bf16.mxu1 %v2421_v42 }
 0x56f   : > { %v6830_v23 = vpop.eup %6829  ;;  %6275 = vmatmul.mubr.bf16.gmra.mxu1 %v2422_v53  ;;  %v3950_v16 = vpop.xlane.xlu0 %3949 }
 0x570   : > { %v2318_v2 = vmul.f32 1.442695, %v2288_v41  ;;  %v9121_v19 = vmax.f32 %v9113_v63, %v3950_v16  ;;  %2375 = vadd.xlane.f32.xlu0 %v6830_v23  ;;  %v2424_v56 = vpack.c.bf16 %v6824_v44, %v6830_v23  ;;  %v10444_v44 = vld [vmem:[#allocation97_spill] sm:$0xff]  ;;  %v2160_v41 = vsub.f32 %v10446_v37, %v10411_v39  ;;  %v10447_v39 = vld [vmem:[#allocation108_spill] sm:$0xff]  ;;  %v1430_v37 = vld [vmem:[#allocation4] sm:$0xff] }
 0x571   : > { %v2257_v31 = vpop.permute.xlu1 %2256  ;;  %v2161_v40 = vsub.f32 %v10444_v44, %v8536_v36 }
 0x572   : > { %4646 = vst.msk [vmem:[#allocation3 + $0x188] sm:$0xff] %vm1510_vm2, %v9121_v19  ;;  %v2286_v51 = vsub.f32 %v10439_v9, %v2257_v31  ;;  %6835 = vpow2.f32 %v2318_v2  ;;  %v2190_v36 = vmul.f32 1.442695, %v2160_v41  ;;  %v1694_v9 = vld [vmem:[#allocation5 + $0xe0] sm:$0xff]  ;;  %v10451_v41 = vld [vmem:[#allocation82_spill] sm:$0xff] }
 0x573   : > { %v6832_v5 = vpop.eup %6831  ;;  %v3974_v49 = vpop.xlane.xlu0 %3973  ;;  %v2192_v48 = vmul.f32 1.442695, %v2161_v40 }
 0x574   : > { %v2314_v26 = vmul.f32 1.442695, %v2286_v51  ;;  %v9129_v8 = vmax.f32 %v9123_v35, %v3974_v49  ;;  %2371 = vadd.xlane.f32.xlu0 %v6832_v5  ;;  %v2423_v13 = vpack.c.bf16 %v6828_v33, %v6832_v5  ;;  %v6834_v21 = vpop.eup %6833  ;;  %v10445_v33 = vld [vmem:[#allocation99_spill] sm:$0xff]  ;;  %v1790_v49 = vmul.f32 %v9055_v61, %v1694_v9 }
 0x575   : > { %v2158_v42 = vsub.f32 %v10445_v33, %v10412_v29  ;;  %v9160_v2 = vpop.permute.xlu1 %2636  ;;  %v6714_v51 = vld [vmem:[%s7737_s7 + $0x64] ss:$8 sps:$4 sm:$0xff]  }
 0x576   : > { %10440 = vst [vmem:[#allocation49_spill] sm:$0xff] %v9129_v8  ;;  %4658 = vst.msk [vmem:[#allocation3 + $0x1e8] sm:$0xff] %vm1510_vm2, %v9129_v8  ;;  %6278 = vmatprep.mubr.bf16.mxu1 %v2423_v13  ;;  %6837 = vpow2.f32 %v2314_v26  ;;  %v1692_v5 = vld [vmem:[#allocation5 + $0xc0] sm:$0xff]  ;;  %6312 = vmatprep.subr.bf16.mxu1 %v6714_v51  ;;  %v6715_v13 = vld [vmem:[%s7737_s7 + $0x54] ss:$8 sps:$4 sm:$0xff]  }
 0x577   : > { %6279 = vmatmul.mubr.bf16.gmra.mxu1 %v2424_v56  ;;  %v3954_v46 = vpop.xlane.xlu0 %3953  ;;  %6839 = vpow2.f32 %v2320_v45  ;;  %v2186_v23 = vmul.f32 1.442695, %v2158_v42  ;;  %v1695_v45 = vld [vmem:[#allocation5 + $0xf0] sm:$0xff]  ;;  %v1788_v56 = vmul.f32 %v9070_v30, %v1692_v5  ;;  %v1789_v30 = vmul.f32 %v8886_v43, %v1693_v20  ;;  %v10450_v43 = vld [vmem:[#allocation112_spill] sm:$0xff] }
 0x578   : > { %v9136_v7 = vmax.f32 %v9131_v15, %v3954_v46  ;;  %3977 = vmax.xlane.f32.xlu0 %v8979_v54  ;;  %6841 = vpow2.f32 %v2188_v25  ;;  %6313 = vmatpush3.bf16.msra.mxu1 %v6714_v51  ;;  %v1791_v44 = vmul.f32 %v8860_v34, %v1695_v45  ;;  %v6716_v25 = vld [vmem:[%s7737_s7 + $0x44] ss:$8 sps:$4 sm:$0xff]   ;;  %v1433_v51 = vld [vmem:[#allocation4 + $0x18] sm:$0xff]  ;;  %v10453_v45 = vld [vmem:[#allocation85_spill] sm:$0xff] }
 0x579   : > { %6843 = vpow2.f32 %v2192_v48  ;;  %v9170_v46 = vpop.permute.xlu1 %2626  ;;  %6314 = vmatprep.subr.bf16.mxu1 %v6715_v13  ;;  %v10449_v48 = vld [vmem:[#allocation106_spill] sm:$0xff]  ;;  %v6705_v5 = vld [vmem:[%s7737_s7 + $0x64] ss:$8 sps:$4 sm:$0xff]  }
 0x57a   : > { %10442 = vst [vmem:[#allocation47_spill] sm:$0xff] %v9136_v7  ;;  %4648 = vst.msk [vmem:[#allocation3 + $0x198] sm:$0xff] %vm1510_vm2, %v9136_v7  ;;  %6845 = vpow2.f32 %v2186_v23  ;;  %v1446_v23 = vmul.f32 %v10451_v41, %v1430_v37  ;;  %v1441_v37 = vld [vmem:[#allocation4 + $0x58] sm:$0xff]  ;;  %v6706_v41 = vld [vmem:[%s7737_s7 + $0x44] ss:$8 sps:$4 sm:$0xff]  }
 0x57b   : > { %6847 = vpow2.f32 %v2190_v36  ;;  %v6719_v36 = vld [vmem:[%s7737_s7 + $0x14] ss:$8 sps:$4 sm:$0xff]  }
 0x57c   : > { %2381 = vadd.xlane.f32.xlu0 %v6834_v21  ;;  %6315 = vmatpush3.bf16.msra.mxu1 %v6715_v13  ;;  %v6720_v13 = vld [vmem:[%s7737_s7 + $0x4] ss:$8 sps:$4 sm:$0xff]  }
 0x57d   : > { %6316 = vmatprep.subr.bf16.mxu1 %v6716_v25  ;;  %v9181_v34 = vpop.permute.xlu1 %2656 }
 0x57f   : > { %v6836_v57 = vpop.eup %6835 }
 0x580   : > { %2383 = vadd.xlane.f32.xlu1 %v6836_v57  ;;  %6317 = vmatpush3.bf16.msra.mxu1 %v6716_v25  ;;  %v1435_v25 = vld [vmem:[#allocation4 + $0x28] sm:$0xff] }
 0x583   : > { %v6838_v52 = vpop.eup %6837 }
 0x584   : > { %v6840_v18 = vpop.eup %6839  ;;  %2379 = vadd.xlane.f32.xlu1 %v6838_v52  ;;  %v2425_v53 = vpack.c.bf16 %v6834_v21, %v6838_v52 }
 0x585   : > { %v2426_v50 = vpack.c.bf16 %v6840_v18, %v6836_v57  ;;  %v9149_v16 = vpop.eup %6841 }
 0x586   : > { %6282 = vmatprep.mubr.bf16.mxu1 %v2425_v53  ;;  %v9152_v29 = vpop.eup %6843  ;;  %v6718_v53 = vld [vmem:[%s7737_s7 + $0x24] ss:$8 sps:$4 sm:$0xff]  }
 0x587   : > { %6283 = vmatmul.mubr.bf16.gmra.mxu1 %v2426_v50  ;;  %v9155_v4 = vpop.eup %6845  ;;  %v9189_v50 = vpop.permute.xlu1 %2646 }
 0x588   : > { %2385 = vadd.xlane.f32.xlu1 %v6840_v18  ;;  %v9162_v31 = vpop.eup %6847  ;;  %v6717_v18 = vld [vmem:[%s7737_s7 + $0x34] ss:$8 sps:$4 sm:$0xff]  }
 0x589   : > { %6318 = vmatprep.subr.bf16.mxu1 %v6717_v18 }
 0x58a   : > { %6319 = vmatpush3.bf16.msra.mxu1 %v6717_v18 }
 0x58b   : > { %6320 = vmatprep.subr.bf16.mxu1 %v6718_v53 }
 0x58e   : > { %6321 = vmatpush3.bf16.msra.mxu1 %v6718_v53  ;;  %v10458_v53 = vld [vmem:[#allocation148_spill] sm:$0xff] }
 0x58f   : > { %6322 = vmatprep.subr.bf16.mxu1 %v6719_v36 }
 0x592   : > { %2671 = vperm.xlu0 %6640, %v9149_v16   ;;  %6323 = vmatpush3.bf16.msra.mxu1 %v6719_v36  ;;  %v10459_v36 = vld [vmem:[#allocation119_spill] sm:$0xff] }
 0x593   : > { %6324 = vmatprep.subr.bf16.mxu1 %v6720_v13 }
 0x596   : > { %2681 = vperm.xlu0 %6640, %v9152_v29   ;;  %6325 = vmatpush3.bf16.msra.mxu1 %v6720_v13  ;;  %v10461_v13 = vld [vmem:[#allocation120_spill] sm:$0xff] }
 0x599   : > { %2666 = vperm.xlu1 %6639, %v9155_v4  }
 0x59a   : > { %3153 = vperm.xlu0 %6640, %v10447_v39  }
 0x59d   : > { %2676 = vperm.xlu1 %6639, %v9162_v31  }
 0x59e   : > { %3173 = vperm.xlu0 %6640, %v8634_v62  }
 0x5a1   : > { %v6228_v26 = vpop.f32.mrf.mxu1  ;;  %3158 = vperm.xlu1 %6639, %v10448_v11  }
 0x5a2   : > { %v1806_v21 = vadd.f32 %v6228_v26, %v1790_v49  ;;  %3188 = vperm.xlu0 %6640, %v8642_v12   ;;  %v1449_v26 = vmul.f32 %v10453_v45, %v1433_v51  ;;  %v10460_v51 = vld [vmem:[#allocation128_spill] sm:$0xff] }
 0x5a3   : > { %v1665_v57 = vpop.f32.mrf.mxu1  ;;  %v1439_v45 = vld [vmem:[#allocation4 + $0x48] sm:$0xff] }
 0x5a4   : > { %1822 = vst.msk [vmem:[#allocation5 + $0xe0] sm:$0xff] %vm1068_vm1, %v1806_v21  ;;  %v1804_v61 = vadd.f32 %v1788_v56, %v1665_v57  ;;  %v1437_v21 = vld [vmem:[#allocation4 + $0x38] sm:$0xff]  ;;  %v10454_v57 = vld [vmem:[#allocation91_spill] sm:$0xff] }
 0x5a5   : > { %v6229_v40 = vpop.f32.mrf.mxu1  ;;  %3163 = vperm.xlu1 %6639, %v10449_v48  }
 0x5a6   : > { %1820 = vst.msk [vmem:[#allocation5 + $0xc0] sm:$0xff] %vm1068_vm1, %v1804_v61  ;;  %v1807_v52 = vadd.f32 %v6229_v40, %v1791_v44  ;;  %3198 = vperm.xlu0 %6640, %v8872_v3   ;;  %v1453_v44 = vmul.f32 %v10454_v57, %v1437_v21  ;;  %v10455_v40 = vld [vmem:[#allocation88_spill] sm:$0xff] }
 0x5a7   : > { %v1668_v33 = vpop.f32.mrf.mxu1 }
 0x5a8   : > { %1823 = vst.msk [vmem:[#allocation5 + $0xf0] sm:$0xff] %vm1068_vm1, %v1807_v52  ;;  %v1805_v42 = vadd.f32 %v1789_v30, %v1668_v33  ;;  %v10456_v52 = vld [vmem:[#allocation94_spill] sm:$0xff] }
 0x5a9   : > { %3168 = vperm.xlu1 %6639, %v10450_v43   ;;  %v1451_v33 = vmul.f32 %v10456_v52, %v1435_v25 }
 0x5aa   : > { %1821 = vst.msk [vmem:[#allocation5 + $0xd0] sm:$0xff] %vm1068_vm1, %v1805_v42  ;;  %3208 = vperm.xlu0 %6640, %v8828_v38   ;;  %v10457_v42 = vld [vmem:[#allocation131_spill] sm:$0xff] }
 0x5ad   : > { %3178 = vperm.xlu1 %6639, %v8730_v0  }
 0x5ae   : > { %3218 = vperm.xlu0 %6640, %v8931_v55  }
 0x5b1   : > { %3183 = vperm.xlu1 %6639, %v10452_v47  }
 0x5b2   : > { %v1463_v9 = vpop.xlane.xlu1 %1462  ;;  %3228 = vperm.xlu0 %6640, %v8921_v28  }
 0x5b3   : > { %v1494_v49 = vadd.f32 %v1463_v9, %v1446_v23  ;;  %v1457_v9 = vmul.f32 %v10459_v36, %v1441_v37  ;;  %v10467_v37 = vld [vmem:[#allocation142_spill] sm:$0xff] }
 0x5b5   : > { %1511 = vst.msk [vmem:[#allocation4] sm:$0xff] %vm1510_vm2, %v1494_v49  ;;  %3193 = vperm.xlu1 %6639, %v8656_v6   ;;  %v6707_v49 = vld [vmem:[%s7737_s7 + $0x74] ss:$8 sps:$4 sm:$0xff]  }
 0x5b6   : > { %v1469_v56 = vpop.xlane.xlu1 %1468  ;;  %4328 = vrot.lane.b32.xlu0 %v6705_v5, %s7417_s25 }
 0x5b7   : > { %v1497_v20 = vadd.f32 %v1469_v56, %v1449_v26  ;;  %v1455_v56 = vmul.f32 %v10461_v13, %v1439_v45 }
 0x5b9   : > { %1514 = vst.msk [vmem:[#allocation4 + $0x18] sm:$0xff] %vm1510_vm2, %v1497_v20  ;;  %3203 = vperm.xlu1 %6639, %v8648_v24   ;;  %v10462_v20 = vld [vmem:[#allocation35_spill] sm:$0xff] }
 0x5ba   : > { %v1477_v61 = vpop.xlane.xlu1 %1476  ;;  %4070 = vperm.xlu0 %6640, %v10455_v40   ;;  %v2324_v40 = vld [vmem:[#allocation4 + $0x88] sm:$0xff] }
 0x5bb   : > { %v1501_v30 = vadd.f32 %v1477_v61, %v1453_v44  ;;  %v9221_v44 = vld [vmem:[#allocation3 + $0x180] sm:$0xff]  ;;  %v10464_v61 = vld [vmem:[#allocation145_spill] sm:$0xff] }
 0x5bc   : > { %10463 = vst [vmem:[#allocation54_spill] sm:$0xff] %v9221_v44 }
 0x5bd   : > { %1518 = vst.msk [vmem:[#allocation4 + $0x38] sm:$0xff] %vm1510_vm2, %v1501_v30  ;;  %3213 = vperm.xlu1 %6639, %v10457_v42   ;;  %v6708_v30 = vld [vmem:[%s7737_s7 + $0x24] ss:$8 sps:$4 sm:$0xff]  }
 0x5be   : > { %v1473_v18 = vpop.xlane.xlu1 %1472  ;;  %4080 = vperm.xlu0 %6640, %v10458_v53  }
 0x5bf   : > { %v1499_v23 = vadd.f32 %v1473_v18, %v1451_v33  ;;  %v9230_v33 = vld [vmem:[#allocation3 + $0x1e0] sm:$0xff]  ;;  %v6710_v18 = vld [vmem:[%s7737_s7 + $0x34] ss:$8 sps:$4 sm:$0xff]  }
 0x5c0   : > { %10466 = vst [vmem:[#allocation57_spill] sm:$0xff] %v9230_v33 }
 0x5c1   : > { %1516 = vst.msk [vmem:[#allocation4 + $0x28] sm:$0xff] %vm1510_vm2, %v1499_v23  ;;  %3223 = vperm.xlu1 %6639, %v10460_v51   ;;  %v6709_v23 = vld [vmem:[%s7737_s7 + $0x54] ss:$8 sps:$4 sm:$0xff]  }
 0x5c2   : > { %v1485_v5 = vpop.xlane.xlu1 %1484  ;;  %4324 = vrot.lane.b32.xlu0 %v6706_v41, %s7417_s25 }
 0x5c3   : > { %v1505_v26 = vadd.f32 %v1485_v5, %v1457_v9  ;;  %v9242_v9 = vld [vmem:[#allocation3 + $0x190] sm:$0xff]  ;;  %v1443_v5 = vld [vmem:[#allocation4 + $0x68] sm:$0xff] }
 0x5c5   : > { %1522 = vst.msk [vmem:[#allocation4 + $0x58] sm:$0xff] %vm1510_vm2, %v1505_v26  ;;  %4330 = vrot.lane.b32.xlu1 %v6707_v49, %s7417_s25  ;;  %v9253_v26 = vld [vmem:[#allocation3 + $0x1f0] sm:$0xff] }
 0x5c6   : > { %v1481_v21 = vpop.xlane.xlu1 %1480  ;;  %4090 = vperm.xlu0 %6640, %v10462_v20   ;;  %10469 = vst [vmem:[#allocation58_spill] sm:$0xff] %v9253_v26  ;;  %v2326_v20 = vld [vmem:[#allocation4 + $0x98] sm:$0xff] }
 0x5c7   : > { %v1503_v57 = vadd.f32 %v1481_v21, %v1455_v56  ;;  %v1445_v21 = vld [vmem:[#allocation4 + $0x78] sm:$0xff] }
 0x5c9   : > { %1520 = vst.msk [vmem:[#allocation4 + $0x48] sm:$0xff] %vm1510_vm2, %v1503_v57  ;;  %4065 = vperm.xlu1 %6639, %v10464_v61  }
 0x5ca   : > { %v3948_v25 = vpop.xlane.xlu1 %3947  ;;  %4100 = vperm.xlu0 %6640, %v9111_v60  }
 0x5cb   : > { %v9228_v52 = vmax.f32 %v9221_v44, %v3948_v25  ;;  %v6711_v44 = vld [vmem:[%s7737_s7 + $0x14] ss:$8 sps:$4 sm:$0xff]  }
 0x5cd   : > { %10465 = vst [vmem:[#allocation50_spill] sm:$0xff] %v9228_v52  ;;  %4645 = vst.msk [vmem:[#allocation3 + $0x180] sm:$0xff] %vm1510_vm2, %v9228_v52  ;;  %4075 = vperm.xlu1 %6639, %v10467_v37  }
 0x5ce   : > { %v3972_v41 = vpop.xlane.xlu1 %3971  ;;  %4320 = vrot.lane.b32.xlu0 %v6708_v30, %s7417_s25  ;;  %v10471_v30 = vld [vmem:[#allocation121_spill] sm:$0xff] }
 0x5cf   : > { %v9240_v36 = vmax.f32 %v9230_v33, %v3972_v41  ;;  %v1461_v41 = vmul.f32 %v10471_v30, %v1445_v21  ;;  %v10474_v21 = vld [vmem:[#allocation83_spill] sm:$0xff] }
 0x5d1   : > { %10468 = vst [vmem:[#allocation51_spill] sm:$0xff] %v9240_v36  ;;  %4657 = vst.msk [vmem:[#allocation3 + $0x1e0] sm:$0xff] %vm1510_vm2, %v9240_v36  ;;  %4326 = vrot.lane.b32.xlu1 %v6709_v23, %s7417_s25  ;;  %v10472_v23 = vld [vmem:[#allocation93_spill] sm:$0xff] }
 0x5d2   : > { %v3952_v49 = vpop.xlane.xlu1 %3951  ;;  %4050 = vperm.xlu0 %6640, %v9121_v19  }
 0x5d3   : > { %v9251_v45 = vmax.f32 %v9242_v9, %v3952_v49 }
 0x5d5   : > { %4647 = vst.msk [vmem:[#allocation3 + $0x190] sm:$0xff] %vm1510_vm2, %v9251_v45  ;;  %4085 = vperm.xlu1 %6639, %v9064_v1  }
 0x5d6   : > { %v3976_v56 = vpop.xlane.xlu1 %3975  ;;  %4110 = vperm.xlu0 %6640, %v9129_v8   ;;  %v2323_v8 = vld [vmem:[#allocation4 + $0x80] sm:$0xff] }
 0x5d7   : > { %v9262_v57 = vmax.f32 %v9253_v26, %v3976_v56  ;;  %v10473_v56 = vld [vmem:[#allocation135_spill] sm:$0xff]  ;;  %v2339_v30 = vmul.f32 %v10474_v21, %v2323_v8 }
 0x5d8   : > { %v1459_v35 = vmul.f32 %v10473_v56, %v1443_v5  ;;  %v2330_v5 = vld [vmem:[#allocation4 + $0xb8] sm:$0xff]  ;;  %v10477_v8 = vld [vmem:[#allocation139_spill] sm:$0xff] }
 0x5d9   : > { %10470 = vst [vmem:[#allocation52_spill] sm:$0xff] %v9262_v57  ;;  %4659 = vst.msk [vmem:[#allocation3 + $0x1f0] sm:$0xff] %vm1510_vm2, %v9262_v57  ;;  %4095 = vperm.xlu1 %6639, %v10472_v23   ;;  %v2346_v21 = vmul.f32 %v10477_v8, %v2330_v5  ;;  %v2334_v8 = vld [vmem:[#allocation4 + $0xd8] sm:$0xff] }
 0x5da   : > { %v1493_v49 = vpop.xlane.xlu1 %1492  ;;  %4060 = vperm.xlu0 %6640, %v9136_v7  }
 0x5db   : > { %v1509_v13 = vadd.f32 %v1493_v49, %v1461_v41  ;;  %v10475_v41 = vld [vmem:[#allocation137_spill] sm:$0xff] }
 0x5dc   : > { %v2325_v49 = vld [vmem:[#allocation4 + $0x90] sm:$0xff] }
 0x5dd   : > { %1526 = vst.msk [vmem:[#allocation4 + $0x78] sm:$0xff] %vm1510_vm2, %v1509_v13  ;;  %4322 = vrot.lane.b32.xlu1 %v6710_v18, %s7417_s25  ;;  %v2342_v13 = vmul.f32 %v10475_v41, %v2326_v20  ;;  %v2328_v20 = vld [vmem:[#allocation4 + $0xa8] sm:$0xff]  ;;  %v10478_v41 = vld [vmem:[#allocation138_spill] sm:$0xff] }
 0x5de   : > { %v1489_v25 = vpop.xlane.xlu1 %1488 }
 0x5df   : > { %v1507_v22 = vadd.f32 %v1489_v25, %v1459_v35  ;;  %v10476_v35 = vld [vmem:[#allocation84_spill] sm:$0xff] }
 0x5e0   : > { %v2341_v25 = vmul.f32 %v10476_v35, %v2325_v49  ;;  %v10479_v49 = vld [vmem:[#allocation141_spill] sm:$0xff] }
 0x5e1   : > { %1524 = vst.msk [vmem:[#allocation4 + $0x68] sm:$0xff] %vm1510_vm2, %v1507_v22  ;;  %4045 = vperm.xlu1 %6639, %v9228_v52   ;;  %v2340_v52 = vmul.f32 %v10478_v41, %v2324_v40 }
 0x5e2   : > { %v2356_v60 = vpop.xlane.xlu1 %2355 }
 0x5e3   : > { %v2387_v53 = vadd.f32 %v2356_v60, %v2339_v30 }
 0x5e5   : > { %2403 = vst.msk [vmem:[#allocation4 + $0x80] sm:$0xff] %vm1510_vm2, %v2387_v53  ;;  %4105 = vperm.xlu1 %6639, %v9240_v36  }
 0x5e6   : > { %v2362_v18 = vpop.xlane.xlu1 %2361 }
 0x5e7   : > { %v2390_v56 = vadd.f32 %v2362_v18, %v2342_v13  ;;  %v2344_v18 = vmul.f32 %v10479_v49, %v2328_v20  ;;  %v2332_v49 = vld [vmem:[#allocation4 + $0xc8] sm:$0xff] }
 0x5e9   : > { %2406 = vst.msk [vmem:[#allocation4 + $0x98] sm:$0xff] %vm1510_vm2, %v2390_v56  ;;  %v2360_v22 = vpop.xlane.xlu0 %2359  ;;  %4055 = vperm.xlu1 %6639, %v9251_v45   ;;  %v2329_v56 = vld [vmem:[#allocation4 + $0xb0] sm:$0xff] }
 0x5ea   : > { %v2389_v60 = vadd.f32 %v2360_v22, %v2341_v25  ;;  %v2370_v53 = vpop.xlane.xlu1 %2369  ;;  %v10480_v22 = vld [vmem:[#allocation87_spill] sm:$0xff] }
 0x5eb   : > { %v2394_v30 = vadd.f32 %v2370_v53, %v2346_v21  ;;  %v2345_v21 = vmul.f32 %v10480_v22, %v2329_v56  ;;  %v10483_v56 = vld [vmem:[#allocation147_spill] sm:$0xff] }
 0x5ec   : > { %2405 = vst.msk [vmem:[#allocation4 + $0x90] sm:$0xff] %vm1510_vm2, %v2389_v60  ;;  %v10481_v60 = vld [vmem:[#allocation144_spill] sm:$0xff] }
 0x5ed   : > { %2410 = vst.msk [vmem:[#allocation4 + $0xb8] sm:$0xff] %vm1510_vm2, %v2394_v30  ;;  %v2358_v13 = vpop.xlane.xlu0 %2357  ;;  %4115 = vperm.xlu1 %6639, %v9262_v57   ;;  %v2350_v53 = vmul.f32 %v10481_v60, %v2334_v8  ;;  %v2327_v30 = vld [vmem:[#allocation4 + $0xa0] sm:$0xff] }
 0x5ee   : > { %v2388_v5 = vadd.f32 %v2358_v13, %v2340_v52  ;;  %v2366_v35 = vpop.xlane.xlu1 %2365  ;;  %v10482_v13 = vld [vmem:[#allocation89_spill] sm:$0xff]  ;;  %v2331_v60 = vld [vmem:[#allocation4 + $0xc0] sm:$0xff] }
 0x5ef   : > { %v2392_v25 = vadd.f32 %v2366_v35, %v2344_v18  ;;  %v2343_v18 = vmul.f32 %v10482_v13, %v2327_v30  ;;  %v2348_v35 = vmul.f32 %v10483_v56, %v2332_v49  ;;  %v10485_v30 = vld [vmem:[#allocation86_spill] sm:$0xff]  ;;  %v2336_v13 = vld [vmem:[#allocation4 + $0xe8] sm:$0xff] }
 0x5f0   : > { %2404 = vst.msk [vmem:[#allocation4 + $0x88] sm:$0xff] %vm1510_vm2, %v2388_v5  ;;  %v2352_v56 = vmul.f32 %v9149_v16, %v2336_v13 }
 0x5f1   : > { %2408 = vst.msk [vmem:[#allocation4 + $0xa8] sm:$0xff] %vm1510_vm2, %v2392_v25  ;;  %v2368_v40 = vpop.xlane.xlu0 %2367  ;;  %4318 = vrot.lane.b32.xlu1 %v6711_v44, %s7417_s25  ;;  %v2333_v25 = vld [vmem:[#allocation4 + $0xd0] sm:$0xff] }
 0x5f2   : > { %v2393_v41 = vadd.f32 %v2368_v40, %v2345_v21  ;;  %v2378_v20 = vpop.xlane.xlu1 %2377  ;;  %v10484_v21 = vld [vmem:[#allocation92_spill] sm:$0xff] }
 0x5f3   : > { %v2398_v52 = vadd.f32 %v2378_v20, %v2350_v53  ;;  %v2349_v40 = vmul.f32 %v10484_v21, %v2333_v25 }
 0x5f4   : > { %2409 = vst.msk [vmem:[#allocation4 + $0xb0] sm:$0xff] %vm1510_vm2, %v2393_v41  ;;  %v2347_v41 = vmul.f32 %v10485_v30, %v2331_v60 }
 0x5f5   : > { %2414 = vst.msk [vmem:[#allocation4 + $0xd8] sm:$0xff] %vm1510_vm2, %v2398_v52  ;;  %v2364_v5 = vpop.xlane.xlu0 %2363  ;;  %v9305_v52 = vld [vmem:[#allocation3 + $0x1f8] sm:$0xff] }
 0x5f6   : > { %v2391_v22 = vadd.f32 %v2364_v5, %v2343_v18  ;;  %v2374_v15 = vpop.xlane.xlu1 %2373  ;;  %10486 = vst [vmem:[#allocation55_spill] sm:$0xff] %v9305_v52 }
 0x5f7   : > { %v2396_v8 = vadd.f32 %v2374_v15, %v2348_v35  ;;  %v6712_v35 = vld [vmem:[%s7737_s7 + $0x4] ss:$8 sps:$4 sm:$0xff]  }
 0x5f8   : > { %2407 = vst.msk [vmem:[#allocation4 + $0xa0] sm:$0xff] %vm1510_vm2, %v2391_v22 }
 0x5f9   : > { %2412 = vst.msk [vmem:[#allocation4 + $0xc8] sm:$0xff] %vm1510_vm2, %v2396_v8  ;;  %v2376_v44 = vpop.xlane.xlu0 %2375  ;;  %v2337_v8 = vld [vmem:[#allocation4 + $0xf0] sm:$0xff] }
 0x5fa   : > { %v2397_v53 = vadd.f32 %v2376_v44, %v2349_v40  ;;  %v2353_v21 = vmul.f32 %v9162_v31, %v2337_v8  ;;  %v2335_v44 = vld [vmem:[#allocation4 + $0xe0] sm:$0xff] }
 0x5fc   : > { %2413 = vst.msk [vmem:[#allocation4 + $0xd0] sm:$0xff] %vm1510_vm2, %v2397_v53  ;;  %v2351_v53 = vmul.f32 %v9155_v4, %v2335_v44 }
 0x5fd   : > { %v2372_v20 = vpop.xlane.xlu0 %2371 }
 0x5fe   : > { %v2395_v49 = vadd.f32 %v2372_v20, %v2347_v41  ;;  %v2338_v41 = vld [vmem:[#allocation4 + $0xf8] sm:$0xff] }
 0x600   : > { %2411 = vst.msk [vmem:[#allocation4 + $0xc0] sm:$0xff] %vm1510_vm2, %v2395_v49  ;;  %v2354_v49 = vmul.f32 %v9152_v29, %v2338_v41  ;;  %v10493_v41 = vld [vmem:[#allocation72_spill] sm:$0xff] }
 0x601   : > { %v3978_v15 = vpop.xlane.xlu0 %3977 }
 0x602   : > { %v9309_v18 = vmax.f32 %v9305_v52, %v3978_v15 }
 0x604   : > { %10487 = vst [vmem:[#allocation56_spill] sm:$0xff] %v9309_v18  ;;  %4660 = vst.msk [vmem:[#allocation3 + $0x1f8] sm:$0xff] %vm1510_vm2, %v9309_v18  ;;  %4120 = vperm.xlu0 %6640, %v9309_v18  }
 0x605   : > { %v2382_v25 = vpop.xlane.xlu0 %2381 }
 0x606   : > { %v2400_v22 = vadd.f32 %v2382_v25, %v2352_v56  ;;  %v10491_v25 = vld [vmem:[#allocation64_spill] sm:$0xff] }
 0x608   : > { %2416 = vst.msk [vmem:[#allocation4 + $0xe8] sm:$0xff] %vm1510_vm2, %v2400_v22  ;;  %4316 = vrot.lane.b32.xlu0 %v6712_v35, %s7417_s25 }
 0x609   : > { %v2384_v40 = vpop.xlane.xlu1 %2383 }
 0x60a   : > { %v2401_v60 = vadd.f32 %v2384_v40, %v2353_v21 }
 0x60c   : > { %2417 = vst.msk [vmem:[#allocation4 + $0xf0] sm:$0xff] %vm1510_vm2, %v2401_v60  ;;  %v10492_v60 = vld [vmem:[#allocation66_spill] sm:$0xff] }
 0x60d   : > { %v9323_v30 = vpop.permute.xlu0 %2671  ;;  %v2380_v16 = vpop.xlane.xlu1 %2379 }
 0x60e   : > { %10488 = vst [vmem:[#allocation62_spill] sm:$0xff] %v9323_v30  ;;  %v2399_v20 = vadd.f32 %v2380_v16, %v2351_v53 }
 0x610   : > { %2415 = vst.msk [vmem:[#allocation4 + $0xe0] sm:$0xff] %vm1510_vm2, %v2399_v20 }
 0x611   : > { %v9327_v15 = vpop.permute.xlu0 %2681  ;;  %v2386_v13 = vpop.xlane.xlu1 %2385 }
 0x612   : > { %10489 = vst [vmem:[#allocation59_spill] sm:$0xff] %v9327_v15  ;;  %v2402_v31 = vadd.f32 %v2386_v13, %v2354_v49  ;;  %v10494_v13 = vld [vmem:[#allocation63_spill] sm:$0xff] }
 0x614   : > { %2418 = vst.msk [vmem:[#allocation4 + $0xf8] sm:$0xff] %vm1510_vm2, %v2402_v31 }
 0x615   : > { %v3154_v56 = vpop.permute.xlu0 %3153  ;;  %v9330_v35 = vpop.permute.xlu1 %2666 }
 0x616   : > { %10490 = vst [vmem:[#allocation61_spill] sm:$0xff] %v9330_v35  ;;  %v3231_v4 = vsub.f32 %v10491_v25, %v3154_v56 }
 0x618   : > { %v3247_v22 = vmul.f32 1.442695, %v3231_v4 }
 0x619   : > { %v3174_v8 = vpop.permute.xlu0 %3173  ;;  %v9333_v21 = vpop.permute.xlu1 %2676 }
 0x61a   : > { %6849 = vpow2.f32 %v3247_v22  ;;  %v3235_v20 = vsub.f32 %v10493_v41, %v3174_v8  ;;  %v10495_v22 = vld [vmem:[#allocation65_spill] sm:$0xff]  ;;  %v10497_v8 = vld [vmem:[#allocation74_spill] sm:$0xff] }
 0x61c   : > { %v3255_v56 = vmul.f32 1.442695, %v3235_v20 }
 0x61d   : > { %v3189_v40 = vpop.permute.xlu0 %3188  ;;  %v3159_v44 = vpop.permute.xlu1 %3158 }
 0x61e   : > { %v3232_v29 = vsub.f32 %v10492_v60, %v3159_v44  ;;  %v10496_v44 = vld [vmem:[#allocation73_spill] sm:$0xff] }
 0x61f   : > { %v3238_v60 = vsub.f32 %v10496_v44, %v3189_v40 }
 0x620   : > { %v3249_v53 = vmul.f32 1.442695, %v3232_v29 }
 0x621   : > { %v3199_v16 = vpop.permute.xlu0 %3198  ;;  %v3164_v49 = vpop.permute.xlu1 %3163 }
 0x622   : > { %6851 = vpow2.f32 %v3249_v53  ;;  %v3233_v31 = vsub.f32 %v10494_v13, %v3164_v49  ;;  %v3261_v13 = vmul.f32 1.442695, %v3238_v60 }
 0x624   : > { %v3251_v5 = vmul.f32 1.442695, %v3233_v31  ;;  %v10498_v31 = vld [vmem:[#allocation78_spill] sm:$0xff] }
 0x625   : > { %v3209_v18 = vpop.permute.xlu0 %3208  ;;  %v3169_v25 = vpop.permute.xlu1 %3168  ;;  %v3240_v20 = vsub.f32 %v10498_v31, %v3199_v16 }
 0x626   : > { %6853 = vpow2.f32 %v3251_v5  ;;  %v3234_v52 = vsub.f32 %v10495_v22, %v3169_v25  ;;  %v10499_v5 = vld [vmem:[#allocation67_spill] sm:$0xff] }
 0x627   : > { %v6850_v4 = vpop.eup %6849  ;;  %6855 = vpow2.f32 %v3255_v56  ;;  %v3265_v40 = vmul.f32 1.442695, %v3240_v20 }
 0x628   : > { %3312 = vadd.xlane.f32.xlu1 %v6850_v4  ;;  %v3253_v30 = vmul.f32 1.442695, %v3234_v52 }
 0x629   : > { %v3219_v15 = vpop.permute.xlu0 %3218  ;;  %v3179_v29 = vpop.permute.xlu1 %3178 }
 0x62a   : > { %6857 = vpow2.f32 %v3253_v30  ;;  %v3236_v53 = vsub.f32 %v10497_v8, %v3179_v29  ;;  %v10500_v30 = vld [vmem:[#allocation77_spill] sm:$0xff]  ;;  %v10501_v8 = vld [vmem:[#allocation76_spill] sm:$0xff] }
 0x62b   : > { %v3242_v44 = vsub.f32 %v10500_v30, %v3209_v18  ;;  %v10504_v30 = vld [vmem:[#allocation100_spill] sm:$0xff] }
 0x62c   : > { %v3257_v41 = vmul.f32 1.442695, %v3236_v53 }
 0x62d   : > { %v3229_v49 = vpop.permute.xlu0 %3228  ;;  %v3184_v7 = vpop.permute.xlu1 %3183 }
 0x62e   : > { %6859 = vpow2.f32 %v3257_v41  ;;  %v3237_v28 = vsub.f32 %v10499_v5, %v3184_v7  ;;  %v3269_v7 = vmul.f32 1.442695, %v3242_v44  ;;  %v9352_v44 = vpop.f32.mrf.mxu1 }
 0x62f   : > { %v6852_v25 = vpop.eup %6851  ;;  %6861 = vpow2.f32 %v3261_v13 }
 0x630   : > { %v3259_v22 = vmul.f32 1.442695, %v3237_v28  ;;  %3314 = vadd.xlane.f32.xlu0 %v6852_v25  ;;  %v3376_v56 = vpack.c.bf16 %v6852_v25, %v6850_v4  ;;  %v10502_v28 = vld [vmem:[#allocation104_spill] sm:$0xff]  ;;  %v10503_v4 = vld [vmem:[#allocation75_spill] sm:$0xff] }
 0x631   : > { %v9343_v52 = vpop.permute.xlu0 %4328  ;;  %v3194_v29 = vpop.permute.xlu1 %3193  ;;  %v3244_v31 = vsub.f32 %v10502_v28, %v3219_v15  ;;  %v10505_v15 = vld [vmem:[#allocation80_spill] sm:$0xff] }
 0x632   : > { %6863 = vpow2.f32 %v3259_v22  ;;  %v3239_v60 = vsub.f32 %v10501_v8, %v3194_v29  ;;  %6326 = vmatprep.mubr.bf16.mxu1 %v3376_v56  ;;  %v3246_v29 = vsub.f32 %v10504_v30, %v3229_v49  ;;  %v10507_v30 = vld [vmem:[#allocation127_spill] sm:$0xff] }
 0x633   : > { %v6854_v16 = vpop.eup %6853  ;;  %6865 = vpow2.f32 %v3265_v40  ;;  %v3273_v56 = vmul.f32 1.442695, %v3244_v31 }
 0x634   : > { %v3263_v53 = vmul.f32 1.442695, %v3239_v60  ;;  %3316 = vadd.xlane.f32.xlu0 %v6854_v16  ;;  %v6856_v55 = vpop.eup %6855 }
 0x635   : > { %v4071_v41 = vpop.permute.xlu0 %4070  ;;  %v3204_v5 = vpop.permute.xlu1 %3203 }
 0x636   : > { %6867 = vpow2.f32 %v3263_v53  ;;  %v3241_v13 = vsub.f32 %v10503_v4, %v3204_v5  ;;  %v3277_v5 = vmul.f32 1.442695, %v3246_v29 }
 0x637   : > { %v6858_v20 = vpop.eup %6857  ;;  %6869 = vpow2.f32 %v3269_v7  ;;  %v10506_v7 = vld [vmem:[#allocation79_spill] sm:$0xff] }
 0x638   : > { %v3267_v18 = vmul.f32 1.442695, %v3241_v13  ;;  %3318 = vadd.xlane.f32.xlu1 %v6858_v20  ;;  %3320 = vadd.xlane.f32.xlu0 %v6856_v55  ;;  %v3377_v22 = vpack.c.bf16 %v6858_v20, %v6854_v16  ;;  %v9355_v16 = vpop.f32.mrf.mxu1 }
 0x639   : > { %v9349_v25 = vpop.permute.xlu0 %4080  ;;  %v3214_v40 = vpop.permute.xlu1 %3213 }
 0x63a   : > { %6871 = vpow2.f32 %v3267_v18  ;;  %v3243_v8 = vsub.f32 %v10505_v15, %v3214_v40  ;;  %6327 = vmatmul.mubr.bf16.vlgmr.msra.gmra.mxu1 %v3377_v22  ;;  %v4128_v40 = vsub.f32 %v10507_v30, %v4071_v41  ;;  %v6273_v29 = vpop.f32.mrf.mxu1 }
 0x63b   : > { %v6860_v60 = vpop.eup %6859  ;;  %6873 = vpow2.f32 %v3273_v56 }
 0x63c   : > { %v3271_v53 = vmul.f32 1.442695, %v3243_v8  ;;  %3322 = vadd.xlane.f32.xlu1 %v6860_v60  ;;  %v3378_v28 = vpack.c.bf16 %v6860_v60, %v6856_v55  ;;  %v6862_v13 = vpop.eup %6861 }
 0x63d   : > { %v3224_v4 = vpop.permute.xlu1 %3223  ;;  %v4325_v31 = vpop.permute.xlu0 %4324 }
 0x63e   : > { %6875 = vpow2.f32 %v3271_v53  ;;  %v3245_v49 = vsub.f32 %v10506_v7, %v3224_v4  ;;  %6330 = vmatprep.mubr.bf16.mxu1 %v3378_v28  ;;  %v4149_v53 = vmul.f32 1.442695, %v4128_v40  ;;  %v10508_v4 = vld [vmem:[#allocation117_spill] sm:$0xff] }
 0x63f   : > { %v6864_v20 = vpop.eup %6863  ;;  %6877 = vpow2.f32 %v3277_v5  ;;  %v2528_v5 = vpop.f32.mrf.mxu1 }
 0x640   : > { %v3275_v18 = vmul.f32 1.442695, %v3245_v49  ;;  %3324 = vadd.xlane.f32.xlu0 %v6864_v20  ;;  %3326 = vadd.xlane.f32.xlu1 %v6862_v13  ;;  %v3379_v22 = vpack.c.bf16 %v6862_v13, %v6864_v20  ;;  %v9359_v56 = vpop.eup %6865 }
 0x641   : > { %v4331_v55 = vpop.permute.xlu1 %4330  ;;  %v9361_v8 = vpop.permute.xlu0 %4090 }
 0x642   : > { %6879 = vpow2.f32 %v3275_v18  ;;  %6331 = vmatmul.mubr.bf16.gmra.mxu1 %v3379_v22  ;;  %6366 = vmatprep.subr.bf16.mxu0 %v4331_v55  ;;  %v6276_v30 = vpop.f32.mrf.mxu1 }
 0x643   : > { %v6868_v15 = vpop.eup %6867  ;;  %6414 = vmatprep.subr.bf16.mxu1 %v4331_v55  ;;  %6367 = vmatpush3.bf16.msra.mxu0 %v4331_v55  ;;  %6881 = vpow2.f32 %v4149_v53 }
 0x644   : > { %6422 = vmatpush3.bf16.msra.mxu1 %v4331_v55  ;;  %3328 = vadd.xlane.f32.xlu0 %v6868_v15  ;;  %v3380_v60 = vpack.c.bf16 %v9359_v56, %v6868_v15  ;;  %v9366_v41 = vpop.eup %6869 }
 0x645   : > { %v4066_v28 = vpop.permute.xlu1 %4065  ;;  %6368 = vmatprep.subr.bf16.mxu0 %v9343_v52  ;;  %6415 = vmatprep.subr.bf16.mxu1 %v9343_v52  ;;  %v9379_v40 = vpop.permute.xlu0 %4100 }
 0x646   : > { %v4127_v13 = vsub.f32 %v10508_v4, %v4066_v28  ;;  %6334 = vmatprep.mubr.bf16.mxu1 %v3380_v60  ;;  %v2541_v28 = vpop.f32.mrf.mxu1 }
 0x647   : > { %v9369_v7 = vpop.eup %6871  ;;  %6369 = vmatpush3.bf16.msra.mxu0 %v9343_v52 }
 0x648   : > { %v4147_v49 = vmul.f32 1.442695, %v4127_v13  ;;  %6423 = vmatpush3.bf16.msra.mxu1 %v9343_v52  ;;  %v3381_v20 = vpack.c.bf16 %v9366_v41, %v9369_v7  ;;  %v9377_v22 = vpop.eup %6873 }
 0x649   : > { %v9375_v18 = vpop.permute.xlu1 %4075  ;;  %v4321_v4 = vpop.permute.xlu0 %4320 }
 0x64a   : > { %6883 = vpow2.f32 %v4147_v49  ;;  %6335 = vmatmul.mubr.bf16.gmra.mxu1 %v3381_v20  ;;  %v6277_v20 = vpop.f32.mrf.mxu1 }
 0x64b   : > { %v9381_v55 = vpop.eup %6875 }
 0x64c   : > { %v3382_v15 = vpack.c.bf16 %v9377_v22, %v9381_v55  ;;  %v9385_v52 = vpop.eup %6877  ;;  %v2544_v38 = vpop.f32.mrf.mxu1 }
 0x64d   : > { %v4327_v60 = vpop.permute.xlu1 %4326  ;;  %v4051_v3 = vpop.permute.xlu0 %4050 }
 0x64e   : > { %6338 = vmatprep.mubr.bf16.mxu1 %v3382_v15  ;;  %6370 = vmatprep.subr.bf16.mxu0 %v4327_v60 }
 0x64f   : > { %v9387_v53 = vpop.eup %6879  ;;  %6416 = vmatprep.subr.bf16.mxu1 %v4327_v60  ;;  %6371 = vmatpush3.bf16.msra.mxu0 %v4327_v60 }
 0x650   : > { %6424 = vmatpush3.bf16.msra.mxu1 %v4327_v60  ;;  %v3383_v13 = vpack.c.bf16 %v9385_v52, %v9387_v53  ;;  %6372 = vmatprep.subr.bf16.mxu0 %v4325_v31  ;;  %v9399_v60 = vpop.eup %6881 }
 0x651   : > { %v9391_v49 = vpop.permute.xlu1 %4085  ;;  %2720 = vrot.lane.b32.xlu1 %v9352_v44, %s7417_s25  ;;  %6417 = vmatprep.subr.bf16.mxu1 %v4325_v31  ;;  %v10509_v44 = vld [vmem:[#allocation115_spill] sm:$0xff] }
 0x652   : > { %6339 = vmatmul.mubr.bf16.gmra.mxu1 %v3383_v13  ;;  %v4124_v36 = vsub.f32 %v10509_v44, %v4051_v3  ;;  %v10511_v44 = vld [vmem:[#allocation116_spill] sm:$0xff] }
 0x653   : > { %6373 = vmatpush3.bf16.msra.mxu0 %v4325_v31 }
 0x654   : > { %6425 = vmatpush3.bf16.msra.mxu1 %v4325_v31  ;;  %v6280_v31 = vpop.f32.mrf.mxu1 }
 0x655   : > { %v9395_v15 = vpop.permute.xlu1 %4095  ;;  %2716 = vrot.lane.b32.xlu1 %v9355_v16, %s7417_s25  ;;  %v4141_v16 = vmul.f32 1.442695, %v4124_v36 }
 0x656   : > { %v2557_v23 = vpop.f32.mrf.mxu1 }
 0x657   : > { %v9401_v57 = vpop.eup %6883  ;;  %6885 = vpow2.f32 %v4141_v16 }
 0x658   : > { %v4270_v26 = vpack.c.bf16 %v9399_v60, %v9401_v57 }
 0x659   : > { %v4323_v33 = vpop.permute.xlu1 %4322  ;;  %2728 = vrot.lane.b32.xlu1 %v6276_v30, %s7417_s25  ;;  %v4111_v30 = vpop.permute.xlu0 %4110 }
 0x65a   : > { %2722 = vrot.lane.b32.xlu0 %v6273_v29, %s7417_s25  ;;  %6386 = vmatprep.mubr.bf16.mxu1 %v4270_v26  ;;  %v6281_v29 = vpop.f32.mrf.mxu1 }
 0x65b   : > { %6374 = vmatprep.subr.bf16.mxu0 %v4323_v33  ;;  %6418 = vmatprep.subr.bf16.mxu1 %v4323_v33 }
 0x65c   : > { %6375 = vmatpush3.bf16.msra.mxu0 %v4323_v33  ;;  %6426 = vmatpush3.bf16.msra.mxu1 %v4323_v33  ;;  %v2560_v36 = vpop.f32.mrf.mxu1 }
 0x65d   : > { %v4046_v13 = vpop.permute.xlu1 %4045  ;;  %2724 = vrot.lane.b32.xlu1 %v2541_v28, %s7417_s25  ;;  %6376 = vmatprep.subr.bf16.mxu0 %v4321_v4 }
 0x65e   : > { %v4123_v35 = vsub.f32 %v8589_v27, %v4046_v13  ;;  %2718 = vrot.lane.b32.xlu0 %v2528_v5, %s7417_s25  ;;  %6419 = vmatprep.subr.bf16.mxu1 %v4321_v4  ;;  %v6284_v27 = vpop.f32.mrf.mxu1  ;;  %v10512_v13 = vld [vmem:[#allocation132_spill] sm:$0xff] }
 0x660   : > { %v4139_v3 = vmul.f32 1.442695, %v4123_v35  ;;  %6377 = vmatpush3.bf16.msra.mxu0 %v4321_v4  ;;  %6427 = vmatpush3.bf16.msra.mxu1 %v4321_v4  ;;  %v10510_v35 = vld [vmem:[#allocation118_spill] sm:$0xff]  ;;  %v2573_v4 = vpop.f32.mrf.mxu1 }
 0x661   : > { %v4106_v26 = vpop.permute.xlu1 %4105  ;;  %2736 = vrot.lane.b32.xlu1 %v6280_v31, %s7417_s25  ;;  %v4130_v28 = vsub.f32 %v10510_v35, %v9349_v25  ;;  %v4061_v31 = vpop.permute.xlu0 %4060 }
 0x662   : > { %6887 = vpow2.f32 %v4139_v3  ;;  %2730 = vrot.lane.b32.xlu0 %v6277_v20, %s7417_s25  ;;  %v4129_v20 = vsub.f32 %v10511_v44, %v9375_v18  ;;  %v4131_v3 = vsub.f32 %v10512_v13, %v9391_v49 }
 0x663   : > { %v4153_v25 = vmul.f32 1.442695, %v4130_v28  ;;  %v10515_v28 = vld [vmem:[#allocation130_spill] sm:$0xff] }
 0x664   : > { %v4155_v49 = vmul.f32 1.442695, %v4131_v3 }
 0x665   : > { %v4056_v33 = vpop.permute.xlu1 %4055  ;;  %2732 = vrot.lane.b32.xlu1 %v2557_v23, %s7417_s25  ;;  %6889 = vpow2.f32 %v4153_v25 }
 0x666   : > { %2726 = vrot.lane.b32.xlu0 %v2544_v38, %s7417_s25  ;;  %v4125_v23 = vsub.f32 %v8572_v59, %v4056_v33  ;;  %v9423_v38 = vpop.eup %6885  ;;  %v10514_v59 = vld [vmem:[#allocation134_spill] sm:$0xff]  ;;  %v4151_v33 = vmul.f32 1.442695, %v4129_v20 }
 0x667   : > { %v4132_v18 = vsub.f32 %v10514_v59, %v9361_v8  ;;  %v10516_v8 = vld [vmem:[#allocation133_spill] sm:$0xff] }
 0x668   : > { %v4143_v44 = vmul.f32 1.442695, %v4125_v23  ;;  %6891 = vpow2.f32 %v4151_v33  ;;  %v4134_v20 = vsub.f32 %v10516_v8, %v9379_v40 }
 0x669   : > { %v4116_v5 = vpop.permute.xlu1 %4115  ;;  %2744 = vrot.lane.b32.xlu1 %v6284_v27, %s7417_s25  ;;  %v10513_v27 = vld [vmem:[#allocation114_spill] sm:$0xff]  ;;  %v4157_v13 = vmul.f32 1.442695, %v4132_v18 }
 0x66a   : > { %2738 = vrot.lane.b32.xlu0 %v6281_v29, %s7417_s25  ;;  %v4126_v35 = vsub.f32 %v10513_v27, %v4061_v31  ;;  %v4133_v31 = vsub.f32 %v10515_v28, %v9395_v15  ;;  %6893 = vpow2.f32 %v4143_v44  ;;  %v4135_v27 = vsub.f32 %v8971_v58, %v4106_v26 }
 0x66b   : > { %6895 = vpow2.f32 %v4155_v49  ;;  %v4161_v25 = vmul.f32 1.442695, %v4134_v20  ;;  %v4137_v15 = vsub.f32 %v8962_v32, %v4116_v5 }
 0x66c   : > { %v4159_v3 = vmul.f32 1.442695, %v4133_v31  ;;  %v4163_v59 = vmul.f32 1.442695, %v4135_v27 }
 0x66d   : > { %2740 = vrot.lane.b32.xlu1 %v2573_v4, %s7417_s25  ;;  %v4319_v16 = vpop.permute.xlu1 %4318  ;;  %v4167_v49 = vmul.f32 1.442695, %v4137_v15  ;;  %v6285_v15 = vpop.f32.mrf.mxu1 }
 0x66e   : > { %2734 = vrot.lane.b32.xlu0 %v2560_v36, %s7417_s25  ;;  %6378 = vmatprep.subr.bf16.mxu0 %v4319_v16  ;;  %v4145_v36 = vmul.f32 1.442695, %v4126_v35 }
 0x66f   : > { %v9428_v29 = vpop.eup %6887  ;;  %6420 = vmatprep.subr.bf16.mxu1 %v4319_v16  ;;  %6379 = vmatpush3.bf16.msra.mxu0 %v4319_v16 }
 0x670   : > { %v4268_v4 = vpack.c.bf16 %v9423_v38, %v9428_v29  ;;  %6428 = vmatpush3.bf16.msra.mxu1 %v4319_v16  ;;  %6897 = vpow2.f32 %v4145_v36  ;;  %v10517_v16 = vld [vmem:[#allocation81_spill] sm:$0xff] }
 0x671   : > { %6899 = vpow2.f32 %v4157_v13  ;;  %v4136_v23 = vsub.f32 %v10517_v16, %v4111_v30 }
 0x672   : > { %6382 = vmatprep.mubr.bf16.mxu0 %v4268_v4  ;;  %6901 = vpow2.f32 %v4159_v3  ;;  %v6890_v58 = vpop.eup %6889 }
 0x673   : > { %v4165_v35 = vmul.f32 1.442695, %v4136_v23  ;;  %6903 = vpow2.f32 %v4163_v59 }
 0x674   : > { %6905 = vpow2.f32 %v4161_v25  ;;  %v10518_v25 = vld [vmem:[#allocation105_spill] sm:$0xff] }
 0x675   : > { %6907 = vpow2.f32 %v4165_v35  ;;  %v9443_v26 = vpop.eup %6891  ;;  %v3103_v35 = vsub.f32 %v10518_v25, %v10447_v39  ;;  %v2576_v39 = vpop.f32.mrf.mxu1 }
 0x677   : > { %v9445_v4 = vpop.eup %6893 }
 0x678   : > { %v9447_v44 = vpop.eup %6895 }
 0x67d   : > { %v6898_v36 = vpop.eup %6897 }
 0x67e   : > { %v6900_v13 = vpop.eup %6899  ;;  %v4269_v32 = vpack.c.bf16 %v6898_v36, %v9445_v4 }
 0x67f   : > { %v4121_v18 = vpop.permute.xlu0 %4120  ;;  %v4272_v5 = vpack.c.bf16 %v6900_v13, %v9447_v44  ;;  %v9452_v28 = vpop.eup %6901 }
 0x680   : > { %v4138_v33 = vsub.f32 %v8979_v54, %v4121_v18  ;;  %v4271_v54 = vpack.c.bf16 %v6890_v58, %v9443_v26  ;;  %v9454_v31 = vpop.eup %6903  ;;  %v10519_v18 = vld [vmem:[#allocation107_spill] sm:$0xff] }
 0x681   : > { %v6906_v27 = vpop.eup %6905 }
 0x682   : > { %v4169_v40 = vmul.f32 1.442695, %v4138_v33  ;;  %v6908_v8 = vpop.eup %6907  ;;  %v4273_v20 = vpack.c.bf16 %v6906_v27, %v9452_v28 }
 0x683   : > { %v4317_v30 = vpop.permute.xlu0 %4316  ;;  %v4274_v16 = vpack.c.bf16 %v6908_v8, %v9454_v31 }
 0x684   : > { %6380 = vmatprep.subr.bf16.mxu0 %v4317_v30  ;;  %6421 = vmatprep.subr.bf16.mxu1 %v4317_v30  ;;  %6909 = vpow2.f32 %v4169_v40 }
 0x685   : > { %6381 = vmatpush3.bf16.msra.mxu0 %v4317_v30  ;;  %6429 = vmatpush3.bf16.msra.mxu1 %v4317_v30  ;;  %6911 = vpow2.f32 %v4167_v49 }
 0x688   : > { %6383 = vmatmul.mubr.bf16.vlgmr.msra.gmra.mxu0 %v4269_v32  ;;  %6387 = vmatmul.mubr.bf16.vlgmr.msra.gmra.mxu1 %v4271_v54 }
 0x689   : > { %6390 = vmatprep.mubr.bf16.mxu1 %v4272_v5  ;;  %v3280_v5 = vld [vmem:[#allocation4 + $0x100] sm:$0xff] }
 0x68d   : > { %3332 = vadd.xlane.f32.xlu0 %v9369_v7  ;;  %v3119_v7 = vmul.f32 1.442695, %v3103_v35 }
 0x68f   : > { %6913 = vpow2.f32 %v3119_v7 }
 0x690   : > { %6391 = vmatmul.mubr.bf16.gmra.mxu1 %v4273_v20 }
 0x691   : > { %6394 = vmatprep.mubr.bf16.mxu1 %v4274_v16  ;;  %3330 = vadd.xlane.f32.xlu1 %v9359_v56  ;;  %v6910_v23 = vpop.eup %6909  ;;  %v3104_v56 = vsub.f32 %v10519_v18, %v10448_v11  ;;  %v10522_v11 = vld [vmem:[#allocation122_spill] sm:$0xff] }
 0x692   : > { %v9460_v3 = vpop.eup %6911  ;;  %v3107_v49 = vsub.f32 %v10522_v11, %v8634_v62  ;;  %v10525_v62 = vld [vmem:[#allocation123_spill] sm:$0xff] }
 0x693   : > { %v4275_v59 = vpack.c.bf16 %v6910_v23, %v9460_v3  ;;  %v3121_v40 = vmul.f32 1.442695, %v3104_v56 }
 0x695   : > { %3334 = vadd.xlane.f32.xlu1 %v9366_v41  ;;  %v10520_v41 = vld [vmem:[#allocation103_spill] sm:$0xff]  ;;  %6915 = vpow2.f32 %v3121_v40 }
 0x696   : > { %v3105_v33 = vsub.f32 %v10520_v41, %v10449_v48  ;;  %v3127_v48 = vmul.f32 1.442695, %v3107_v49 }
 0x698   : > { %6395 = vmatmul.mubr.bf16.gmra.mxu1 %v4275_v59 }
 0x699   : > { %3338 = vadd.xlane.f32.xlu1 %v9377_v22  ;;  %v10521_v22 = vld [vmem:[#allocation109_spill] sm:$0xff] }
 0x69a   : > { %v3106_v30 = vsub.f32 %v10521_v22, %v10450_v43  ;;  %v10524_v43 = vld [vmem:[#allocation111_spill] sm:$0xff] }
 0x69b   : > { %v3109_v20 = vsub.f32 %v10524_v43, %v10452_v47  ;;  %v3281_v47 = vld [vmem:[#allocation4 + $0x108] sm:$0xff] }
 0x69c   : > { %v9480_v32 = vpop.eup %6913 }
 0x69d   : > { %3342 = vadd.xlane.f32.xlu1 %v9385_v52  ;;  %v3123_v52 = vmul.f32 1.442695, %v3105_v33  ;;  %v3296_v16 = vmul.f32 %v9480_v32, %v3280_v5  ;;  %v3131_v7 = vmul.f32 1.442695, %v3109_v20  ;;  %v3282_v33 = vld [vmem:[#allocation4 + $0x110] sm:$0xff] }
 0x69f   : > { %6917 = vpow2.f32 %v3123_v52  ;;  %v3284_v52 = vld [vmem:[#allocation4 + $0x120] sm:$0xff] }
 0x6a1   : > { %4204 = vadd.xlane.f32.xlu1 %v9428_v29  ;;  %v3125_v29 = vmul.f32 1.442695, %v3106_v30  ;;  %v3283_v30 = vld [vmem:[#allocation4 + $0x118] sm:$0xff] }
 0x6a2   : > { %v9492_v56 = vpop.eup %6915 }
 0x6a3   : > { %2746 = vrot.lane.b32.xlu0 %v6285_v15, %s7417_s25  ;;  %6919 = vpow2.f32 %v3125_v29 }
 0x6a4   : > { %6921 = vpow2.f32 %v3127_v48 }
 0x6a5   : > { %4210 = vadd.xlane.f32.xlu1 %v6898_v36  ;;  %v10523_v36 = vld [vmem:[#allocation136_spill] sm:$0xff] }
 0x6a6   : > { %v3108_v54 = vsub.f32 %v10523_v36, %v8730_v0 }
 0x6a7   : > { %2742 = vrot.lane.b32.xlu0 %v2576_v39, %s7417_s25 }
 0x6a8   : > { %v3129_v59 = vmul.f32 1.442695, %v3108_v54  ;;  %v3285_v54 = vld [vmem:[#allocation4 + $0x128] sm:$0xff] }
 0x6a9   : > { %4214 = vadd.xlane.f32.xlu1 %v9399_v60  ;;  %v3110_v60 = vsub.f32 %v10525_v62, %v8642_v12  ;;  %v3297_v12 = vmul.f32 %v9492_v56, %v3281_v47  ;;  %v3288_v47 = vld [vmem:[#allocation4 + $0x140] sm:$0xff] }
 0x6aa   : > { %6923 = vpow2.f32 %v3129_v59  ;;  %v3286_v59 = vld [vmem:[#allocation4 + $0x130] sm:$0xff] }
 0x6ab   : > { %v3133_v0 = vmul.f32 1.442695, %v3110_v60  ;;  %6925 = vpow2.f32 %v3131_v7  ;;  %v3287_v60 = vld [vmem:[#allocation4 + $0x138] sm:$0xff] }
 0x6ac   : > { %v9495_v41 = vpop.eup %6917 }
 0x6ad   : > { %4218 = vadd.xlane.f32.xlu1 %v6890_v58  ;;  %v10526_v58 = vld [vmem:[#allocation125_spill] sm:$0xff]  ;;  %6927 = vpow2.f32 %v3133_v0 }
 0x6ae   : > { %v3111_v18 = vsub.f32 %v10526_v58, %v8656_v6  ;;  %v3298_v6 = vmul.f32 %v9495_v41, %v3282_v33  ;;  %v10527_v33 = vld [vmem:[#allocation124_spill] sm:$0xff] }
 0x6b0   : > { %v3135_v15 = vmul.f32 1.442695, %v3111_v18  ;;  %v9497_v39 = vpop.eup %6919 }
 0x6b1   : > { %v3313_v25 = vpop.xlane.xlu1 %3312  ;;  %4222 = vadd.xlane.f32.xlu1 %v6900_v13 }
 0x6b2   : > { %v3344_v35 = vadd.f32 %v3313_v25, %v3296_v16  ;;  %6929 = vpow2.f32 %v3135_v15 }
 0x6b4   : > { %3360 = vst.msk [vmem:[#allocation4 + $0x100] sm:$0xff] %vm1510_vm2, %v3344_v35 }
 0x6b5   : > { %4226 = vadd.xlane.f32.xlu1 %v6906_v27  ;;  %v9501_v27 = vpop.eup %6921 }
 0x6b6   : > { %v3300_v49 = vmul.f32 %v9501_v27, %v3284_v52  ;;  %v2591_v52 = vld [vmem:[#allocation5 + $0x30] sm:$0xff] }
 0x6b7   : > { %v9506_v29 = vpop.eup %6923 }
 0x6b8   : > { %v9508_v20 = vpop.eup %6925 }
 0x6b9   : > { %4230 = vadd.xlane.f32.xlu1 %v6908_v8  ;;  %v3315_v13 = vpop.xlane.xlu0 %3314  ;;  %v3299_v8 = vmul.f32 %v9497_v39, %v3283_v30  ;;  %v3302_v7 = vmul.f32 %v9508_v20, %v3286_v59 }
 0x6ba   : > { %v3345_v40 = vadd.f32 %v3315_v13, %v3297_v12  ;;  %v9513_v16 = vpop.eup %6927  ;;  %v2590_v13 = vld [vmem:[#allocation5 + $0x20] sm:$0xff] }
 0x6bb   : > { %v3303_v35 = vmul.f32 %v9513_v16, %v3287_v60  ;;  %v2594_v60 = vld [vmem:[#allocation5 + $0x60] sm:$0xff] }
 0x6bc   : > { %3361 = vst.msk [vmem:[#allocation4 + $0x108] sm:$0xff] %vm1510_vm2, %v3345_v40  ;;  %v3113_v40 = vsub.f32 %v10527_v33, %v8648_v24  ;;  %v2690_v59 = vmul.f32 %v9160_v2, %v2594_v60  ;;  %v3996_v2 = vsub.f32 %v9113_v63, %v9121_v19 }
 0x6bd   : > { %4234 = vadd.xlane.f32.xlu1 %v6910_v23  ;;  %v3317_v22 = vpop.xlane.xlu0 %3316  ;;  %v3301_v23 = vmul.f32 %v9506_v29, %v3285_v54 }
 0x6be   : > { %v3346_v11 = vadd.f32 %v3317_v22, %v3298_v6  ;;  %v3139_v24 = vmul.f32 1.442695, %v3113_v40  ;;  %v4013_v63 = vmul.f32 1.442695, %v3996_v2 }
 0x6bf   : > { %v9519_v0 = vpop.eup %6929 }
 0x6c0   : > { %3362 = vst.msk [vmem:[#allocation4 + $0x110] sm:$0xff] %vm1510_vm2, %v3346_v11  ;;  %v3304_v6 = vmul.f32 %v9519_v0, %v3288_v47  ;;  %6931 = vpow2.f32 %v3139_v24  ;;  %v2596_v24 = vld [vmem:[#allocation5 + $0x80] sm:$0xff] }
 0x6c1   : > { %v3319_v48 = vpop.xlane.xlu1 %3318  ;;  %v3321_v36 = vpop.xlane.xlu0 %3320 }
 0x6c2   : > { %v3347_v5 = vadd.f32 %v3319_v48, %v3299_v8  ;;  %v3348_v43 = vadd.f32 %v3321_v36, %v3300_v49  ;;  %v10529_v36 = vld [vmem:[#allocation42_spill] sm:$0xff] }
 0x6c3   : > { %v2687_v54 = vmul.f32 %v10529_v36, %v2591_v52 }
 0x6c4   : > { %3363 = vst.msk [vmem:[#allocation4 + $0x118] sm:$0xff] %vm1510_vm2, %v3347_v5  ;;  %3364 = vst.msk [vmem:[#allocation4 + $0x120] sm:$0xff] %vm1510_vm2, %v3348_v43 }
 0x6c5   : > { %v3323_v62 = vpop.xlane.xlu1 %3322 }
 0x6c6   : > { %v3349_v25 = vadd.f32 %v3323_v62, %v3301_v23  ;;  %3336 = vadd.xlane.f32.xlu0 %v9381_v55  ;;  %v2686_v55 = vmul.f32 %v9100_v10, %v2590_v13  ;;  %v10528_v10 = vld [vmem:[#allocation129_spill] sm:$0xff] }
 0x6c7   : > { %v3115_v49 = vsub.f32 %v10528_v10, %v10457_v42  ;;  %v2589_v23 = vld [vmem:[#allocation5 + $0x10] sm:$0xff]  ;;  %v10535_v10 = vsub.f32 %v9242_v9, %v9251_v45  ;;  %v2602_v45 = vld [vmem:[#allocation5 + $0xe0] sm:$0xff] }
 0x6c8   : > { %3365 = vst.msk [vmem:[#allocation4 + $0x128] sm:$0xff] %vm1510_vm2, %v3349_v25  ;;  %v10531_v25 = vld [vmem:[#allocation40_spill] sm:$0xff] }
 0x6c9   : > { %v3327_v58 = vpop.xlane.xlu1 %3326  ;;  %v3325_v18 = vpop.xlane.xlu0 %3324 }
 0x6ca   : > { %v3351_v15 = vadd.f32 %v3327_v58, %v3303_v35  ;;  %v3350_v12 = vadd.f32 %v3325_v18, %v3302_v7  ;;  %3340 = vadd.xlane.f32.xlu0 %v9387_v53  ;;  %v2588_v53 = vld [vmem:[#allocation5] sm:$0xff]  ;;  %v2685_v35 = vmul.f32 %v10531_v25, %v2589_v23  ;;  %v2595_v18 = vld [vmem:[#allocation5 + $0x70] sm:$0xff] }
 0x6cb   : > { %v2684_v48 = vmul.f32 %v9105_v17, %v2588_v53  ;;  %v3143_v17 = vmul.f32 1.442695, %v3115_v49  ;;  %v4015_v49 = vmul.f32 1.442695, %v10535_v10 }
 0x6cc   : > { %3367 = vst.msk [vmem:[#allocation4 + $0x138] sm:$0xff] %vm1510_vm2, %v3351_v15  ;;  %3366 = vst.msk [vmem:[#allocation4 + $0x130] sm:$0xff] %vm1510_vm2, %v3350_v12  ;;  %v10532_v12 = vld [vmem:[#allocation43_spill] sm:$0xff] }
 0x6cd   : > { %v2721_v22 = vpop.permute.xlu1 %2720  ;;  %v3329_v30 = vpop.xlane.xlu0 %3328  ;;  %6933 = vpow2.f32 %v3143_v17  ;;  %v2691_v13 = vmul.f32 %v10532_v12, %v2595_v18 }
 0x6ce   : > { %v2766_v11 = vadd.f32 %v2721_v22, %v2686_v55  ;;  %v3352_v8 = vadd.f32 %v3329_v30, %v3304_v6  ;;  %4206 = vadd.xlane.f32.xlu0 %v9423_v38  ;;  %3552 = vperm.xlu1 %6639, %v9492_v56   ;;  %v10530_v56 = vld [vmem:[#allocation126_spill] sm:$0xff]  ;;  %v2593_v55 = vld [vmem:[#allocation5 + $0x50] sm:$0xff] }
 0x6cf   : > { %v3117_v42 = vsub.f32 %v10530_v56, %v10460_v51 }
 0x6d0   : > { %2783 = vst.msk [vmem:[#allocation5 + $0x20] sm:$0xff] %vm2780_vm3, %v2766_v11  ;;  %v2599_v11 = vld [vmem:[#allocation5 + $0xb0] sm:$0xff] }
 0x6d1   : > { %3368 = vst.msk [vmem:[#allocation4 + $0x140] sm:$0xff] %vm1510_vm2, %v3352_v8  ;;  %v2717_v5 = vpop.permute.xlu1 %2716  ;;  %v2723_v43 = vpop.permute.xlu0 %2722  ;;  %v3147_v51 = vmul.f32 1.442695, %v3117_v42 }
 0x6d2   : > { %v2764_v62 = vadd.f32 %v2717_v5, %v2684_v48  ;;  %v2767_v38 = vadd.f32 %v2723_v43, %v2687_v54  ;;  %4208 = vadd.xlane.f32.xlu0 %v9445_v4  ;;  %3557 = vperm.xlu1 %6639, %v9495_v41   ;;  %v2592_v41 = vld [vmem:[#allocation5 + $0x40] sm:$0xff]  ;;  %v10536_v48 = vld [vmem:[#allocation45_spill] sm:$0xff] }
 0x6d3   : > { %v2688_v15 = vmul.f32 %v9170_v46, %v2592_v41  ;;  %6935 = vpow2.f32 %v3147_v51  ;;  %v10533_v46 = vld [vmem:[#allocation46_spill] sm:$0xff]  ;;  %v2695_v36 = vmul.f32 %v10536_v48, %v2599_v11  ;;  %v2597_v5 = vld [vmem:[#allocation5 + $0x90] sm:$0xff]  ;;  %v10555_v48 = vld [vmem:[#allocation68_spill] sm:$0xff] }
 0x6d4   : > { %2781 = vst.msk [vmem:[#allocation5] sm:$0xff] %vm2780_vm3, %v2764_v62  ;;  %2784 = vst.msk [vmem:[#allocation5 + $0x30] sm:$0xff] %vm2780_vm3, %v2767_v38  ;;  %v2689_v22 = vmul.f32 %v10533_v46, %v2593_v55  ;;  %6937 = vpow2.f32 %v4013_v63  ;;  %v2698_v62 = vmul.f32 %v9333_v21, %v2602_v45  ;;  %v10538_v38 = vld [vmem:[#allocation44_spill] sm:$0xff]  ;;  %v4003_v21 = vsub.f32 %v9060_v14, %v9064_v1  ;;  %v10548_v63 = vld [vmem:[#allocation71_spill] sm:$0xff] }
 0x6d5   : > { %v2729_v7 = vpop.permute.xlu1 %2728  ;;  %v2719_v58 = vpop.permute.xlu0 %2718  ;;  %6939 = vpow2.f32 %v4015_v49  ;;  %v2693_v56 = vmul.f32 %v10538_v38, %v2597_v5  ;;  %v10546_v55 = vld [vmem:[#allocation52_spill] sm:$0xff]  ;;  %v10554_v49 = vld [vmem:[#allocation39_spill] sm:$0xff]  ;;  %v10559_v45 = vld [vmem:[#allocation50_spill] sm:$0xff] }
 0x6d6   : > { %v2770_v4 = vadd.f32 %v2729_v7, %v2690_v59  ;;  %v2765_v47 = vadd.f32 %v2719_v58, %v2685_v35  ;;  %4212 = vadd.xlane.f32.xlu0 %v9401_v57  ;;  %3567 = vperm.xlu1 %6639, %v9501_v27   ;;  %v2598_v27 = vld [vmem:[#allocation5 + $0xa0] sm:$0xff]  ;;  %v10539_v35 = vld [vmem:[#allocation61_spill] sm:$0xff]  ;;  %v4027_v41 = vmul.f32 1.442695, %v4003_v21  ;;  %v10563_v21 = vld [vmem:[#allocation148_spill] sm:$0xff] }
 0x6d7   : > { %v2694_v19 = vmul.f32 %v9181_v34, %v2598_v27  ;;  %v2692_v34 = vmul.f32 %v9189_v50, %v2596_v24  ;;  %v10537_v50 = vld [vmem:[#allocation140_spill] sm:$0xff]  ;;  %v10553_v24 = vld [vmem:[#allocation41_spill] sm:$0xff] }
 0x6d8   : > { %2787 = vst.msk [vmem:[#allocation5 + $0x60] sm:$0xff] %vm2780_vm3, %v2770_v4  ;;  %2782 = vst.msk [vmem:[#allocation5 + $0x10] sm:$0xff] %vm2780_vm3, %v2765_v47  ;;  %v4001_v9 = vsub.f32 %v10537_v50, %v10467_v37  ;;  %v2600_v37 = vld [vmem:[#allocation5 + $0xc0] sm:$0xff]  ;;  %v10541_v47 = vld [vmem:[#allocation90_spill] sm:$0xff] }
 0x6d9   : > { %v2725_v33 = vpop.permute.xlu1 %2724  ;;  %v2731_v40 = vpop.permute.xlu0 %2730  ;;  %v2696_v7 = vmul.f32 %v10539_v35, %v2600_v37  ;;  %v10564_v35 = vld [vmem:[#allocation146_spill] sm:$0xff] }
 0x6da   : > { %v2768_v57 = vadd.f32 %v2725_v33, %v2688_v15  ;;  %v2771_v6 = vadd.f32 %v2731_v40, %v2691_v13  ;;  %4216 = vadd.xlane.f32.xlu0 %v9443_v26  ;;  %3577 = vperm.xlu1 %6639, %v9508_v20   ;;  %v10534_v26 = vld [vmem:[#allocation143_spill] sm:$0xff]  ;;  %v4023_v25 = vmul.f32 1.442695, %v4001_v9  ;;  %v10545_v40 = vld [vmem:[#allocation58_spill] sm:$0xff] }
 0x6db   : > { %v3999_v20 = vsub.f32 %v10534_v26, %v10464_v61  ;;  %v10543_v15 = vld [vmem:[#allocation51_spill] sm:$0xff]  ;;  %v10558_v9 = vld [vmem:[#allocation54_spill] sm:$0xff] }
 0x6dc   : > { %2785 = vst.msk [vmem:[#allocation5 + $0x40] sm:$0xff] %vm2780_vm3, %v2768_v57  ;;  %2788 = vst.msk [vmem:[#allocation5 + $0x70] sm:$0xff] %vm2780_vm3, %v2771_v6  ;;  %v10547_v57 = vsub.f32 %v10545_v40, %v10546_v55  ;;  %v10567_v40 = vld [vmem:[#allocation37_spill] sm:$0xff] }
 0x6dd   : > { %v2737_v30 = vpop.permute.xlu1 %2736  ;;  %v2727_v52 = vpop.permute.xlu0 %2726  ;;  %v4019_v23 = vmul.f32 1.442695, %v3999_v20  ;;  %v10552_v20 = vld [vmem:[#allocation70_spill] sm:$0xff] }
 0x6de   : > { %v2774_v8 = vadd.f32 %v2737_v30, %v2694_v19  ;;  %v2769_v53 = vadd.f32 %v2727_v52, %v2689_v22  ;;  %4220 = vadd.xlane.f32.xlu0 %v9447_v44  ;;  %3587 = vperm.xlu1 %6639, %v9519_v0   ;;  %v9569_v44 = vpop.eup %6931  ;;  %v4039_v6 = vmul.f32 1.442695, %v10547_v57  ;;  %v10549_v19 = vld [vmem:[#allocation38_spill] sm:$0xff]  ;;  %v10550_v30 = vld [vmem:[#allocation36_spill] sm:$0xff]  ;;  %v10551_v52 = vld [vmem:[#allocation69_spill] sm:$0xff] }
 0x6df   : > { %v9579_v42 = vpop.eup %6933  ;;  %6941 = vpow2.f32 %v4019_v23  ;;  %v3112_v46 = vsub.f32 %v10549_v19, %v10548_v63  ;;  %v3114_v11 = vsub.f32 %v10551_v52, %v10550_v30  ;;  %v10560_v23 = vsub.f32 %v10558_v9, %v10559_v45  ;;  %v3291_v63 = vld [vmem:[#allocation4 + $0x158] sm:$0xff]  ;;  %v2601_v52 = vld [vmem:[#allocation5 + $0xd0] sm:$0xff] }
 0x6e0   : > { %2791 = vst.msk [vmem:[#allocation5 + $0xa0] sm:$0xff] %vm2780_vm3, %v2774_v8  ;;  %2786 = vst.msk [vmem:[#allocation5 + $0x50] sm:$0xff] %vm2780_vm3, %v2769_v53  ;;  %v9588_v58 = vpop.eup %6935  ;;  %6943 = vpow2.f32 %v4023_v25 }
 0x6e1   : > { %v2733_v0 = vpop.permute.xlu1 %2732  ;;  %v2739_v54 = vpop.permute.xlu0 %2738  ;;  %6945 = vpow2.f32 %v4027_v41  ;;  %v3137_v8 = vmul.f32 1.442695, %v3112_v46  ;;  %v3141_v26 = vmul.f32 1.442695, %v3114_v11  ;;  %v2603_v41 = vld [vmem:[#allocation5 + $0xf0] sm:$0xff]  ;;  %v10568_v11 = vld [vmem:[#allocation62_spill] sm:$0xff] }
 0x6e2   : > { %v2772_v61 = vadd.f32 %v2733_v0, %v2692_v34  ;;  %v2775_v43 = vadd.f32 %v2739_v54, %v2695_v36  ;;  %4224 = vadd.xlane.f32.xlu0 %v9452_v28  ;;  %3597 = vperm.xlu1 %6639, %v9569_v44   ;;  %v9595_v14 = vpop.eup %6937  ;;  %v3116_v34 = vsub.f32 %v10553_v24, %v10552_v20 }
 0x6e3   : > { %v9598_v2 = vpop.eup %6939  ;;  %v3118_v36 = vsub.f32 %v10555_v48, %v10554_v49  ;;  %v10570_v49 = vld [vmem:[#allocation98_spill] sm:$0xff] }
 0x6e4   : > { %2789 = vst.msk [vmem:[#allocation5 + $0x80] sm:$0xff] %vm2780_vm3, %v2772_v61  ;;  %2792 = vst.msk [vmem:[#allocation5 + $0xb0] sm:$0xff] %vm2780_vm3, %v2775_v43  ;;  %v3145_v0 = vmul.f32 1.442695, %v3116_v34  ;;  %v10556_v61 = vld [vmem:[#allocation47_spill] sm:$0xff]  ;;  %v10557_v43 = vld [vmem:[#allocation53_spill] sm:$0xff] }
 0x6e5   : > { %v2745_v60 = vpop.permute.xlu1 %2744  ;;  %v2735_v28 = vpop.permute.xlu0 %2734  ;;  %v3149_v5 = vmul.f32 1.442695, %v3118_v36  ;;  %v3998_v50 = vsub.f32 %v10557_v43, %v10556_v61  ;;  %v10569_v34 = vld [vmem:[#allocation102_spill] sm:$0xff] }
 0x6e6   : > { %v2778_v17 = vadd.f32 %v2745_v60, %v2698_v62  ;;  %v2773_v59 = vadd.f32 %v2735_v28, %v2693_v56  ;;  %4228 = vadd.xlane.f32.xlu0 %v9454_v31  ;;  %3607 = vperm.xlu1 %6639, %v9579_v42   ;;  %v10540_v31 = vld [vmem:[#allocation93_spill] sm:$0xff]  ;;  %v10561_v56 = vld [vmem:[#allocation88_spill] sm:$0xff]  ;;  %v10562_v60 = vld [vmem:[#allocation95_spill] sm:$0xff]  ;;  %v4006_v48 = vsub.f32 %v10570_v49, %v10569_v34 }
 0x6e7   : > { %v4005_v51 = vsub.f32 %v10541_v47, %v10540_v31  ;;  %v4000_v28 = vsub.f32 %v10562_v60, %v10561_v56  ;;  %v3289_v31 = vld [vmem:[#allocation4 + $0x148] sm:$0xff] }
 0x6e8   : > { %2795 = vst.msk [vmem:[#allocation5 + $0xe0] sm:$0xff] %vm2780_vm3, %v2778_v17  ;;  %2790 = vst.msk [vmem:[#allocation5 + $0x90] sm:$0xff] %vm2780_vm3, %v2773_v59  ;;  %v4017_v17 = vmul.f32 1.442695, %v3998_v50 }
 0x6e9   : > { %v2741_v18 = vpop.permute.xlu1 %2740  ;;  %v4031_v1 = vmul.f32 1.442695, %v4005_v51 }
 0x6ea   : > { %v2776_v4 = vadd.f32 %v2741_v18, %v2696_v7  ;;  %4232 = vadd.xlane.f32.xlu0 %v9460_v3  ;;  %3617 = vperm.xlu1 %6639, %v9588_v58   ;;  %v10542_v3 = vld [vmem:[#allocation57_spill] sm:$0xff]  ;;  %v4002_v7 = vsub.f32 %v10564_v35, %v10563_v21  ;;  %v4021_v18 = vmul.f32 1.442695, %v4000_v28  ;;  %v3295_v28 = vld [vmem:[#allocation4 + $0x178] sm:$0xff] }
 0x6eb   : > { %6947 = vpow2.f32 %v4031_v1  ;;  %v10544_v12 = vsub.f32 %v10542_v3, %v10543_v15  ;;  %v10565_v1 = vld [vmem:[#allocation59_spill] sm:$0xff] }
 0x6ec   : > { %2793 = vst.msk [vmem:[#allocation5 + $0xc0] sm:$0xff] %vm2780_vm3, %v2776_v4  ;;  %v9604_v33 = vpop.eup %6941  ;;  %v2699_v3 = vmul.f32 %v10565_v1, %v2603_v41  ;;  %v10574_v41 = vld [vmem:[#allocation56_spill] sm:$0xff] }
 0x6ed   : > { %v4035_v13 = vmul.f32 1.442695, %v10544_v12  ;;  %v9610_v27 = vpop.eup %6943 }
 0x6ee   : > { %4460 = vperm.xlu1 %6639, %v9595_v14   ;;  %v9615_v22 = vpop.eup %6945 }
 0x6ef   : > { %6949 = vpow2.f32 %v4035_v13  ;;  %v4025_v13 = vmul.f32 1.442695, %v4002_v7  ;;  %v4172_v7 = vld [vmem:[#allocation4 + $0x180] sm:$0xff] }
 0x6f0   : > { %6951 = vpow2.f32 %v4039_v6 }
 0x6f1   : > { %6953 = vpow2.f32 %v3137_v8  ;;  %v2697_v8 = vmul.f32 %v10568_v11, %v2601_v52 }
 0x6f2   : > { %4465 = vperm.xlu1 %6639, %v9598_v2   ;;  %6955 = vpow2.f32 %v3141_v26 }
 0x6f3   : > { %6957 = vpow2.f32 %v3145_v0 }
 0x6f4   : > { %6959 = vpow2.f32 %v3149_v5  ;;  %v3293_v5 = vld [vmem:[#allocation4 + $0x168] sm:$0xff] }
 0x6f6   : > { %4475 = vperm.xlu1 %6639, %v9604_v33  }
 0x6f8   : > { %v9621_v53 = vpop.eup %6947 }
 0x6fa   : > { %4485 = vperm.xlu1 %6639, %v9610_v27   ;;  %v9635_v54 = vpop.f32.mrf.mxu1 }
 0x6fc   : > { %v9627_v10 = vpop.eup %6949 }
 0x6fe   : > { %4495 = vperm.xlu1 %6639, %v9615_v22  }
 0x700   : > { %3547 = vperm.xlu0 %6640, %v9480_v32   ;;  %v9633_v32 = vpop.eup %6951 }
 0x701   : > { %v6954_v62 = vpop.eup %6953 }
 0x702   : > { %4505 = vperm.xlu1 %6639, %v9621_v53   ;;  %v6956_v59 = vpop.eup %6955  ;;  %v3305_v12 = vmul.f32 %v6954_v62, %v3289_v31 }
 0x703   : > { %v6958_v47 = vpop.eup %6957  ;;  %v3307_v20 = vmul.f32 %v6956_v59, %v3291_v63  ;;  %v4177_v63 = vld [vmem:[#allocation4 + $0x1a8] sm:$0xff] }
 0x704   : > { %3562 = vperm.xlu0 %6640, %v9497_v39   ;;  %v9639_v39 = vpop.f32.mrf.mxu1  ;;  %v6960_v19 = vpop.eup %6959  ;;  %v3309_v45 = vmul.f32 %v6958_v47, %v3293_v5 }
 0x706   : > { %4515 = vperm.xlu1 %6639, %v9627_v10   ;;  %v9646_v38 = vpop.f32.mrf.mxu1 }
 0x708   : > { %3572 = vperm.xlu0 %6640, %v9506_v29   ;;  %v4011_v29 = vmul.f32 1.442695, %v10560_v23  ;;  %v9650_v37 = vpop.f32.mrf.mxu1  ;;  %v4033_v23 = vmul.f32 1.442695, %v4006_v48 }
 0x70a   : > { %4525 = vperm.xlu1 %6639, %v9633_v32   ;;  %6961 = vpow2.f32 %v4011_v29  ;;  %v9656_v15 = vpop.f32.mrf.mxu1  ;;  %v10571_v29 = vld [vmem:[#allocation49_spill] sm:$0xff] }
 0x70b   : > { %6963 = vpow2.f32 %v4017_v17 }
 0x70c   : > { %3582 = vperm.xlu0 %6640, %v9513_v16   ;;  %v3290_v16 = vld [vmem:[#allocation4 + $0x150] sm:$0xff]  ;;  %6965 = vpow2.f32 %v4021_v18  ;;  %v9662_v26 = vpop.f32.mrf.mxu1 }
 0x70d   : > { %v3306_v25 = vmul.f32 %v9569_v44, %v3290_v16  ;;  %v10566_v44 = vld [vmem:[#allocation35_spill] sm:$0xff]  ;;  %6967 = vpow2.f32 %v4025_v13  ;;  %v4175_v13 = vld [vmem:[#allocation4 + $0x198] sm:$0xff] }
 0x70e   : > { %v4004_v55 = vsub.f32 %v10567_v40, %v10566_v44  ;;  %v9668_v9 = vpop.f32.mrf.mxu1 }
 0x710   : > { %3592 = vperm.xlu0 %6640, %v6954_v62   ;;  %v4029_v24 = vmul.f32 1.442695, %v4004_v55  ;;  %v10572_v62 = vld [vmem:[#allocation48_spill] sm:$0xff] }
 0x711   : > { %v4008_v56 = vsub.f32 %v10572_v62, %v10571_v29 }
 0x712   : > { %6969 = vpow2.f32 %v4029_v24 }
 0x713   : > { %6971 = vpow2.f32 %v4033_v23  ;;  %v4037_v21 = vmul.f32 1.442695, %v4008_v56 }
 0x714   : > { %3602 = vperm.xlu0 %6640, %v6956_v59   ;;  %v9674_v59 = vpop.f32.mrf.mxu1 }
 0x715   : > { %6973 = vpow2.f32 %v4037_v21 }
 0x716   : > { %v3333_v4 = vpop.xlane.xlu0 %3332  ;;  %v9677_v31 = vpop.f32.mrf.mxu1 }
 0x717   : > { %v3354_v51 = vadd.f32 %v3333_v4, %v3306_v25  ;;  %v6962_v61 = vpop.eup %6961  ;;  %v3311_v25 = vmul.f32 %v6960_v19, %v3295_v28  ;;  %v4185_v28 = vld [vmem:[#allocation4 + $0x1e8] sm:$0xff] }
 0x718   : > { %3612 = vperm.xlu0 %6640, %v6958_v47   ;;  %v6964_v17 = vpop.eup %6963  ;;  %v4188_v47 = vmul.f32 %v6962_v61, %v4172_v7  ;;  %v9683_v55 = vpop.f32.mrf.mxu1 }
 0x719   : > { %3370 = vst.msk [vmem:[#allocation4 + $0x150] sm:$0xff] %vm1510_vm2, %v3354_v51  ;;  %v6966_v18 = vpop.eup %6965  ;;  %v10573_v51 = vld [vmem:[#allocation55_spill] sm:$0xff] }
 0x71a   : > { %v3331_v57 = vpop.xlane.xlu1 %3330  ;;  %v2747_v6 = vpop.permute.xlu0 %2746  ;;  %v10575_v1 = vsub.f32 %v10573_v51, %v10574_v41  ;;  %v4193_v52 = vmul.f32 %v6966_v18, %v4177_v63  ;;  %v3292_v63 = vld [vmem:[#allocation4 + $0x160] sm:$0xff] }
 0x71b   : > { %v3353_v46 = vadd.f32 %v3331_v57, %v3305_v12  ;;  %v2779_v30 = vadd.f32 %v2747_v6, %v2699_v3  ;;  %v6968_v44 = vpop.eup %6967  ;;  %v4191_v57 = vmul.f32 %v6964_v17, %v4175_v13 }
 0x71c   : > { %3622 = vperm.xlu0 %6640, %v6960_v19   ;;  %v4041_v3 = vmul.f32 1.442695, %v10575_v1 }
 0x71d   : > { %3369 = vst.msk [vmem:[#allocation4 + $0x148] sm:$0xff] %vm1510_vm2, %v3353_v46 }
 0x71e   : > { %2796 = vst.msk [vmem:[#allocation5 + $0xf0] sm:$0xff] %vm2780_vm3, %v2779_v30  ;;  %v3335_v36 = vpop.xlane.xlu1 %3334  ;;  %v2743_v0 = vpop.permute.xlu0 %2742  ;;  %6975 = vpow2.f32 %v4041_v3  ;;  %v3530_v3 = vld [vmem:[#allocation5 + $0x18] sm:$0xff] }
 0x71f   : > { %v3355_v43 = vadd.f32 %v3335_v36, %v3307_v20  ;;  %v2777_v50 = vadd.f32 %v2743_v0, %v2697_v8  ;;  %v6970_v19 = vpop.eup %6969  ;;  %v9686_v30 = vpop.f32.mrf.mxu1  ;;  %v4179_v8 = vld [vmem:[#allocation4 + $0x1b8] sm:$0xff]  ;;  %v4181_v36 = vld [vmem:[#allocation4 + $0x1c8] sm:$0xff] }
 0x720   : > { %4455 = vperm.xlu0 %6640, %v6962_v61   ;;  %v6972_v20 = vpop.eup %6971  ;;  %v4195_v49 = vmul.f32 %v6968_v44, %v4179_v8 }
 0x721   : > { %3371 = vst.msk [vmem:[#allocation4 + $0x158] sm:$0xff] %vm1510_vm2, %v3355_v43  ;;  %v9689_v34 = vpop.f32.mrf.mxu1  ;;  %v4197_v43 = vmul.f32 %v6970_v19, %v4181_v36  ;;  %v3294_v36 = vld [vmem:[#allocation4 + $0x170] sm:$0xff] }
 0x722   : > { %2794 = vst.msk [vmem:[#allocation5 + $0xd0] sm:$0xff] %vm2780_vm3, %v2777_v50  ;;  %v3339_v60 = vpop.xlane.xlu1 %3338  ;;  %v6974_v0 = vpop.eup %6973 }
 0x723   : > { %v3357_v16 = vadd.f32 %v3339_v60, %v3309_v45  ;;  %v9692_v61 = vpop.f32.mrf.mxu1  ;;  %v4183_v45 = vld [vmem:[#allocation4 + $0x1d8] sm:$0xff] }
 0x724   : > { %4470 = vperm.xlu0 %6640, %v6964_v17   ;;  %v4199_v56 = vmul.f32 %v6972_v20, %v4183_v45 }
 0x725   : > { %3373 = vst.msk [vmem:[#allocation4 + $0x168] sm:$0xff] %vm1510_vm2, %v3357_v16  ;;  %v9695_v62 = vpop.f32.mrf.mxu1 }
 0x726   : > { %v3343_v35 = vpop.xlane.xlu1 %3342 }
 0x727   : > { %v3359_v4 = vadd.f32 %v3343_v35, %v3311_v25  ;;  %v9698_v16 = vpop.f32.mrf.mxu1  ;;  %v4201_v25 = vmul.f32 %v6974_v0, %v4185_v28  ;;  %v4187_v35 = vld [vmem:[#allocation4 + $0x1f8] sm:$0xff]  ;;  %v3535_v28 = vld [vmem:[#allocation5 + $0x68] sm:$0xff] }
 0x728   : > { %4480 = vperm.xlu0 %6640, %v6966_v18  }
 0x729   : > { %3375 = vst.msk [vmem:[#allocation4 + $0x178] sm:$0xff] %vm1510_vm2, %v3359_v4  ;;  %v9701_v18 = vpop.f32.mrf.mxu1 }
 0x72a   : > { %v4205_v12 = vpop.xlane.xlu1 %4204 }
 0x72b   : > { %v4236_v40 = vadd.f32 %v4205_v12, %v4188_v47  ;;  %v6976_v23 = vpop.eup %6975 }
 0x72c   : > { %4490 = vperm.xlu0 %6640, %v6968_v44   ;;  %v4203_v4 = vmul.f32 %v6976_v23, %v4187_v35 }
 0x72d   : > { %4252 = vst.msk [vmem:[#allocation4 + $0x180] sm:$0xff] %vm1510_vm2, %v4236_v40 }
 0x72e   : > { %v4211_v6 = vpop.xlane.xlu1 %4210 }
 0x72f   : > { %v4239_v46 = vadd.f32 %v4211_v6, %v4191_v57 }
 0x730   : > { %4500 = vperm.xlu0 %6640, %v6970_v19   ;;  %v3531_v19 = vld [vmem:[#allocation5 + $0x28] sm:$0xff] }
 0x731   : > { %4255 = vst.msk [vmem:[#allocation4 + $0x198] sm:$0xff] %vm1510_vm2, %v4239_v46 }
 0x732   : > { %v4215_v11 = vpop.xlane.xlu1 %4214 }
 0x733   : > { %v4241_v24 = vadd.f32 %v4215_v11, %v4193_v52 }
 0x734   : > { %4510 = vperm.xlu0 %6640, %v6972_v20   ;;  %v3308_v20 = vmul.f32 %v9579_v42, %v3292_v63  ;;  %v3310_v42 = vmul.f32 %v9588_v58, %v3294_v36  ;;  %v3543_v36 = vld [vmem:[#allocation5 + $0xe8] sm:$0xff] }
 0x735   : > { %4257 = vst.msk [vmem:[#allocation4 + $0x1a8] sm:$0xff] %vm1510_vm2, %v4241_v24 }
 0x736   : > { %v4219_v48 = vpop.xlane.xlu1 %4218 }
 0x737   : > { %v4243_v5 = vadd.f32 %v4219_v48, %v4195_v49 }
 0x738   : > { %4520 = vperm.xlu0 %6640, %v6974_v0  }
 0x739   : > { %4259 = vst.msk [vmem:[#allocation4 + $0x1b8] sm:$0xff] %vm1510_vm2, %v4243_v5  ;;  %v3533_v5 = vld [vmem:[#allocation5 + $0x48] sm:$0xff] }
 0x73a   : > { %v4223_v50 = vpop.xlane.xlu1 %4222 }
 0x73b   : > { %v4245_v29 = vadd.f32 %v4223_v50, %v4197_v43 }
 0x73c   : > { %4530 = vperm.xlu0 %6640, %v6976_v23  }
 0x73d   : > { %4261 = vst.msk [vmem:[#allocation4 + $0x1c8] sm:$0xff] %vm1510_vm2, %v4245_v29 }
 0x73e   : > { %v4227_v60 = vpop.xlane.xlu1 %4226 }
 0x73f   : > { %v4247_v17 = vadd.f32 %v4227_v60, %v4199_v56  ;;  %v4173_v56 = vld [vmem:[#allocation4 + $0x188] sm:$0xff] }
 0x740   : > { %v4189_v58 = vmul.f32 %v9595_v14, %v4173_v56 }
 0x741   : > { %4263 = vst.msk [vmem:[#allocation4 + $0x1d8] sm:$0xff] %vm1510_vm2, %v4247_v17 }
 0x742   : > { %v4231_v21 = vpop.xlane.xlu1 %4230 }
 0x743   : > { %v4249_v7 = vadd.f32 %v4231_v21, %v4201_v25 }
 0x745   : > { %4265 = vst.msk [vmem:[#allocation4 + $0x1e8] sm:$0xff] %vm1510_vm2, %v4249_v7  ;;  %v4174_v7 = vld [vmem:[#allocation4 + $0x190] sm:$0xff] }
 0x746   : > { %v4235_v47 = vpop.xlane.xlu1 %4234 }
 0x747   : > { %v4251_v51 = vadd.f32 %v4235_v47, %v4203_v4  ;;  %v3537_v47 = vld [vmem:[#allocation5 + $0x88] sm:$0xff] }
 0x748   : > { %v6384_v41 = vpop.f32.mrf.mxu0  ;;  %v6388_v1 = vpop.f32.mrf.mxu1 }
 0x749   : > { %4267 = vst.msk [vmem:[#allocation4 + $0x1f8] sm:$0xff] %vm1510_vm2, %v4251_v51 }
 0x74a   : > { %v4374_v12 = vpop.f32.mrf.mxu0  ;;  %v4390_v13 = vpop.f32.mrf.mxu1 }
 0x74b   : > { %v3553_v44 = vpop.permute.xlu1 %3552  ;;  %4565 = vrot.lane.b32.xlu1 %v4374_v12, %s7417_s25  ;;  %v4176_v12 = vld [vmem:[#allocation4 + $0x1a0] sm:$0xff] }
 0x74c   : > { %v3626_v40 = vmul.f32 %v3553_v44, %v3530_v3  ;;  %v6385_v57 = vpop.f32.mrf.mxu0  ;;  %v6389_v6 = vpop.f32.mrf.mxu1  ;;  %v3539_v44 = vld [vmem:[#allocation5 + $0xa8] sm:$0xff] }
 0x74e   : > { %v3642_v46 = vadd.f32 %v3626_v40, %v9650_v37  ;;  %v4377_v52 = vpop.f32.mrf.mxu0  ;;  %v4393_v11 = vpop.f32.mrf.mxu1 }
 0x74f   : > { %v3558_v8 = vpop.permute.xlu1 %3557  ;;  %4569 = vrot.lane.b32.xlu1 %v6384_v41, %s7417_s25  ;;  %4567 = vrot.lane.b32.xlu0 %v4377_v52, %s7417_s25  ;;  %v3337_v49 = vpop.xlane.xlu0 %3336  ;;  %v3541_v52 = vld [vmem:[#allocation5 + $0xc8] sm:$0xff] }
 0x750   : > { %3658 = vst.msk [vmem:[#allocation5 + $0x18] sm:$0xff] %vm1068_vm1, %v3642_v46  ;;  %v3627_v24 = vmul.f32 %v3558_v8, %v3531_v19  ;;  %v6392_v48 = vpop.f32.mrf.mxu1  ;;  %v3356_v0 = vadd.f32 %v3337_v49, %v3308_v20  ;;  %v4178_v19 = vld [vmem:[#allocation4 + $0x1b0] sm:$0xff]  ;;  %v4180_v49 = vld [vmem:[#allocation4 + $0x1c0] sm:$0xff] }
 0x751   : > { %v4194_v20 = vmul.f32 %v9610_v27, %v4178_v19 }
 0x752   : > { %v3643_v43 = vadd.f32 %v9635_v54, %v3627_v24  ;;  %v4406_v37 = vpop.f32.mrf.mxu1  ;;  %3372 = vst.msk [vmem:[#allocation4 + $0x160] sm:$0xff] %vm1510_vm2, %v3356_v0 }
 0x753   : > { %v3568_v50 = vpop.permute.xlu1 %3567  ;;  %4573 = vrot.lane.b32.xlu1 %v4390_v13, %s7417_s25  ;;  %4571 = vrot.lane.b32.xlu0 %v6385_v57, %s7417_s25  ;;  %v3341_v23 = vpop.xlane.xlu0 %3340 }
 0x754   : > { %3659 = vst.msk [vmem:[#allocation5 + $0x28] sm:$0xff] %vm1068_vm1, %v3643_v43  ;;  %v3629_v45 = vmul.f32 %v3568_v50, %v3533_v5  ;;  %v6393_v29 = vpop.f32.mrf.mxu1  ;;  %v3358_v60 = vadd.f32 %v3341_v23, %v3310_v42  ;;  %v4196_v43 = vmul.f32 %v9615_v22, %v4180_v49  ;;  %v4182_v50 = vld [vmem:[#allocation4 + $0x1d0] sm:$0xff] }
 0x756   : > { %v3645_v54 = vadd.f32 %v3629_v45, %v9662_v26  ;;  %v4409_v17 = vpop.f32.mrf.mxu1  ;;  %3374 = vst.msk [vmem:[#allocation4 + $0x170] sm:$0xff] %vm1510_vm2, %v3358_v60 }
 0x757   : > { %v3578_v25 = vpop.permute.xlu1 %3577  ;;  %4577 = vrot.lane.b32.xlu1 %v6388_v1, %s7417_s25  ;;  %4575 = vrot.lane.b32.xlu0 %v4393_v11, %s7417_s25  ;;  %v4207_v35 = vpop.xlane.xlu0 %4206  ;;  %v4190_v1 = vmul.f32 %v9598_v2, %v4174_v7 }
 0x758   : > { %3661 = vst.msk [vmem:[#allocation5 + $0x48] sm:$0xff] %vm1068_vm1, %v3645_v54  ;;  %v3631_v21 = vmul.f32 %v3578_v25, %v3535_v28  ;;  %v4237_v4 = vadd.f32 %v4207_v35, %v4189_v58  ;;  %v6396_v26 = vpop.f32.mrf.mxu1  ;;  %v4186_v28 = vld [vmem:[#allocation4 + $0x1f0] sm:$0xff]  ;;  %v3532_v35 = vld [vmem:[#allocation5 + $0x38] sm:$0xff] }
 0x75a   : > { %v3647_v51 = vadd.f32 %v9656_v15, %v3631_v21  ;;  %4253 = vst.msk [vmem:[#allocation4 + $0x188] sm:$0xff] %vm1510_vm2, %v4237_v4  ;;  %v4422_v15 = vpop.f32.mrf.mxu1 }
 0x75b   : > { %v3588_v41 = vpop.permute.xlu1 %3587  ;;  %4581 = vrot.lane.b32.xlu1 %v4406_v37, %s7417_s25  ;;  %4579 = vrot.lane.b32.xlu0 %v6389_v6, %s7417_s25  ;;  %v4209_v3 = vpop.xlane.xlu0 %4208  ;;  %v4192_v6 = vmul.f32 %v9604_v33, %v4176_v12  ;;  %v3538_v12 = vld [vmem:[#allocation5 + $0x98] sm:$0xff] }
 0x75c   : > { %3663 = vst.msk [vmem:[#allocation5 + $0x68] sm:$0xff] %vm1068_vm1, %v3647_v51  ;;  %v3633_v14 = vmul.f32 %v3588_v41, %v3537_v47  ;;  %v4238_v13 = vadd.f32 %v4209_v3, %v4190_v1  ;;  %v6397_v11 = vpop.f32.mrf.mxu1  ;;  %v3534_v47 = vld [vmem:[#allocation5 + $0x58] sm:$0xff] }
 0x75d   : > { %v3536_v41 = vld [vmem:[#allocation5 + $0x78] sm:$0xff] }
 0x75e   : > { %v3649_v40 = vadd.f32 %v3633_v14, %v9683_v55  ;;  %4254 = vst.msk [vmem:[#allocation4 + $0x190] sm:$0xff] %vm1510_vm2, %v4238_v13  ;;  %v4425_v0 = vpop.f32.mrf.mxu1 }
 0x75f   : > { %v3598_v57 = vpop.permute.xlu1 %3597  ;;  %4585 = vrot.lane.b32.xlu1 %v6392_v48, %s7417_s25  ;;  %4583 = vrot.lane.b32.xlu0 %v4409_v17, %s7417_s25  ;;  %v4213_v63 = vpop.xlane.xlu0 %4212 }
 0x760   : > { %3665 = vst.msk [vmem:[#allocation5 + $0x88] sm:$0xff] %vm1068_vm1, %v3649_v40  ;;  %v3635_v2 = vmul.f32 %v3598_v57, %v3539_v44  ;;  %v4240_v46 = vadd.f32 %v4213_v63, %v4192_v6  ;;  %v3540_v40 = vld [vmem:[#allocation5 + $0xb8] sm:$0xff] }
 0x762   : > { %v3651_v55 = vadd.f32 %v9677_v31, %v3635_v2  ;;  %4256 = vst.msk [vmem:[#allocation4 + $0x1a0] sm:$0xff] %vm1510_vm2, %v4240_v46  ;;  %v3544_v46 = vld [vmem:[#allocation5 + $0xf8] sm:$0xff] }
 0x763   : > { %v3608_v8 = vpop.permute.xlu1 %3607  ;;  %4589 = vrot.lane.b32.xlu1 %v4422_v15, %s7417_s25  ;;  %4587 = vrot.lane.b32.xlu0 %v6393_v29, %s7417_s25  ;;  %v4217_v24 = vpop.xlane.xlu0 %4216  ;;  %v4184_v29 = vld [vmem:[#allocation4 + $0x1e0] sm:$0xff] }
 0x764   : > { %3667 = vst.msk [vmem:[#allocation5 + $0xa8] sm:$0xff] %vm1068_vm1, %v3651_v55  ;;  %v3637_v33 = vmul.f32 %v3608_v8, %v3541_v52  ;;  %v4242_v48 = vadd.f32 %v4217_v24, %v4194_v20  ;;  %v4200_v22 = vmul.f32 %v9627_v10, %v4184_v29 }
 0x766   : > { %v3653_v5 = vadd.f32 %v3637_v33, %v9695_v62  ;;  %4258 = vst.msk [vmem:[#allocation4 + $0x1b0] sm:$0xff] %vm1510_vm2, %v4242_v48  ;;  %v4198_v62 = vmul.f32 %v9621_v53, %v4182_v50  ;;  %v3529_v53 = vld [vmem:[#allocation5 + $0x8] sm:$0xff] }
 0x767   : > { %v3618_v31 = vpop.permute.xlu1 %3617  ;;  %4593 = vrot.lane.b32.xlu1 %v6396_v26, %s7417_s25  ;;  %4591 = vrot.lane.b32.xlu0 %v4425_v0, %s7417_s25  ;;  %v4221_v37 = vpop.xlane.xlu0 %4220 }
 0x768   : > { %3669 = vst.msk [vmem:[#allocation5 + $0xc8] sm:$0xff] %vm1068_vm1, %v3653_v5  ;;  %v3639_v27 = vmul.f32 %v3618_v31, %v3543_v36  ;;  %v4244_v42 = vadd.f32 %v4221_v37, %v4196_v43 }
 0x76a   : > { %v3655_v45 = vadd.f32 %v9692_v61, %v3639_v27  ;;  %4260 = vst.msk [vmem:[#allocation4 + $0x1c0] sm:$0xff] %vm1510_vm2, %v4244_v42  ;;  %v4202_v61 = vmul.f32 %v9633_v32, %v4186_v28 }
 0x76b   : > { %4595 = vrot.lane.b32.xlu0 %v6397_v11, %s7417_s25  ;;  %v4225_v23 = vpop.xlane.xlu0 %4224 }
 0x76c   : > { %3671 = vst.msk [vmem:[#allocation5 + $0xe8] sm:$0xff] %vm1068_vm1, %v3655_v45  ;;  %v4246_v56 = vadd.f32 %v4225_v23, %v4198_v62  ;;  %v4438_v45 = vld [vmem:[#allocation5 + $0x18] sm:$0xff]  ;;  %v4439_v62 = vld [vmem:[#allocation5 + $0x28] sm:$0xff] }
 0x76e   : > { %4262 = vst.msk [vmem:[#allocation4 + $0x1d0] sm:$0xff] %vm1510_vm2, %v4246_v56 }
 0x76f   : > { %v4229_v60 = vpop.xlane.xlu0 %4228 }
 0x770   : > { %v4248_v54 = vadd.f32 %v4229_v60, %v4200_v22 }
 0x772   : > { %4264 = vst.msk [vmem:[#allocation4 + $0x1e0] sm:$0xff] %vm1510_vm2, %v4248_v54  ;;  %v4441_v54 = vld [vmem:[#allocation5 + $0x48] sm:$0xff] }
 0x773   : > { %v4233_v17 = vpop.xlane.xlu0 %4232 }
 0x774   : > { %v4250_v25 = vadd.f32 %v4233_v17, %v4202_v61 }
 0x776   : > { %4266 = vst.msk [vmem:[#allocation4 + $0x1f0] sm:$0xff] %vm1510_vm2, %v4250_v25 }
 0x77b   : > { %v3548_v58 = vpop.permute.xlu0 %3547 }
 0x77c   : > { %v3625_v21 = vmul.f32 %v3548_v58, %v3529_v53 }
 0x77e   : > { %v3641_v7 = vadd.f32 %v3625_v21, %v9639_v39 }
 0x77f   : > { %v3563_v4 = vpop.permute.xlu0 %3562 }
 0x780   : > { %3657 = vst.msk [vmem:[#allocation5 + $0x8] sm:$0xff] %vm1068_vm1, %v3641_v7  ;;  %v3628_v10 = vmul.f32 %v3563_v4, %v3532_v35  ;;  %v4443_v7 = vld [vmem:[#allocation5 + $0x68] sm:$0xff] }
 0x782   : > { %v3644_v51 = vadd.f32 %v9646_v38, %v3628_v10  ;;  %v4461_v38 = vpop.permute.xlu1 %4460 }
 0x783   : > { %v3573_v26 = vpop.permute.xlu0 %3572  ;;  %v4534_v23 = vmul.f32 %v4461_v38, %v4438_v45  ;;  %v4447_v38 = vld [vmem:[#allocation5 + $0xa8] sm:$0xff] }
 0x784   : > { %3660 = vst.msk [vmem:[#allocation5 + $0x38] sm:$0xff] %vm1068_vm1, %v3644_v51  ;;  %v3630_v32 = vmul.f32 %v3573_v26, %v3534_v47 }
 0x786   : > { %v3646_v1 = vadd.f32 %v3630_v32, %v9674_v59  ;;  %v3542_v59 = vld [vmem:[#allocation5 + $0xd8] sm:$0xff]  ;;  %v4466_v19 = vpop.permute.xlu1 %4465 }
 0x787   : > { %v3583_v14 = vpop.permute.xlu0 %3582  ;;  %v4437_v27 = vld [vmem:[#allocation5 + $0x8] sm:$0xff]  ;;  %v4535_v29 = vmul.f32 %v4466_v19, %v4439_v62 }
 0x788   : > { %3662 = vst.msk [vmem:[#allocation5 + $0x58] sm:$0xff] %vm1068_vm1, %v3646_v1  ;;  %v3632_v3 = vmul.f32 %v3583_v14, %v3536_v41  ;;  %v4445_v1 = vld [vmem:[#allocation5 + $0x88] sm:$0xff] }
 0x78a   : > { %v3648_v39 = vadd.f32 %v9668_v9, %v3632_v3 }
 0x78b   : > { %v3593_v13 = vpop.permute.xlu0 %3592  ;;  %v4440_v61 = vld [vmem:[#allocation5 + $0x38] sm:$0xff] }
 0x78c   : > { %3664 = vst.msk [vmem:[#allocation5 + $0x78] sm:$0xff] %vm1068_vm1, %v3648_v39  ;;  %v3634_v44 = vmul.f32 %v3593_v13, %v3538_v12 }
 0x78e   : > { %v3650_v15 = vadd.f32 %v3634_v44, %v9689_v34  ;;  %v4476_v34 = vpop.permute.xlu1 %4475 }
 0x78f   : > { %v3603_v57 = vpop.permute.xlu0 %3602  ;;  %v4537_v17 = vmul.f32 %v4476_v34, %v4441_v54  ;;  %v4442_v4 = vld [vmem:[#allocation5 + $0x58] sm:$0xff] }
 0x790   : > { %3666 = vst.msk [vmem:[#allocation5 + $0x98] sm:$0xff] %vm1068_vm1, %v3650_v15  ;;  %v3636_v6 = vmul.f32 %v3603_v57, %v3540_v40 }
 0x792   : > { %v3652_v2 = vadd.f32 %v9686_v30, %v3636_v6  ;;  %v4486_v30 = vpop.permute.xlu1 %4485 }
 0x793   : > { %v3613_v63 = vpop.permute.xlu0 %3612  ;;  %v4539_v10 = vmul.f32 %v4486_v30, %v4443_v7  ;;  %v4444_v14 = vld [vmem:[#allocation5 + $0x78] sm:$0xff] }
 0x794   : > { %3668 = vst.msk [vmem:[#allocation5 + $0xb8] sm:$0xff] %vm1068_vm1, %v3652_v2  ;;  %v3638_v9 = vmul.f32 %v3613_v63, %v3542_v59 }
 0x796   : > { %v3654_v52 = vadd.f32 %v3638_v9, %v9701_v18  ;;  %v4496_v49 = vpop.permute.xlu1 %4495  ;;  %v4449_v9 = vld [vmem:[#allocation5 + $0xc8] sm:$0xff] }
 0x797   : > { %v3623_v11 = vpop.permute.xlu0 %3622  ;;  %v4541_v3 = vmul.f32 %v4496_v49, %v4445_v1  ;;  %v4446_v15 = vld [vmem:[#allocation5 + $0x98] sm:$0xff] }
 0x798   : > { %3670 = vst.msk [vmem:[#allocation5 + $0xd8] sm:$0xff] %vm1068_vm1, %v3654_v52  ;;  %v3640_v55 = vmul.f32 %v3623_v11, %v3544_v46 }
 0x79a   : > { %v3656_v8 = vadd.f32 %v9698_v16, %v3640_v55  ;;  %v4506_v0 = vpop.permute.xlu1 %4505 }
 0x79b   : > { %v4456_v20 = vpop.permute.xlu0 %4455  ;;  %v4543_v57 = vmul.f32 %v4506_v0, %v4447_v38  ;;  %v4448_v46 = vld [vmem:[#allocation5 + $0xb8] sm:$0xff] }
 0x79c   : > { %3672 = vst.msk [vmem:[#allocation5 + $0xf8] sm:$0xff] %vm1068_vm1, %v3656_v8  ;;  %v4533_v37 = vmul.f32 %v4456_v20, %v4437_v27 }
 0x79e   : > { %v4516_v31 = vpop.permute.xlu1 %4515 }
 0x79f   : > { %v4471_v33 = vpop.permute.xlu0 %4470  ;;  %v4545_v52 = vmul.f32 %v4516_v31, %v4449_v9  ;;  %v4450_v30 = vld [vmem:[#allocation5 + $0xd8] sm:$0xff] }
 0x7a0   : > { %v4536_v25 = vmul.f32 %v4471_v33, %v4440_v61  ;;  %v4451_v33 = vld [vmem:[#allocation5 + $0xe8] sm:$0xff] }
 0x7a2   : > { %v9775_v43 = vpop.permute.xlu1 %4525 }
 0x7a3   : > { %v4481_v24 = vpop.permute.xlu0 %4480  ;;  %v4452_v31 = vld [vmem:[#allocation5 + $0xf8] sm:$0xff] }
 0x7a4   : > { %v4538_v47 = vmul.f32 %v4481_v24, %v4442_v4  ;;  %v4547_v24 = vmul.f32 %v9775_v43, %v4451_v33 }
 0x7a7   : > { %v4491_v48 = vpop.permute.xlu0 %4490 }
 0x7a8   : > { %v4540_v12 = vmul.f32 %v4491_v48, %v4444_v14 }
 0x7ab   : > { %v4501_v36 = vpop.permute.xlu0 %4500 }
 0x7ac   : > { %v4542_v6 = vmul.f32 %v4501_v36, %v4446_v15 }
 0x7af   : > { %v4511_v5 = vpop.permute.xlu0 %4510 }
 0x7b0   : > { %v4544_v11 = vmul.f32 %v4511_v5, %v4448_v46 }
 0x7b3   : > { %v9773_v18 = vpop.permute.xlu0 %4520 }
 0x7b4   : > { %v4546_v49 = vmul.f32 %v9773_v18, %v4450_v30 }
 0x7b7   : > { %v9777_v50 = vpop.permute.xlu0 %4530 }
 0x7b8   : > { %v4548_v27 = vmul.f32 %v9777_v50, %v4452_v31 }
 0x7bd   : > { %v4566_v16 = vpop.permute.xlu1 %4565 }
 0x7be   : > { %v4613_v42 = vadd.f32 %v4566_v16, %v4533_v37 }
 0x7c0   : > { %4629 = vst.msk [vmem:[#allocation5 + $0x8] sm:$0xff] %vm2780_vm3, %v4613_v42 }
 0x7c1   : > { %v4570_v56 = vpop.permute.xlu1 %4569  ;;  %v4568_v22 = vpop.permute.xlu0 %4567 }
 0x7c2   : > { %v4615_v60 = vadd.f32 %v4570_v56, %v4535_v29  ;;  %v4614_v28 = vadd.f32 %v4568_v22, %v4534_v23 }
 0x7c4   : > { %4631 = vst.msk [vmem:[#allocation5 + $0x28] sm:$0xff] %vm2780_vm3, %v4615_v60  ;;  %4630 = vst.msk [vmem:[#allocation5 + $0x18] sm:$0xff] %vm2780_vm3, %v4614_v28 }
 0x7c5   : > { %v4574_v53 = vpop.permute.xlu1 %4573  ;;  %v4572_v58 = vpop.permute.xlu0 %4571 }
 0x7c6   : > { %v4617_v21 = vadd.f32 %v4574_v53, %v4537_v17  ;;  %v4616_v35 = vadd.f32 %v4572_v58, %v4536_v25 }
 0x7c8   : > { %4633 = vst.msk [vmem:[#allocation5 + $0x48] sm:$0xff] %vm2780_vm3, %v4617_v21  ;;  %4632 = vst.msk [vmem:[#allocation5 + $0x38] sm:$0xff] %vm2780_vm3, %v4616_v35 }
 0x7c9   : > { %v4578_v51 = vpop.permute.xlu1 %4577  ;;  %v4576_v26 = vpop.permute.xlu0 %4575 }
 0x7ca   : > { %v4619_v32 = vadd.f32 %v4578_v51, %v4539_v10  ;;  %v4618_v41 = vadd.f32 %v4576_v26, %v4538_v47 }
 0x7cc   : > { %4635 = vst.msk [vmem:[#allocation5 + $0x68] sm:$0xff] %vm2780_vm3, %v4619_v32  ;;  %4634 = vst.msk [vmem:[#allocation5 + $0x58] sm:$0xff] %vm2780_vm3, %v4618_v41 }
 0x7cd   : > { %v4582_v39 = vpop.permute.xlu1 %4581  ;;  %v4580_v13 = vpop.permute.xlu0 %4579 }
 0x7ce   : > { %v4621_v44 = vadd.f32 %v4582_v39, %v4541_v3  ;;  %v4620_v40 = vadd.f32 %v4580_v13, %v4540_v12 }
 0x7d0   : > { %4637 = vst.msk [vmem:[#allocation5 + $0x88] sm:$0xff] %vm2780_vm3, %v4621_v44  ;;  %4636 = vst.msk [vmem:[#allocation5 + $0x78] sm:$0xff] %vm2780_vm3, %v4620_v40 }
 0x7d1   : > { %v4586_v59 = vpop.permute.xlu1 %4585  ;;  %v4584_v2 = vpop.permute.xlu0 %4583 }
 0x7d2   : > { %v4623_v63 = vadd.f32 %v4586_v59, %v4543_v57  ;;  %v4622_v19 = vadd.f32 %v4584_v2, %v4542_v6 }
 0x7d4   : > { %4639 = vst.msk [vmem:[#allocation5 + $0xa8] sm:$0xff] %vm2780_vm3, %v4623_v63  ;;  %4638 = vst.msk [vmem:[#allocation5 + $0x98] sm:$0xff] %vm2780_vm3, %v4622_v19 }
 0x7d5   : > { %v4590_v55 = vpop.permute.xlu1 %4589  ;;  %v4588_v34 = vpop.permute.xlu0 %4587 }
 0x7d6   : > { %v4625_v8 = vadd.f32 %v4590_v55, %v4545_v52  ;;  %v4624_v20 = vadd.f32 %v4588_v34, %v4544_v11 }
 0x7d8   : > { %4641 = vst.msk [vmem:[#allocation5 + $0xc8] sm:$0xff] %vm2780_vm3, %v4625_v8  ;;  %4640 = vst.msk [vmem:[#allocation5 + $0xb8] sm:$0xff] %vm2780_vm3, %v4624_v20 }
 0x7d9   : > { %v4594_v48 = vpop.permute.xlu1 %4593  ;;  %v4592_v36 = vpop.permute.xlu0 %4591 }
 0x7da   : > { %v4627_v0 = vadd.f32 %v4594_v48, %v4547_v24  ;;  %v4626_v5 = vadd.f32 %v4592_v36, %v4546_v49 }
 0x7dc   : > { %4643 = vst.msk [vmem:[#allocation5 + $0xe8] sm:$0xff] %vm2780_vm3, %v4627_v0  ;;  %4642 = vst.msk [vmem:[#allocation5 + $0xd8] sm:$0xff] %vm2780_vm3, %v4626_v5  ;;  %4663 = sbr.rel (%p5957_p1) target bundleno = 2498 (0x9c2), region = 72 }
 0x7dd   : > { %v4596_v37 = vpop.permute.xlu0 %4595 }
 0x7de   : > { %v4628_v16 = vadd.f32 %v4596_v37, %v4548_v27 }
 0x7e0   : > { %4644 = vst.msk [vmem:[#allocation5 + $0xf8] sm:$0xff] %vm2780_vm3, %v4628_v16 }
 0x7e1   : > { %v5008_v18 = vld [vmem:[#allocation4 + $0x140] sm:$0xff]  ;;  %v7419_v42 = vmov 0   ;;  %v5009_v45 = vld [vmem:[#allocation4 + $0x148] sm:$0xff]  ;;  %v5003_v22 = vld [vmem:[#allocation4 + $0x118] sm:$0xff] }
 0x7e2   : > { %v5000_v43 = vld [vmem:[#allocation4 + $0x100] sm:$0xff]  ;;  %6978 = vset.pattern.permute.xlu1 %v7419_v42  ;;  %6977 = vset.pattern.permute.xlu0 %v7419_v42  ;;  %v5001_v50 = vld [vmem:[#allocation4 + $0x108] sm:$0xff]  ;;  %v5002_v60 = vld [vmem:[#allocation4 + $0x110] sm:$0xff] }
 0x7e3   : > { %5058 = vperm.xlu1 %6978, %v5008_v18   ;;  %5018 = vperm.xlu0 %6977, %v5000_v43   ;;  %v4681_v62 = vld [vmem:[#allocation4 + $0x8] sm:$0xff]  ;;  %v4680_v23 = vld [vmem:[#allocation4] sm:$0xff]  ;;  %v5011_v28 = vld [vmem:[#allocation4 + $0x158] sm:$0xff] }
 0x7e4   : > { %v4689_v29 = vld [vmem:[#allocation4 + $0x48] sm:$0xff]  ;;  %v4688_v56 = vld [vmem:[#allocation4 + $0x40] sm:$0xff]  ;;  %v5010_v54 = vld [vmem:[#allocation4 + $0x150] sm:$0xff] }
 0x7e5   : > { %v4683_v61 = vld [vmem:[#allocation4 + $0x18] sm:$0xff]  ;;  %v4682_v17 = vld [vmem:[#allocation4 + $0x10] sm:$0xff]  ;;  %v5161_v58 = vld [vmem:[#allocation4 + $0x188] sm:$0xff] }
 0x7e6   : > { %v4691_v25 = vld [vmem:[#allocation4 + $0x58] sm:$0xff]  ;;  %v4690_v53 = vld [vmem:[#allocation4 + $0x50] sm:$0xff]  ;;  %v5160_v21 = vld [vmem:[#allocation4 + $0x180] sm:$0xff] }
 0x7e7   : > { %5063 = vperm.xlu1 %6978, %v5009_v45   ;;  %5023 = vperm.xlu0 %6977, %v5001_v50   ;;  %v6979_v35 = vld [vmem:[#allocation14 + $0x78] sm:$0xff]   ;;  %v5169_v4 = vld [vmem:[#allocation4 + $0x1c8] sm:$0xff]  ;;  %v5168_v10 = vld [vmem:[#allocation4 + $0x1c0] sm:$0xff] }
 0x7e8   : > { %v6980_v7 = vld [vmem:[#allocation14 + $0x38] sm:$0xff]   ;;  %6110 = vmatprep.subr.bf16.mxu0 %v6979_v35  ;;  %6430 = vmatprep.subr.bf16.mxu1 %v6979_v35  ;;  %v6981_v47 = vld [vmem:[#allocation14 + $0x70] sm:$0xff]   ;;  %v4841_v26 = vld [vmem:[#allocation4 + $0x88] sm:$0xff] }
 0x7e9   : > { %6111 = vmatpush3.bf16.msra.mxu0 %v6980_v7  ;;  %6438 = vmatpush3.bf16.msra.mxu1 %v6980_v7  ;;  %v6982_v51 = vld [vmem:[#allocation14 + $0x30] sm:$0xff]   ;;  %v4840_v32 = vld [vmem:[#allocation4 + $0x80] sm:$0xff]  ;;  %v6983_v41 = vld [vmem:[#allocation14 + $0x68] sm:$0xff]  }
 0x7ea   : > { %6112 = vmatprep.subr.bf16.mxu0 %v6981_v47  ;;  %6431 = vmatprep.subr.bf16.mxu1 %v6981_v47  ;;  %v6984_v1 = vld [vmem:[#allocation14 + $0x28] sm:$0xff]   ;;  %v4848_v3 = vld [vmem:[#allocation4 + $0xc0] sm:$0xff]  ;;  %v6987_v40 = vld [vmem:[#allocation14 + $0x58] sm:$0xff]  }
 0x7eb   : > { %4703 = vperm.xlu1 %6978, %v4681_v62   ;;  %4698 = vperm.xlu0 %6977, %v4680_v23   ;;  %v4849_v14 = vld [vmem:[#allocation4 + $0xc8] sm:$0xff]  ;;  %v6985_v12 = vld [vmem:[#allocation14 + $0x60] sm:$0xff]   ;;  %v6988_v38 = vld [vmem:[#allocation14 + $0x18] sm:$0xff]  }
 0x7ec   : > { %v6986_v39 = vld [vmem:[#allocation14 + $0x20] sm:$0xff]   ;;  %v5005_v13 = vld [vmem:[#allocation4 + $0x128] sm:$0xff]  ;;  %v6989_v6 = vld [vmem:[#allocation14 + $0x50] sm:$0xff]  }
 0x7ed   : > { %6113 = vmatpush3.bf16.msra.mxu0 %v6982_v51  ;;  %6439 = vmatpush3.bf16.msra.mxu1 %v6982_v51  ;;  %v5004_v44 = vld [vmem:[#allocation4 + $0x120] sm:$0xff]  ;;  %v5013_v15 = vld [vmem:[#allocation4 + $0x168] sm:$0xff]  ;;  %v6990_v59 = vld [vmem:[#allocation14 + $0x10] sm:$0xff]  }
 0x7ee   : > { %6114 = vmatprep.subr.bf16.mxu0 %v6983_v41  ;;  %6432 = vmatprep.subr.bf16.mxu1 %v6983_v41  ;;  %v5012_v57 = vld [vmem:[#allocation4 + $0x160] sm:$0xff]  ;;  %v4685_v2 = vld [vmem:[#allocation4 + $0x28] sm:$0xff]  ;;  %v5163_v34 = vld [vmem:[#allocation4 + $0x198] sm:$0xff] }
 0x7ef   : > { %4743 = vperm.xlu1 %6978, %v4689_v29   ;;  %4738 = vperm.xlu0 %6977, %v4688_v56   ;;  %v4684_v63 = vld [vmem:[#allocation4 + $0x20] sm:$0xff]  ;;  %v6991_v19 = vld [vmem:[#allocation14 + $0x48] sm:$0xff]   ;;  %v5162_v8 = vld [vmem:[#allocation4 + $0x190] sm:$0xff] }
 0x7f0   : > { %v6992_v9 = vld [vmem:[#allocation14 + $0x8] sm:$0xff]   ;;  %v4692_v52 = vld [vmem:[#allocation4 + $0x60] sm:$0xff]  ;;  %v5171_v20 = vld [vmem:[#allocation4 + $0x1d8] sm:$0xff] }
 0x7f1   : > { %6115 = vmatpush3.bf16.msra.mxu0 %v6984_v1  ;;  %6440 = vmatpush3.bf16.msra.mxu1 %v6984_v1  ;;  %v4693_v46 = vld [vmem:[#allocation4 + $0x68] sm:$0xff]  ;;  %v6993_v11 = vld [vmem:[#allocation14 + $0x40] sm:$0xff]   ;;  %v5170_v33 = vld [vmem:[#allocation4 + $0x1d0] sm:$0xff] }
 0x7f2   : > { %6116 = vmatprep.subr.bf16.mxu0 %v6985_v12  ;;  %6433 = vmatprep.subr.bf16.mxu1 %v6985_v12  ;;  %v6994_v55 = vld [vmem:[#allocation14] sm:$0xff]   ;;  %v4843_v30 = vld [vmem:[#allocation4 + $0x98] sm:$0xff]  ;;  %v4842_v24 = vld [vmem:[#allocation4 + $0x90] sm:$0xff] }
 0x7f3   : > { %5033 = vperm.xlu1 %6978, %v5003_v22   ;;  %5028 = vperm.xlu0 %6977, %v5002_v60   ;;  %v4851_v49 = vld [vmem:[#allocation4 + $0xd8] sm:$0xff]  ;;  %v4850_v48 = vld [vmem:[#allocation4 + $0xd0] sm:$0xff]  ;;  %v5165_v43 = vld [vmem:[#allocation4 + $0x1a8] sm:$0xff] }
 0x7f4   : > { %v5007_v36 = vld [vmem:[#allocation4 + $0x138] sm:$0xff]  ;;  %v5006_v0 = vld [vmem:[#allocation4 + $0x130] sm:$0xff]  ;;  %v5164_v42 = vld [vmem:[#allocation4 + $0x1a0] sm:$0xff] }
 0x7f5   : > { %6117 = vmatpush3.bf16.msra.mxu0 %v6986_v39  ;;  %6441 = vmatpush3.bf16.msra.mxu1 %v6986_v39  ;;  %v5015_v5 = vld [vmem:[#allocation4 + $0x178] sm:$0xff]  ;;  %v5014_v31 = vld [vmem:[#allocation4 + $0x170] sm:$0xff]  ;;  %v5173_v45 = vld [vmem:[#allocation4 + $0x1e8] sm:$0xff] }
 0x7f6   : > { %6118 = vmatprep.subr.bf16.mxu0 %v6987_v40  ;;  %6434 = vmatprep.subr.bf16.mxu1 %v6987_v40  ;;  %v4687_v27 = vld [vmem:[#allocation4 + $0x38] sm:$0xff]  ;;  %v4686_v37 = vld [vmem:[#allocation4 + $0x30] sm:$0xff]  ;;  %v5172_v50 = vld [vmem:[#allocation4 + $0x1e0] sm:$0xff] }
 0x7f7   : > { %5073 = vperm.xlu1 %6978, %v5011_v28   ;;  %5068 = vperm.xlu0 %6977, %v5010_v54   ;;  %v4695_v16 = vld [vmem:[#allocation4 + $0x78] sm:$0xff]  ;;  %v4694_v18 = vld [vmem:[#allocation4 + $0x70] sm:$0xff]  ;;  %v4845_v62 = vld [vmem:[#allocation4 + $0xa8] sm:$0xff] }
 0x7f8   : > { %v4844_v23 = vld [vmem:[#allocation4 + $0xa0] sm:$0xff]  ;;  %v4853_v29 = vld [vmem:[#allocation4 + $0xe8] sm:$0xff]  ;;  %v5167_v22 = vld [vmem:[#allocation4 + $0x1b8] sm:$0xff] }
 0x7f9   : > { %6119 = vmatpush3.bf16.msra.mxu0 %v6988_v38  ;;  %6442 = vmatpush3.bf16.msra.mxu1 %v6988_v38  ;;  %v4852_v56 = vld [vmem:[#allocation4 + $0xe0] sm:$0xff]  ;;  %v5166_v60 = vld [vmem:[#allocation4 + $0x1b0] sm:$0xff]  ;;  %v5175_v28 = vld [vmem:[#allocation4 + $0x1f8] sm:$0xff] }
 0x7fa   : > { %6120 = vmatprep.subr.bf16.mxu0 %v6989_v6  ;;  %6435 = vmatprep.subr.bf16.mxu1 %v6989_v6  ;;  %v5174_v54 = vld [vmem:[#allocation4 + $0x1f0] sm:$0xff]  ;;  %v4992_v47 = vld [vmem:[#allocation5 + $0x88] sm:$0xff]  ;;  %v4993_v12 = vld [vmem:[#allocation5 + $0x98] sm:$0xff] }
 0x7fb   : > { %4713 = vperm.xlu1 %6978, %v4683_v61   ;;  %4708 = vperm.xlu0 %6977, %v4682_v17   ;;  %v4847_v61 = vld [vmem:[#allocation4 + $0xb8] sm:$0xff]  ;;  %v4846_v17 = vld [vmem:[#allocation4 + $0xb0] sm:$0xff] }
 0x7fc   : > { %v4665_v6 = vld [vmem:[#allocation5 + $0x10] sm:$0xff] }
 0x7fd   : > { %6121 = vmatpush3.bf16.msra.mxu0 %v6990_v59  ;;  %6443 = vmatpush3.bf16.msra.mxu1 %v6990_v59 }
 0x7fe   : > { %6122 = vmatprep.subr.bf16.mxu0 %v6991_v19  ;;  %6436 = vmatprep.subr.bf16.mxu1 %v6991_v19 }
 0x7ff   : > { %4753 = vperm.xlu1 %6978, %v4691_v25   ;;  %4748 = vperm.xlu0 %6977, %v4690_v53   ;;  %v4855_v25 = vld [vmem:[#allocation4 + $0xf8] sm:$0xff]  ;;  %v4854_v53 = vld [vmem:[#allocation4 + $0xf0] sm:$0xff] }
 0x801   : > { %6123 = vmatpush3.bf16.msra.mxu0 %v6992_v9  ;;  %6444 = vmatpush3.bf16.msra.mxu1 %v6992_v9 }
 0x802   : > { %6124 = vmatprep.subr.bf16.mxu0 %v6993_v11  ;;  %6437 = vmatprep.subr.bf16.mxu1 %v6993_v11  ;;  %v4673_v11 = vld [vmem:[#allocation5 + $0x90] sm:$0xff] }
 0x803   : > { %5183 = vperm.xlu1 %6978, %v5161_v58   ;;  %5178 = vperm.xlu0 %6977, %v5160_v21  }
 0x805   : > { %6125 = vmatpush3.bf16.msra.mxu0 %v6994_v55  ;;  %6445 = vmatpush3.bf16.msra.mxu1 %v6994_v55 }
 0x807   : > { %5223 = vperm.xlu1 %6978, %v5169_v4   ;;  %5218 = vperm.xlu0 %6977, %v5168_v10  }
 0x80b   : > { %4863 = vperm.xlu1 %6978, %v4841_v26   ;;  %4858 = vperm.xlu0 %6977, %v4840_v32   ;;  %v4984_v32 = vld [vmem:[#allocation5 + $0x8] sm:$0xff] }
 0x80f   : > { %4903 = vperm.xlu1 %6978, %v4849_v14   ;;  %4898 = vperm.xlu0 %6977, %v4848_v3  }
 0x813   : > { %5043 = vperm.xlu1 %6978, %v5005_v13   ;;  %5038 = vperm.xlu0 %6977, %v5004_v44   ;;  %v4985_v44 = vld [vmem:[#allocation5 + $0x18] sm:$0xff] }
 0x817   : > { %5083 = vperm.xlu1 %6978, %v5013_v15   ;;  %5078 = vperm.xlu0 %6977, %v5012_v57  }
 0x81b   : > { %4723 = vperm.xlu1 %6978, %v4685_v2   ;;  %4718 = vperm.xlu0 %6977, %v4684_v63   ;;  %v4664_v63 = vld [vmem:[#allocation5] sm:$0xff] }
 0x81f   : > { %4763 = vperm.xlu1 %6978, %v4693_v46   ;;  %4758 = vperm.xlu0 %6977, %v4692_v52  }
 0x823   : > { %5193 = vperm.xlu1 %6978, %v5163_v34   ;;  %5188 = vperm.xlu0 %6977, %v5162_v8   ;;  %v4672_v8 = vld [vmem:[#allocation5 + $0x80] sm:$0xff] }
 0x827   : > { %5233 = vperm.xlu1 %6978, %v5171_v20   ;;  %5228 = vperm.xlu0 %6977, %v5170_v33  }
 0x82b   : > { %4873 = vperm.xlu1 %6978, %v4843_v30   ;;  %4868 = vperm.xlu0 %6977, %v4842_v24  }
 0x82f   : > { %4913 = vperm.xlu1 %6978, %v4851_v49   ;;  %4908 = vperm.xlu0 %6977, %v4850_v48   ;;  %v4987_v49 = vld [vmem:[#allocation5 + $0x38] sm:$0xff] }
 0x833   : > { %5053 = vperm.xlu1 %6978, %v5007_v36   ;;  %5048 = vperm.xlu0 %6977, %v5006_v0   ;;  %v4986_v0 = vld [vmem:[#allocation5 + $0x28] sm:$0xff] }
 0x837   : > { %5093 = vperm.xlu1 %6978, %v5015_v5   ;;  %5088 = vperm.xlu0 %6977, %v5014_v31  }
 0x83b   : > { %4733 = vperm.xlu1 %6978, %v4687_v27   ;;  %4728 = vperm.xlu0 %6977, %v4686_v37  }
 0x83f   : > { %4773 = vperm.xlu1 %6978, %v4695_v16   ;;  %4768 = vperm.xlu0 %6977, %v4694_v18   ;;  %v4995_v16 = vld [vmem:[#allocation5 + $0xb8] sm:$0xff] }
 0x843   : > { %5203 = vperm.xlu1 %6978, %v5165_v43   ;;  %5198 = vperm.xlu0 %6977, %v5164_v42   ;;  %v4994_v42 = vld [vmem:[#allocation5 + $0xa8] sm:$0xff] }
 0x847   : > { %5243 = vperm.xlu1 %6978, %v5173_v45   ;;  %5238 = vperm.xlu0 %6977, %v5172_v50  }
 0x84b   : > { %4883 = vperm.xlu1 %6978, %v4845_v62   ;;  %4878 = vperm.xlu0 %6977, %v4844_v23  }
 0x84f   : > { %4923 = vperm.xlu1 %6978, %v4853_v29   ;;  %4918 = vperm.xlu0 %6977, %v4852_v56   ;;  %v4667_v29 = vld [vmem:[#allocation5 + $0x30] sm:$0xff] }
 0x853   : > { %5213 = vperm.xlu1 %6978, %v5167_v22   ;;  %5208 = vperm.xlu0 %6977, %v5166_v60   ;;  %v4666_v60 = vld [vmem:[#allocation5 + $0x20] sm:$0xff] }
 0x857   : > { %5253 = vperm.xlu1 %6978, %v5175_v28   ;;  %5248 = vperm.xlu0 %6977, %v5174_v54  }
 0x85b   : > { %4893 = vperm.xlu1 %6978, %v4847_v61   ;;  %4888 = vperm.xlu0 %6977, %v4846_v17  }
 0x85e   : > { %v5059_v58 = vpop.permute.xlu1 %5058  ;;  %v5019_v21 = vpop.permute.xlu0 %5018 }
 0x85f   : > { %6995 = vrcp.f32 %v5059_v58  ;;  %4933 = vperm.xlu1 %6978, %v4855_v25   ;;  %4928 = vperm.xlu0 %6977, %v4854_v53   ;;  %v4675_v25 = vld [vmem:[#allocation5 + $0xb0] sm:$0xff] }
 0x860   : > { %6997 = vrcp.f32 %v5019_v21  ;;  %v4674_v21 = vld [vmem:[#allocation5 + $0xa0] sm:$0xff] }
 0x862   : > { %v5064_v35 = vpop.permute.xlu1 %5063  ;;  %v5024_v7 = vpop.permute.xlu0 %5023 }
 0x863   : > { %6999 = vrcp.f32 %v5064_v35 }
 0x864   : > { %7001 = vrcp.f32 %v5024_v7 }
 0x866   : > { %v4704_v4 = vpop.permute.xlu1 %4703  ;;  %v4699_v10 = vpop.permute.xlu0 %4698 }
 0x867   : > { %7003 = vrcp.f32 %v4704_v4 }
 0x868   : > { %7005 = vrcp.f32 %v4699_v10 }
 0x86a   : > { %v4744_v51 = vpop.permute.xlu1 %4743  ;;  %v4739_v26 = vpop.permute.xlu0 %4738 }
 0x86b   : > { %7007 = vrcp.f32 %v4744_v51 }
 0x86c   : > { %v6996_v41 = vpop.eup %6995  ;;  %7009 = vrcp.f32 %v4739_v26 }
 0x86d   : > { %v6998_v1 = vpop.eup %6997  ;;  %v5113_v14 = vmul.f32 %v6996_v41, %v4992_v47 }
 0x86e   : > { %v5097_v3 = vmul.f32 %v6998_v1, %v4984_v32  ;;  %v5034_v39 = vpop.permute.xlu1 %5033  ;;  %v5029_v13 = vpop.permute.xlu0 %5028 }
 0x86f   : > { %5136 = vst.msk [vmem:[#allocation5 + $0x88] sm:$0xff] %vm1068_vm1, %v5113_v14  ;;  %7011 = vrcp.f32 %v5034_v39 }
 0x870   : > { %v7000_v40 = vpop.eup %6999  ;;  %5128 = vst.msk [vmem:[#allocation5 + $0x8] sm:$0xff] %vm1068_vm1, %v5097_v3  ;;  %7013 = vrcp.f32 %v5029_v13 }
 0x871   : > { %v7002_v38 = vpop.eup %7001  ;;  %v5115_v15 = vmul.f32 %v7000_v40, %v4993_v12 }
 0x872   : > { %v5099_v57 = vmul.f32 %v7002_v38, %v4985_v44  ;;  %v5074_v59 = vpop.permute.xlu1 %5073  ;;  %v5069_v2 = vpop.permute.xlu0 %5068 }
 0x873   : > { %5137 = vst.msk [vmem:[#allocation5 + $0x98] sm:$0xff] %vm1068_vm1, %v5115_v15  ;;  %7015 = vrcp.f32 %v5074_v59 }
 0x874   : > { %v7004_v19 = vpop.eup %7003  ;;  %5129 = vst.msk [vmem:[#allocation5 + $0x18] sm:$0xff] %vm1068_vm1, %v5099_v57  ;;  %7017 = vrcp.f32 %v5069_v2 }
 0x875   : > { %v7006_v9 = vpop.eup %7005  ;;  %v4779_v46 = vmul.f32 %v7004_v19, %v4665_v6 }
 0x876   : > { %v4777_v52 = vmul.f32 %v7006_v9, %v4664_v63  ;;  %v4714_v55 = vpop.permute.xlu1 %4713  ;;  %v4709_v34 = vpop.permute.xlu0 %4708  ;;  %v5152_v15 = vld [vmem:[#allocation5 + $0x88] sm:$0xff] }
 0x877   : > { %4809 = vst.msk [vmem:[#allocation5 + $0x10] sm:$0xff] %vm1068_vm1, %v4779_v46  ;;  %7019 = vrcp.f32 %v4714_v55  ;;  %v5144_v14 = vld [vmem:[#allocation5 + $0x8] sm:$0xff] }
 0x878   : > { %v7008_v20 = vpop.eup %7007  ;;  %4808 = vst.msk [vmem:[#allocation5] sm:$0xff] %vm1068_vm1, %v4777_v52  ;;  %7021 = vrcp.f32 %v4709_v34 }
 0x879   : > { %v7010_v33 = vpop.eup %7009  ;;  %v4795_v30 = vmul.f32 %v7008_v20, %v4673_v11 }
 0x87a   : > { %v4793_v24 = vmul.f32 %v7010_v33, %v4672_v8  ;;  %v4754_v48 = vpop.permute.xlu1 %4753  ;;  %v4749_v36 = vpop.permute.xlu0 %4748  ;;  %v5153_v44 = vld [vmem:[#allocation5 + $0x98] sm:$0xff] }
 0x87b   : > { %4817 = vst.msk [vmem:[#allocation5 + $0x90] sm:$0xff] %vm1068_vm1, %v4795_v30  ;;  %7023 = vrcp.f32 %v4754_v48  ;;  %v5145_v32 = vld [vmem:[#allocation5 + $0x18] sm:$0xff] }
 0x87c   : > { %v7012_v5 = vpop.eup %7011  ;;  %4816 = vst.msk [vmem:[#allocation5 + $0x80] sm:$0xff] %vm1068_vm1, %v4793_v24  ;;  %7025 = vrcp.f32 %v4749_v36 }
 0x87d   : > { %v7014_v31 = vpop.eup %7013  ;;  %v5103_v27 = vmul.f32 %v7012_v5, %v4987_v49 }
 0x87e   : > { %v5101_v37 = vmul.f32 %v7014_v31, %v4986_v0  ;;  %v5184_v18 = vpop.permute.xlu1 %5183  ;;  %v5179_v43 = vpop.permute.xlu0 %5178  ;;  %v4825_v63 = vld [vmem:[#allocation5 + $0x10] sm:$0xff]  ;;  %v4989_v0 = vld [vmem:[#allocation5 + $0x58] sm:$0xff] }
 0x87f   : > { %5131 = vst.msk [vmem:[#allocation5 + $0x38] sm:$0xff] %vm1068_vm1, %v5103_v27  ;;  %7027 = vrcp.f32 %v5184_v18  ;;  %v4824_v46 = vld [vmem:[#allocation5] sm:$0xff] }
 0x880   : > { %v7016_v45 = vpop.eup %7015  ;;  %5130 = vst.msk [vmem:[#allocation5 + $0x28] sm:$0xff] %vm1068_vm1, %v5101_v37  ;;  %7029 = vrcp.f32 %v5179_v43  ;;  %v4988_v37 = vld [vmem:[#allocation5 + $0x48] sm:$0xff] }
 0x881   : > { %v7018_v50 = vpop.eup %7017  ;;  %v5119_v62 = vmul.f32 %v7016_v45, %v4995_v16 }
 0x882   : > { %v5117_v23 = vmul.f32 %v7018_v50, %v4994_v42  ;;  %v5224_v56 = vpop.permute.xlu1 %5223  ;;  %v5219_v22 = vpop.permute.xlu0 %5218  ;;  %v4833_v33 = vld [vmem:[#allocation5 + $0x90] sm:$0xff] }
 0x883   : > { %5139 = vst.msk [vmem:[#allocation5 + $0xb8] sm:$0xff] %vm1068_vm1, %v5119_v62  ;;  %7031 = vrcp.f32 %v5224_v56  ;;  %v4832_v48 = vld [vmem:[#allocation5 + $0x80] sm:$0xff]  ;;  %v4997_v62 = vld [vmem:[#allocation5 + $0xd8] sm:$0xff] }
 0x884   : > { %v7020_v28 = vpop.eup %7019  ;;  %5138 = vst.msk [vmem:[#allocation5 + $0xa8] sm:$0xff] %vm1068_vm1, %v5117_v23  ;;  %7033 = vrcp.f32 %v5219_v22  ;;  %v4996_v22 = vld [vmem:[#allocation5 + $0xc8] sm:$0xff] }
 0x885   : > { %v7022_v54 = vpop.eup %7021  ;;  %v4783_v61 = vmul.f32 %v7020_v28, %v4667_v29 }
 0x886   : > { %v4781_v17 = vmul.f32 %v7022_v54, %v4666_v60  ;;  %v4864_v53 = vpop.permute.xlu1 %4863  ;;  %v4859_v58 = vpop.permute.xlu0 %4858 }
 0x887   : > { %4811 = vst.msk [vmem:[#allocation5 + $0x30] sm:$0xff] %vm1068_vm1, %v4783_v61  ;;  %7035 = vrcp.f32 %v4864_v53  ;;  %v4669_v53 = vld [vmem:[#allocation5 + $0x50] sm:$0xff] }
 0x888   : > { %v7024_v35 = vpop.eup %7023  ;;  %4810 = vst.msk [vmem:[#allocation5 + $0x20] sm:$0xff] %vm1068_vm1, %v4781_v17  ;;  %7037 = vrcp.f32 %v4859_v58 }
 0x889   : > { %v7026_v7 = vpop.eup %7025  ;;  %v4799_v4 = vmul.f32 %v7024_v35, %v4675_v25 }
 0x88a   : > { %v4797_v10 = vmul.f32 %v7026_v7, %v4674_v21  ;;  %v4904_v47 = vpop.permute.xlu1 %4903  ;;  %v4899_v51 = vpop.permute.xlu0 %4898  ;;  %v4668_v7 = vld [vmem:[#allocation5 + $0x40] sm:$0xff] }
 0x88b   : > { %4819 = vst.msk [vmem:[#allocation5 + $0xb0] sm:$0xff] %vm1068_vm1, %v4799_v4  ;;  %7039 = vrcp.f32 %v4904_v47 }
 0x88c   : > { %v7028_v26 = vpop.eup %7027  ;;  %4818 = vst.msk [vmem:[#allocation5 + $0xa0] sm:$0xff] %vm1068_vm1, %v4797_v10  ;;  %7041 = vrcp.f32 %v4899_v51 }
 0x88d   : > { %v7030_v41 = vpop.eup %7029  ;;  %v5259_v1 = vmul.f32 %v7028_v26, %v5145_v32 }
 0x88e   : > { %v5257_v3 = vmul.f32 %v7030_v41, %v5144_v14  ;;  %v5044_v12 = vpop.permute.xlu1 %5043  ;;  %v5039_v39 = vpop.permute.xlu0 %5038  ;;  %v4677_v41 = vld [vmem:[#allocation5 + $0xd0] sm:$0xff] }
 0x88f   : > { %5289 = vst.msk [vmem:[#allocation5 + $0x18] sm:$0xff] %vm2780_vm3, %v5259_v1  ;;  %7043 = vrcp.f32 %v5044_v12 }
 0x890   : > { %v7032_v13 = vpop.eup %7031  ;;  %5288 = vst.msk [vmem:[#allocation5 + $0x8] sm:$0xff] %vm2780_vm3, %v5257_v3  ;;  %7045 = vrcp.f32 %v5039_v39  ;;  %v4676_v3 = vld [vmem:[#allocation5 + $0xc0] sm:$0xff] }
 0x891   : > { %v7034_v40 = vpop.eup %7033  ;;  %v5275_v38 = vmul.f32 %v7032_v13, %v5153_v44 }
 0x892   : > { %v5273_v57 = vmul.f32 %v7034_v40, %v5152_v15  ;;  %v5084_v6 = vpop.permute.xlu1 %5083  ;;  %v5079_v59 = vpop.permute.xlu0 %5078 }
 0x893   : > { %5297 = vst.msk [vmem:[#allocation5 + $0x98] sm:$0xff] %vm2780_vm3, %v5275_v38  ;;  %7047 = vrcp.f32 %v5084_v6 }
 0x894   : > { %v7036_v2 = vpop.eup %7035  ;;  %5296 = vst.msk [vmem:[#allocation5 + $0x88] sm:$0xff] %vm2780_vm3, %v5273_v57  ;;  %7049 = vrcp.f32 %v5079_v59  ;;  %v5147_v57 = vld [vmem:[#allocation5 + $0x38] sm:$0xff] }
 0x895   : > { %v7038_v19 = vpop.eup %7037  ;;  %v4939_v9 = vmul.f32 %v7036_v2, %v4825_v63  ;;  %v5146_v2 = vld [vmem:[#allocation5 + $0x28] sm:$0xff] }
 0x896   : > { %v4937_v52 = vmul.f32 %v7038_v19, %v4824_v46  ;;  %v4724_v11 = vpop.permute.xlu1 %4723  ;;  %v4719_v55 = vpop.permute.xlu0 %4718  ;;  %v5307_v34 = vld [vmem:[#allocation5 + $0x18] sm:$0xff] }
 0x897   : > { %4969 = vst.msk [vmem:[#allocation5 + $0x10] sm:$0xff] %vm2780_vm3, %v4939_v9  ;;  %7051 = vrcp.f32 %v4724_v11  ;;  %v5305_v8 = vld [vmem:[#allocation5 + $0x8] sm:$0xff] }
 0x898   : > { %v7040_v20 = vpop.eup %7039  ;;  %4968 = vst.msk [vmem:[#allocation5] sm:$0xff] %vm2780_vm3, %v4937_v52  ;;  %7053 = vrcp.f32 %v4719_v55  ;;  %v5337_v30 = vpack.c.bf16 %v5307_v34, %v5305_v8  ;;  %v5155_v52 = vld [vmem:[#allocation5 + $0xb8] sm:$0xff]  ;;  %v5154_v34 = vld [vmem:[#allocation5 + $0xa8] sm:$0xff] }
 0x899   : > { %v7042_v24 = vpop.eup %7041  ;;  %v4955_v49 = vmul.f32 %v7040_v20, %v4833_v33 }
 0x89a   : > { %v4953_v36 = vmul.f32 %v7042_v24, %v4832_v48  ;;  %5519 = vmatprep.mubr.bf16.mxu0 %v5337_v30  ;;  %v4764_v5 = vpop.permute.xlu1 %4763  ;;  %v4759_v31 = vpop.permute.xlu0 %4758  ;;  %v5323_v27 = vld [vmem:[#allocation5 + $0x98] sm:$0xff]  ;;  %v4827_v24 = vld [vmem:[#allocation5 + $0x30] sm:$0xff] }
 0x89b   : > { %4977 = vst.msk [vmem:[#allocation5 + $0x90] sm:$0xff] %vm2780_vm3, %v4955_v49  ;;  %7055 = vrcp.f32 %v4764_v5  ;;  %v5321_v16 = vld [vmem:[#allocation5 + $0x88] sm:$0xff] }
 0x89c   : > { %v7044_v18 = vpop.eup %7043  ;;  %4976 = vst.msk [vmem:[#allocation5 + $0x80] sm:$0xff] %vm2780_vm3, %v4953_v36  ;;  %7057 = vrcp.f32 %v4759_v31  ;;  %v5345_v43 = vpack.c.bf16 %v5323_v27, %v5321_v16  ;;  %v4826_v36 = vld [vmem:[#allocation5 + $0x20] sm:$0xff] }
 0x89d   : > { %v7046_v42 = vpop.eup %7045  ;;  %v5107_v45 = vmul.f32 %v7044_v18, %v4989_v0  ;;  %v4835_v18 = vld [vmem:[#allocation5 + $0xb0] sm:$0xff] }
 0x89e   : > { %v5105_v50 = vmul.f32 %v7046_v42, %v4988_v37  ;;  %5551 = vmatprep.mubr.bf16.mxu1 %v5345_v43  ;;  %v5194_v23 = vpop.permute.xlu1 %5193  ;;  %v5189_v29 = vpop.permute.xlu0 %5188  ;;  %v5306_v56 = vld [vmem:[#allocation5 + $0x10] sm:$0xff] }
 0x89f   : > { %5133 = vst.msk [vmem:[#allocation5 + $0x58] sm:$0xff] %vm1068_vm1, %v5107_v45  ;;  %7059 = vrcp.f32 %v5194_v23  ;;  %v5304_v60 = vld [vmem:[#allocation5] sm:$0xff]  ;;  %v4991_v23 = vld [vmem:[#allocation5 + $0x78] sm:$0xff] }
 0x8a0   : > { %v7048_v28 = vpop.eup %7047  ;;  %5132 = vst.msk [vmem:[#allocation5 + $0x48] sm:$0xff] %vm1068_vm1, %v5105_v50  ;;  %7061 = vrcp.f32 %v5189_v29  ;;  %v5336_v54 = vpack.c.bf16 %v5306_v56, %v5304_v60  ;;  %v4834_v50 = vld [vmem:[#allocation5 + $0xa0] sm:$0xff]  ;;  %v4990_v60 = vld [vmem:[#allocation5 + $0x68] sm:$0xff] }
 0x8a1   : > { %v7050_v61 = vpop.eup %7049  ;;  %v5123_v17 = vmul.f32 %v7048_v28, %v4997_v62 }
 0x8a2   : > { %v5121_v25 = vmul.f32 %v7050_v61, %v4996_v22  ;;  %5520 = vmatmul.mubr.bf16.vlgmr.msra.gmra.mxu0 %v5336_v54  ;;  %v5234_v58 = vpop.permute.xlu1 %5233  ;;  %v5229_v21 = vpop.permute.xlu0 %5228  ;;  %v5322_v35 = vld [vmem:[#allocation5 + $0x90] sm:$0xff] }
 0x8a3   : > { %5141 = vst.msk [vmem:[#allocation5 + $0xd8] sm:$0xff] %vm1068_vm1, %v5123_v17  ;;  %7063 = vrcp.f32 %v5234_v58  ;;  %v5320_v4 = vld [vmem:[#allocation5 + $0x80] sm:$0xff]  ;;  %v4999_v58 = vld [vmem:[#allocation5 + $0xf8] sm:$0xff] }
 0x8a4   : > { %v7052_v10 = vpop.eup %7051  ;;  %5140 = vst.msk [vmem:[#allocation5 + $0xc8] sm:$0xff] %vm1068_vm1, %v5121_v25  ;;  %7065 = vrcp.f32 %v5229_v21  ;;  %v5344_v47 = vpack.c.bf16 %v5322_v35, %v5320_v4  ;;  %v4998_v4 = vld [vmem:[#allocation5 + $0xe8] sm:$0xff] }
 0x8a5   : > { %v7054_v51 = vpop.eup %7053  ;;  %v4787_v26 = vmul.f32 %v7052_v10, %v4669_v53 }
 0x8a6   : > { %v4785_v32 = vmul.f32 %v7054_v51, %v4668_v7  ;;  %5552 = vmatmul.mubr.bf16.vlgmr.msra.gmra.mxu1 %v5344_v47  ;;  %v4874_v1 = vpop.permute.xlu1 %4873  ;;  %v4869_v14 = vpop.permute.xlu0 %4868 }
 0x8a7   : > { %4813 = vst.msk [vmem:[#allocation5 + $0x50] sm:$0xff] %vm1068_vm1, %v4787_v26  ;;  %7067 = vrcp.f32 %v4874_v1  ;;  %v4671_v1 = vld [vmem:[#allocation5 + $0x70] sm:$0xff] }
 0x8a8   : > { %v7056_v12 = vpop.eup %7055  ;;  %4812 = vst.msk [vmem:[#allocation5 + $0x40] sm:$0xff] %vm1068_vm1, %v4785_v32  ;;  %7069 = vrcp.f32 %v4869_v14 }
 0x8a9   : > { %v7058_v39 = vpop.eup %7057  ;;  %v4803_v13 = vmul.f32 %v7056_v12, %v4677_v41 }
 0x8aa   : > { %v4801_v44 = vmul.f32 %v7058_v39, %v4676_v3  ;;  %v4914_v40 = vpop.permute.xlu1 %4913  ;;  %v4909_v38 = vpop.permute.xlu0 %4908  ;;  %v4670_v39 = vld [vmem:[#allocation5 + $0x60] sm:$0xff] }
 0x8ab   : > { %4821 = vst.msk [vmem:[#allocation5 + $0xd0] sm:$0xff] %vm1068_vm1, %v4803_v13  ;;  %7071 = vrcp.f32 %v4914_v40 }
 0x8ac   : > { %v7060_v15 = vpop.eup %7059  ;;  %4820 = vst.msk [vmem:[#allocation5 + $0xc0] sm:$0xff] %vm1068_vm1, %v4801_v44  ;;  %7073 = vrcp.f32 %v4909_v38 }
 0x8ad   : > { %v7062_v6 = vpop.eup %7061  ;;  %v5263_v59 = vmul.f32 %v7060_v15, %v5147_v57 }
 0x8ae   : > { %v5261_v63 = vmul.f32 %v7062_v6, %v5146_v2  ;;  %v5054_v19 = vpop.permute.xlu1 %5053  ;;  %v5049_v9 = vpop.permute.xlu0 %5048  ;;  %v4679_v6 = vld [vmem:[#allocation5 + $0xf0] sm:$0xff] }
 0x8af   : > { %5291 = vst.msk [vmem:[#allocation5 + $0x38] sm:$0xff] %vm2780_vm3, %v5263_v59  ;;  %7075 = vrcp.f32 %v5054_v19 }
 0x8b0   : > { %v7064_v46 = vpop.eup %7063  ;;  %5290 = vst.msk [vmem:[#allocation5 + $0x28] sm:$0xff] %vm2780_vm3, %v5261_v63  ;;  %7077 = vrcp.f32 %v5049_v9  ;;  %v4678_v63 = vld [vmem:[#allocation5 + $0xe0] sm:$0xff] }
 0x8b1   : > { %v7066_v11 = vpop.eup %7065  ;;  %v5279_v55 = vmul.f32 %v7064_v46, %v5155_v52 }
 0x8b2   : > { %v5277_v8 = vmul.f32 %v7066_v11, %v5154_v34  ;;  %v5094_v20 = vpop.permute.xlu1 %5093  ;;  %v5089_v33 = vpop.permute.xlu0 %5088 }
 0x8b3   : > { %5299 = vst.msk [vmem:[#allocation5 + $0xb8] sm:$0xff] %vm2780_vm3, %v5279_v55  ;;  %7079 = vrcp.f32 %v5094_v20 }
 0x8b4   : > { %v7068_v30 = vpop.eup %7067  ;;  %5298 = vst.msk [vmem:[#allocation5 + $0xa8] sm:$0xff] %vm2780_vm3, %v5277_v8  ;;  %7081 = vrcp.f32 %v5089_v33  ;;  %v5149_v8 = vld [vmem:[#allocation5 + $0x58] sm:$0xff] }
 0x8b5   : > { %v7070_v49 = vpop.eup %7069  ;;  %v4943_v48 = vmul.f32 %v7068_v30, %v4827_v24  ;;  %v5148_v30 = vld [vmem:[#allocation5 + $0x48] sm:$0xff] }
 0x8b6   : > { %v4941_v0 = vmul.f32 %v7070_v49, %v4826_v36  ;;  %v4734_v5 = vpop.permute.xlu1 %4733  ;;  %v4729_v31 = vpop.permute.xlu0 %4728  ;;  %v5311_v27 = vld [vmem:[#allocation5 + $0x38] sm:$0xff] }
 0x8b7   : > { %4971 = vst.msk [vmem:[#allocation5 + $0x30] sm:$0xff] %vm2780_vm3, %v4943_v48  ;;  %7083 = vrcp.f32 %v4734_v5  ;;  %v5309_v37 = vld [vmem:[#allocation5 + $0x28] sm:$0xff] }
 0x8b8   : > { %v7072_v16 = vpop.eup %7071  ;;  %4970 = vst.msk [vmem:[#allocation5 + $0x20] sm:$0xff] %vm2780_vm3, %v4941_v0  ;;  %7085 = vrcp.f32 %v4729_v31  ;;  %v5339_v43 = vpack.c.bf16 %v5311_v27, %v5309_v37  ;;  %v5157_v0 = vld [vmem:[#allocation5 + $0xd8] sm:$0xff]  ;;  %v5156_v27 = vld [vmem:[#allocation5 + $0xc8] sm:$0xff] }
 0x8b9   : > { %v7074_v42 = vpop.eup %7073  ;;  %v4959_v45 = vmul.f32 %v7072_v16, %v4835_v18 }
 0x8ba   : > { %v4957_v62 = vmul.f32 %v7074_v42, %v4834_v50  ;;  %5527 = vmatprep.mubr.bf16.mxu0 %v5339_v43  ;;  %v4774_v29 = vpop.permute.xlu1 %4773  ;;  %v4769_v56 = vpop.permute.xlu0 %4768  ;;  %v5327_v22 = vld [vmem:[#allocation5 + $0xb8] sm:$0xff]  ;;  %v4829_v42 = vld [vmem:[#allocation5 + $0x50] sm:$0xff] }
 0x8bb   : > { %4979 = vst.msk [vmem:[#allocation5 + $0xb0] sm:$0xff] %vm2780_vm3, %v4959_v45  ;;  %7087 = vrcp.f32 %v4774_v29  ;;  %v5325_v28 = vld [vmem:[#allocation5 + $0xa8] sm:$0xff] }
 0x8bc   : > { %v7076_v54 = vpop.eup %7075  ;;  %4978 = vst.msk [vmem:[#allocation5 + $0xa0] sm:$0xff] %vm2780_vm3, %v4957_v62  ;;  %7089 = vrcp.f32 %v4769_v56  ;;  %v5347_v61 = vpack.c.bf16 %v5327_v22, %v5325_v28  ;;  %v4828_v62 = vld [vmem:[#allocation5 + $0x40] sm:$0xff] }
 0x8bd   : > { %v7078_v17 = vpop.eup %7077  ;;  %v5111_v25 = vmul.f32 %v7076_v54, %v4991_v23  ;;  %v4837_v54 = vld [vmem:[#allocation5 + $0xd0] sm:$0xff] }
 0x8be   : > { %v5109_v53 = vmul.f32 %v7078_v17, %v4990_v60  ;;  %5559 = vmatprep.mubr.bf16.mxu1 %v5347_v61  ;;  %v5204_v21 = vpop.permute.xlu1 %5203  ;;  %v5199_v35 = vpop.permute.xlu0 %5198  ;;  %v5310_v7 = vld [vmem:[#allocation5 + $0x30] sm:$0xff] }
 0x8bf   : > { %5135 = vst.msk [vmem:[#allocation5 + $0x78] sm:$0xff] %vm1068_vm1, %v5111_v25  ;;  %7091 = vrcp.f32 %v5204_v21  ;;  %v5308_v10 = vld [vmem:[#allocation5 + $0x20] sm:$0xff] }
 0x8c0   : > { %v7080_v47 = vpop.eup %7079  ;;  %5134 = vst.msk [vmem:[#allocation5 + $0x68] sm:$0xff] %vm1068_vm1, %v5109_v53  ;;  %7093 = vrcp.f32 %v5199_v35  ;;  %v5338_v51 = vpack.c.bf16 %v5310_v7, %v5308_v10  ;;  %v4836_v53 = vld [vmem:[#allocation5 + $0xc0] sm:$0xff] }
 0x8c1   : > { %v7082_v26 = vpop.eup %7081  ;;  %v5127_v32 = vmul.f32 %v7080_v47, %v4999_v58 }
 0x8c2   : > { %v5125_v41 = vmul.f32 %v7082_v26, %v4998_v4  ;;  %5528 = vmatmul.mubr.bf16.gmra.mxu0 %v5338_v51  ;;  %v5244_v14 = vpop.permute.xlu1 %5243  ;;  %v5239_v3 = vpop.permute.xlu0 %5238  ;;  %v5326_v12 = vld [vmem:[#allocation5 + $0xb0] sm:$0xff] }
 0x8c3   : > { %5143 = vst.msk [vmem:[#allocation5 + $0xf8] sm:$0xff] %vm1068_vm1, %v5127_v32  ;;  %7095 = vrcp.f32 %v5244_v14  ;;  %v5324_v13 = vld [vmem:[#allocation5 + $0xa0] sm:$0xff] }
 0x8c4   : > { %v7084_v44 = vpop.eup %7083  ;;  %5142 = vst.msk [vmem:[#allocation5 + $0xe8] sm:$0xff] %vm1068_vm1, %v5125_v41  ;;  %7097 = vrcp.f32 %v5239_v3  ;;  %v5346_v40 = vpack.c.bf16 %v5326_v12, %v5324_v13 }
 0x8c5   : > { %v7086_v38 = vpop.eup %7085  ;;  %v4791_v15 = vmul.f32 %v7084_v44, %v4671_v1 }
 0x8c6   : > { %v4789_v57 = vmul.f32 %v7086_v38, %v4670_v39  ;;  %5560 = vmatmul.mubr.bf16.gmra.mxu1 %v5346_v40  ;;  %v4884_v59 = vpop.permute.xlu1 %4883  ;;  %v4879_v2 = vpop.permute.xlu0 %4878  ;;  %v5151_v47 = vld [vmem:[#allocation5 + $0x78] sm:$0xff] }
 0x8c7   : > { %4815 = vst.msk [vmem:[#allocation5 + $0x70] sm:$0xff] %vm1068_vm1, %v4791_v15  ;;  %7099 = vrcp.f32 %v4884_v59  ;;  %v5150_v41 = vld [vmem:[#allocation5 + $0x68] sm:$0xff] }
 0x8c8   : > { %v7088_v19 = vpop.eup %7087  ;;  %4814 = vst.msk [vmem:[#allocation5 + $0x60] sm:$0xff] %vm1068_vm1, %v4789_v57  ;;  %7101 = vrcp.f32 %v4879_v2 }
 0x8c9   : > { %v7090_v9 = vpop.eup %7089  ;;  %v4807_v46 = vmul.f32 %v7088_v19, %v4679_v6 }
 0x8ca   : > { %v4805_v52 = vmul.f32 %v7090_v9, %v4678_v63  ;;  %v4924_v11 = vpop.permute.xlu1 %4923  ;;  %v4919_v55 = vpop.permute.xlu0 %4918  ;;  %v5159_v39 = vld [vmem:[#allocation5 + $0xf8] sm:$0xff] }
 0x8cb   : > { %4823 = vst.msk [vmem:[#allocation5 + $0xf0] sm:$0xff] %vm1068_vm1, %v4807_v46  ;;  %7103 = vrcp.f32 %v4924_v11  ;;  %v5158_v38 = vld [vmem:[#allocation5 + $0xe8] sm:$0xff] }
 0x8cc   : > { %v7092_v34 = vpop.eup %7091  ;;  %4822 = vst.msk [vmem:[#allocation5 + $0xe0] sm:$0xff] %vm1068_vm1, %v4805_v52  ;;  %7105 = vrcp.f32 %v4919_v55 }
 0x8cd   : > { %v7094_v20 = vpop.eup %7093  ;;  %v5267_v33 = vmul.f32 %v7092_v34, %v5149_v8 }
 0x8ce   : > { %v5265_v24 = vmul.f32 %v7094_v20, %v5148_v30  ;;  %v5214_v49 = vpop.permute.xlu1 %5213  ;;  %v5209_v48 = vpop.permute.xlu0 %5208  ;;  %v4831_v2 = vld [vmem:[#allocation5 + $0x70] sm:$0xff] }
 0x8cf   : > { %5293 = vst.msk [vmem:[#allocation5 + $0x58] sm:$0xff] %vm2780_vm3, %v5267_v33  ;;  %7107 = vrcp.f32 %v5214_v49  ;;  %v4830_v46 = vld [vmem:[#allocation5 + $0x60] sm:$0xff] }
 0x8d0   : > { %v7096_v36 = vpop.eup %7095  ;;  %5292 = vst.msk [vmem:[#allocation5 + $0x48] sm:$0xff] %vm2780_vm3, %v5265_v24  ;;  %7109 = vrcp.f32 %v5209_v48 }
 0x8d1   : > { %v7098_v5 = vpop.eup %7097  ;;  %v5283_v31 = vmul.f32 %v7096_v36, %v5157_v0 }
 0x8d2   : > { %v5281_v37 = vmul.f32 %v7098_v5, %v5156_v27  ;;  %v5254_v16 = vpop.permute.xlu1 %5253  ;;  %v5249_v18 = vpop.permute.xlu0 %5248  ;;  %v4839_v8 = vld [vmem:[#allocation5 + $0xf0] sm:$0xff] }
 0x8d3   : > { %5301 = vst.msk [vmem:[#allocation5 + $0xd8] sm:$0xff] %vm2780_vm3, %v5283_v31  ;;  %7111 = vrcp.f32 %v5254_v16  ;;  %v4838_v24 = vld [vmem:[#allocation5 + $0xe0] sm:$0xff] }
 0x8d4   : > { %v7100_v43 = vpop.eup %7099  ;;  %5300 = vst.msk [vmem:[#allocation5 + $0xc8] sm:$0xff] %vm2780_vm3, %v5281_v37  ;;  %7113 = vrcp.f32 %v5249_v18 }
 0x8d5   : > { %v7102_v45 = vpop.eup %7101  ;;  %v4947_v50 = vmul.f32 %v7100_v43, %v4829_v42  ;;  %v9866_v42 = vld [vmem:[%s10577_s21] ss:$0 sm:$0xff] }
 0x8d6   : > { %v4945_v23 = vmul.f32 %v7102_v45, %v4828_v62  ;;  %v4894_v29 = vpop.permute.xlu1 %4893  ;;  %v4889_v56 = vpop.permute.xlu0 %4888  ;;  %v5315_v22 = vld [vmem:[#allocation5 + $0x58] sm:$0xff] }
 0x8d7   : > { %4973 = vst.msk [vmem:[#allocation5 + $0x50] sm:$0xff] %vm2780_vm3, %v4947_v50  ;;  %7115 = vrcp.f32 %v4894_v29  ;;  %v5313_v60 = vld [vmem:[#allocation5 + $0x48] sm:$0xff] }
 0x8d8   : > { %v7104_v28 = vpop.eup %7103  ;;  %4972 = vst.msk [vmem:[#allocation5 + $0x40] sm:$0xff] %vm2780_vm3, %v4945_v23  ;;  %7117 = vrcp.f32 %v4889_v56  ;;  %v5341_v61 = vpack.c.bf16 %v5315_v22, %v5313_v60 }
 0x8d9   : > { %v7106_v17 = vpop.eup %7105  ;;  %v4963_v25 = vmul.f32 %v7104_v28, %v4837_v54 }
 0x8da   : > { %v4961_v58 = vmul.f32 %v7106_v17, %v4836_v53  ;;  %5535 = vmatprep.mubr.bf16.mxu0 %v5341_v61  ;;  %v4934_v21 = vpop.permute.xlu1 %4933  ;;  %v4929_v35 = vpop.permute.xlu0 %4928  ;;  %v5331_v7 = vld [vmem:[#allocation5 + $0xd8] sm:$0xff] }
 0x8db   : > { %4981 = vst.msk [vmem:[#allocation5 + $0xd0] sm:$0xff] %vm2780_vm3, %v4963_v25  ;;  %7119 = vrcp.f32 %v4934_v21  ;;  %v5329_v4 = vld [vmem:[#allocation5 + $0xc8] sm:$0xff] }
 0x8dc   : > { %v7108_v10 = vpop.eup %7107  ;;  %4980 = vst.msk [vmem:[#allocation5 + $0xc0] sm:$0xff] %vm2780_vm3, %v4961_v58  ;;  %7121 = vrcp.f32 %v4929_v35  ;;  %v5349_v51 = vpack.c.bf16 %v5331_v7, %v5329_v4 }
 0x8dd   : > { %v7110_v26 = vpop.eup %7109  ;;  %v5271_v32 = vmul.f32 %v7108_v10, %v5151_v47 }
 0x8de   : > { %v5269_v1 = vmul.f32 %v7110_v26, %v5150_v41  ;;  %5567 = vmatprep.mubr.bf16.mxu1 %v5349_v51  ;;  %v5314_v14 = vld [vmem:[#allocation5 + $0x50] sm:$0xff] }
 0x8df   : > { %5295 = vst.msk [vmem:[#allocation5 + $0x78] sm:$0xff] %vm2780_vm3, %v5271_v32  ;;  %v5312_v3 = vld [vmem:[#allocation5 + $0x40] sm:$0xff] }
 0x8e0   : > { %v7112_v12 = vpop.eup %7111  ;;  %5294 = vst.msk [vmem:[#allocation5 + $0x68] sm:$0xff] %vm2780_vm3, %v5269_v1  ;;  %v5340_v13 = vpack.c.bf16 %v5314_v14, %v5312_v3 }
 0x8e1   : > { %v7114_v44 = vpop.eup %7113  ;;  %v5287_v40 = vmul.f32 %v7112_v12, %v5159_v39 }
 0x8e2   : > { %v5285_v15 = vmul.f32 %v7114_v44, %v5158_v38  ;;  %5536 = vmatmul.mubr.bf16.gmra.mxu0 %v5340_v13  ;;  %v5330_v57 = vld [vmem:[#allocation5 + $0xd0] sm:$0xff] }
 0x8e3   : > { %5303 = vst.msk [vmem:[#allocation5 + $0xf8] sm:$0xff] %vm2780_vm3, %v5287_v40  ;;  %v5328_v6 = vld [vmem:[#allocation5 + $0xc0] sm:$0xff] }
 0x8e4   : > { %v7116_v59 = vpop.eup %7115  ;;  %5302 = vst.msk [vmem:[#allocation5 + $0xe8] sm:$0xff] %vm2780_vm3, %v5285_v15  ;;  %v5348_v63 = vpack.c.bf16 %v5330_v57, %v5328_v6 }
 0x8e5   : > { %v7118_v19 = vpop.eup %7117  ;;  %v4951_v9 = vmul.f32 %v7116_v59, %v4831_v2 }
 0x8e6   : > { %v4949_v52 = vmul.f32 %v7118_v19, %v4830_v46  ;;  %5568 = vmatmul.mubr.bf16.gmra.mxu1 %v5348_v63  ;;  %v5319_v11 = vld [vmem:[#allocation5 + $0x78] sm:$0xff] }
 0x8e7   : > { %4975 = vst.msk [vmem:[#allocation5 + $0x70] sm:$0xff] %vm2780_vm3, %v4951_v9  ;;  %v5317_v55 = vld [vmem:[#allocation5 + $0x68] sm:$0xff] }
 0x8e8   : > { %v7120_v34 = vpop.eup %7119  ;;  %4974 = vst.msk [vmem:[#allocation5 + $0x60] sm:$0xff] %vm2780_vm3, %v4949_v52  ;;  %v5343_v20 = vpack.c.bf16 %v5319_v11, %v5317_v55 }
 0x8e9   : > { %v7122_v33 = vpop.eup %7121  ;;  %v4967_v30 = vmul.f32 %v7120_v34, %v4839_v8 }
 0x8ea   : > { %v4965_v49 = vmul.f32 %v7122_v33, %v4838_v24  ;;  %5543 = vmatprep.mubr.bf16.mxu0 %v5343_v20  ;;  %v5335_v48 = vld [vmem:[#allocation5 + $0xf8] sm:$0xff] }
 0x8eb   : > { %4983 = vst.msk [vmem:[#allocation5 + $0xf0] sm:$0xff] %vm2780_vm3, %v4967_v30  ;;  %v5333_v36 = vld [vmem:[#allocation5 + $0xe8] sm:$0xff] }
 0x8ec   : > { %4982 = vst.msk [vmem:[#allocation5 + $0xe0] sm:$0xff] %vm2780_vm3, %v4965_v49  ;;  %v5351_v0 = vpack.c.bf16 %v5335_v48, %v5333_v36 }
 0x8ee   : > { %5575 = vmatprep.mubr.bf16.mxu1 %v5351_v0  ;;  %v5318_v5 = vld [vmem:[#allocation5 + $0x70] sm:$0xff] }
 0x8ef   : > { %v5316_v31 = vld [vmem:[#allocation5 + $0x60] sm:$0xff] }
 0x8f0   : > { %v5342_v27 = vpack.c.bf16 %v5318_v5, %v5316_v31 }
 0x8f2   : > { %5544 = vmatmul.mubr.bf16.gmra.mxu0 %v5342_v27  ;;  %v5334_v37 = vld [vmem:[#allocation5 + $0xf0] sm:$0xff] }
 0x8f3   : > { %v5332_v16 = vld [vmem:[#allocation5 + $0xe0] sm:$0xff] }
 0x8f4   : > { %v5350_v18 = vpack.c.bf16 %v5334_v37, %v5332_v16 }
 0x8f6   : > { %5576 = vmatmul.mubr.bf16.gmra.mxu1 %v5350_v18 }
 0x962   : > { %v6126_v43 = vpop.f32.mrf.mxu0 }
 0x964   : > { %v6127_v45 = vpop.f32.mrf.mxu0 }
 0x965   : > { %v6128_v50 = vadd.f32 %v6127_v45, %v6126_v43 }
 0x966   : > { %v6129_v62 = vpop.f32.mrf.mxu0  ;;  %v6150_v23 = vpop.f32.mrf.mxu1 }
 0x967   : > { %v5522_v29 = vadd.f32 %v6128_v50, %v9866_v42 }
 0x968   : > { %v6130_v56 = vpop.f32.mrf.mxu0  ;;  %v6151_v22 = vpop.f32.mrf.mxu1 }
 0x969   : > { %5584 = vst [vmem:[%s7744_s17] sm:$0xff] %v5522_v29  ;;  %v6131_v60 = vadd.f32 %v6130_v56, %v6129_v62  ;;  %v6152_v28 = vadd.f32 %v6151_v22, %v6150_v23 }
 0x96a   : > { %v6153_v54 = vpop.f32.mrf.mxu1 }
 0x96b   : > { %v5525_v61 = vadd.f32 %v6131_v60, %v9866_v42  ;;  %v5554_v17 = vadd.f32 %v6152_v28, %v9866_v42 }
 0x96c   : > { %v6154_v25 = vpop.f32.mrf.mxu1 }
 0x96d   : > { %5585 = vst [vmem:[%s7744_s17 + $0x8] sm:$0xff] %v5525_v61  ;;  %5592 = vst [vmem:[%s7744_s17 + $0x40] sm:$0xff] %v5554_v17  ;;  %v6155_v53 = vadd.f32 %v6154_v25, %v6153_v54 }
 0x96f   : > { %v5557_v58 = vadd.f32 %v6155_v53, %v9866_v42 }
 0x971   : > { %5593 = vst [vmem:[%s7744_s17 + $0x48] sm:$0xff] %v5557_v58 }
 0x982   : > { %v6132_v21 = vpop.f32.mrf.mxu0 }
 0x984   : > { %v6133_v35 = vpop.f32.mrf.mxu0 }
 0x985   : > { %v6134_v7 = vadd.f32 %v6133_v35, %v6132_v21 }
 0x986   : > { %v6135_v4 = vpop.f32.mrf.mxu0  ;;  %v6156_v10 = vpop.f32.mrf.mxu1 }
 0x987   : > { %v5530_v47 = vadd.f32 %v6134_v7, %v9866_v42 }
 0x988   : > { %v6136_v51 = vpop.f32.mrf.mxu0  ;;  %v6157_v26 = vpop.f32.mrf.mxu1 }
 0x989   : > { %5586 = vst [vmem:[%s7744_s17 + $0x10] sm:$0xff] %v5530_v47  ;;  %v6137_v32 = vadd.f32 %v6136_v51, %v6135_v4  ;;  %v6158_v41 = vadd.f32 %v6157_v26, %v6156_v10 }
 0x98a   : > { %v6159_v1 = vpop.f32.mrf.mxu1 }
 0x98b   : > { %v5533_v14 = vadd.f32 %v6137_v32, %v9866_v42  ;;  %v5562_v3 = vadd.f32 %v6158_v41, %v9866_v42 }
 0x98c   : > { %v6160_v12 = vpop.f32.mrf.mxu1 }
 0x98d   : > { %5587 = vst [vmem:[%s7744_s17 + $0x18] sm:$0xff] %v5533_v14  ;;  %5594 = vst [vmem:[%s7744_s17 + $0x50] sm:$0xff] %v5562_v3  ;;  %v6161_v39 = vadd.f32 %v6160_v12, %v6159_v1 }
 0x98f   : > { %v5565_v13 = vadd.f32 %v6161_v39, %v9866_v42 }
 0x991   : > { %5595 = vst [vmem:[%s7744_s17 + $0x58] sm:$0xff] %v5565_v13 }
 0x9a2   : > { %v6138_v44 = vpop.f32.mrf.mxu0 }
 0x9a4   : > { %v6139_v40 = vpop.f32.mrf.mxu0 }
 0x9a5   : > { %v6140_v38 = vadd.f32 %v6139_v40, %v6138_v44 }
 0x9a6   : > { %v6141_v15 = vpop.f32.mrf.mxu0  ;;  %v6162_v57 = vpop.f32.mrf.mxu1 }
 0x9a7   : > { %v5538_v6 = vadd.f32 %v6140_v38, %v9866_v42 }
 0x9a8   : > { %v6142_v59 = vpop.f32.mrf.mxu0  ;;  %v6163_v2 = vpop.f32.mrf.mxu1 }
 0x9a9   : > { %5588 = vst [vmem:[%s7744_s17 + $0x20] sm:$0xff] %v5538_v6  ;;  %v6143_v63 = vadd.f32 %v6142_v59, %v6141_v15  ;;  %v6164_v19 = vadd.f32 %v6163_v2, %v6162_v57 }
 0x9aa   : > { %v6165_v9 = vpop.f32.mrf.mxu1 }
 0x9ab   : > { %v5541_v46 = vadd.f32 %v6143_v63, %v9866_v42  ;;  %v5570_v52 = vadd.f32 %v6164_v19, %v9866_v42 }
 0x9ac   : > { %v6166_v11 = vpop.f32.mrf.mxu1 }
 0x9ad   : > { %5589 = vst [vmem:[%s7744_s17 + $0x28] sm:$0xff] %v5541_v46  ;;  %5596 = vst [vmem:[%s7744_s17 + $0x60] sm:$0xff] %v5570_v52  ;;  %v6167_v55 = vadd.f32 %v6166_v11, %v6165_v9 }
 0x9af   : > { %v5573_v34 = vadd.f32 %v6167_v55, %v9866_v42 }
 0x9b1   : > { %5597 = vst [vmem:[%s7744_s17 + $0x68] sm:$0xff] %v5573_v34 }
 0x9b2   : > { %v6144_v8 = vpop.f32.mrf.mxu0 }
 0x9b4   : > { %v6145_v20 = vpop.f32.mrf.mxu0 }
 0x9b5   : > { %v6146_v33 = vadd.f32 %v6145_v20, %v6144_v8 }
 0x9b6   : > { %v6147_v30 = vpop.f32.mrf.mxu0  ;;  %v6168_v24 = vpop.f32.mrf.mxu1 }
 0x9b7   : > { %v5546_v49 = vadd.f32 %v6146_v33, %v9866_v42 }
 0x9b8   : > { %v6148_v48 = vpop.f32.mrf.mxu0  ;;  %v6169_v36 = vpop.f32.mrf.mxu1 }
 0x9b9   : > { %5590 = vst [vmem:[%s7744_s17 + $0x30] sm:$0xff] %v5546_v49  ;;  %v6149_v0 = vadd.f32 %v6148_v48, %v6147_v30  ;;  %v6170_v5 = vadd.f32 %v6169_v36, %v6168_v24 }
 0x9ba   : > { %v6171_v31 = vpop.f32.mrf.mxu1 }
 0x9bb   : > { %v5549_v27 = vadd.f32 %v6149_v0, %v9866_v42  ;;  %v5578_v37 = vadd.f32 %v6170_v5, %v9866_v42 }
 0x9bc   : > { %v6172_v16 = vpop.f32.mrf.mxu1 }
 0x9bd   : > { %5591 = vst [vmem:[%s7744_s17 + $0x38] sm:$0xff] %v5549_v27  ;;  %5598 = vst [vmem:[%s7744_s17 + $0x70] sm:$0xff] %v5578_v37  ;;  %v6173_v18 = vadd.f32 %v6172_v16, %v6171_v31 }
 0x9bf   : > { %v5581_v43 = vadd.f32 %v6173_v18, %v9866_v42 }
 0x9c1   : > { %5599 = vst [vmem:[%s7744_s17 + $0x78] sm:$0xff] %v5581_v43 }
 0x9c2 PF: > { %s10578_s16 = sld [smem:[#allocation24_spill]]  ;;  %s5616_s24 = sshll.u32 %s7744_s17, 4  ;;  %s9903_s24 = int_to_ptr.vmem [resolvable:$true] %s5616_s24 }
 0x9c3   : > { %s10579_s14 = sld [smem:[#allocation25_spill]]  ;;  %s5601_s25 = scalar_lea.sflag [#allocation8], %s7719_s18 }
 0x9c4   : > { %s10581_s7 = sld [smem:[#allocation153_spill]]  ;;  %s7259_s5 = scalar_lea.vmem %s9903_s24, 2048 }
 0x9c5   : > { %p7260_p13 = scmp.ne.s32.totalorder %s9903_s24, %s7259_s5  ;;  %s7420_s12 = smov [#allocation15]  }
 0x9c6   : > { %s7263_s17 = sshll.u32 %s7420_s12, 4  ;;  %s7264_s17 = int_to_ptr.vmem [resolvable:$false] %s7263_s17 }
 0x9c7   : > { %p7261_p6 = pnand %p7260_p13, %p7650_p2  ;;  %s7265_s22 = scalar_lea.vmem %s7264_s17, 4096 }
 0x9c8   : > { %s5976_s11 = sshll.u32 %s10578_s16, 4  ;;  %p7266_p0 = scmp.lt.s32.totalorder %s9903_s24, %s7264_s17 }
 0x9c9   : > { %s5977_s10 = sshll.u32 %s10579_s14, 5  ;;  %p7262_p7 = pneg %p7261_p6 }
 0x9ca   : > { %s5613_s3 = sadd.s32 %s5977_s10, %s5976_s11  ;;  %s10582_s1 = smov %s10581_s7 }
 0x9cb   : > { %s5978_s4 = sshll.u32 %s5613_s3, 7  ;;  %p7267_p11 = scmp.lt.s32.totalorder %s7265_s22, %s7259_s5 }
 0x9cc   : > { %s9908_s27 = scalar_lea.hbm %s10581_s7, %s5978_s4 }
 0x9cd   : > { %p7268_p9 = por %p7267_p11, %p7266_p0 }
 0x9cf   : > { %p7269_p12 = pnand %p7268_p9, %p7262_p7 }
 0x9d1   : > { %7272 = shalt.err (!%p7269_p12)
}
 0x9d2   : > { %s7273_s21 = scalar_lea.hbm %s9908_s27, 2048  ;;  %s7277_s11 = scalar_lea.hbm %s10582_s1, 8192 }
 0x9d3   : > { %p7274_p8 = scmp.ne.s32.totalorder %s9908_s27, %s7273_s21  ;;  %p7278_p4 = scmp.lt.s32.totalorder %s9908_s27, %s10582_s1 }
 0x9d4   : > { %p7279_p3 = scmp.lt.s32.totalorder %s7277_s11, %s7273_s21 }
 0x9d5   : > { %p7275_p10 = pnand %p7274_p8, %p7650_p2 }
 0x9d6   : > { %p7280_p1 = por %p7279_p3, %p7278_p4 }
 0x9d7   : > { %p7276_p5 = pneg %p7275_p10 }
 0x9d9   : > { %p7281_p13 = pnand %p7280_p1, %p7276_p5 }
 0x9db   : > { %7284 = shalt.err (!%p7281_p13)
}
 0x9dc   : > { %s7421_s4 = smov 128   ;;  %s7422_s28 = smov 8  }
 0x9dd   : > { %6460 = dma.vmem_to_hbm [thread:$0]  (%p7650_p2), %s9903_s24, 2048, %s9908_s27, %s5601_s25, %s7421_s4, %s7421_s4, %s7422_s28  }
 0x9de PF: > { %s10583_s6 = sld [smem:[#allocation21_spill]]  ;;  %p6488_p6 = scmp.ge.s32.totalorder %s7403_s9, 2 }
 0x9df   : > { %s10584_s7 = sld [smem:[#allocation30_spill]] }
 0x9e4   : > { %s5631_s5 = sand.u32 1, %s10583_s6  }
 0x9e5   : > { %p10585_p7 = scmp.ne.s32.totalorder %s10584_s7, 0  ;;  %s5632_s12 = scalar_lea.sflag [#allocation8], %s5631_s5 }
 0x9e7   : > { %p6480_p0 = pnand %p6488_p6, %p10585_p7 }
 0x9e9   : > { %p6481_p11 = pneg %p6480_p0 }
 0x9eb   : > { %7350 = dma.done.wait (%p6481_p11), %s5632_s12, 2048  }
 0x9ec   : > { %7352 = vsyncadd (%p6481_p11), %s5632_s12, 4294965248  ;;  %s26_s9 = sadd.s32 1, %s7403_s9   ;;  %s10587_s21 = sld [smem:[#allocation20_spill]] }
 0x9ed   : > { %p9938_p9 = scmp.ge.s32.totalorder %s26_s9, 10   ;;  %s10588_s24 = sld [smem:[#allocation22_spill]] }
 0x9ee   : > { %s10589_s28 = sld [smem:[#allocation26_spill]]  ;;  %s10591_s22 = smov %s7363_s23 }
 0x9ef   : > { %s10590_s7 = sld [smem:[#allocation34_spill]]  ;;  %s10592_s23 = smov %s7681_s20 }
 0x9f0   : > { %s10593_s25 = smov %s7375_s26  ;;  %s10594_s26 = smov %s7676_s15 }
 0x9f1   : > { %s10595_s27 = smov %s7391_s30  ;;  %s10596_s29 = smov %s7399_s8 }
 0x9f2   : > { %s10597_s30 = smov %s10600_s19  ;;  %s10598_s8 = smov %s10608_s13 }
 0x9f3   :  { %25 = sbr.rel (!%p9938_p9) target bundleno = 19 (0x13), region = 135 }
 0x9f8   :  { %5637 = vsyncpa [#allocation7], 1 }
 0x9f9   :  { %5639 = vsyncpa [#allocation7 + $0x1], 1 }
 0x9fa   :  { %5640 = vsyncpa [#allocation10], 1 }
 0x9fb   :  { %5642 = vsyncpa [#allocation10 + $0x1], 1 }
 0x9fc   :  { %5643 = vsyncpa [#allocation13], 1 }
 0x9fd   :  { %5644 = vsyncpa [#allocation8], 1 }
 0x9fe   :  { %5646 = vsyncpa [#allocation8 + $0x1], 1 }

</bundles_post_ra>
